<compile_context>
chip_gen: v6e
topology: v6e:2x2x1
jax: 0.10.0
libtpu: 0.0.40
codegen_flags: <defaults>
</compile_context>

<pallas_src>
import math

import jax
import jax.numpy as jnp
from jax.experimental import pallas as pl
from jax.experimental.pallas import tpu as pltpu

D_MODEL = 128
N_HEAD = 8
HEAD_DIM = D_MODEL // N_HEAD
D_FF = 2048            # nn.TransformerEncoderLayer default dim_feedforward
NUM_LAYERS = 3
LN_EPS = 1e-5          # nn.LayerNorm default eps


# ----------------------------- Pallas kernel -----------------------------

def _layer_norm_rows(x, w, b):
    """LayerNorm over the last axis. x: (N, E); w, b: (1, E).  f32 throughout."""
    mu = jnp.mean(x, axis=-1, keepdims=True)
    xc = x - mu
    var = jnp.mean(xc * xc, axis=-1, keepdims=True)
    return xc * jax.lax.rsqrt(var + LN_EPS) * w + b


def fused_mtchoopy_kernel(x_ref,                                   # (S, B, E) f32 embedded input
                          wqkv_ref, bqkv_ref,                      # (1,E,3E) bf16 / (1,1,3E) f32
                          wo_ref, bo_ref,                          # (1,E,E)  bf16 / (1,1,E)  f32
                          w1_ref, b1_ref,                          # (1,E,FF) bf16 / (1,1,FF) f32
                          w2_ref, b2_ref,                          # (1,FF,E) bf16 / (1,1,E)  f32
                          ln1w_ref, ln1b_ref, ln2w_ref, ln2b_ref,  # (1,1,E)  f32
                          wh_ref, bh_ref,                          # (E,3) f32 / (1,3) f32
                          out_ref,                                 # (S, B, 3) f32
                          h_scratch):                              # (S*B, E)  f32 resident act.
    l = pl.program_id(0)
    S, B, E = x_ref.shape
    N = S * B

    @pl.when(l == 0)
    def _():
        h_scratch[...] = x_ref[...].reshape(N, E)

    x2 = h_scratch[...]                                            # (N, E) f32

    # --- fused QKV projection (1/sqrt(head_dim) pre-folded into the Q columns) ---
    qkv = jnp.dot(x2.astype(jnp.bfloat16), wqkv_ref[0],
                  preferred_element_type=jnp.float32) + bqkv_ref[0]

    # --- multi-head self-attention over axis B (the module's batch dim) ---
    v_heads, scores = [], []
    for h in range(N_HEAD):                                        # static, 8 tiny contractions
        lo = h * HEAD_DIM
        qh = qkv[:, lo:lo + HEAD_DIM].reshape(S, B, HEAD_DIM)
        kh = qkv[:, E + lo:E + lo + HEAD_DIM].reshape(S, B, HEAD_DIM)
        vh = qkv[:, 2 * E + lo:2 * E + lo + HEAD_DIM].reshape(S, B, HEAD_DIM)
        v_heads.append(vh)
        scores.append(jnp.einsum('sid,sjd->sij', qh, kh,
                                 preferred_element_type=jnp.float32))   # (S, B, B)

    # single stacked softmax over all heads (one max/exp/sum chain, f32)
    s_all = jnp.concatenate(scores, axis=0)                        # (H*S, B, B)
    m = jnp.max(s_all, axis=-1, keepdims=True)
    e = jnp.exp(s_all - m)
    p_all = e * pl.reciprocal(jnp.sum(e, axis=-1, keepdims=True), approx=True)

    ctx = [jnp.einsum('sij,sjd->sid', p_all[h * S:(h + 1) * S], v_heads[h],
                      preferred_element_type=jnp.float32)
           for h in range(N_HEAD)]
    ctx2 = jnp.concatenate(ctx, axis=-1).reshape(N, E)             # concat heads -> (N, E)

    # single K=128 out-projection (replaces 8 accumulated K=16 matmuls)
    attn = jnp.dot(ctx2.astype(jnp.bfloat16), wo_ref[0],
                   preferred_element_type=jnp.float32) + bo_ref[0]

    # residual + LayerNorm 1
    h1 = _layer_norm_rows(x2 + attn, ln1w_ref[0], ln1b_ref[0])

    # feed-forward (Linear -> ReLU -> Linear), bf16 operands / f32 accumulation
    f = jnp.dot(h1.astype(jnp.bfloat16), w1_ref[0],
                preferred_element_type=jnp.float32) + b1_ref[0]
    f = jnp.maximum(f, 0.0)
    f = jnp.dot(f.astype(jnp.bfloat16), w2_ref[0],
                preferred_element_type=jnp.float32) + b2_ref[0]

    # residual + LayerNorm 2 -> carried activation for the next layer
    h2 = _layer_norm_rows(h1 + f, ln2w_ref[0], ln2b_ref[0])
    h_scratch[...] = h2

    # --- task heads, only after the last encoder layer ---
    @pl.when(l == pl.num_programs(0) - 1)
    def _():
        z = jnp.dot(h2, wh_ref[...], preferred_element_type=jnp.float32) + bh_ref[...]
        z3 = z.reshape(S, B, 3)
        y0 = pl.reciprocal(1.0 + jnp.exp(-z3[:, :, 0:1]), approx=True)   # Sigmoid
        y1 = z3[:, :, 1:2]                                               # plain Linear
        zd = z3[:, :, 2:3]                                               # Softmax over S (dim=1)
        mm = jnp.max(zd, axis=0, keepdims=True)
        ee = jnp.exp(zd - mm)
        y2 = ee * pl.reciprocal(jnp.sum(ee, axis=0, keepdims=True), approx=True)
        out_ref[...] = jnp.concatenate([y0, y1, y2], axis=-1)            # one combined store


# ----------------------------- wrappers -----------------------------

def prep_params(params):
    """Stack per-layer weights on a leading axis, fold the attention scale into the Q columns,
    and cast the big matmul weights to bf16 (biases / LN params stay f32)."""
    scale = 1.0 / math.sqrt(HEAD_DIM)
    col_scale = jnp.concatenate([jnp.full((D_MODEL,), scale, jnp.float32),
                                 jnp.ones((2 * D_MODEL,), jnp.float32)])[None, :]
    stk = {k: [] for k in ('wqkv', 'bqkv', 'wo', 'bo', 'w1', 'b1', 'w2', 'b2',
                           'ln1w', 'ln1b', 'ln2w', 'ln2b')}
    for p in params['layers']:
        stk['wqkv'].append((p['wqkv_t'] * col_scale).astype(jnp.bfloat16))
        stk['bqkv'].append(p['bqkv'] * col_scale)
        stk['wo'].append(p['wo_t'].astype(jnp.bfloat16))
        stk['bo'].append(p['bo'])
        stk['w1'].append(p['w1_t'].astype(jnp.bfloat16))
        stk['b1'].append(p['b1'])
        stk['w2'].append(p['w2_t'].astype(jnp.bfloat16))
        stk['b2'].append(p['b2'])
        stk['ln1w'].append(p['ln1w']); stk['ln1b'].append(p['ln1b'])
        stk['ln2w'].append(p['ln2w']); stk['ln2b'].append(p['ln2b'])
    prepped = {k: jnp.stack(v, axis=0) for k, v in stk.items()}
    prepped['wh'] = params['w_heads']
    prepped['bh'] = params['b_heads']
    prepped['pos_enc'] = params['pos_enc']
    return prepped


def mt_choopy_forward(x, pp):
    """x: (B, S, 1) float32 -> [y0, y1, y2], each (B, S, 1)."""
    B, S, _ = x.shape
    E, N = D_MODEL, B * S

    # Build the embedded sequence directly in the kernel's (S, B, E) layout
    # (only a trivial (B,S,1) transpose; no (B,S,128) relayout before/after the encoder).
    xt = jnp.transpose(x, (1, 0, 2))                                 # (S, B, 1)
    pe = jnp.broadcast_to(pp['pos_enc'][:, None, :], (S, B, E - 1))
    h0 = jnp.concatenate([xt, pe], axis=2)                           # (S, B, 128)

    args = (h0,
            pp['wqkv'], pp['bqkv'], pp['wo'], pp['bo'],
            pp['w1'], pp['b1'], pp['w2'], pp['b2'],
            pp['ln1w'], pp['ln1b'], pp['ln2w'], pp['ln2b'],
            pp['wh'], pp['bh'])

    def stacked_spec(a):                                             # stream layer l's slice
        return pl.BlockSpec((1,) + a.shape[1:], lambda l: (l,) + (0,) * (a.ndim - 1))

    def const_spec(a):                                               # resident across layers
        nd = a.ndim
        return pl.BlockSpec(a.shape, lambda l: (0,) * nd)

    in_specs = ([const_spec(h0)]
                + [stacked_spec(a) for a in args[1:13]]
                + [const_spec(pp['wh']), const_spec(pp['bh'])])

    # Advisory cost estimate for the XLA scheduler.
    flops_layer = (2 * N * E * 3 * E          # QKV projection
                   + 4 * S * B * B * E        # QK^T + PV over all heads
                   + 2 * N * E * E            # out-projection
                   + 4 * N * E * D_FF)        # FFN
    flops = NUM_LAYERS * flops_layer + 2 * N * E * 3
    transcend = NUM_LAYERS * (N_HEAD * S * B * B + 2 * N) + 3 * N
    bytes_accessed = sum(int(a.size) * a.dtype.itemsize for a in args) + N * 3 * 4

    out = pl.pallas_call(
        fused_mtchoopy_kernel,
        out_shape=jax.ShapeDtypeStruct((S, B, 3), jnp.float32),
        grid=(NUM_LAYERS,),
        in_specs=in_specs,
        out_specs=pl.BlockSpec((S, B, 3), lambda l: (0, 0, 0)),
        scratch_shapes=[pltpu.VMEM((N, E), jnp.float32)],
        compiler_params=pltpu.CompilerParams(dimension_semantics=("arbitrary",)),
        cost_estimate=pl.CostEstimate(flops=int(flops),
                                      transcendentals=int(transcend),
                                      bytes_accessed=int(bytes_accessed)),
    )(*args)

    # Split/transpose the combined (S, B, 3) output into the module's three (B, S, 1) outputs.
    y0 = jnp.transpose(out[:, :, 0])[..., None]
    y1 = jnp.transpose(out[:, :, 1])[..., None]
    y2 = jnp.transpose(out[:, :, 2])[..., None]
    return [y0, y1, y2]


# ----------------------------- deterministic params -----------------------------

def init_params(key, seq_len):
    keys = iter(jax.random.split(key, 128))

    def nrm(shape, scale=0.05):
        return scale * jax.random.normal(next(keys), shape, jnp.float32)

    params = {'pos_enc': jax.random.normal(next(keys), (seq_len, D_MODEL - 1), jnp.float32)}
    layers = []
    for _ in range(NUM_LAYERS):
        layers.append(dict(
            wqkv_t=nrm((D_MODEL, 3 * D_MODEL)),          # in_proj_weight.T
            bqkv=nrm((1, 3 * D_MODEL), 0.02),
            wo_t=nrm((D_MODEL, D_MODEL)),                # out_proj.weight.T
            bo=nrm((1, D_MODEL), 0.02),
            w1_t=nrm((D_MODEL, D_FF)),                   # linear1.weight.T
            b1=nrm((1, D_FF), 0.02),
            w2_t=nrm((D_FF, D_MODEL), 0.02),             # linear2.weight.T
            b2=nrm((1, D_MODEL), 0.02),
            ln1w=jnp.ones((1, D_MODEL), jnp.float32) + nrm((1, D_MODEL), 0.01),
            ln1b=nrm((1, D_MODEL), 0.01),
            ln2w=jnp.ones((1, D_MODEL), jnp.float32) + nrm((1, D_MODEL), 0.01),
            ln2b=nrm((1, D_MODEL), 0.01),
        ))
    params['layers'] = layers
    params['w_heads'] = nrm((D_MODEL, 3), 0.1)           # columns: [classi, rerank, decision]
    params['b_heads'] = nrm((1, 3), 0.02)
    return params


# ----------------------------- pure-JAX f32 reference -----------------------------

def _ln_ref(x, w, b):
    mu = jnp.mean(x, axis=-1, keepdims=True)
    xc = x - mu
    var = jnp.mean(xc * xc, axis=-1, keepdims=True)
    return xc * jax.lax.rsqrt(var + LN_EPS) * w + b


def _ref_layer(x, p):
    # x: (L, N, E) with L = module batch, N = module seq; attention over L.
    L, N, E = x.shape
    hp = jax.lax.Precision.HIGHEST
    qkv = jnp.einsum('lne,ef->lnf', x, p['wqkv_t'], precision=hp) + p['bqkv'][0]
    q, k, v = qkv[..., :E], qkv[..., E:2 * E], qkv[..., 2 * E:]
    qh = q.reshape(L, N, N_HEAD, HEAD_DIM)
    kh = k.reshape(L, N, N_HEAD, HEAD_DIM)
    vh = v.reshape(L, N, N_HEAD, HEAD_DIM)
    scores = jnp.einsum('inhd,jnhd->nhij', qh, kh, precision=hp) / math.sqrt(HEAD_DIM)
    attn = jax.nn.softmax(scores, axis=-1)
    o = jnp.einsum('nhij,jnhd->inhd', attn, vh, precision=hp).reshape(L, N, E)
    o = jnp.einsum('lne,ef->lnf', o, p['wo_t'], precision=hp) + p['bo'][0]
    x = _ln_ref(x + o, p['ln1w'][0], p['ln1b'][0])
    f = jax.nn.relu(jnp.einsum('lne,ef->lnf', x, p['w1_t'], precision=hp) + p['b1'][0])
    f = jnp.einsum('lnf,fe->lne', f, p['w2_t'], precision=hp) + p['b2'][0]
    return _ln_ref(x + f, p['ln2w'][0], p['ln2b'][0])


def reference_forward(x, params):
    B, S, _ = x.shape
    pe = jnp.broadcast_to(params['pos_enc'][None], (B, S, D_MODEL - 1))
    h = jnp.concatenate([x, pe], axis=2)
    for p in params['layers']:
        h = _ref_layer(h, p)
    z = jnp.einsum('bse,ek->bsk', h, params['w_heads'],
                   precision=jax.lax.Precision.HIGHEST) + params['b_heads'][0]
    y0 = jax.nn.sigmoid(z[..., 0:1])
    y1 = z[..., 1:2]
    y2 = jax.nn.softmax(z[..., 2:3], axis=1)
    return [y0, y1, y2]


# ----------------------------- main -----------------------------

if __name__ == "__main__":
    B, S = 4, 8                                          # small example: seq_len=8, batch=4
    key = jax.random.PRNGKey(0)
    k_x, k_p = jax.random.split(key)
    x = jax.random.normal(k_x, (B, S, 1), jnp.float32)   # module input: (batch, seq_len, 1)
    params = init_params(k_p, seq_len=S)
    prepped = prep_params(params)

    fwd = jax.jit(lambda xx: mt_choopy_forward(xx, prepped))
    outs = jax.block_until_ready(fwd(x))

    # Scale-aware tolerance: kernel uses bf16 matmul operands (f32 accumulation / LN / softmax),
    # reference is full f32, so allow ~2% of each output's dynamic range.
    refs = reference_forward(x, params)
    for o, r in zip(outs, refs):
        assert o.shape == r.shape == (B, S, 1), (o.shape, r.shape)
        err = float(jnp.max(jnp.abs(o - r)))
        tol = 2e-2 * (1.0 + float(jnp.max(jnp.abs(r))))
        assert err <= tol, f"kernel/reference mismatch: err={err} tol={tol}"

    print("KERNEL_OK")
</pallas_src>

<mosaic_0001>
module attributes {stable_mosaic.version = 11 : i64} {
  func.func @fused_mtchoopy_kernel(%arg0: i32, %arg1: memref<8x4x128xf32, #tpu.memory_space<vmem>>, %arg2: memref<1x128x384xbf16, #tpu.memory_space<vmem>>, %arg3: memref<1x1x384xf32, #tpu.memory_space<vmem>>, %arg4: memref<1x128x128xbf16, #tpu.memory_space<vmem>>, %arg5: memref<1x1x128xf32, #tpu.memory_space<vmem>>, %arg6: memref<1x128x2048xbf16, #tpu.memory_space<vmem>>, %arg7: memref<1x1x2048xf32, #tpu.memory_space<vmem>>, %arg8: memref<1x2048x128xbf16, #tpu.memory_space<vmem>>, %arg9: memref<1x1x128xf32, #tpu.memory_space<vmem>>, %arg10: memref<1x1x128xf32, #tpu.memory_space<vmem>>, %arg11: memref<1x1x128xf32, #tpu.memory_space<vmem>>, %arg12: memref<1x1x128xf32, #tpu.memory_space<vmem>>, %arg13: memref<1x1x128xf32, #tpu.memory_space<vmem>>, %arg14: memref<128x3xf32, #tpu.memory_space<vmem>>, %arg15: memref<1x3xf32, #tpu.memory_space<vmem>>, %arg16: memref<8x4x3xf32, #tpu.memory_space<vmem>>, %arg17: memref<32x128xf32, #tpu.memory_space<vmem>>) attributes {dimension_semantics = [#tpu.dimension_semantics<arbitrary>], iteration_bounds = array<i64: 3>, scalar_prefetch = 0 : i64, scratch_operands = 1 : i64, tpu.core_type = #tpu.core_type<tc>, window_params = [{pipeline_mode = #tpu.pipeline_mode<synchronous>, transform_indices = @transform_0, window_bounds = array<i64: 8, 4, 128>}, {transform_indices = @transform_1, window_bounds = array<i64: 1, 128, 384>}, {transform_indices = @transform_2, window_bounds = array<i64: 1, 1, 384>}, {transform_indices = @transform_3, window_bounds = array<i64: 1, 128, 128>}, {transform_indices = @transform_4, window_bounds = array<i64: 1, 1, 128>}, {transform_indices = @transform_5, window_bounds = array<i64: 1, 128, 2048>}, {transform_indices = @transform_6, window_bounds = array<i64: 1, 1, 2048>}, {transform_indices = @transform_7, window_bounds = array<i64: 1, 2048, 128>}, {transform_indices = @transform_8, window_bounds = array<i64: 1, 1, 128>}, {transform_indices = @transform_9, window_bounds = array<i64: 1, 1, 128>}, {transform_indices = @transform_10, window_bounds = array<i64: 1, 1, 128>}, {transform_indices = @transform_11, window_bounds = array<i64: 1, 1, 128>}, {transform_indices = @transform_12, window_bounds = array<i64: 1, 1, 128>}, {pipeline_mode = #tpu.pipeline_mode<synchronous>, transform_indices = @transform_13, window_bounds = array<i64: 128, 3>}, {pipeline_mode = #tpu.pipeline_mode<synchronous>, transform_indices = @transform_14, window_bounds = array<i64: 1, 3>}, {pipeline_mode = #tpu.pipeline_mode<synchronous>, transform_indices = @transform_15, window_bounds = array<i64: 8, 4, 3>}]} {
    %c0_i32 = arith.constant 0 : i32
    %0 = arith.cmpi eq, %arg0, %c0_i32 : i32
    %1 = arith.extui %0 : i1 to i32
    %c0_i32_0 = arith.constant 0 : i32
    %2 = arith.cmpi ne, %1, %c0_i32_0 : i32
    scf.if %2 {
      %c0_73 = arith.constant 0 : index
      %c0_74 = arith.constant 0 : index
      %c0_75 = arith.constant 0 : index
      %177 = vector.load %arg1[%c0_73, %c0_74, %c0_75] : memref<8x4x128xf32, #tpu.memory_space<vmem>>, vector<8x4x128xf32>
      %178 = vector.shape_cast %177 : vector<8x4x128xf32> to vector<32x128xf32>
      %c0_76 = arith.constant 0 : index
      %c0_77 = arith.constant 0 : index
      %179 = vector.load %arg17[%c0_76, %c0_77] : memref<32x128xf32, #tpu.memory_space<vmem>>, vector<32x128xf32>
      tpu.vector_store %arg17[%c0_76, %c0_77], %178 {strides = array<i32>} : memref<32x128xf32, #tpu.memory_space<vmem>>, vector<32x128xf32>,
    } else {
    }
    %c0 = arith.constant 0 : index
    %c0_1 = arith.constant 0 : index
    %3 = vector.load %arg17[%c0, %c0_1] : memref<32x128xf32, #tpu.memory_space<vmem>>, vector<32x128xf32>
    %4 = arith.truncf %3 : vector<32x128xf32> to vector<32x128xbf16>
    %c0_2 = arith.constant 0 : index
    %c0_3 = arith.constant 0 : index
    %c0_4 = arith.constant 0 : index
    %5 = vector.load %arg2[%c0_2, %c0_3, %c0_4] : memref<1x128x384xbf16, #tpu.memory_space<vmem>>, vector<1x128x384xbf16>
    %6 = vector.shape_cast %5 : vector<1x128x384xbf16> to vector<128x384xbf16>
    %cst = arith.constant dense<0.000000e+00> : vector<32x384xf32>
    %7 = tpu.matmul %4, %6, %cst {dimension_numbers = #tpu.dot_dimension_numbers<[1], [0], [0], [1], [0, 0, 1, 1], [], []>} : vector<32x128xbf16>, vector<128x384xbf16>, vector<32x384xf32> -> vector<32x384xf32>
    %c0_5 = arith.constant 0 : index
    %c0_6 = arith.constant 0 : index
    %c0_7 = arith.constant 0 : index
    %8 = vector.load %arg3[%c0_5, %c0_6, %c0_7] : memref<1x1x384xf32, #tpu.memory_space<vmem>>, vector<1x1x384xf32>
    %9 = vector.shape_cast %8 : vector<1x1x384xf32> to vector<1x384xf32>
    %10 = vector.broadcast %9 : vector<1x384xf32> to vector<32x384xf32>
    %11 = arith.addf %7, %10 : vector<32x384xf32>
    %12 = vector.extract_strided_slice %11 {offsets = [0, 0], sizes = [32, 16], strides = [1, 1]} : vector<32x384xf32> to vector<32x16xf32>
    %13 = vector.shape_cast %12 : vector<32x16xf32> to vector<8x4x16xf32>
    %14 = vector.extract_strided_slice %11 {offsets = [0, 128], sizes = [32, 16], strides = [1, 1]} : vector<32x384xf32> to vector<32x16xf32>
    %15 = vector.shape_cast %14 : vector<32x16xf32> to vector<8x4x16xf32>
    %16 = vector.extract_strided_slice %11 {offsets = [0, 256], sizes = [32, 16], strides = [1, 1]} : vector<32x384xf32> to vector<32x16xf32>
    %17 = vector.shape_cast %16 : vector<32x16xf32> to vector<8x4x16xf32>
    "tpu.trace_start"() <{level = 10 : i32, message = "sid,sjd->sij"}> : () -> ()
    %cst_8 = arith.constant dense<0.000000e+00> : vector<8x4x4xf32>
    %18 = tpu.matmul %13, %15, %cst_8 {dimension_numbers = #tpu.dot_dimension_numbers<[2], [2], [1], [1], [0, 0, 0, 1, 1, 1], [0], [0]>} : vector<8x4x16xf32>, vector<8x4x16xf32>, vector<8x4x4xf32> -> vector<8x4x4xf32>
    "tpu.trace_stop"() : () -> ()
    %19 = vector.extract_strided_slice %11 {offsets = [0, 16], sizes = [32, 16], strides = [1, 1]} : vector<32x384xf32> to vector<32x16xf32>
    %20 = vector.shape_cast %19 : vector<32x16xf32> to vector<8x4x16xf32>
    %21 = vector.extract_strided_slice %11 {offsets = [0, 144], sizes = [32, 16], strides = [1, 1]} : vector<32x384xf32> to vector<32x16xf32>
    %22 = vector.shape_cast %21 : vector<32x16xf32> to vector<8x4x16xf32>
    %23 = vector.extract_strided_slice %11 {offsets = [0, 272], sizes = [32, 16], strides = [1, 1]} : vector<32x384xf32> to vector<32x16xf32>
    %24 = vector.shape_cast %23 : vector<32x16xf32> to vector<8x4x16xf32>
    "tpu.trace_start"() <{level = 10 : i32, message = "sid,sjd->sij"}> : () -> ()
    %cst_9 = arith.constant dense<0.000000e+00> : vector<8x4x4xf32>
    %25 = tpu.matmul %20, %22, %cst_9 {dimension_numbers = #tpu.dot_dimension_numbers<[2], [2], [1], [1], [0, 0, 0, 1, 1, 1], [0], [0]>} : vector<8x4x16xf32>, vector<8x4x16xf32>, vector<8x4x4xf32> -> vector<8x4x4xf32>
    "tpu.trace_stop"() : () -> ()
    %26 = vector.extract_strided_slice %11 {offsets = [0, 32], sizes = [32, 16], strides = [1, 1]} : vector<32x384xf32> to vector<32x16xf32>
    %27 = vector.shape_cast %26 : vector<32x16xf32> to vector<8x4x16xf32>
    %28 = vector.extract_strided_slice %11 {offsets = [0, 160], sizes = [32, 16], strides = [1, 1]} : vector<32x384xf32> to vector<32x16xf32>
    %29 = vector.shape_cast %28 : vector<32x16xf32> to vector<8x4x16xf32>
    %30 = vector.extract_strided_slice %11 {offsets = [0, 288], sizes = [32, 16], strides = [1, 1]} : vector<32x384xf32> to vector<32x16xf32>
    %31 = vector.shape_cast %30 : vector<32x16xf32> to vector<8x4x16xf32>
    "tpu.trace_start"() <{level = 10 : i32, message = "sid,sjd->sij"}> : () -> ()
    %cst_10 = arith.constant dense<0.000000e+00> : vector<8x4x4xf32>
    %32 = tpu.matmul %27, %29, %cst_10 {dimension_numbers = #tpu.dot_dimension_numbers<[2], [2], [1], [1], [0, 0, 0, 1, 1, 1], [0], [0]>} : vector<8x4x16xf32>, vector<8x4x16xf32>, vector<8x4x4xf32> -> vector<8x4x4xf32>
    "tpu.trace_stop"() : () -> ()
    %33 = vector.extract_strided_slice %11 {offsets = [0, 48], sizes = [32, 16], strides = [1, 1]} : vector<32x384xf32> to vector<32x16xf32>
    %34 = vector.shape_cast %33 : vector<32x16xf32> to vector<8x4x16xf32>
    %35 = vector.extract_strided_slice %11 {offsets = [0, 176], sizes = [32, 16], strides = [1, 1]} : vector<32x384xf32> to vector<32x16xf32>
    %36 = vector.shape_cast %35 : vector<32x16xf32> to vector<8x4x16xf32>
    %37 = vector.extract_strided_slice %11 {offsets = [0, 304], sizes = [32, 16], strides = [1, 1]} : vector<32x384xf32> to vector<32x16xf32>
    %38 = vector.shape_cast %37 : vector<32x16xf32> to vector<8x4x16xf32>
    "tpu.trace_start"() <{level = 10 : i32, message = "sid,sjd->sij"}> : () -> ()
    %cst_11 = arith.constant dense<0.000000e+00> : vector<8x4x4xf32>
    %39 = tpu.matmul %34, %36, %cst_11 {dimension_numbers = #tpu.dot_dimension_numbers<[2], [2], [1], [1], [0, 0, 0, 1, 1, 1], [0], [0]>} : vector<8x4x16xf32>, vector<8x4x16xf32>, vector<8x4x4xf32> -> vector<8x4x4xf32>
    "tpu.trace_stop"() : () -> ()
    %40 = vector.extract_strided_slice %11 {offsets = [0, 64], sizes = [32, 16], strides = [1, 1]} : vector<32x384xf32> to vector<32x16xf32>
    %41 = vector.shape_cast %40 : vector<32x16xf32> to vector<8x4x16xf32>
    %42 = vector.extract_strided_slice %11 {offsets = [0, 192], sizes = [32, 16], strides = [1, 1]} : vector<32x384xf32> to vector<32x16xf32>
    %43 = vector.shape_cast %42 : vector<32x16xf32> to vector<8x4x16xf32>
    %44 = vector.extract_strided_slice %11 {offsets = [0, 320], sizes = [32, 16], strides = [1, 1]} : vector<32x384xf32> to vector<32x16xf32>
    %45 = vector.shape_cast %44 : vector<32x16xf32> to vector<8x4x16xf32>
    "tpu.trace_start"() <{level = 10 : i32, message = "sid,sjd->sij"}> : () -> ()
    %cst_12 = arith.constant dense<0.000000e+00> : vector<8x4x4xf32>
    %46 = tpu.matmul %41, %43, %cst_12 {dimension_numbers = #tpu.dot_dimension_numbers<[2], [2], [1], [1], [0, 0, 0, 1, 1, 1], [0], [0]>} : vector<8x4x16xf32>, vector<8x4x16xf32>, vector<8x4x4xf32> -> vector<8x4x4xf32>
    "tpu.trace_stop"() : () -> ()
    %47 = vector.extract_strided_slice %11 {offsets = [0, 80], sizes = [32, 16], strides = [1, 1]} : vector<32x384xf32> to vector<32x16xf32>
    %48 = vector.shape_cast %47 : vector<32x16xf32> to vector<8x4x16xf32>
    %49 = vector.extract_strided_slice %11 {offsets = [0, 208], sizes = [32, 16], strides = [1, 1]} : vector<32x384xf32> to vector<32x16xf32>
    %50 = vector.shape_cast %49 : vector<32x16xf32> to vector<8x4x16xf32>
    %51 = vector.extract_strided_slice %11 {offsets = [0, 336], sizes = [32, 16], strides = [1, 1]} : vector<32x384xf32> to vector<32x16xf32>
    %52 = vector.shape_cast %51 : vector<32x16xf32> to vector<8x4x16xf32>
    "tpu.trace_start"() <{level = 10 : i32, message = "sid,sjd->sij"}> : () -> ()
    %cst_13 = arith.constant dense<0.000000e+00> : vector<8x4x4xf32>
    %53 = tpu.matmul %48, %50, %cst_13 {dimension_numbers = #tpu.dot_dimension_numbers<[2], [2], [1], [1], [0, 0, 0, 1, 1, 1], [0], [0]>} : vector<8x4x16xf32>, vector<8x4x16xf32>, vector<8x4x4xf32> -> vector<8x4x4xf32>
    "tpu.trace_stop"() : () -> ()
    %54 = vector.extract_strided_slice %11 {offsets = [0, 96], sizes = [32, 16], strides = [1, 1]} : vector<32x384xf32> to vector<32x16xf32>
    %55 = vector.shape_cast %54 : vector<32x16xf32> to vector<8x4x16xf32>
    %56 = vector.extract_strided_slice %11 {offsets = [0, 224], sizes = [32, 16], strides = [1, 1]} : vector<32x384xf32> to vector<32x16xf32>
    %57 = vector.shape_cast %56 : vector<32x16xf32> to vector<8x4x16xf32>
    %58 = vector.extract_strided_slice %11 {offsets = [0, 352], sizes = [32, 16], strides = [1, 1]} : vector<32x384xf32> to vector<32x16xf32>
    %59 = vector.shape_cast %58 : vector<32x16xf32> to vector<8x4x16xf32>
    "tpu.trace_start"() <{level = 10 : i32, message = "sid,sjd->sij"}> : () -> ()
    %cst_14 = arith.constant dense<0.000000e+00> : vector<8x4x4xf32>
    %60 = tpu.matmul %55, %57, %cst_14 {dimension_numbers = #tpu.dot_dimension_numbers<[2], [2], [1], [1], [0, 0, 0, 1, 1, 1], [0], [0]>} : vector<8x4x16xf32>, vector<8x4x16xf32>, vector<8x4x4xf32> -> vector<8x4x4xf32>
    "tpu.trace_stop"() : () -> ()
    %61 = vector.extract_strided_slice %11 {offsets = [0, 112], sizes = [32, 16], strides = [1, 1]} : vector<32x384xf32> to vector<32x16xf32>
    %62 = vector.shape_cast %61 : vector<32x16xf32> to vector<8x4x16xf32>
    %63 = vector.extract_strided_slice %11 {offsets = [0, 240], sizes = [32, 16], strides = [1, 1]} : vector<32x384xf32> to vector<32x16xf32>
    %64 = vector.shape_cast %63 : vector<32x16xf32> to vector<8x4x16xf32>
    %65 = vector.extract_strided_slice %11 {offsets = [0, 368], sizes = [32, 16], strides = [1, 1]} : vector<32x384xf32> to vector<32x16xf32>
    %66 = vector.shape_cast %65 : vector<32x16xf32> to vector<8x4x16xf32>
    "tpu.trace_start"() <{level = 10 : i32, message = "sid,sjd->sij"}> : () -> ()
    %cst_15 = arith.constant dense<0.000000e+00> : vector<8x4x4xf32>
    %67 = tpu.matmul %62, %64, %cst_15 {dimension_numbers = #tpu.dot_dimension_numbers<[2], [2], [1], [1], [0, 0, 0, 1, 1, 1], [0], [0]>} : vector<8x4x16xf32>, vector<8x4x16xf32>, vector<8x4x4xf32> -> vector<8x4x4xf32>
    "tpu.trace_stop"() : () -> ()
    %68 = tpu.concatenate %18, %25, %32, %39, %46, %53, %60, %67 in 0 : vector<8x4x4xf32>, vector<8x4x4xf32>, vector<8x4x4xf32>, vector<8x4x4xf32>, vector<8x4x4xf32>, vector<8x4x4xf32>, vector<8x4x4xf32>, vector<8x4x4xf32> -> vector<64x4x4xf32>
    %cst_16 = arith.constant dense<0xFF800000> : vector<64x4xf32>
    %69 = vector.multi_reduction <maximumf>, %68, %cst_16 [2] : vector<64x4x4xf32> to vector<64x4xf32>
    %70 = vector.shape_cast %69 : vector<64x4xf32> to vector<64x4x1xf32>
    %71 = vector.broadcast %70 : vector<64x4x1xf32> to vector<64x4x4xf32>
    %72 = arith.subf %68, %71 : vector<64x4x4xf32>
    %73 = math.exp %72 : vector<64x4x4xf32>
    %cst_17 = arith.constant dense<0.000000e+00> : vector<64x4xf32>
    %74 = vector.multi_reduction <add>, %73, %cst_17 [2] : vector<64x4x4xf32> to vector<64x4xf32>
    %75 = vector.shape_cast %74 : vector<64x4xf32> to vector<64x4x1xf32>
    %76 = tpu.reciprocal %75 {approx = true} : vector<64x4x1xf32> -> vector<64x4x1xf32>
    %77 = vector.broadcast %76 : vector<64x4x1xf32> to vector<64x4x4xf32>
    %78 = arith.mulf %73, %77 : vector<64x4x4xf32>
    %79 = vector.extract_strided_slice %78 {offsets = [0, 0, 0], sizes = [8, 4, 4], strides = [1, 1, 1]} : vector<64x4x4xf32> to vector<8x4x4xf32>
    "tpu.trace_start"() <{level = 10 : i32, message = "sij,sjd->sid"}> : () -> ()
    %cst_18 = arith.constant dense<0.000000e+00> : vector<8x4x16xf32>
    %80 = tpu.matmul %79, %17, %cst_18 {dimension_numbers = #tpu.dot_dimension_numbers<[2], [1], [1], [2], [0, 0, 0, 1, 1, 2], [0], [0]>} : vector<8x4x4xf32>, vector<8x4x16xf32>, vector<8x4x16xf32> -> vector<8x4x16xf32>
    "tpu.trace_stop"() : () -> ()
    %81 = vector.extract_strided_slice %78 {offsets = [8, 0, 0], sizes = [8, 4, 4], strides = [1, 1, 1]} : vector<64x4x4xf32> to vector<8x4x4xf32>
    "tpu.trace_start"() <{level = 10 : i32, message = "sij,sjd->sid"}> : () -> ()
    %cst_19 = arith.constant dense<0.000000e+00> : vector<8x4x16xf32>
    %82 = tpu.matmul %81, %24, %cst_19 {dimension_numbers = #tpu.dot_dimension_numbers<[2], [1], [1], [2], [0, 0, 0, 1, 1, 2], [0], [0]>} : vector<8x4x4xf32>, vector<8x4x16xf32>, vector<8x4x16xf32> -> vector<8x4x16xf32>
    "tpu.trace_stop"() : () -> ()
    %83 = vector.extract_strided_slice %78 {offsets = [16, 0, 0], sizes = [8, 4, 4], strides = [1, 1, 1]} : vector<64x4x4xf32> to vector<8x4x4xf32>
    "tpu.trace_start"() <{level = 10 : i32, message = "sij,sjd->sid"}> : () -> ()
    %cst_20 = arith.constant dense<0.000000e+00> : vector<8x4x16xf32>
    %84 = tpu.matmul %83, %31, %cst_20 {dimension_numbers = #tpu.dot_dimension_numbers<[2], [1], [1], [2], [0, 0, 0, 1, 1, 2], [0], [0]>} : vector<8x4x4xf32>, vector<8x4x16xf32>, vector<8x4x16xf32> -> vector<8x4x16xf32>
    "tpu.trace_stop"() : () -> ()
    %85 = vector.extract_strided_slice %78 {offsets = [24, 0, 0], sizes = [8, 4, 4], strides = [1, 1, 1]} : vector<64x4x4xf32> to vector<8x4x4xf32>
    "tpu.trace_start"() <{level = 10 : i32, message = "sij,sjd->sid"}> : () -> ()
    %cst_21 = arith.constant dense<0.000000e+00> : vector<8x4x16xf32>
    %86 = tpu.matmul %85, %38, %cst_21 {dimension_numbers = #tpu.dot_dimension_numbers<[2], [1], [1], [2], [0, 0, 0, 1, 1, 2], [0], [0]>} : vector<8x4x4xf32>, vector<8x4x16xf32>, vector<8x4x16xf32> -> vector<8x4x16xf32>
    "tpu.trace_stop"() : () -> ()
    %87 = vector.extract_strided_slice %78 {offsets = [32, 0, 0], sizes = [8, 4, 4], strides = [1, 1, 1]} : vector<64x4x4xf32> to vector<8x4x4xf32>
    "tpu.trace_start"() <{level = 10 : i32, message = "sij,sjd->sid"}> : () -> ()
    %cst_22 = arith.constant dense<0.000000e+00> : vector<8x4x16xf32>
    %88 = tpu.matmul %87, %45, %cst_22 {dimension_numbers = #tpu.dot_dimension_numbers<[2], [1], [1], [2], [0, 0, 0, 1, 1, 2], [0], [0]>} : vector<8x4x4xf32>, vector<8x4x16xf32>, vector<8x4x16xf32> -> vector<8x4x16xf32>
    "tpu.trace_stop"() : () -> ()
    %89 = vector.extract_strided_slice %78 {offsets = [40, 0, 0], sizes = [8, 4, 4], strides = [1, 1, 1]} : vector<64x4x4xf32> to vector<8x4x4xf32>
    "tpu.trace_start"() <{level = 10 : i32, message = "sij,sjd->sid"}> : () -> ()
    %cst_23 = arith.constant dense<0.000000e+00> : vector<8x4x16xf32>
    %90 = tpu.matmul %89, %52, %cst_23 {dimension_numbers = #tpu.dot_dimension_numbers<[2], [1], [1], [2], [0, 0, 0, 1, 1, 2], [0], [0]>} : vector<8x4x4xf32>, vector<8x4x16xf32>, vector<8x4x16xf32> -> vector<8x4x16xf32>
    "tpu.trace_stop"() : () -> ()
    %91 = vector.extract_strided_slice %78 {offsets = [48, 0, 0], sizes = [8, 4, 4], strides = [1, 1, 1]} : vector<64x4x4xf32> to vector<8x4x4xf32>
    "tpu.trace_start"() <{level = 10 : i32, message = "sij,sjd->sid"}> : () -> ()
    %cst_24 = arith.constant dense<0.000000e+00> : vector<8x4x16xf32>
    %92 = tpu.matmul %91, %59, %cst_24 {dimension_numbers = #tpu.dot_dimension_numbers<[2], [1], [1], [2], [0, 0, 0, 1, 1, 2], [0], [0]>} : vector<8x4x4xf32>, vector<8x4x16xf32>, vector<8x4x16xf32> -> vector<8x4x16xf32>
    "tpu.trace_stop"() : () -> ()
    %93 = vector.extract_strided_slice %78 {offsets = [56, 0, 0], sizes = [8, 4, 4], strides = [1, 1, 1]} : vector<64x4x4xf32> to vector<8x4x4xf32>
    "tpu.trace_start"() <{level = 10 : i32, message = "sij,sjd->sid"}> : () -> ()
    %cst_25 = arith.constant dense<0.000000e+00> : vector<8x4x16xf32>
    %94 = tpu.matmul %93, %66, %cst_25 {dimension_numbers = #tpu.dot_dimension_numbers<[2], [1], [1], [2], [0, 0, 0, 1, 1, 2], [0], [0]>} : vector<8x4x4xf32>, vector<8x4x16xf32>, vector<8x4x16xf32> -> vector<8x4x16xf32>
    "tpu.trace_stop"() : () -> ()
    %95 = tpu.concatenate %80, %82, %84, %86, %88, %90, %92, %94 in 2 : vector<8x4x16xf32>, vector<8x4x16xf32>, vector<8x4x16xf32>, vector<8x4x16xf32>, vector<8x4x16xf32>, vector<8x4x16xf32>, vector<8x4x16xf32>, vector<8x4x16xf32> -> vector<8x4x128xf32>
    %96 = vector.shape_cast %95 : vector<8x4x128xf32> to vector<32x128xf32>
    %97 = arith.truncf %96 : vector<32x128xf32> to vector<32x128xbf16>
    %c0_26 = arith.constant 0 : index
    %c0_27 = arith.constant 0 : index
    %c0_28 = arith.constant 0 : index
    %98 = vector.load %arg4[%c0_26, %c0_27, %c0_28] : memref<1x128x128xbf16, #tpu.memory_space<vmem>>, vector<1x128x128xbf16>
    %99 = vector.shape_cast %98 : vector<1x128x128xbf16> to vector<128x128xbf16>
    %cst_29 = arith.constant dense<0.000000e+00> : vector<32x128xf32>
    %100 = tpu.matmul %97, %99, %cst_29 {dimension_numbers = #tpu.dot_dimension_numbers<[1], [0], [0], [1], [0, 0, 1, 1], [], []>} : vector<32x128xbf16>, vector<128x128xbf16>, vector<32x128xf32> -> vector<32x128xf32>
    %c0_30 = arith.constant 0 : index
    %c0_31 = arith.constant 0 : index
    %c0_32 = arith.constant 0 : index
    %101 = vector.load %arg5[%c0_30, %c0_31, %c0_32] : memref<1x1x128xf32, #tpu.memory_space<vmem>>, vector<1x1x128xf32>
    %102 = vector.shape_cast %101 : vector<1x1x128xf32> to vector<1x128xf32>
    %103 = vector.broadcast %102 : vector<1x128xf32> to vector<32x128xf32>
    %104 = arith.addf %100, %103 : vector<32x128xf32>
    %105 = arith.addf %3, %104 : vector<32x128xf32>
    %c0_33 = arith.constant 0 : index
    %c0_34 = arith.constant 0 : index
    %c0_35 = arith.constant 0 : index
    %106 = vector.load %arg10[%c0_33, %c0_34, %c0_35] : memref<1x1x128xf32, #tpu.memory_space<vmem>>, vector<1x1x128xf32>
    %107 = vector.shape_cast %106 : vector<1x1x128xf32> to vector<1x128xf32>
    %c0_36 = arith.constant 0 : index
    %c0_37 = arith.constant 0 : index
    %c0_38 = arith.constant 0 : index
    %108 = vector.load %arg11[%c0_36, %c0_37, %c0_38] : memref<1x1x128xf32, #tpu.memory_space<vmem>>, vector<1x1x128xf32>
    %109 = vector.shape_cast %108 : vector<1x1x128xf32> to vector<1x128xf32>
    %cst_39 = arith.constant dense<0.000000e+00> : vector<32xf32>
    %110 = vector.multi_reduction <add>, %105, %cst_39 [1] : vector<32x128xf32> to vector<32xf32>
    %111 = vector.shape_cast %110 : vector<32xf32> to vector<32x1xf32>
    %cst_40 = arith.constant 1.280000e+02 : f32
    %112 = vector.broadcast %cst_40 : f32 to vector<32x1xf32>
    %113 = arith.divf %111, %112 : vector<32x1xf32>
    %114 = vector.broadcast %113 : vector<32x1xf32> to vector<32x128xf32>
    %115 = arith.subf %105, %114 : vector<32x128xf32>
    %116 = arith.mulf %115, %115 : vector<32x128xf32>
    %cst_41 = arith.constant dense<0.000000e+00> : vector<32xf32>
    %117 = vector.multi_reduction <add>, %116, %cst_41 [1] : vector<32x128xf32> to vector<32xf32>
    %118 = vector.shape_cast %117 : vector<32xf32> to vector<32x1xf32>
    %cst_42 = arith.constant 1.280000e+02 : f32
    %119 = vector.broadcast %cst_42 : f32 to vector<32x1xf32>
    %120 = arith.divf %118, %119 : vector<32x1xf32>
    %cst_43 = arith.constant 9.99999974E-6 : f32
    %121 = vector.broadcast %cst_43 : f32 to vector<32x1xf32>
    %122 = arith.addf %120, %121 : vector<32x1xf32>
    %123 = math.rsqrt %122 : vector<32x1xf32>
    %124 = vector.broadcast %123 : vector<32x1xf32> to vector<32x128xf32>
    %125 = arith.mulf %115, %124 : vector<32x128xf32>
    %126 = vector.broadcast %107 : vector<1x128xf32> to vector<32x128xf32>
    %127 = arith.mulf %125, %126 : vector<32x128xf32>
    %128 = vector.broadcast %109 : vector<1x128xf32> to vector<32x128xf32>
    %129 = arith.addf %127, %128 : vector<32x128xf32>
    %130 = arith.truncf %129 : vector<32x128xf32> to vector<32x128xbf16>
    %c0_44 = arith.constant 0 : index
    %c0_45 = arith.constant 0 : index
    %c0_46 = arith.constant 0 : index
    %131 = vector.load %arg6[%c0_44, %c0_45, %c0_46] : memref<1x128x2048xbf16, #tpu.memory_space<vmem>>, vector<1x128x2048xbf16>
    %132 = vector.shape_cast %131 : vector<1x128x2048xbf16> to vector<128x2048xbf16>
    %cst_47 = arith.constant dense<0.000000e+00> : vector<32x2048xf32>
    %133 = tpu.matmul %130, %132, %cst_47 {dimension_numbers = #tpu.dot_dimension_numbers<[1], [0], [0], [1], [0, 0, 1, 1], [], []>} : vector<32x128xbf16>, vector<128x2048xbf16>, vector<32x2048xf32> -> vector<32x2048xf32>
    %c0_48 = arith.constant 0 : index
    %c0_49 = arith.constant 0 : index
    %c0_50 = arith.constant 0 : index
    %134 = vector.load %arg7[%c0_48, %c0_49, %c0_50] : memref<1x1x2048xf32, #tpu.memory_space<vmem>>, vector<1x1x2048xf32>
    %135 = vector.shape_cast %134 : vector<1x1x2048xf32> to vector<1x2048xf32>
    %136 = vector.broadcast %135 : vector<1x2048xf32> to vector<32x2048xf32>
    %137 = arith.addf %133, %136 : vector<32x2048xf32>
    %cst_51 = arith.constant 0.000000e+00 : f32
    %138 = vector.broadcast %cst_51 : f32 to vector<32x2048xf32>
    %139 = arith.maximumf %137, %138 : vector<32x2048xf32>
    %140 = arith.truncf %139 : vector<32x2048xf32> to vector<32x2048xbf16>
    %c0_52 = arith.constant 0 : index
    %c0_53 = arith.constant 0 : index
    %c0_54 = arith.constant 0 : index
    %141 = vector.load %arg8[%c0_52, %c0_53, %c0_54] : memref<1x2048x128xbf16, #tpu.memory_space<vmem>>, vector<1x2048x128xbf16>
    %142 = vector.shape_cast %141 : vector<1x2048x128xbf16> to vector<2048x128xbf16>
    %cst_55 = arith.constant dense<0.000000e+00> : vector<32x128xf32>
    %143 = tpu.matmul %140, %142, %cst_55 {dimension_numbers = #tpu.dot_dimension_numbers<[1], [0], [0], [1], [0, 0, 1, 1], [], []>} : vector<32x2048xbf16>, vector<2048x128xbf16>, vector<32x128xf32> -> vector<32x128xf32>
    %c0_56 = arith.constant 0 : index
    %c0_57 = arith.constant 0 : index
    %c0_58 = arith.constant 0 : index
    %144 = vector.load %arg9[%c0_56, %c0_57, %c0_58] : memref<1x1x128xf32, #tpu.memory_space<vmem>>, vector<1x1x128xf32>
    %145 = vector.shape_cast %144 : vector<1x1x128xf32> to vector<1x128xf32>
    %146 = vector.broadcast %145 : vector<1x128xf32> to vector<32x128xf32>
    %147 = arith.addf %143, %146 : vector<32x128xf32>
    %148 = arith.addf %129, %147 : vector<32x128xf32>
    %c0_59 = arith.constant 0 : index
    %c0_60 = arith.constant 0 : index
    %c0_61 = arith.constant 0 : index
    %149 = vector.load %arg12[%c0_59, %c0_60, %c0_61] : memref<1x1x128xf32, #tpu.memory_space<vmem>>, vector<1x1x128xf32>
    %150 = vector.shape_cast %149 : vector<1x1x128xf32> to vector<1x128xf32>
    %c0_62 = arith.constant 0 : index
    %c0_63 = arith.constant 0 : index
    %c0_64 = arith.constant 0 : index
    %151 = vector.load %arg13[%c0_62, %c0_63, %c0_64] : memref<1x1x128xf32, #tpu.memory_space<vmem>>, vector<1x1x128xf32>
    %152 = vector.shape_cast %151 : vector<1x1x128xf32> to vector<1x128xf32>
    %cst_65 = arith.constant dense<0.000000e+00> : vector<32xf32>
    %153 = vector.multi_reduction <add>, %148, %cst_65 [1] : vector<32x128xf32> to vector<32xf32>
    %154 = vector.shape_cast %153 : vector<32xf32> to vector<32x1xf32>
    %cst_66 = arith.constant 1.280000e+02 : f32
    %155 = vector.broadcast %cst_66 : f32 to vector<32x1xf32>
    %156 = arith.divf %154, %155 : vector<32x1xf32>
    %157 = vector.broadcast %156 : vector<32x1xf32> to vector<32x128xf32>
    %158 = arith.subf %148, %157 : vector<32x128xf32>
    %159 = arith.mulf %158, %158 : vector<32x128xf32>
    %cst_67 = arith.constant dense<0.000000e+00> : vector<32xf32>
    %160 = vector.multi_reduction <add>, %159, %cst_67 [1] : vector<32x128xf32> to vector<32xf32>
    %161 = vector.shape_cast %160 : vector<32xf32> to vector<32x1xf32>
    %cst_68 = arith.constant 1.280000e+02 : f32
    %162 = vector.broadcast %cst_68 : f32 to vector<32x1xf32>
    %163 = arith.divf %161, %162 : vector<32x1xf32>
    %cst_69 = arith.constant 9.99999974E-6 : f32
    %164 = vector.broadcast %cst_69 : f32 to vector<32x1xf32>
    %165 = arith.addf %163, %164 : vector<32x1xf32>
    %166 = math.rsqrt %165 : vector<32x1xf32>
    %167 = vector.broadcast %166 : vector<32x1xf32> to vector<32x128xf32>
    %168 = arith.mulf %158, %167 : vector<32x128xf32>
    %169 = vector.broadcast %150 : vector<1x128xf32> to vector<32x128xf32>
    %170 = arith.mulf %168, %169 : vector<32x128xf32>
    %171 = vector.broadcast %152 : vector<1x128xf32> to vector<32x128xf32>
    %172 = arith.addf %170, %171 : vector<32x128xf32>
    %c0_70 = arith.constant 0 : index
    %c0_71 = arith.constant 0 : index
    %173 = vector.load %arg17[%c0_70, %c0_71] : memref<32x128xf32, #tpu.memory_space<vmem>>, vector<32x128xf32>
    tpu.vector_store %arg17[%c0_70, %c0_71], %172 {strides = array<i32>} : memref<32x128xf32, #tpu.memory_space<vmem>>, vector<32x128xf32>,
    %c2_i32 = arith.constant 2 : i32
    %174 = arith.cmpi eq, %arg0, %c2_i32 : i32
    %175 = arith.extui %174 : i1 to i32
    %c0_i32_72 = arith.constant 0 : i32
    %176 = arith.cmpi ne, %175, %c0_i32_72 : i32
    scf.if %176 {
      %c0_73 = arith.constant 0 : index
      %c0_74 = arith.constant 0 : index
      %177 = vector.load %arg14[%c0_73, %c0_74] : memref<128x3xf32, #tpu.memory_space<vmem>>, vector<128x3xf32>
      %cst_75 = arith.constant dense<0.000000e+00> : vector<32x3xf32>
      %178 = tpu.matmul %172, %177, %cst_75 {dimension_numbers = #tpu.dot_dimension_numbers<[1], [0], [0], [1], [0, 0, 1, 1], [], []>} : vector<32x128xf32>, vector<128x3xf32>, vector<32x3xf32> -> vector<32x3xf32>
      %c0_76 = arith.constant 0 : index
      %c0_77 = arith.constant 0 : index
      %179 = vector.load %arg15[%c0_76, %c0_77] : memref<1x3xf32, #tpu.memory_space<vmem>>, vector<1x3xf32>
      %180 = vector.broadcast %179 : vector<1x3xf32> to vector<32x3xf32>
      %181 = arith.addf %178, %180 : vector<32x3xf32>
      %182 = vector.shape_cast %181 : vector<32x3xf32> to vector<8x4x3xf32>
      %183 = vector.extract_strided_slice %182 {offsets = [0, 0, 0], sizes = [8, 4, 1], strides = [1, 1, 1]} : vector<8x4x3xf32> to vector<8x4x1xf32>
      %cst_78 = arith.constant 0.000000e+00 : f32
      %184 = vector.broadcast %cst_78 : f32 to vector<8x4x1xf32>
      %185 = arith.subf %184, %183 : vector<8x4x1xf32>
      %186 = math.exp %185 : vector<8x4x1xf32>
      %cst_79 = arith.constant 1.000000e+00 : f32
      %187 = vector.broadcast %cst_79 : f32 to vector<8x4x1xf32>
      %188 = arith.addf %187, %186 : vector<8x4x1xf32>
      %189 = tpu.reciprocal %188 {approx = true} : vector<8x4x1xf32> -> vector<8x4x1xf32>
      %190 = vector.extract_strided_slice %182 {offsets = [0, 0, 1], sizes = [8, 4, 1], strides = [1, 1, 1]} : vector<8x4x3xf32> to vector<8x4x1xf32>
      %191 = vector.extract_strided_slice %182 {offsets = [0, 0, 2], sizes = [8, 4, 1], strides = [1, 1, 1]} : vector<8x4x3xf32> to vector<8x4x1xf32>
      %cst_80 = arith.constant dense<0xFF800000> : vector<4x1xf32>
      %192 = vector.multi_reduction <maximumf>, %191, %cst_80 [0] : vector<8x4x1xf32> to vector<4x1xf32>
      %193 = vector.shape_cast %192 : vector<4x1xf32> to vector<1x4x1xf32>
      %194 = vector.broadcast %193 : vector<1x4x1xf32> to vector<8x4x1xf32>
      %195 = arith.subf %191, %194 : vector<8x4x1xf32>
      %196 = math.exp %195 : vector<8x4x1xf32>
      %cst_81 = arith.constant dense<0.000000e+00> : vector<4x1xf32>
      %197 = vector.multi_reduction <add>, %196, %cst_81 [0] : vector<8x4x1xf32> to vector<4x1xf32>
      %198 = vector.shape_cast %197 : vector<4x1xf32> to vector<1x4x1xf32>
      %199 = tpu.reciprocal %198 {approx = true} : vector<1x4x1xf32> -> vector<1x4x1xf32>
      %200 = vector.broadcast %199 : vector<1x4x1xf32> to vector<8x4x1xf32>
      %201 = arith.mulf %196, %200 : vector<8x4x1xf32>
      %202 = tpu.concatenate %189, %190, %201 in 2 : vector<8x4x1xf32>, vector<8x4x1xf32>, vector<8x4x1xf32> -> vector<8x4x3xf32>
      %c0_82 = arith.constant 0 : index
      %c0_83 = arith.constant 0 : index
      %c0_84 = arith.constant 0 : index
      %203 = vector.load %arg16[%c0_82, %c0_83, %c0_84] : memref<8x4x3xf32, #tpu.memory_space<vmem>>, vector<8x4x3xf32>
      tpu.vector_store %arg16[%c0_82, %c0_83, %c0_84], %202 {strides = array<i32>} : memref<8x4x3xf32, #tpu.memory_space<vmem>>, vector<8x4x3xf32>,
    } else {
    }
    return
  }
  func.func @transform_0(%arg0: i32) -> (i32, i32, i32) {
    %c0_i32 = arith.constant 0 : i32
    %c0_i32_0 = arith.constant 0 : i32
    %c0_i32_1 = arith.constant 0 : i32
    %c0_i32_2 = arith.constant 0 : i32
    return %c0_i32, %c0_i32_0, %c0_i32_1 : i32, i32, i32
  }
  func.func @transform_1(%arg0: i32) -> (i32, i32, i32) {
    %c0_i32 = arith.constant 0 : i32
    %c0_i32_0 = arith.constant 0 : i32
    %c0_i32_1 = arith.constant 0 : i32
    return %arg0, %c0_i32, %c0_i32_0 : i32, i32, i32
  }
  func.func @transform_2(%arg0: i32) -> (i32, i32, i32) {
    %c0_i32 = arith.constant 0 : i32
    %c0_i32_0 = arith.constant 0 : i32
    %c0_i32_1 = arith.constant 0 : i32
    return %arg0, %c0_i32, %c0_i32_0 : i32, i32, i32
  }
  func.func @transform_3(%arg0: i32) -> (i32, i32, i32) {
    %c0_i32 = arith.constant 0 : i32
    %c0_i32_0 = arith.constant 0 : i32
    %c0_i32_1 = arith.constant 0 : i32
    return %arg0, %c0_i32, %c0_i32_0 : i32, i32, i32
  }
  func.func @transform_4(%arg0: i32) -> (i32, i32, i32) {
    %c0_i32 = arith.constant 0 : i32
    %c0_i32_0 = arith.constant 0 : i32
    %c0_i32_1 = arith.constant 0 : i32
    return %arg0, %c0_i32, %c0_i32_0 : i32, i32, i32
  }
  func.func @transform_5(%arg0: i32) -> (i32, i32, i32) {
    %c0_i32 = arith.constant 0 : i32
    %c0_i32_0 = arith.constant 0 : i32
    %c0_i32_1 = arith.constant 0 : i32
    return %arg0, %c0_i32, %c0_i32_0 : i32, i32, i32
  }
  func.func @transform_6(%arg0: i32) -> (i32, i32, i32) {
    %c0_i32 = arith.constant 0 : i32
    %c0_i32_0 = arith.constant 0 : i32
    %c0_i32_1 = arith.constant 0 : i32
    return %arg0, %c0_i32, %c0_i32_0 : i32, i32, i32
  }
  func.func @transform_7(%arg0: i32) -> (i32, i32, i32) {
    %c0_i32 = arith.constant 0 : i32
    %c0_i32_0 = arith.constant 0 : i32
    %c0_i32_1 = arith.constant 0 : i32
    return %arg0, %c0_i32, %c0_i32_0 : i32, i32, i32
  }
  func.func @transform_8(%arg0: i32) -> (i32, i32, i32) {
    %c0_i32 = arith.constant 0 : i32
    %c0_i32_0 = arith.constant 0 : i32
    %c0_i32_1 = arith.constant 0 : i32
    return %arg0, %c0_i32, %c0_i32_0 : i32, i32, i32
  }
  func.func @transform_9(%arg0: i32) -> (i32, i32, i32) {
    %c0_i32 = arith.constant 0 : i32
    %c0_i32_0 = arith.constant 0 : i32
    %c0_i32_1 = arith.constant 0 : i32
    return %arg0, %c0_i32, %c0_i32_0 : i32, i32, i32
  }
  func.func @transform_10(%arg0: i32) -> (i32, i32, i32) {
    %c0_i32 = arith.constant 0 : i32
    %c0_i32_0 = arith.constant 0 : i32
    %c0_i32_1 = arith.constant 0 : i32
    return %arg0, %c0_i32, %c0_i32_0 : i32, i32, i32
  }
  func.func @transform_11(%arg0: i32) -> (i32, i32, i32) {
    %c0_i32 = arith.constant 0 : i32
    %c0_i32_0 = arith.constant 0 : i32
    %c0_i32_1 = arith.constant 0 : i32
    return %arg0, %c0_i32, %c0_i32_0 : i32, i32, i32
  }
  func.func @transform_12(%arg0: i32) -> (i32, i32, i32) {
    %c0_i32 = arith.constant 0 : i32
    %c0_i32_0 = arith.constant 0 : i32
    %c0_i32_1 = arith.constant 0 : i32
    return %arg0, %c0_i32, %c0_i32_0 : i32, i32, i32
  }
  func.func @transform_13(%arg0: i32) -> (i32, i32) {
    %c0_i32 = arith.constant 0 : i32
    %c0_i32_0 = arith.constant 0 : i32
    %c0_i32_1 = arith.constant 0 : i32
    return %c0_i32, %c0_i32_0 : i32, i32
  }
  func.func @transform_14(%arg0: i32) -> (i32, i32) {
    %c0_i32 = arith.constant 0 : i32
    %c0_i32_0 = arith.constant 0 : i32
    %c0_i32_1 = arith.constant 0 : i32
    return %c0_i32, %c0_i32_0 : i32, i32
  }
  func.func @transform_15(%arg0: i32) -> (i32, i32, i32) {
    %c0_i32 = arith.constant 0 : i32
    %c0_i32_0 = arith.constant 0 : i32
    %c0_i32_1 = arith.constant 0 : i32
    %c0_i32_2 = arith.constant 0 : i32
    return %c0_i32, %c0_i32_0, %c0_i32_1 : i32, i32, i32
  }
}

</mosaic_0001>

<bundles_post_ra>
// kernel: _lambda_.1
= control target key start
LH: loop header
LB: loop body
LE: loop exit
PB: predicated region body
PF: predicated region fallthrough
CT: control target
= control target key end

     0   :  { %s22596_s0 = inlined_call_operand.vmem [shape: f32[8,4,128], index: 0, kind: input, shape index: {}]   ;;  %s22597_s1 = inlined_call_operand.hbm [shape: bf16[3,128,384], index: 1, kind: input, shape index: {}]   ;;  %s22598_s2 = inlined_call_operand.hbm [shape: f32[3,1,384], index: 2, kind: input, shape index: {}]   ;;  %s22599_s3 = inlined_call_operand.hbm [shape: bf16[3,128,128], index: 3, kind: input, shape index: {}]   ;;  %s22600_s4 = inlined_call_operand.hbm [shape: f32[3,1,128], index: 4, kind: input, shape index: {}]   ;;  %s22601_s5 = inlined_call_operand.hbm [shape: bf16[3,128,2048], index: 5, kind: input, shape index: {}]   ;;  %s22602_s6 = inlined_call_operand.hbm [shape: f32[3,1,2048], index: 6, kind: input, shape index: {}]   ;;  %s22603_s7 = inlined_call_operand.hbm [shape: bf16[3,2048,128], index: 7, kind: input, shape index: {}]   ;;  %s22604_s8 = inlined_call_operand.hbm [shape: f32[3,1,128], index: 8, kind: input, shape index: {}]   ;;  %s22605_s9 = inlined_call_operand.hbm [shape: f32[3,1,128], index: 9, kind: input, shape index: {}]   ;;  %s22606_s10 = inlined_call_operand.hbm [shape: f32[3,1,128], index: 10, kind: input, shape index: {}]   ;;  %s22607_s11 = inlined_call_operand.hbm [shape: f32[3,1,128], index: 11, kind: input, shape index: {}]   ;;  %s22608_s12 = inlined_call_operand.hbm [shape: f32[3,1,128], index: 12, kind: input, shape index: {}]   ;;  %s22609_s13 = inlined_call_operand.hbm [shape: f32[128,3], index: 13, kind: input, shape index: {}]   ;;  %s22610_s14 = inlined_call_operand.hbm [shape: f32[1,3], index: 14, kind: input, shape index: {}]   ;;  %s22611_s15 = inlined_call_operand.vmem [shape: f32[8,4,3], index: 15, kind: output, shape index: {}]  }
   0x1   :  { %22716 = sst [smem:[#allocation96_spill]] %s22596_s0 }
   0x2   :  { %22717 = sst [smem:[#allocation97_spill]] %s22597_s1 }
   0x3   :  { %22718 = sst [smem:[#allocation98_spill]] %s22598_s2 }
   0x4   :  { %22719 = sst [smem:[#allocation99_spill]] %s22599_s3 }
   0x5   :  { %22720 = sst [smem:[#allocation100_spill]] %s22600_s4 }
   0x6   :  { %22721 = sst [smem:[#allocation101_spill]] %s22605_s9 }
   0x7   :  { %22722 = sst [smem:[#allocation102_spill]] %s22607_s11 }
   0x8   :  { %22723 = sst [smem:[#allocation103_spill]] %s22608_s12 }
   0x9   :  { %22724 = sst [smem:[#allocation104_spill]] %s22611_s15 }
   0xa   :  { %20 = vsyncpa [#allocation4], 0 }
   0xb   :  { %22 = vsyncpa [#allocation4 + $0x1], 0 }
   0xc   :  { %23 = vsyncpa [#allocation6], 0 }
   0xd   :  { %25 = vsyncpa [#allocation6 + $0x1], 0 }
   0xe   :  { %26 = vsyncpa [#allocation9], 0 }
   0xf   :  { %28 = vsyncpa [#allocation9 + $0x1], 0 }
  0x10   :  { %29 = vsyncpa [#allocation12], 0 }
  0x11   :  { %31 = vsyncpa [#allocation12 + $0x1], 0 }
  0x12   :  { %32 = vsyncpa [#allocation15], 0 }
  0x13   :  { %34 = vsyncpa [#allocation15 + $0x1], 0 }
  0x14   :  { %35 = vsyncpa [#allocation18], 0 }
  0x15   :  { %37 = vsyncpa [#allocation18 + $0x1], 0 }
  0x16   :  { %38 = vsyncpa [#allocation21], 0 }
  0x17   :  { %40 = vsyncpa [#allocation21 + $0x1], 0 }
  0x18   :  { %41 = vsyncpa [#allocation24], 0  ;;  %s18813_s18 = smov 0   ;;  %s18815_s19 = smov 0  }
  0x19   :  { %s18817_s20 = smov 0   ;;  %s18819_s21 = smov 0  }
  0x1a LB: > { %22725 = sst [smem:[#allocation34_spill]] %s18692_s19  ;;  %s18832_s22 = sadd.s32 4294967295, %s18700_s21   ;;  %s18700_s21 = sphi %s18819_s21, %s23019_s21   ;;  %s18696_s20 = sphi %s18817_s20, %s23022_s20   ;;  %s18692_s19 = sphi %s18815_s19, %s23021_s19   ;;  %s18688_s18 = sphi %s18813_s18, %s23020_s18  }
  0x1b   : > { %22726 = sst [smem:[#allocation35_spill]] %s18696_s20  ;;  %s18835_s23 = sadd.s32 1, %s18700_s21  }
  0x1c   : > { %22727 = sst [smem:[#allocation36_spill]] %s18832_s22  ;;  %s72_s24 = ssub.s32 %s18700_s21, %s18835_s23 }
  0x1d   : > { %22728 = sst [smem:[#allocation37_spill]] %s18835_s23  ;;  %s75_s25 = sadd.s32 1, %s18696_s20 }
  0x1e   : > { %p73_p0 = scmp.eq.s32.totalorder %s72_s24, 0  ;;  %p82_p1 = scmp.ne.s32.totalorder %s18696_s20, %s18692_s19 }
  0x1f   : > { %p83_p2 = scmp.eq.s32.totalorder %s18700_s21, 0  ;;  %p88_p3 = scmp.ne.s32.totalorder %s18692_s19, %s18688_s18 }
  0x20   : > { %s18845_s26 = scalar_select %p73_p0, %s18696_s20, %s75_s25  }
  0x21   : > { %p18847_p4 = por %p83_p2, %p82_p1  ;;  %p22612_p5 = scmp.eq.s32.totalorder %s18832_s22, 0 }
  0x22   : > { %22729 = sst [smem:[#allocation38_spill]] %s18845_s26  ;;  %p15734_p6 = scmp.ge.s32.totalorder %s18700_s21, 1 }
  0x23   : > { %p448_p7 = scmp.lt.s32.totalorder %s18700_s21, 4  ;;  %p18856_p8 = por %p22612_p5, %p88_p3 }
  0x24   : > { %s18702_s30 = smov [#allocation22]   ;;  %p17694_p13 = scmp.lt.s32.totalorder %s18700_s21, 3 }
  0x25   : > { %s22731_s28 = scalar_select %p18856_p8, 1, 0 }
  0x26   : > { %p18861_p10 = pnand %p15734_p6, %p448_p7  ;;  %s463_s16 = sshll.u32 %s18702_s30, 4  ;;  %s464_s16 = int_to_ptr.vmem [resolvable:$true] %s463_s16 }
  0x27   : > { %22732 = sst [smem:[#allocation39_spill]] %s22731_s28  ;;  %s18875_s18 = sand.u32 1, %s18696_s20  }
  0x28   : > { %s22733_s29 = scalar_select %p18861_p10, 1, 0 }
  0x29   : > { %p17648_p11 = pneg %p18861_p10  ;;  %s18878_s24 = sand.u32 1, %s18700_s21  }
  0x2a   : > { %22734 = sst [smem:[#allocation40_spill]] %s22733_s29  ;;  %p18882_p0 = pnand %p17694_p13, %p18847_p4 }
  0x2b   : > { %p18869_p12 = pnand %p17648_p11, %p22612_p5  ;;  %s18257_s30 = scalar_lea.vmem %s464_s16, 2048 }
  0x2c   : > { %p18258_p2 = scmp.ne.s32.totalorder %s464_s16, %s18257_s30  ;;  %p18265_p7 = scmp.lt.s32.totalorder %s464_s16, %s464_s16 }
  0x2d   : > { %s22735_s17 = scalar_select %p18869_p12, 1, 0 }
  0x2e   : > { %p22627_p1 = pneg %p18869_p12  ;;  %p18266_p11 = scmp.lt.s32.totalorder %s18257_s30, %s18257_s30 }
  0x30   : > { %p18260_p3 = pnand %p18258_p2, %p22627_p1  ;;  %p18267_p9 = por %p18266_p11, %p18265_p7 }
  0x32   : > { %p18261_p6 = pneg %p18260_p3 }
  0x34   : > { %p18268_p5 = pnand %p18267_p9, %p18261_p6 }
  0x36   : > { %18271 = shalt.err (!%p18268_p5)
}
  0x37   : > { %s18703_s26 = smov 128   ;;  %s18704_s27 = smov 8  }
  0x38   : > { %17651 = dma.hbm_to_vmem [thread:$0]  (!%p18869_p12), %s22609_s13, 2048, %s464_s16, [#allocation21], %s18703_s26, %s18703_s26, %s18704_s27  }
  0x39   : > { %s17612_s15 = smul.u32 3, %s18875_s18  ;;  %s18899_s22 = sshll.u32 %s18700_s21, 4 }
  0x3a   : > { %s17613_s0 = smul.u32 48, %s18700_s21  ;;  %s22737_s2 = sld [smem:[#allocation98_spill]] }
  0x3b   : > { %s513_s29 = scalar_lea.vmem [#allocation5], %s17612_s15  ;;  %s22738_s4 = sld [smem:[#allocation100_spill]] }
  0x3c   : > { %s521_s12 = sshll.u32 %s513_s29, 4  ;;  %p18917_p5 = pneg %p18882_p0  ;;  %s522_s12 = int_to_ptr.vmem [resolvable:$true] %s521_s12 }
  0x40   : > { %s18904_s19 = scalar_lea.hbm %s22737_s2, %s17613_s0  ;;  %s18277_s29 = scalar_lea.hbm %s22737_s2, 144 }
  0x41   : > { %s18910_s20 = scalar_lea.hbm %s22738_s4, %s18899_s22  ;;  %s18272_s26 = scalar_lea.hbm %s18904_s19, 48 }
  0x42   : > { %p18273_p4 = scmp.ne.s32.totalorder %s18904_s19, %s18272_s26  ;;  %p18278_p2 = scmp.lt.s32.totalorder %s18904_s19, %s22737_s2 }
  0x43   : > { %p18279_p3 = scmp.lt.s32.totalorder %s18277_s29, %s18272_s26 }
  0x44   : > { %p18275_p9 = pnand %p18917_p5, %p18273_p4 }
  0x45   : > { %p18280_p6 = por %p18279_p3, %p18278_p2 }
  0x46   : > { %p18276_p13 = pneg %p18275_p9 }
  0x48   : > { %p18281_p7 = pnand %p18280_p6, %p18276_p13 }
  0x4a   : > { %18284 = shalt.err (!%p18281_p7)
}
  0x4b   : > { %s18285_s11 = scalar_lea.vmem %s522_s12, 48  ;;  %s18705_s27 = smov [#allocation5]  }
  0x4c   : > { %p18286_p11 = scmp.ne.s32.totalorder %s522_s12, %s18285_s11  ;;  %s18290_s30 = sshll.u32 %s18705_s27, 4  ;;  %s18291_s30 = int_to_ptr.vmem [resolvable:$false] %s18290_s30 }
  0x4d   : > { %s18292_s23 = scalar_lea.vmem %s18291_s30, 96  ;;  %p18293_p4 = scmp.lt.s32.totalorder %s522_s12, %s18291_s30 }
  0x4e   : > { %p18288_p1 = pnand %p18286_p11, %p18917_p5  ;;  %p18294_p9 = scmp.lt.s32.totalorder %s18292_s23, %s18285_s11 }
  0x50   : > { %p18289_p8 = pneg %p18288_p1  ;;  %p18295_p10 = por %p18294_p9, %p18293_p4 }
  0x52   : > { %p18296_p12 = pnand %p18295_p10, %p18289_p8 }
  0x54   : > { %18299 = shalt.err (!%p18296_p12)
}
  0x55   : > { %s22740_s26 = scalar_lea.sflag [#allocation6], %s18878_s24  ;;  %s552_s0 = scalar_lea.vmem [#allocation8], %s18875_s18 }
  0x56   : > { %17661 = dma.hbm_to_vmem [thread:$0]  (!%p18882_p0), %s18904_s19, 48, %s522_s12, %s22740_s26  }
  0x57   : > { %s559_s15 = sshll.u32 %s552_s0, 4  ;;  %s15747_s23 = sshll.u32 %s18875_s18, 4  ;;  %s560_s15 = int_to_ptr.vmem [resolvable:$true] %s559_s15 }
  0x58   : > { %s550_s29 = scalar_lea.sflag [#allocation9], %s18878_s24  ;;  %s18300_s16 = scalar_lea.hbm %s18910_s20, 16 }
  0x59   : > { %p18301_p8 = scmp.ne.s32.totalorder %s18910_s20, %s18300_s16  ;;  %s18305_s27 = scalar_lea.hbm %s22738_s4, 48 }
  0x5a   : > { %p18306_p1 = scmp.lt.s32.totalorder %s18910_s20, %s22738_s4  ;;  %p18307_p13 = scmp.lt.s32.totalorder %s18305_s27, %s18300_s16 }
  0x5b   : > { %p18303_p10 = pnand %p18301_p8, %p18917_p5 }
  0x5c   : > { %p18308_p2 = por %p18307_p13, %p18306_p1 }
  0x5d   : > { %p18304_p12 = pneg %p18303_p10 }
  0x5f   : > { %p18309_p3 = pnand %p18308_p2, %p18304_p12 }
  0x61   : > { %18312 = shalt.err (!%p18309_p3)
}
  0x62   : > { %s18313_s12 = scalar_lea.vmem %s560_s15, 16  ;;  %s18706_s19 = smov [#allocation8]  }
  0x63   : > { %p18314_p6 = scmp.ne.s32.totalorder %s560_s15, %s18313_s12  ;;  %s18318_s26 = sshll.u32 %s18706_s19, 4  ;;  %s18319_s26 = int_to_ptr.vmem [resolvable:$false] %s18318_s26 }
  0x64   : > { %s18320_s0 = scalar_lea.vmem %s18319_s26, 32  ;;  %p18321_p4 = scmp.lt.s32.totalorder %s560_s15, %s18319_s26 }
  0x65   : > { %p18316_p7 = pnand %p18314_p6, %p18917_p5  ;;  %p18322_p9 = scmp.lt.s32.totalorder %s18320_s0, %s18313_s12 }
  0x67   : > { %p18317_p11 = pneg %p18316_p7  ;;  %p18323_p8 = por %p18322_p9, %p18321_p4 }
  0x69   : > { %p18324_p10 = pnand %p18323_p8, %p18317_p11 }
  0x6b   : > { %18327 = shalt.err (!%p18324_p10)
}
  0x6c   : > { %17667 = dma.hbm_to_vmem [thread:$0]  (!%p18882_p0), %s18910_s20, 16, %s560_s15, %s550_s29  }
  0x6d   : > { %s16322_s2 = sshll.u32 %s18700_s21, 8  ;;  %s591_s27 = scalar_lea.vmem [#allocation11], %s15747_s23 }
  0x6e   : > { %s18962_s11 = scalar_lea.hbm %s22602_s6, %s16322_s2  ;;  %s599_s30 = sshll.u32 %s591_s27, 4  ;;  %s600_s30 = int_to_ptr.vmem [resolvable:$true] %s599_s30 }
  0x6f   : > { %s22632_s12 = scalar_lea.sflag [#allocation12], %s18878_s24  ;;  %s18328_s19 = scalar_lea.hbm %s18962_s11, 256 }
  0x70   : > { %p18329_p12 = scmp.ne.s32.totalorder %s18962_s11, %s18328_s19  ;;  %s18333_s15 = scalar_lea.hbm %s22602_s6, 768 }
  0x71   : > { %p18334_p2 = scmp.lt.s32.totalorder %s18962_s11, %s22602_s6  ;;  %p18335_p3 = scmp.lt.s32.totalorder %s18333_s15, %s18328_s19 }
  0x72   : > { %p18331_p1 = pnand %p18329_p12, %p18917_p5 }
  0x73   : > { %p18336_p6 = por %p18335_p3, %p18334_p2 }
  0x74   : > { %p18332_p13 = pneg %p18331_p1 }
  0x76   : > { %p18337_p7 = pnand %p18336_p6, %p18332_p13 }
  0x78   : > { %18340 = shalt.err (!%p18337_p7)
}
  0x79   : > { %s18341_s23 = scalar_lea.vmem %s600_s30, 256  ;;  %s18707_s2 = smov [#allocation11]  }
  0x7a   : > { %p18342_p11 = scmp.ne.s32.totalorder %s600_s30, %s18341_s23  ;;  %s18346_s9 = sshll.u32 %s18707_s2, 4  ;;  %s18347_s9 = int_to_ptr.vmem [resolvable:$false] %s18346_s9 }
  0x7b   : > { %s18348_s27 = scalar_lea.vmem %s18347_s9, 512  ;;  %p18349_p8 = scmp.lt.s32.totalorder %s600_s30, %s18347_s9 }
  0x7c   : > { %p18344_p4 = pnand %p18342_p11, %p18917_p5  ;;  %p18350_p10 = scmp.lt.s32.totalorder %s18348_s27, %s18341_s23 }
  0x7e   : > { %p18345_p9 = pneg %p18344_p4  ;;  %p18351_p12 = por %p18350_p10, %p18349_p8 }
  0x80   : > { %p18352_p1 = pnand %p18351_p12, %p18345_p9 }
  0x82   : > { %18355 = shalt.err (!%p18352_p1)
}
  0x83   : > { %17673 = dma.hbm_to_vmem [thread:$0]  (!%p18882_p0), %s18962_s11, 256, %s600_s30, %s22632_s12  }
  0x84   : > { %s18987_s20 = scalar_lea.hbm %s22604_s8, %s18899_s22  ;;  %s630_s15 = scalar_lea.vmem [#allocation14], %s18875_s18 }
  0x85   : > { %s637_s0 = sshll.u32 %s630_s15, 4  ;;  %s22633_s16 = scalar_lea.sflag [#allocation15], %s18878_s24  ;;  %s638_s0 = int_to_ptr.vmem [resolvable:$true] %s637_s0 }
  0x86   : > { %s18356_s23 = scalar_lea.hbm %s18987_s20, 16  ;;  %s18361_s11 = scalar_lea.hbm %s22604_s8, 48 }
  0x87   : > { %p18357_p13 = scmp.ne.s32.totalorder %s18987_s20, %s18356_s23  ;;  %p18362_p6 = scmp.lt.s32.totalorder %s18987_s20, %s22604_s8 }
  0x88   : > { %p18363_p7 = scmp.lt.s32.totalorder %s18361_s11, %s18356_s23 }
  0x89   : > { %p18359_p2 = pnand %p18357_p13, %p18917_p5 }
  0x8a   : > { %p18364_p11 = por %p18363_p7, %p18362_p6 }
  0x8b   : > { %p18360_p3 = pneg %p18359_p2 }
  0x8d   : > { %p18365_p4 = pnand %p18364_p11, %p18360_p3 }
  0x8f   : > { %18368 = shalt.err (!%p18365_p4)
}
  0x90   : > { %s18369_s19 = scalar_lea.vmem %s638_s0, 16  ;;  %s18708_s26 = smov [#allocation14]  }
  0x91   : > { %p18370_p9 = scmp.ne.s32.totalorder %s638_s0, %s18369_s19  ;;  %s18374_s15 = sshll.u32 %s18708_s26, 4  ;;  %s18375_s15 = int_to_ptr.vmem [resolvable:$false] %s18374_s15 }
  0x92   : > { %s18376_s12 = scalar_lea.vmem %s18375_s15, 32  ;;  %p18377_p12 = scmp.lt.s32.totalorder %s638_s0, %s18375_s15 }
  0x93   : > { %p18372_p8 = pnand %p18370_p9, %p18917_p5  ;;  %p18378_p1 = scmp.lt.s32.totalorder %s18376_s12, %s18369_s19 }
  0x95   : > { %p18373_p10 = pneg %p18372_p8  ;;  %p18379_p13 = por %p18378_p1, %p18377_p12 }
  0x97   : > { %p18380_p2 = pnand %p18379_p13, %p18373_p10 }
  0x99   : > { %18383 = shalt.err (!%p18380_p2)
}
  0x9a   : > { %17679 = dma.hbm_to_vmem [thread:$0]  (!%p18882_p0), %s18987_s20, 16, %s638_s0, %s22633_s16  }
  0x9b   : > { %s19013_s9 = scalar_lea.hbm %s22606_s10, %s18899_s22  ;;  %s664_s12 = scalar_lea.vmem [#allocation17], %s18875_s18 }
  0x9c   : > { %s671_s11 = sshll.u32 %s664_s12, 4  ;;  %s22634_s30 = scalar_lea.sflag [#allocation18], %s18878_s24  ;;  %s672_s11 = int_to_ptr.vmem [resolvable:$true] %s671_s11 }
  0x9d   : > { %s18384_s27 = scalar_lea.hbm %s19013_s9, 16  ;;  %s18389_s20 = scalar_lea.hbm %s22606_s10, 48 }
  0x9e   : > { %p18385_p3 = scmp.ne.s32.totalorder %s19013_s9, %s18384_s27  ;;  %p18390_p11 = scmp.lt.s32.totalorder %s19013_s9, %s22606_s10 }
  0x9f   : > { %p18391_p4 = scmp.lt.s32.totalorder %s18389_s20, %s18384_s27 }
  0xa0   : > { %p18387_p6 = pnand %p18385_p3, %p18917_p5 }
  0xa1   : > { %p18392_p9 = por %p18391_p4, %p18390_p11 }
  0xa2   : > { %p18388_p7 = pneg %p18387_p6 }
  0xa4   : > { %p18393_p8 = pnand %p18392_p9, %p18388_p7 }
  0xa6   : > { %18396 = shalt.err (!%p18393_p8)
}
  0xa7   : > { %s18397_s23 = scalar_lea.vmem %s672_s11, 16  ;;  %s18709_s2 = smov [#allocation17]  }
  0xa8   : > { %p18398_p10 = scmp.ne.s32.totalorder %s672_s11, %s18397_s23  ;;  %s18402_s12 = sshll.u32 %s18709_s2, 4  ;;  %s18403_s12 = int_to_ptr.vmem [resolvable:$false] %s18402_s12 }
  0xa9   : > { %s18404_s16 = scalar_lea.vmem %s18403_s12, 32  ;;  %p18405_p13 = scmp.lt.s32.totalorder %s672_s11, %s18403_s12 }
  0xaa   : > { %p18400_p12 = pnand %p18398_p10, %p18917_p5  ;;  %p18406_p2 = scmp.lt.s32.totalorder %s18404_s16, %s18397_s23 }
  0xac   : > { %p18401_p1 = pneg %p18400_p12  ;;  %p18407_p3 = por %p18406_p2, %p18405_p13 }
  0xae   : > { %p18408_p6 = pnand %p18407_p3, %p18401_p1 }
  0xb0   : > { %18411 = shalt.err (!%p18408_p6)
}
  0xb1   : > { %17685 = dma.hbm_to_vmem [thread:$0]  (!%p18882_p0), %s19013_s9, 16, %s672_s11, %s22634_s30  }
  0xb2   : > { %s18710_s27 = smov [#allocation23]   ;;  %s17610_s26 = smul.u32 192, %s18875_s18 }
  0xb3   : > { %s477_s19 = sshll.u32 %s18710_s27, 4  ;;  %p22741_p11 = scmp.ne.s32.totalorder %s22735_s17, 0  ;;  %s478_s19 = int_to_ptr.vmem [resolvable:$true] %s477_s19 }
  0xb4   : > { %s18423_s20 = scalar_lea.vmem %s478_s19, 16  ;;  %s18430_s16 = scalar_lea.vmem %s478_s19, 32 }
  0xb5   : > { %p18424_p7 = scmp.ne.s32.totalorder %s478_s19, %s18423_s20  ;;  %p22742_p4 = pneg %p22741_p11 }
  0xb6   : > { %p18431_p10 = scmp.lt.s32.totalorder %s478_s19, %s478_s19  ;;  %p18432_p12 = scmp.lt.s32.totalorder %s18430_s16, %s18423_s20 }
  0xb7   : > { %p18426_p9 = pnand %p18424_p7, %p22742_p4 }
  0xb8   : > { %p18433_p1 = por %p18432_p12, %p18431_p10 }
  0xb9   : > { %p18427_p8 = pneg %p18426_p9 }
  0xbb   : > { %p18434_p13 = pnand %p18433_p1, %p18427_p8 }
  0xbd   : > { %18437 = shalt.err (!%p18434_p13)
}
  0xbe   : > { %17654 = dma.hbm_to_vmem [thread:$0]  (!%p22741_p11), %s22610_s14, 16, %s478_s19, [#allocation24]  }
  0xbf   : > { %s17611_s11 = smul.u32 3072, %s18700_s21  ;;  %s492_s15 = scalar_lea.vmem [#allocation3], %s17610_s26 }
  0xc0   : > { %s499_s23 = sshll.u32 %s492_s15, 4  ;;  %s22743_s1 = sld [smem:[#allocation97_spill]]  ;;  %s19050_s23 = int_to_ptr.vmem [resolvable:$true] %s499_s23 }
  0xc1   : > { %s15740_s17 = sshll.u32 %s18875_s18, 6  ;;  %s489_s20 = scalar_lea.sflag [#allocation4], %s18875_s18 }
  0xc6   : > { %s19048_s27 = scalar_lea.hbm %s22743_s1, %s17611_s11  ;;  %s18443_s0 = scalar_lea.hbm %s22743_s1, 9216 }
  0xc7   : > { %s18438_s16 = scalar_lea.hbm %s19048_s27, 3072  ;;  %p18444_p7 = scmp.lt.s32.totalorder %s19048_s27, %s22743_s1 }
  0xc8   : > { %p18439_p2 = scmp.ne.s32.totalorder %s19048_s27, %s18438_s16  ;;  %p18445_p11 = scmp.lt.s32.totalorder %s18443_s0, %s18438_s16 }
  0xca   : > { %p18441_p3 = pnand %p18439_p2, %p18917_p5  ;;  %p18446_p4 = por %p18445_p11, %p18444_p7 }
  0xcc   : > { %p18442_p6 = pneg %p18441_p3 }
  0xce   : > { %p18447_p9 = pnand %p18446_p4, %p18442_p6 }
  0xd0   : > { %18450 = shalt.err (!%p18447_p9)
}
  0xd1   : > { %s18451_s11 = scalar_lea.vmem %s19050_s23, 3072  ;;  %s18711_s2 = smov [#allocation3]  }
  0xd2   : > { %p18452_p8 = scmp.ne.s32.totalorder %s19050_s23, %s18451_s11  ;;  %s18456_s12 = sshll.u32 %s18711_s2, 4  ;;  %s18457_s12 = int_to_ptr.vmem [resolvable:$false] %s18456_s12 }
  0xd3   : > { %s18458_s19 = scalar_lea.vmem %s18457_s12, 6144  ;;  %p18459_p1 = scmp.lt.s32.totalorder %s19050_s23, %s18457_s12 }
  0xd4   : > { %p18454_p10 = pnand %p18452_p8, %p18917_p5  ;;  %p18460_p13 = scmp.lt.s32.totalorder %s18458_s19, %s18451_s11 }
  0xd6   : > { %p18455_p12 = pneg %p18454_p10  ;;  %p18461_p2 = por %p18460_p13, %p18459_p1 }
  0xd8   : > { %p18462_p3 = pnand %p18461_p2, %p18455_p12 }
  0xda   : > { %18465 = shalt.err (!%p18462_p3)
}
  0xdb   : > { %s18712_s16 = smov 192   ;;  %s18713_s26 = smov 12  }
  0xdc   : > { %17658 = dma.hbm_to_vmem [thread:$0]  (!%p18882_p0), %s19048_s27, 3072, %s19050_s23, %s489_s20, %s18712_s16, %s18712_s16, %s18713_s26  }
  0xdd   : > { %s16320_s0 = sshll.u32 %s18700_s21, 10  ;;  %s22744_s3 = sld [smem:[#allocation99_spill]] }
  0xde   : > { %s532_s2 = scalar_lea.vmem [#allocation7], %s15740_s17  ;;  %s15744_s19 = sshll.u32 %s18875_s18, 10 }
  0xdf   : > { %s539_s12 = sshll.u32 %s532_s2, 4  ;;  %s19084_s12 = int_to_ptr.vmem [resolvable:$true] %s539_s12 }
  0xe3   : > { %s19080_s11 = scalar_lea.hbm %s22744_s3, %s16320_s0  ;;  %s18471_s20 = scalar_lea.hbm %s22744_s3, 3072 }
  0xe4   : > { %s18466_s30 = scalar_lea.hbm %s19080_s11, 1024  ;;  %p18472_p4 = scmp.lt.s32.totalorder %s19080_s11, %s22744_s3 }
  0xe5   : > { %p18467_p6 = scmp.ne.s32.totalorder %s19080_s11, %s18466_s30  ;;  %p18473_p9 = scmp.lt.s32.totalorder %s18471_s20, %s18466_s30 }
  0xe7   : > { %p18469_p7 = pnand %p18467_p6, %p18917_p5  ;;  %p18474_p8 = por %p18473_p9, %p18472_p4 }
  0xe9   : > { %p18470_p11 = pneg %p18469_p7 }
  0xeb   : > { %p18475_p10 = pnand %p18474_p8, %p18470_p11 }
  0xed   : > { %18478 = shalt.err (!%p18475_p10)
}
  0xee   : > { %s18479_s17 = scalar_lea.vmem %s19084_s12, 1024  ;;  %s18714_s0 = smov [#allocation7]  }
  0xef   : > { %p18480_p12 = scmp.ne.s32.totalorder %s19084_s12, %s18479_s17  ;;  %s18484_s9 = sshll.u32 %s18714_s0, 4  ;;  %s18485_s9 = int_to_ptr.vmem [resolvable:$false] %s18484_s9 }
  0xf0   : > { %s18486_s15 = scalar_lea.vmem %s18485_s9, 2048  ;;  %p18487_p2 = scmp.lt.s32.totalorder %s19084_s12, %s18485_s9 }
  0xf1   : > { %p18482_p1 = pnand %p18480_p12, %p18917_p5  ;;  %p18488_p3 = scmp.lt.s32.totalorder %s18486_s15, %s18479_s17 }
  0xf3   : > { %p18483_p13 = pneg %p18482_p1  ;;  %p18489_p6 = por %p18488_p3, %p18487_p2 }
  0xf5   : > { %p18490_p7 = pnand %p18489_p6, %p18483_p13 }
  0xf7   : > { %18493 = shalt.err (!%p18490_p7)
}
  0xf8   : > { %s18715_s30 = smov 64   ;;  %s22635_s2 = smov 4  }
  0xf9   : > { %s22745_s23 = scalar_lea.sflag [#allocation6], %s18878_s24  ;;  %s16321_s27 = sshll.u32 %s18700_s21, 14 }
  0xfa   : > { %17664 = dma.hbm_to_vmem [thread:$0]  (!%p18882_p0), %s19080_s11, 1024, %s19084_s12, %s22745_s23, %s18715_s30, %s18715_s30, %s22635_s2  }
  0xfb   : > { %s19118_s26 = scalar_lea.hbm %s22601_s5, %s16321_s27  ;;  %s570_s17 = scalar_lea.vmem [#allocation10], %s15744_s19 }
  0xfc   : > { %s577_s0 = sshll.u32 %s570_s17, 4  ;;  %s18494_s9 = scalar_lea.hbm %s19118_s26, 16384  ;;  %s19122_s0 = int_to_ptr.vmem [resolvable:$true] %s577_s0 }
  0xfd   : > { %p18495_p11 = scmp.ne.s32.totalorder %s19118_s26, %s18494_s9  ;;  %s18499_s15 = scalar_lea.hbm %s22601_s5, 49152 }
  0xfe   : > { %p18500_p8 = scmp.lt.s32.totalorder %s19118_s26, %s22601_s5  ;;  %p18501_p10 = scmp.lt.s32.totalorder %s18499_s15, %s18494_s9 }
  0xff   : > { %p18497_p4 = pnand %p18495_p11, %p18917_p5 }
 0x100   : > { %p18502_p12 = por %p18501_p10, %p18500_p8 }
 0x101   : > { %p18498_p9 = pneg %p18497_p4 }
 0x103   : > { %p18503_p1 = pnand %p18502_p12, %p18498_p9 }
 0x105   : > { %18506 = shalt.err (!%p18503_p1)
}
 0x106   : > { %s18507_s16 = scalar_lea.vmem %s19122_s0, 16384  ;;  %s18717_s17 = smov [#allocation10]  }
 0x107   : > { %p18508_p13 = scmp.ne.s32.totalorder %s19122_s0, %s18507_s16  ;;  %s18512_s11 = sshll.u32 %s18717_s17, 4  ;;  %s18513_s11 = int_to_ptr.vmem [resolvable:$false] %s18512_s11 }
 0x108   : > { %s18514_s12 = scalar_lea.vmem %s18513_s11, 32768  ;;  %p18515_p6 = scmp.lt.s32.totalorder %s19122_s0, %s18513_s11 }
 0x109   : > { %p18510_p2 = pnand %p18508_p13, %p18917_p5  ;;  %p18516_p7 = scmp.lt.s32.totalorder %s18514_s12, %s18507_s16 }
 0x10b   : > { %p18511_p3 = pneg %p18510_p2  ;;  %p18517_p11 = por %p18516_p7, %p18515_p6 }
 0x10d   : > { %p18518_p4 = pnand %p18517_p11, %p18511_p3 }
 0x10f   : > { %18521 = shalt.err (!%p18518_p4)
}
 0x110   : > { %s18718_s9 = smov 1024   ;;  %s19152_s20 = scalar_lea.hbm %s22603_s7, %s16321_s27 }
 0x111   : > { %17670 = dma.hbm_to_vmem [thread:$0]  (!%p18882_p0), %s19118_s26, 16384, %s19122_s0, %s550_s29, %s18718_s9, %s18718_s9, %s18715_s30  }
 0x112   : > { %s610_s16 = scalar_lea.vmem [#allocation13], %s15744_s19  ;;  %s22746_s2 = sld [smem:[#allocation101_spill]] }
 0x113   : > { %s617_s17 = sshll.u32 %s610_s16, 4  ;;  %s18522_s29 = scalar_lea.hbm %s19152_s20, 16384  ;;  %s19156_s17 = int_to_ptr.vmem [resolvable:$true] %s617_s17 }
 0x114   : > { %p18523_p9 = scmp.ne.s32.totalorder %s19152_s20, %s18522_s29  ;;  %s18527_s26 = scalar_lea.hbm %s22603_s7, 49152 }
 0x115   : > { %p18528_p12 = scmp.lt.s32.totalorder %s19152_s20, %s22603_s7  ;;  %p18529_p1 = scmp.lt.s32.totalorder %s18527_s26, %s18522_s29 }
 0x116   : > { %p18525_p8 = pnand %p18523_p9, %p18917_p5 }
 0x117   : > { %p18530_p13 = por %p18529_p1, %p18528_p12 }
 0x118   : > { %s19162_s1 = scalar_lea.hbm %s22746_s2, %s18899_s22  ;;  %p18526_p10 = pneg %p18525_p8 }
 0x11a   : > { %p18531_p2 = pnand %p18530_p13, %p18526_p10 }
 0x11c   : > { %18534 = shalt.err (!%p18531_p2)
}
 0x11d   : > { %s18535_s19 = scalar_lea.vmem %s19156_s17, 16384  ;;  %s18719_s15 = smov [#allocation13]  }
 0x11e   : > { %p18536_p3 = scmp.ne.s32.totalorder %s19156_s17, %s18535_s19  ;;  %s18540_s23 = sshll.u32 %s18719_s15, 4  ;;  %s18541_s23 = int_to_ptr.vmem [resolvable:$false] %s18540_s23 }
 0x11f   : > { %s18542_s16 = scalar_lea.vmem %s18541_s23, 32768  ;;  %p18543_p11 = scmp.lt.s32.totalorder %s19156_s17, %s18541_s23 }
 0x120   : > { %p18538_p6 = pnand %p18536_p3, %p18917_p5  ;;  %p18544_p4 = scmp.lt.s32.totalorder %s18542_s16, %s18535_s19 }
 0x122   : > { %p18539_p7 = pneg %p18538_p6  ;;  %p18545_p9 = por %p18544_p4, %p18543_p11 }
 0x124   : > { %p18546_p8 = pnand %p18545_p9, %p18539_p7 }
 0x126   : > { %18549 = shalt.err (!%p18546_p8)
}
 0x127   : > { %s22747_s11 = smov 4   ;;  %s22748_s12 = scalar_lea.sflag [#allocation12], %s18878_s24 }
 0x128   : > { %17676 = dma.hbm_to_vmem [thread:$0]  (!%p18882_p0), %s19152_s20, 16384, %s19156_s17, %s22748_s12, %s18715_s30, %s18715_s30, %s22747_s11  }
 0x129   : > { %s647_s29 = scalar_lea.vmem [#allocation16], %s18875_s18  ;;  %s22749_s0 = sld [smem:[#allocation102_spill]] }
 0x12a   : > { %s654_s21 = sshll.u32 %s647_s29, 4  ;;  %s18550_s19 = scalar_lea.hbm %s19162_s1, 16  ;;  %s655_s21 = int_to_ptr.vmem [resolvable:$true] %s654_s21 }
 0x12b   : > { %p18551_p10 = scmp.ne.s32.totalorder %s19162_s1, %s18550_s19  ;;  %s18555_s16 = scalar_lea.hbm %s22746_s2, 48 }
 0x12c   : > { %p18556_p13 = scmp.lt.s32.totalorder %s19162_s1, %s22746_s2  ;;  %p18557_p2 = scmp.lt.s32.totalorder %s18555_s16, %s18550_s19 }
 0x12d   : > { %p18553_p12 = pnand %p18551_p10, %p18917_p5 }
 0x12e   : > { %p18558_p3 = por %p18557_p2, %p18556_p13 }
 0x12f   : > { %s19194_s9 = scalar_lea.hbm %s22749_s0, %s18899_s22  ;;  %p18554_p1 = pneg %p18553_p12 }
 0x131   : > { %p18559_p6 = pnand %p18558_p3, %p18554_p1 }
 0x133   : > { %18562 = shalt.err (!%p18559_p6)
}
 0x134   : > { %s18563_s30 = scalar_lea.vmem %s655_s21, 16  ;;  %s18720_s20 = smov [#allocation16]  }
 0x135   : > { %p18564_p7 = scmp.ne.s32.totalorder %s655_s21, %s18563_s30  ;;  %s18568_s17 = sshll.u32 %s18720_s20, 4  ;;  %s18569_s17 = int_to_ptr.vmem [resolvable:$false] %s18568_s17 }
 0x136   : > { %s18570_s11 = scalar_lea.vmem %s18569_s17, 32  ;;  %p18571_p9 = scmp.lt.s32.totalorder %s655_s21, %s18569_s17 }
 0x137   : > { %p18566_p11 = pnand %p18564_p7, %p18917_p5  ;;  %p18572_p8 = scmp.lt.s32.totalorder %s18570_s11, %s18563_s30 }
 0x139   : > { %p18567_p4 = pneg %p18566_p11  ;;  %p18573_p10 = por %p18572_p8, %p18571_p9 }
 0x13b   : > { %p18574_p12 = pnand %p18573_p10, %p18567_p4 }
 0x13d   : > { %18577 = shalt.err (!%p18574_p12)
}
 0x13e   : > { %s22750_s3 = scalar_lea.sflag [#allocation15], %s18878_s24  ;;  %s681_s4 = scalar_lea.vmem [#allocation19], %s18875_s18 }
 0x13f   : > { %17682 = dma.hbm_to_vmem [thread:$0]  (!%p18882_p0), %s19162_s1, 16, %s655_s21, %s22750_s3  }
 0x140   : > { %s688_s12 = sshll.u32 %s681_s4, 4  ;;  %s18578_s29 = scalar_lea.hbm %s19194_s9, 16  ;;  %s689_s12 = int_to_ptr.vmem [resolvable:$true] %s688_s12 }
 0x141   : > { %p18579_p1 = scmp.ne.s32.totalorder %s19194_s9, %s18578_s29  ;;  %s18583_s19 = scalar_lea.hbm %s22749_s0, 48 }
 0x142   : > { %p18584_p3 = scmp.lt.s32.totalorder %s19194_s9, %s22749_s0  ;;  %p18585_p6 = scmp.lt.s32.totalorder %s18583_s19, %s18578_s29 }
 0x143   : > { %p18581_p13 = pnand %p18579_p1, %p18917_p5 }
 0x144   : > { %p18586_p7 = por %p18585_p6, %p18584_p3 }
 0x145   : > { %p18582_p2 = pneg %p18581_p13 }
 0x147   : > { %p18587_p11 = pnand %p18586_p7, %p18582_p2 }
 0x149   : > { %18590 = shalt.err (!%p18587_p11)
}
 0x14a   : > { %s18591_s1 = scalar_lea.vmem %s689_s12, 16  ;;  %s18721_s21 = smov [#allocation19]  }
 0x14b   : > { %p18592_p4 = scmp.ne.s32.totalorder %s689_s12, %s18591_s1  ;;  %s18596_s16 = sshll.u32 %s18721_s21, 4  ;;  %s18597_s16 = int_to_ptr.vmem [resolvable:$false] %s18596_s16 }
 0x14c   : > { %s18598_s30 = scalar_lea.vmem %s18597_s16, 32  ;;  %p18599_p10 = scmp.lt.s32.totalorder %s689_s12, %s18597_s16 }
 0x14d   : > { %p18594_p9 = pnand %p18592_p4, %p18917_p5  ;;  %p18600_p12 = scmp.lt.s32.totalorder %s18598_s30, %s18591_s1 }
 0x14f   : > { %p18595_p8 = pneg %p18594_p9  ;;  %p18601_p1 = por %p18600_p12, %p18599_p10 }
 0x151   : > { %p18602_p13 = pnand %p18601_p1, %p18595_p8 }
 0x153   : > { %18605 = shalt.err (!%p18602_p13)
}
 0x154   : > { %s22751_s20 = scalar_lea.sflag [#allocation18], %s18878_s24  ;;  %s22752_s3 = sld [smem:[#allocation103_spill]] }
 0x155   : > { %17688 = dma.hbm_to_vmem [thread:$0]  (!%p18882_p0), %s19194_s9, 16, %s689_s12, %s22751_s20  }
 0x156   : > { %s698_s29 = scalar_lea.vmem [#allocation20], %s18875_s18  ;;  %s696_s26 = scalar_lea.sflag [#allocation21], %s18878_s24 }
 0x157   : > { %s705_s27 = sshll.u32 %s698_s29, 4  ;;  %s706_s27 = int_to_ptr.vmem [resolvable:$true] %s705_s27 }
 0x15a   : > { %s19237_s4 = scalar_lea.hbm %s22752_s3, %s18899_s22  ;;  %s18611_s9 = scalar_lea.hbm %s22752_s3, 48 }
 0x15b   : > { %s18606_s19 = scalar_lea.hbm %s19237_s4, 16  ;;  %p18612_p7 = scmp.lt.s32.totalorder %s19237_s4, %s22752_s3 }
 0x15c   : > { %p18607_p2 = scmp.ne.s32.totalorder %s19237_s4, %s18606_s19  ;;  %p18613_p11 = scmp.lt.s32.totalorder %s18611_s9, %s18606_s19 }
 0x15e   : > { %p18609_p3 = pnand %p18607_p2, %p18917_p5  ;;  %p18614_p4 = por %p18613_p11, %p18612_p7 }
 0x160   : > { %p18610_p6 = pneg %p18609_p3 }
 0x162   : > { %p18615_p9 = pnand %p18614_p4, %p18610_p6 }
 0x164   : > { %18618 = shalt.err (!%p18615_p9)
}
 0x165   : > { %s18619_s22 = scalar_lea.vmem %s706_s27, 16  ;;  %s18722_s18 = smov [#allocation20]  }
 0x166   : > { %p18620_p8 = scmp.ne.s32.totalorder %s706_s27, %s18619_s22  ;;  %s18624_s24 = sshll.u32 %s18722_s18, 4  ;;  %s18625_s24 = int_to_ptr.vmem [resolvable:$false] %s18624_s24 }
 0x167   : > { %s18626_s21 = scalar_lea.vmem %s18625_s24, 32  ;;  %p18627_p1 = scmp.lt.s32.totalorder %s706_s27, %s18625_s24 }
 0x168   : > { %p18622_p10 = pnand %p18620_p8, %p18917_p5  ;;  %p18628_p13 = scmp.lt.s32.totalorder %s18626_s21, %s18619_s22 }
 0x16a   : > { %p18623_p12 = pneg %p18622_p10  ;;  %p18629_p2 = por %p18628_p13, %p18627_p1 }
 0x16c   : > { %p18630_p3 = pnand %p18629_p2, %p18623_p12 }
 0x16e   : > { %18633 = shalt.err (!%p18630_p3)
}
 0x16f   : > { %17691 = dma.hbm_to_vmem [thread:$0]  (!%p18882_p0), %s19237_s4, 16, %s706_s27, %s696_s26  }
 0x170   : > { %s22753_s16 = sld [smem:[#allocation40_spill]] }
 0x176   : > { %p22754_p6 = scmp.ne.s32.totalorder %s22753_s16, 0 }
 0x178   : > { %714 = sbr.rel (%p22754_p6) target bundleno = 4311 (0x10d7), region = 80 }
 0x17d   : > { %s22755_s30 = sld [smem:[#allocation34_spill]] }
 0x17e   : > { %s22756_s28 = sld [smem:[#allocation39_spill]] }
 0x183   : > { %s19260_s20 = sand.u32 1, %s22755_s30  }
 0x184   : > { %s17614_s17 = smul.u32 192, %s19260_s20  ;;  %s717_s11 = scalar_lea.sflag [#allocation4], %s19260_s20 }
 0x185   : > { %p22757_p5 = scmp.ne.s32.totalorder %s22756_s28, 0 }
 0x186   : > { %s19264_s29 = scalar_lea.vmem [#allocation3], %s17614_s17 }
 0x187   : > { %18651 = dma.done.wait (%p22757_p5), %s717_s11, 3072  }
 0x188   : > { %18653 = vsyncadd (%p22757_p5), %s717_s11, 4294964224  ;;  %s22758_s25 = sld [smem:[#allocation36_spill]]  ;;  %s17615_s27 = smul.u32 3, %s19260_s20 }
 0x18a   : > { %s19275_s19 = scalar_lea.vmem [#allocation5], %s17615_s27 }
 0x18e   : > { %s19271_s4 = sand.u32 1, %s22758_s25  }
 0x18f   : > { %s726_s26 = scalar_lea.sflag [#allocation6], %s19271_s4 }
 0x190   : > { %18655 = dma.done.wait (%p22757_p5), %s726_s26, 1072  }
 0x191   : > { %18657 = vsyncadd (%p22757_p5), %s726_s26, 4294966224  ;;  %s15759_s15 = sshll.u32 %s19260_s20, 6  ;;  %s744_s9 = scalar_lea.sflag [#allocation9], %s19271_s4 }
 0x192   : > { %s19282_s23 = scalar_lea.vmem [#allocation7], %s15759_s15  ;;  %s746_s12 = scalar_lea.vmem [#allocation8], %s19260_s20 }
 0x193   : > { %18659 = dma.done.wait (%p22757_p5), %s744_s9, 16400  }
 0x194   : > { %18661 = vsyncadd (%p22757_p5), %s744_s9, 4294950896  ;;  %s15760_s1 = sshll.u32 %s19260_s20, 10  ;;  %s15761_s22 = sshll.u32 %s19260_s20, 4 }
 0x195   : > { %s19292_s18 = scalar_lea.vmem [#allocation10], %s15760_s1  ;;  %s761_s24 = scalar_lea.sflag [#allocation12], %s19271_s4 }
 0x196   : > { %s19295_s21 = scalar_lea.vmem [#allocation11], %s15761_s22 }
 0x197   : > { %18663 = dma.done.wait (%p22757_p5), %s761_s24, 16640  }
 0x198   : > { %18665 = vsyncadd (%p22757_p5), %s761_s24, 4294950656  ;;  %s19301_s16 = scalar_lea.vmem [#allocation13], %s15760_s1  ;;  %s779_s30 = scalar_lea.sflag [#allocation15], %s19271_s4 }
 0x199   : > { %s781_s17 = scalar_lea.vmem [#allocation14], %s19260_s20 }
 0x19a   : > { %18667 = dma.done.wait (%p22757_p5), %s779_s30, 32  }
 0x19b   : > { %18669 = vsyncadd (%p22757_p5), %s779_s30, 4294967264  ;;  %s789_s11 = scalar_lea.vmem [#allocation16], %s19260_s20  ;;  %s795_s27 = scalar_lea.sflag [#allocation18], %s19271_s4 }
 0x19c   : > { %s797_s26 = scalar_lea.vmem [#allocation17], %s19260_s20 }
 0x19d   : > { %18671 = dma.done.wait (%p22757_p5), %s795_s27, 32  }
 0x19e   : > { %18673 = vsyncadd (%p22757_p5), %s795_s27, 4294967264  ;;  %s811_s9 = scalar_lea.sflag [#allocation21], %s19271_s4 }
 0x19f   : > { %18675 = dma.done.wait (%p22757_p5), %s811_s9, 16  }
 0x1a0   : > { %18677 = vsyncadd (%p22757_p5), %s811_s9, 4294967280  ;;  %p22759_p0 = scmp.eq.s32.totalorder %s22758_s25, 0 }
 0x1a2   : > { %18679 = dma.done.wait (%p22759_p0), [#allocation21], 2048   ;;  %p22760_p7 = pmov %p22759_p0 }
 0x1a3   : > { %p22761_p11 = pmov %p22759_p0 }
 0x1a4   : > { %18681 = vsyncadd (%p22760_p7), [#allocation21], 4294965248 }
 0x1a5   : > { %18683 = dma.done.wait (%p22761_p11), [#allocation24], 16   ;;  %p22762_p4 = pmov %p22759_p0 }
 0x1a6   : > { %p22763_p9 = scmp.ne.s32.totalorder %s22758_s25, 0 }
 0x1a7   : > { %18685 = vsyncadd (%p22762_p4), [#allocation24], 4294967280  ;;  %s22764_s24 = sld [smem:[#allocation96_spill]] (!%p22763_p9) }
 0x1a8   : > { %916 = sbr.rel (%p22763_p9) target bundleno = 432 (0x1b0), region = 140 }
 0x1ad   : > { %v17748_v0 = vld [vmem:[%s22764_s24] sm:$0xff]   ;;  %v17749_v1 = vld [vmem:[%s22764_s24 + $0x8] sm:$0xff]   ;;  %v17750_v2 = vld [vmem:[%s22764_s24 + $0x10] sm:$0xff]  }
 0x1ae   : > { %941 = vst [vmem:[#allocation2 + $0x10] sm:$0xff] %v17748_v0  ;;  %942 = vst [vmem:[#allocation2] sm:$0xff] %v17749_v1  ;;  %v17751_v3 = vld [vmem:[%s22764_s24 + $0x18] sm:$0xff]  }
 0x1af   : > { %943 = vst [vmem:[#allocation2 + $0x18] sm:$0xff] %v17750_v2  ;;  %944 = vst [vmem:[#allocation2 + $0x8] sm:$0xff] %v17751_v3 }
 0x1b0 PF: > { %v17752_v4 = vld [vmem:[%s19264_s29 + $0xac] ss:$12 sps:$4 sm:$0xff]   ;;  %v17754_v5 = vld [vmem:[%s19264_s29 + $0xa8] ss:$12 sps:$4 sm:$0xff]   ;;  %v22636_v6 = vmov 0   ;;  %v22638_v35 = vmov 0.0   ;;  %v985_v36 = vlaneseq }
 0x1b1   : > { %1160 = vmatprep.mubr.bf16.mxu0 %v22636_v6  ;;  %1128 = vmatprep.subr.bf16.mxu0 %v17752_v4  ;;  %v17755_v7 = vld [vmem:[%s19264_s29 + $0x94] ss:$12 sps:$4 sm:$0xff]   ;;  %v17757_v8 = vld [vmem:[%s19264_s29 + $0x90] ss:$12 sps:$4 sm:$0xff]   ;;  %v17760_v10 = vld [vmem:[%s19264_s29 + $0x78] ss:$12 sps:$4 sm:$0xff]  }
 0x1b2   : > { %1129 = vmatpush1.bf16.msra.mxu0 %v17754_v5  ;;  %v17758_v9 = vld [vmem:[%s19264_s29 + $0x7c] ss:$12 sps:$4 sm:$0xff]   ;;  %v17761_v11 = vld [vmem:[%s19264_s29 + $0x64] ss:$12 sps:$4 sm:$0xff]   ;;  %v17763_v12 = vld [vmem:[%s19264_s29 + $0x60] ss:$12 sps:$4 sm:$0xff]  }
 0x1b3   : > { %1130 = vmatprep.subr.bf16.mxu0 %v17755_v7  ;;  %v17764_v13 = vld [vmem:[%s19264_s29 + $0x4c] ss:$12 sps:$4 sm:$0xff]   ;;  %v17776_v14 = vld [vmem:[%s19264_s29 + $0xb0] ss:$12 sps:$4 sm:$0xff]   ;;  %v17766_v18 = vld [vmem:[%s19264_s29 + $0x48] ss:$12 sps:$4 sm:$0xff]  }
 0x1b4   : > { %16844 = vmatprep.subr.bf16.mxu1 %v17776_v14  ;;  %v17777_v17 = vld [vmem:[%s19264_s29 + $0x98] ss:$12 sps:$4 sm:$0xff]   ;;  %v17778_v20 = vld [vmem:[%s19264_s29 + $0x80] ss:$12 sps:$4 sm:$0xff]   ;;  %v17769_v22 = vld [vmem:[%s19264_s29 + $0x30] ss:$12 sps:$4 sm:$0xff]  }
 0x1b5   : > { %v945_v15 = vld [vmem:[#allocation2 + $0x10] sm:$0xff]  ;;  %v946_v16 = vld [vmem:[#allocation2] sm:$0xff]  ;;  %16845 = vmatpush3.bf16.msra.mxu1 %v17776_v14  ;;  %v17770_v24 = vld [vmem:[%s19264_s29 + $0x1c] ss:$12 sps:$4 sm:$0xff]   ;;  %vm18725_vm0 = vmmov 0   ;;  %v19377_v37 = vshrl.u32 %v985_v36, 7 }
 0x1b6   : > { %1131 = vmatpush1.bf16.msra.mxu0 %v17757_v8  ;;  %v949_v19 = vpack.c.bf16 %v946_v16, %v945_v15  ;;  %16846 = vmatprep.subr.bf16.mxu1 %v17777_v17  ;;  %v17767_v21 = vld [vmem:[%s19264_s29 + $0x34] ss:$12 sps:$4 sm:$0xff]   ;;  %v17772_v25 = vld [vmem:[%s19264_s29 + $0x18] ss:$12 sps:$4 sm:$0xff]   ;;  %v17780_v26 = vld [vmem:[%s19264_s29 + $0x50] ss:$12 sps:$4 sm:$0xff]  }
 0x1b7   : > { %1132 = vmatprep.subr.bf16.mxu0 %v17758_v9  ;;  %v17779_v23 = vld [vmem:[%s19264_s29 + $0x68] ss:$12 sps:$4 sm:$0xff]   ;;  %v17773_v27 = vld [vmem:[%s19264_s29 + $0x4] ss:$12 sps:$4 sm:$0xff]   ;;  %v17775_v28 = vld [vmem:[%s19264_s29] ss:$12 sps:$4 sm:$0xff]  }
 0x1b8   : > { %16860 = vmatprep.mubr.bf16.mxu1 %v949_v19  ;;  %v17781_v29 = vld [vmem:[%s19264_s29 + $0x38] ss:$12 sps:$4 sm:$0xff]   ;;  %v17782_v30 = vld [vmem:[%s19264_s29 + $0x20] ss:$12 sps:$4 sm:$0xff]   ;;  %v17783_v31 = vld [vmem:[%s19264_s29 + $0x8] ss:$12 sps:$4 sm:$0xff]  }
 0x1b9   : > { %16847 = vmatpush3.bf16.msra.mxu1 %v17777_v17  ;;  %v947_v32 = vld [vmem:[#allocation2 + $0x18] sm:$0xff]  ;;  %v948_v33 = vld [vmem:[#allocation2 + $0x8] sm:$0xff]  ;;  %22765 = vst [vmem:[#allocation41_spill] sm:$0xff] %v19377_v37  ;;  %v19380_v38 = vsub.s32 0, %v19377_v37  ;;  %v983_v39 = vld [vmem:[%s19275_s19] sm:$0x7] }
 0x1ba   : > { %1133 = vmatpush1.bf16.msra.mxu0 %v17760_v10  ;;  %16848 = vmatprep.subr.bf16.mxu1 %v17778_v20  ;;  %v950_v34 = vpack.c.bf16 %v948_v33, %v947_v32  ;;  %v19384_v40 = vsub.s32 1, %v19377_v37  ;;  %vm1254_vm1 = vcmask 130048   ;;  %s18726_s29 = smov 96   ;;  %s18727_s25 = smov 112   ;;  %v19404_v50 = vsub.s32 2, %v19377_v37 }
 0x1bb   : > { %1134 = vmatprep.subr.bf16.mxu0 %v17761_v11  ;;  %22766 = vst [vmem:[#allocation42_spill] sm:$0xff] %v19380_v38  ;;  %v988_v41 = vrot.slane %v983_v39, %v19380_v38  ;;  %s18728_s19 = smov 80   ;;  %s18729_s15 = smov 64   ;;  %vm6215_vm2 = vcmask 27648   ;;  %vm6924_vm3 = vcmask 1043456   ;;  %vm6920_vm4 = vcmask 31744  }
 0x1bc   : > { %22767 = vst [vmem:[#allocation43_spill] sm:$0xff] %v19384_v40  ;;  %v992_v42 = vrot.slane %v983_v39, %v19384_v40  ;;  %22768 = vst [vmem:[#allocation44_spill] sm:$0xff] %v19404_v50  ;;  %v19428_v55 = vrot.slane %v983_v39, %v19404_v50  ;;  %s18730_s1 = smov 48   ;;  %s18731_s4 = smov 32   ;;  %vm12066_vm5 = vcmask 261120   ;;  %vm12075_vm6 = vcmask 392192  }
 0x1bd   : > { %16849 = vmatpush3.bf16.msra.mxu1 %v17778_v20  ;;  %s18732_s22 = smov 16   ;;  %vm12084_vm7 = vcmask 523264   ;;  %vm12093_vm8 = vcmask 654336   ;;  %vm12102_vm9 = vcmask 785408   ;;  %vm12111_vm10 = vcmask 916480  }
 0x1be   : > { %1135 = vmatpush1.bf16.msra.mxu0 %v17763_v12  ;;  %16850 = vmatprep.subr.bf16.mxu1 %v17779_v23 }
 0x1bf   : > { %1136 = vmatprep.subr.bf16.mxu0 %v17764_v13 }
 0x1c1   : > { %16851 = vmatpush3.bf16.msra.mxu1 %v17779_v23 }
 0x1c2   : > { %1137 = vmatpush1.bf16.msra.mxu0 %v17766_v18  ;;  %16852 = vmatprep.subr.bf16.mxu1 %v17780_v26 }
 0x1c3   : > { %1138 = vmatprep.subr.bf16.mxu0 %v17767_v21 }
 0x1c5   : > { %16853 = vmatpush3.bf16.msra.mxu1 %v17780_v26 }
 0x1c6   : > { %1139 = vmatpush1.bf16.msra.mxu0 %v17769_v22  ;;  %16854 = vmatprep.subr.bf16.mxu1 %v17781_v29 }
 0x1c7   : > { %1140 = vmatprep.subr.bf16.mxu0 %v17770_v24 }
 0x1c9   : > { %16855 = vmatpush3.bf16.msra.mxu1 %v17781_v29 }
 0x1ca   : > { %1141 = vmatpush1.bf16.msra.mxu0 %v17772_v25  ;;  %16856 = vmatprep.subr.bf16.mxu1 %v17782_v30 }
 0x1cb   : > { %1142 = vmatprep.subr.bf16.mxu0 %v17773_v27 }
 0x1cd   : > { %16857 = vmatpush3.bf16.msra.mxu1 %v17782_v30 }
 0x1ce   : > { %1143 = vmatpush1.bf16.msra.mxu0 %v17775_v28  ;;  %16858 = vmatprep.subr.bf16.mxu1 %v17783_v31 }
 0x1cf   : > { %16874 = vmatprep.subr.mxu0 %v22638_v35 }
 0x1d1   : > { %1161 = vmatmul.mubr.bf16.vlgmr.msra.gmra.mxu0 %v949_v19  ;;  %16859 = vmatpush3.bf16.msra.mxu1 %v17783_v31 }
 0x1d2   : > { %1170 = vmatprep.mubr.bf16.mxu0 %v22636_v6  ;;  %16864 = vmatprep.subr.mxu1 %v22638_v35 }
 0x1d4   : > { %16861 = vmatmul.mubr.bf16.vlgmr.msra.gmra.mxu1 %v950_v34 }
 0x1d5   : > { %16866 = vmatprep.mubr.msk.f32.mxu1 %vm18725_vm0, %v22638_v35 }
 0x1d9   : > { %1171 = vmatmul.mubr.bf16.gmra.mxu0 %v950_v34 }
 0x1da   : > { %16876 = vmatprep.mubr.msk.f32.mxu0 %vm18725_vm0, %v22638_v35 }
 0x291   : > { %v1162_v43 = vpop.f32.mrf.mxu0 }
 0x292   : > { %v19388_v44 = vadd.f32 %v1162_v43, %v988_v41 }
 0x293   : > { %v1164_v45 = vpop.f32.mrf.mxu0 }
 0x294   : > { %v19390_v46 = vadd.f32 %v1164_v45, %v992_v42  ;;  %2471 = vrot.lane.b32.xlu0 %v19388_v44, %s18726_s29  ;;  %1847 = vrot.lane.b32.xlu1 %v19388_v44, %s18727_s25  ;;  %v19400_v48 = vcombine.high %v19388_v44, %v19388_v44  ;;  %v16862_v58 = vpop.f32.mrf.mxu1 }
 0x295   : > { %v1166_v47 = vpop.f32.mrf.mxu0  ;;  %v19445_v60 = vadd.f32 %v16862_v58, %v19428_v55 }
 0x296   : > { %16865 = vmatpush3.xpose.msk.msra.mxu1 %vm1254_vm1, %v19390_v46  ;;  %v19414_v52 = vcombine.high %v19390_v46, %v19390_v46  ;;  %v19422_v54 = vadd.f32 %v1166_v47, %v988_v41  ;;  %v1215_v8 = vpop.f32.mrf.mxu1 }
 0x297   : > { %v1168_v49 = vpop.f32.mrf.mxu0  ;;  %16869 = vmatprep.subr.mxu1 %v22638_v35  ;;  %22769 = vst [vmem:[#allocation45_spill] sm:$0xff] %v19445_v60  ;;  %v19534_v9 = vadd.f32 %v1215_v8, %v19428_v55 }
 0x298   : > { %v19406_v51 = vadd.f32 %v1168_v49, %v992_v42  ;;  %3095 = vrot.lane.b32.xlu0 %v19388_v44, %s18728_s19  ;;  %1925 = vrot.lane.b32.xlu1 %v19400_v48, %s18727_s25  ;;  %v19455_v63 = vcombine.high %v19422_v54, %v19422_v54 }
 0x299   : > { %16867 = vmatmul.mubr.msk.f32.vlgmr.msra.gmra.mxu1 %vm1254_vm1, %v19388_v44  ;;  %v1172_v53 = vpop.f32.mrf.mxu0  ;;  %22770 = vst [vmem:[#allocation46_spill] sm:$0xff] %v19534_v9  ;;  %v19590_v10 = vcombine.high %v19534_v9, %v19534_v9 }
 0x29a   : > { %16870 = vmatpush3.xpose.msk.msra.mxu1 %vm1254_vm1, %v19414_v52  ;;  %16875 = vmatpush3.xpose.msk.msra.mxu0 %vm1254_vm1, %v19406_v51  ;;  %v19436_v57 = vcombine.high %v19406_v51, %v19406_v51  ;;  %v19451_v62 = vadd.f32 %v1172_v53, %v988_v41 }
 0x29b   : > { %16871 = vmatprep.mubr.msk.f32.mxu1 %vm18725_vm0, %v22638_v35  ;;  %16879 = vmatprep.subr.mxu1 %v22638_v35  ;;  %v1174_v56 = vpop.f32.mrf.mxu0  ;;  %22771 = vst [vmem:[#allocation47_spill] sm:$0xff] %v19590_v10 }
 0x29c   : > { %3719 = vrot.lane.b32.xlu0 %v19388_v44, %s18729_s15  ;;  %2549 = vrot.lane.b32.xlu1 %v19400_v48, %s18726_s29  ;;  %v19438_v59 = vadd.f32 %v1174_v56, %v992_v42  ;;  %v19480_v4 = vcombine.high %v19451_v62, %v19451_v62 }
 0x29d   : > { %16872 = vmatmul.mubr.msk.f32.vlgmr.msra.gmra.mxu1 %vm1254_vm1, %v19400_v48  ;;  %16877 = vmatmul.mubr.msk.f32.vlgmr.msra.gmra.mxu0 %vm1254_vm1, %v19422_v54  ;;  %v1176_v61 = vpop.f32.mrf.mxu0 }
 0x29e   : > { %16880 = vmatpush3.xpose.msk.msra.mxu1 %vm1254_vm1, %v19436_v57  ;;  %16881 = vmatprep.mubr.msk.f32.mxu1 %vm18725_vm0, %v22638_v35  ;;  %v19462_v1 = vcombine.high %v19438_v59, %v19438_v59  ;;  %v19474_v3 = vadd.f32 %v1176_v61, %v988_v41 }
 0x29f   : > { %16884 = vmatprep.subr.mxu0 %v22638_v35  ;;  %v1178_v0 = vpop.f32.mrf.mxu0  ;;  %16886 = vmatprep.mubr.msk.f32.mxu0 %vm18725_vm0, %v22638_v35 }
 0x2a0   : > { %4343 = vrot.lane.b32.xlu0 %v19388_v44, %s18730_s1  ;;  %3173 = vrot.lane.b32.xlu1 %v19400_v48, %s18728_s19  ;;  %v19468_v2 = vadd.f32 %v1178_v0, %v992_v42  ;;  %v19503_v7 = vcombine.high %v19474_v3, %v19474_v3 }
 0x2a1   : > { %16882 = vmatmul.mubr.msk.f32.vlgmr.msra.gmra.mxu1 %vm1254_vm1, %v19455_v63  ;;  %16885 = vmatpush3.xpose.msk.msra.mxu0 %vm1254_vm1, %v19438_v59 }
 0x2a2   : > { %16889 = vmatprep.subr.mxu1 %v22638_v35  ;;  %16894 = vmatprep.subr.mxu0 %v22638_v35  ;;  %v19488_v5 = vcombine.high %v19468_v2, %v19468_v2 }
 0x2a3   : > { %16890 = vmatpush3.xpose.msk.msra.mxu1 %vm1254_vm1, %v19462_v1  ;;  %16891 = vmatprep.mubr.msk.f32.mxu1 %vm18725_vm0, %v22638_v35 }
 0x2a4   : > { %4967 = vrot.lane.b32.xlu0 %v19388_v44, %s18731_s4  ;;  %3797 = vrot.lane.b32.xlu1 %v19400_v48, %s18729_s15 }
 0x2a5   : > { %16887 = vmatmul.mubr.msk.f32.vlgmr.msra.gmra.mxu0 %vm1254_vm1, %v19451_v62  ;;  %16899 = vmatprep.subr.mxu1 %v22638_v35 }
 0x2a6   : > { %16895 = vmatpush3.xpose.msk.msra.mxu0 %vm1254_vm1, %v19468_v2  ;;  %16892 = vmatmul.mubr.msk.f32.vlgmr.msra.gmra.mxu1 %vm1254_vm1, %v19480_v4 }
 0x2a7   : > { %16896 = vmatprep.mubr.msk.f32.mxu0 %vm18725_vm0, %v22638_v35  ;;  %16900 = vmatpush3.xpose.msk.msra.mxu1 %vm1254_vm1, %v19488_v5 }
 0x2a8   : > { %5591 = vrot.lane.b32.xlu0 %v19388_v44, %s18732_s22  ;;  %4421 = vrot.lane.b32.xlu1 %v19400_v48, %s18730_s1 }
 0x2a9   : > { %16897 = vmatmul.mubr.msk.f32.vlgmr.msra.gmra.mxu0 %vm1254_vm1, %v19474_v3  ;;  %16901 = vmatprep.mubr.msk.f32.mxu1 %vm18725_vm0, %v22638_v35 }
 0x2aa   : > { %16902 = vmatmul.mubr.msk.f32.vlgmr.msra.gmra.mxu1 %vm1254_vm1, %v19503_v7  ;;  %16904 = vmatprep.subr.mxu0 %v22638_v35 }
 0x2ab   : > { %16906 = vmatprep.mubr.msk.f32.mxu0 %vm18725_vm0, %v22638_v35  ;;  %16909 = vmatprep.subr.mxu1 %v22638_v35 }
 0x2ac   : > { %1849 = vrot.lane.b32.xlu0 %v19390_v46, %s18727_s25  ;;  %5045 = vrot.lane.b32.xlu1 %v19400_v48, %s18731_s4 }
 0x2ad   : > { %16911 = vmatprep.mubr.msk.f32.mxu1 %vm18725_vm0, %v22638_v35 }
 0x2b0   : > { %2473 = vrot.lane.b32.xlu0 %v19390_v46, %s18726_s29  ;;  %5669 = vrot.lane.b32.xlu1 %v19400_v48, %s18732_s22 }
 0x2b4   : > { %3097 = vrot.lane.b32.xlu0 %v19390_v46, %s18728_s19  ;;  %7522 = vrot.lane.b32.xlu1 %v19534_v9, %s18727_s25 }
 0x2b8   : > { %3721 = vrot.lane.b32.xlu0 %v19390_v46, %s18729_s15  ;;  %2551 = vrot.lane.b32.xlu1 %v19414_v52, %s18726_s29 }
 0x2bc   : > { %4345 = vrot.lane.b32.xlu0 %v19390_v46, %s18730_s1  ;;  %3175 = vrot.lane.b32.xlu1 %v19414_v52, %s18728_s19 }
 0x2c0   : > { %4969 = vrot.lane.b32.xlu0 %v19390_v46, %s18731_s4  ;;  %3799 = vrot.lane.b32.xlu1 %v19414_v52, %s18729_s15 }
 0x2c4   : > { %5593 = vrot.lane.b32.xlu0 %v19390_v46, %s18732_s22  ;;  %4423 = vrot.lane.b32.xlu1 %v19414_v52, %s18730_s1 }
 0x2c8   : > { %1927 = vrot.lane.b32.xlu0 %v19414_v52, %s18727_s25  ;;  %5047 = vrot.lane.b32.xlu1 %v19414_v52, %s18731_s4 }
 0x2cc   : > { %2003 = vrot.lane.b32.xlu0 %v19422_v54, %s18727_s25  ;;  %5671 = vrot.lane.b32.xlu1 %v19414_v52, %s18732_s22 }
 0x2d0   : > { %2627 = vrot.lane.b32.xlu0 %v19422_v54, %s18726_s29  ;;  %2081 = vrot.lane.b32.xlu1 %v19455_v63, %s18727_s25 }
 0x2d4   : > { %3251 = vrot.lane.b32.xlu0 %v19422_v54, %s18728_s19  ;;  %2705 = vrot.lane.b32.xlu1 %v19455_v63, %s18726_s29 }
 0x2d8   : > { %3875 = vrot.lane.b32.xlu0 %v19422_v54, %s18729_s15  ;;  %3329 = vrot.lane.b32.xlu1 %v19455_v63, %s18728_s19 }
 0x2dc   : > { %4499 = vrot.lane.b32.xlu0 %v19422_v54, %s18730_s1  ;;  %3953 = vrot.lane.b32.xlu1 %v19455_v63, %s18729_s15 }
 0x2e0   : > { %5123 = vrot.lane.b32.xlu0 %v19422_v54, %s18731_s4  ;;  %4577 = vrot.lane.b32.xlu1 %v19455_v63, %s18730_s1 }
 0x2e4   : > { %5747 = vrot.lane.b32.xlu0 %v19422_v54, %s18732_s22  ;;  %5201 = vrot.lane.b32.xlu1 %v19455_v63, %s18731_s4 }
 0x2e8   : > { %7599 = vrot.lane.b32.xlu0 %v19590_v10, %s18727_s25  ;;  %5825 = vrot.lane.b32.xlu1 %v19455_v63, %s18732_s22 }
 0x2ec   : > { %2005 = vrot.lane.b32.xlu0 %v19406_v51, %s18727_s25  ;;  %2083 = vrot.lane.b32.xlu1 %v19436_v57, %s18727_s25 }
 0x2f0   : > { %2629 = vrot.lane.b32.xlu0 %v19406_v51, %s18726_s29  ;;  %2707 = vrot.lane.b32.xlu1 %v19436_v57, %s18726_s29 }
 0x2f4   : > { %3253 = vrot.lane.b32.xlu0 %v19406_v51, %s18728_s19  ;;  %3331 = vrot.lane.b32.xlu1 %v19436_v57, %s18728_s19 }
 0x2f8   : > { %3877 = vrot.lane.b32.xlu0 %v19406_v51, %s18729_s15  ;;  %3955 = vrot.lane.b32.xlu1 %v19436_v57, %s18729_s15 }
 0x2fc   : > { %4501 = vrot.lane.b32.xlu0 %v19406_v51, %s18730_s1  ;;  %4579 = vrot.lane.b32.xlu1 %v19436_v57, %s18730_s1 }
 0x300   : > { %5125 = vrot.lane.b32.xlu0 %v19406_v51, %s18731_s4  ;;  %5203 = vrot.lane.b32.xlu1 %v19436_v57, %s18731_s4 }
 0x304   : > { %5749 = vrot.lane.b32.xlu0 %v19406_v51, %s18732_s22  ;;  %5827 = vrot.lane.b32.xlu1 %v19436_v57, %s18732_s22  ;;  %v19778_v57 = vpop.f32.mrf.mxu1 }
 0x306   : > { %v19624_v11 = vpop.permute.xlu0 %2471  ;;  %v1848_v12 = vpop.permute.xlu1 %1847 }
 0x307   : > { %v1218_v61 = vpop.f32.mrf.mxu1 }
 0x308   : > { %2159 = vrot.lane.b32.xlu0 %v19451_v62, %s18727_s25  ;;  %2237 = vrot.lane.b32.xlu1 %v19480_v4, %s18727_s25 }
 0x30a   : > { %v19630_v13 = vpop.permute.xlu0 %3095  ;;  %v1926_v14 = vpop.permute.xlu1 %1925 }
 0x30c   : > { %2783 = vrot.lane.b32.xlu0 %v19451_v62, %s18726_s29  ;;  %2861 = vrot.lane.b32.xlu1 %v19480_v4, %s18726_s29 }
 0x30e   : > { %v19636_v15 = vpop.permute.xlu0 %3719  ;;  %v19638_v16 = vpop.permute.xlu1 %2549 }
 0x310   : > { %3407 = vrot.lane.b32.xlu0 %v19451_v62, %s18728_s19  ;;  %3485 = vrot.lane.b32.xlu1 %v19480_v4, %s18728_s19 }
 0x312   : > { %v19644_v17 = vpop.permute.xlu0 %4343  ;;  %v19646_v18 = vpop.permute.xlu1 %3173 }
 0x314   : > { %4031 = vrot.lane.b32.xlu0 %v19451_v62, %s18729_s15  ;;  %4109 = vrot.lane.b32.xlu1 %v19480_v4, %s18729_s15 }
 0x316   : > { %v19652_v19 = vpop.permute.xlu0 %4967  ;;  %v19654_v20 = vpop.permute.xlu1 %3797 }
 0x317   : > { %22772 = vst [vmem:[#allocation48_spill] sm:$0xff] %v19652_v19 }
 0x318   : > { %4655 = vrot.lane.b32.xlu0 %v19451_v62, %s18730_s1  ;;  %4733 = vrot.lane.b32.xlu1 %v19480_v4, %s18730_s1 }
 0x31a   : > { %v19660_v21 = vpop.permute.xlu0 %5591  ;;  %v19662_v22 = vpop.permute.xlu1 %4421 }
 0x31b   : > { %22773 = vst [vmem:[#allocation49_spill] sm:$0xff] %v19660_v21 }
 0x31c   : > { %5279 = vrot.lane.b32.xlu0 %v19451_v62, %s18731_s4  ;;  %5357 = vrot.lane.b32.xlu1 %v19480_v4, %s18731_s4 }
 0x31e   : > { %v1850_v23 = vpop.permute.xlu0 %1849  ;;  %v19668_v24 = vpop.permute.xlu1 %5045 }
 0x31f   : > { %22774 = vst [vmem:[#allocation50_spill] sm:$0xff] %v19668_v24  ;;  %16905 = vmatpush3.xpose.msk.msra.mxu0 %vm1254_vm1, %v1850_v23 }
 0x320   : > { %5903 = vrot.lane.b32.xlu0 %v19451_v62, %s18732_s22  ;;  %5981 = vrot.lane.b32.xlu1 %v19480_v4, %s18732_s22 }
 0x321   : > { %16914 = vmatprep.subr.mxu0 %v22638_v35 }
 0x322   : > { %v19676_v25 = vpop.permute.xlu0 %2473  ;;  %16907 = vmatmul.mubr.msk.f32.vlgmr.msra.gmra.mxu0 %vm1254_vm1, %v1848_v12  ;;  %v19679_v26 = vpop.permute.xlu1 %5669 }
 0x323   : > { %22775 = vst [vmem:[#allocation51_spill] sm:$0xff] %v19679_v26  ;;  %16916 = vmatprep.mubr.msk.f32.mxu0 %vm18725_vm0, %v22638_v35 }
 0x324   : > { %2161 = vrot.lane.b32.xlu0 %v19438_v59, %s18727_s25  ;;  %2239 = vrot.lane.b32.xlu1 %v19462_v1, %s18727_s25 }
 0x326   : > { %v19687_v27 = vpop.permute.xlu0 %3097  ;;  %v19689_v28 = vpop.permute.xlu1 %7522 }
 0x327   : > { %22776 = vst [vmem:[#allocation52_spill] sm:$0xff] %v19689_v28 }
 0x328   : > { %2785 = vrot.lane.b32.xlu0 %v19438_v59, %s18726_s29  ;;  %2863 = vrot.lane.b32.xlu1 %v19462_v1, %s18726_s29 }
 0x32a   : > { %v19695_v29 = vpop.permute.xlu0 %3721  ;;  %v19697_v30 = vpop.permute.xlu1 %2551 }
 0x32c   : > { %3409 = vrot.lane.b32.xlu0 %v19438_v59, %s18728_s19  ;;  %3487 = vrot.lane.b32.xlu1 %v19462_v1, %s18728_s19 }
 0x32e   : > { %v19703_v31 = vpop.permute.xlu0 %4345  ;;  %v19705_v32 = vpop.permute.xlu1 %3175 }
 0x330   : > { %4033 = vrot.lane.b32.xlu0 %v19438_v59, %s18729_s15  ;;  %4111 = vrot.lane.b32.xlu1 %v19462_v1, %s18729_s15 }
 0x332   : > { %v19711_v33 = vpop.permute.xlu0 %4969  ;;  %v19713_v34 = vpop.permute.xlu1 %3799 }
 0x333   : > { %22777 = vst [vmem:[#allocation53_spill] sm:$0xff] %v19711_v33 }
 0x334   : > { %4657 = vrot.lane.b32.xlu0 %v19438_v59, %s18730_s1  ;;  %4735 = vrot.lane.b32.xlu1 %v19462_v1, %s18730_s1 }
 0x336   : > { %v19719_v36 = vpop.permute.xlu0 %5593  ;;  %v19721_v39 = vpop.permute.xlu1 %4423 }
 0x337   : > { %22778 = vst [vmem:[#allocation54_spill] sm:$0xff] %v19719_v36 }
 0x338   : > { %5281 = vrot.lane.b32.xlu0 %v19438_v59, %s18731_s4  ;;  %5359 = vrot.lane.b32.xlu1 %v19462_v1, %s18731_s4 }
 0x33a   : > { %v1928_v41 = vpop.permute.xlu0 %1927  ;;  %v19727_v42 = vpop.permute.xlu1 %5047 }
 0x33b   : > { %22779 = vst [vmem:[#allocation55_spill] sm:$0xff] %v19727_v42  ;;  %16910 = vmatpush3.xpose.msk.msra.mxu1 %vm1254_vm1, %v1928_v41 }
 0x33c   : > { %5905 = vrot.lane.b32.xlu0 %v19438_v59, %s18732_s22  ;;  %5983 = vrot.lane.b32.xlu1 %v19462_v1, %s18732_s22 }
 0x33d   : > { %16919 = vmatprep.subr.mxu1 %v22638_v35 }
 0x33e   : > { %v2004_v43 = vpop.permute.xlu0 %2003  ;;  %v19735_v44 = vpop.permute.xlu1 %5671  ;;  %16912 = vmatmul.mubr.msk.f32.vlgmr.msra.gmra.mxu1 %vm1254_vm1, %v1926_v14 }
 0x33f   : > { %22780 = vst [vmem:[#allocation56_spill] sm:$0xff] %v19735_v44  ;;  %16921 = vmatprep.mubr.msk.f32.mxu1 %vm18725_vm0, %v22638_v35 }
 0x340   : > { %2315 = vrot.lane.b32.xlu0 %v19474_v3, %s18727_s25  ;;  %2393 = vrot.lane.b32.xlu1 %v19503_v7, %s18727_s25 }
 0x342   : > { %v19744_v45 = vpop.permute.xlu0 %2627  ;;  %v2082_v46 = vpop.permute.xlu1 %2081 }
 0x344   : > { %2939 = vrot.lane.b32.xlu0 %v19474_v3, %s18726_s29  ;;  %3017 = vrot.lane.b32.xlu1 %v19503_v7, %s18726_s29 }
 0x346   : > { %v19750_v47 = vpop.permute.xlu0 %3251  ;;  %v19752_v48 = vpop.permute.xlu1 %2705 }
 0x348   : > { %3563 = vrot.lane.b32.xlu0 %v19474_v3, %s18728_s19  ;;  %3641 = vrot.lane.b32.xlu1 %v19503_v7, %s18728_s19 }
 0x34a   : > { %v19758_v49 = vpop.permute.xlu0 %3875  ;;  %v19760_v51 = vpop.permute.xlu1 %3329 }
 0x34c   : > { %4187 = vrot.lane.b32.xlu0 %v19474_v3, %s18729_s15  ;;  %4265 = vrot.lane.b32.xlu1 %v19503_v7, %s18729_s15 }
 0x34e   : > { %v19766_v52 = vpop.permute.xlu0 %4499  ;;  %v19768_v53 = vpop.permute.xlu1 %3953 }
 0x350   : > { %4811 = vrot.lane.b32.xlu0 %v19474_v3, %s18730_s1  ;;  %4889 = vrot.lane.b32.xlu1 %v19503_v7, %s18730_s1 }
 0x352   : > { %v19774_v54 = vpop.permute.xlu0 %5123  ;;  %v19776_v56 = vpop.permute.xlu1 %4577 }
 0x353   : > { %22781 = vst [vmem:[#allocation57_spill] sm:$0xff] %v19774_v54 }
 0x354   : > { %5435 = vrot.lane.b32.xlu0 %v19474_v3, %s18731_s4  ;;  %5513 = vrot.lane.b32.xlu1 %v19503_v7, %s18731_s4 }
 0x356   : > { %v19784_v58 = vpop.permute.xlu0 %5747  ;;  %v19786_v59 = vpop.permute.xlu1 %5201 }
 0x357   : > { %22782 = vst [vmem:[#allocation58_spill] sm:$0xff] %v19784_v58  ;;  %22783 = vst [vmem:[#allocation59_spill] sm:$0xff] %v19786_v59 }
 0x358   : > { %6059 = vrot.lane.b32.xlu0 %v19474_v3, %s18732_s22  ;;  %6137 = vrot.lane.b32.xlu1 %v19503_v7, %s18732_s22 }
 0x359   : > { %v19792_v62 = vpop.f32.mrf.mxu1 }
 0x35a   : > { %22784 = vst [vmem:[#allocation60_spill] sm:$0xff] %v19792_v62  ;;  %v19794_v63 = vpop.permute.xlu0 %7599  ;;  %v19796_v0 = vpop.permute.xlu1 %5825 }
 0x35b   : > { %22785 = vst [vmem:[#allocation61_spill] sm:$0xff] %v19794_v63  ;;  %22786 = vst [vmem:[#allocation62_spill] sm:$0xff] %v19796_v0  ;;  %v16868_v1 = vpop.f32.mrf.mxu1 }
 0x35c   : > { %2317 = vrot.lane.b32.xlu0 %v19468_v2, %s18727_s25  ;;  %2395 = vrot.lane.b32.xlu1 %v19488_v5, %s18727_s25 }
 0x35d   : > { %v19802_v4 = vpop.f32.mrf.mxu1  ;;  %v19804_v8 = vpop.f32.mrf.mxu0 }
 0x35e   : > { %22787 = vst [vmem:[#allocation63_spill] sm:$0xff] %v19802_v4  ;;  %22788 = vst [vmem:[#allocation64_spill] sm:$0xff] %v19804_v8  ;;  %v2006_v3 = vpop.permute.xlu0 %2005  ;;  %v2084_v12 = vpop.permute.xlu1 %2083  ;;  %v6222_v24 = vsel %vm6215_vm2, %v19804_v8, -inf  ;;  %v6219_v19 = vsel %vm6215_vm2, %v19802_v4, -inf }
 0x35f   : > { %v16873_v7 = vpop.f32.mrf.mxu1  ;;  %v16878_v14 = vpop.f32.mrf.mxu0  ;;  %16915 = vmatpush3.xpose.msk.msra.mxu0 %vm1254_vm1, %v2006_v3  ;;  %16920 = vmatpush3.xpose.msk.msra.mxu1 %vm1254_vm1, %v2084_v12 }
 0x360   : > { %2941 = vrot.lane.b32.xlu0 %v19468_v2, %s18726_s29  ;;  %3019 = vrot.lane.b32.xlu1 %v19488_v5, %s18726_s29 }
 0x361   : > { %v19812_v23 = vpop.f32.mrf.mxu1  ;;  %16924 = vmatprep.subr.mxu0 %v22638_v35  ;;  %16929 = vmatprep.subr.mxu1 %v22638_v35 }
 0x362   : > { %22789 = vst [vmem:[#allocation65_spill] sm:$0xff] %v19812_v23  ;;  %v19816_v41 = vpop.permute.xlu0 %2629  ;;  %16917 = vmatmul.mubr.msk.f32.vlgmr.msra.gmra.mxu0 %vm1254_vm1, %v2004_v43  ;;  %v19819_v1 = vpop.permute.xlu1 %2707  ;;  %16922 = vmatmul.mubr.msk.f32.vlgmr.msra.gmra.mxu1 %vm1254_vm1, %v2082_v46 }
 0x363   : > { %v16883_v3 = vpop.f32.mrf.mxu1  ;;  %16926 = vmatprep.mubr.msk.f32.mxu0 %vm18725_vm0, %v22638_v35  ;;  %16931 = vmatprep.mubr.msk.f32.mxu1 %vm18725_vm0, %v22638_v35 }
 0x364   : > { %3565 = vrot.lane.b32.xlu0 %v19468_v2, %s18728_s19  ;;  %3643 = vrot.lane.b32.xlu1 %v19488_v5, %s18728_s19 }
 0x365   : > { %v19830_v12 = vpop.f32.mrf.mxu0 }
 0x366   : > { %22790 = vst [vmem:[#allocation66_spill] sm:$0xff] %v19830_v12  ;;  %v19832_v43 = vpop.permute.xlu0 %3253  ;;  %v19834_v7 = vpop.permute.xlu1 %3331  ;;  %v6228_v42 = vsel %vm6215_vm2, %v19830_v12, -inf }
 0x367   : > { %v16888_v46 = vpop.f32.mrf.mxu0  ;;  %v19836_v14 = vpop.f32.mrf.mxu1 }
 0x368   : > { %22791 = vst [vmem:[#allocation67_spill] sm:$0xff] %v19836_v14  ;;  %4189 = vrot.lane.b32.xlu0 %v19468_v2, %s18729_s15  ;;  %4267 = vrot.lane.b32.xlu1 %v19488_v5, %s18729_s15  ;;  %v6231_v8 = vsel %vm6215_vm2, %v19836_v14, -inf }
 0x369   : > { %v19842_v3 = vpop.f32.mrf.mxu0  ;;  %v16893_v6 = vpop.f32.mrf.mxu1 }
 0x36a   : > { %22792 = vst [vmem:[#allocation68_spill] sm:$0xff] %v19842_v3  ;;  %v19844_v35 = vpop.permute.xlu0 %3877  ;;  %v19846_v50 = vpop.permute.xlu1 %3955  ;;  %v19863_v6 = vadd.f32 %v1218_v61, %v19428_v55 }
 0x36b   : > { %v19848_v38 = vpop.f32.mrf.mxu1  ;;  %v16898_v40 = vpop.f32.mrf.mxu0 }
 0x36c   : > { %22793 = vst [vmem:[#allocation69_spill] sm:$0xff] %v19848_v38  ;;  %4813 = vrot.lane.b32.xlu0 %v19468_v2, %s18730_s1  ;;  %4891 = vrot.lane.b32.xlu1 %v19488_v5, %s18730_s1  ;;  %22794 = vst [vmem:[#allocation70_spill] sm:$0xff] %v19863_v6  ;;  %v19879_v58 = vcombine.high %v19863_v6, %v19863_v6  ;;  %v6237_v12 = vsel %vm6215_vm2, %v19848_v38, -inf }
 0x36d   : > { %v16903_v46 = vpop.f32.mrf.mxu1 }
 0x36e   : > { %v19854_v37 = vpop.permute.xlu0 %4501  ;;  %v19856_v63 = vpop.permute.xlu1 %4579  ;;  %22799 = vst [vmem:[#allocation75_spill] sm:$0xff] %v19879_v58 }
 0x370   : > { %5437 = vrot.lane.b32.xlu0 %v19468_v2, %s18731_s4  ;;  %5515 = vrot.lane.b32.xlu1 %v19488_v5, %s18731_s4 }
 0x372   : > { %v19865_v40 = vpop.permute.xlu0 %5125  ;;  %v19867_v28 = vpop.permute.xlu1 %5203 }
 0x373   : > { %22795 = vst [vmem:[#allocation71_spill] sm:$0xff] %v19865_v40  ;;  %22796 = vst [vmem:[#allocation72_spill] sm:$0xff] %v19867_v28 }
 0x374   : > { %6061 = vrot.lane.b32.xlu0 %v19468_v2, %s18732_s22  ;;  %6139 = vrot.lane.b32.xlu1 %v19488_v5, %s18732_s22  ;;  %v19887_v2 = vadd.f32 %v19778_v57, %v19428_v55 }
 0x376   : > { %v19873_v46 = vpop.permute.xlu0 %5749  ;;  %v19875_v0 = vpop.permute.xlu1 %5827  ;;  %22800 = vst [vmem:[#allocation76_spill] sm:$0xff] %v19887_v2  ;;  %v19903_v55 = vcombine.high %v19887_v2, %v19887_v2 }
 0x377   : > { %22797 = vst [vmem:[#allocation73_spill] sm:$0xff] %v19873_v46  ;;  %22798 = vst [vmem:[#allocation74_spill] sm:$0xff] %v19875_v0  ;;  %v19891_v46 = vcombine.high %v19445_v60, %v19445_v60 }
 0x378   : > { %7753 = vrot.lane.b32.xlu0 %v19879_v58, %s18727_s25  ;;  %7676 = vrot.lane.b32.xlu1 %v19863_v6, %s18727_s25  ;;  %22802 = vst [vmem:[#allocation78_spill] sm:$0xff] %v19903_v55 }
 0x379   : > { %22801 = vst [vmem:[#allocation77_spill] sm:$0xff] %v19891_v46 }
 0x37a   : > { %v2160_v61 = vpop.permute.xlu0 %2159  ;;  %v2238_v5 = vpop.permute.xlu1 %2237 }
 0x37c   : > { %7907 = vrot.lane.b32.xlu0 %v19891_v46, %s18727_s25  ;;  %7830 = vrot.lane.b32.xlu1 %v19445_v60, %s18727_s25 }
 0x37e   : > { %v19897_v0 = vpop.permute.xlu0 %2783  ;;  %v19899_v26 = vpop.permute.xlu1 %2861 }
 0x380   : > { %8061 = vrot.lane.b32.xlu0 %v19903_v55, %s18727_s25  ;;  %7984 = vrot.lane.b32.xlu1 %v19887_v2, %s18727_s25 }
 0x382   : > { %v19909_v57 = vpop.permute.xlu0 %3407  ;;  %v19911_v46 = vpop.permute.xlu1 %3485 }
 0x384   : > { %8215 = vrot.lane.b32.xlu0 %v19590_v10, %s18726_s29  ;;  %8138 = vrot.lane.b32.xlu1 %v19534_v9, %s18726_s29 }
 0x386   : > { %v19917_v60 = vpop.permute.xlu0 %4031  ;;  %v19919_v21 = vpop.permute.xlu1 %4109 }
 0x388   : > { %8369 = vrot.lane.b32.xlu0 %v19879_v58, %s18726_s29  ;;  %8292 = vrot.lane.b32.xlu1 %v19863_v6, %s18726_s29  ;;  %v22808_v58 = vmov 0.0  }
 0x38a   : > { %v19925_v55 = vpop.permute.xlu0 %4655  ;;  %v19927_v2 = vpop.permute.xlu1 %4733 }
 0x38b   : > { %22803 = vst [vmem:[#allocation79_spill] sm:$0xff] %v19927_v2 }
 0x38e   : > { %v19929_v44 = vpop.permute.xlu0 %5279  ;;  %v19931_v10 = vpop.permute.xlu1 %5357 }
 0x38f   : > { %22804 = vst [vmem:[#allocation80_spill] sm:$0xff] %v19929_v44  ;;  %22805 = vst [vmem:[#allocation81_spill] sm:$0xff] %v19931_v10 }
 0x392   : > { %v19933_v36 = vpop.permute.xlu0 %5903  ;;  %v19935_v9 = vpop.permute.xlu1 %5981 }
 0x393   : > { %22806 = vst [vmem:[#allocation82_spill] sm:$0xff] %v19933_v36  ;;  %22807 = vst [vmem:[#allocation83_spill] sm:$0xff] %v19935_v9 }
 0x396   : > { %v2162_v59 = vpop.permute.xlu0 %2161  ;;  %v2240_v54 = vpop.permute.xlu1 %2239 }
 0x397   : > { %16925 = vmatpush3.xpose.msk.msra.mxu0 %vm1254_vm1, %v2162_v59  ;;  %16930 = vmatpush3.xpose.msk.msra.mxu1 %vm1254_vm1, %v2240_v54 }
 0x398   : > { %16934 = vmatprep.subr.mxu0 %v22808_v58  ;;  %16939 = vmatprep.subr.mxu1 %v22808_v58 }
 0x39a   : > { %v19941_v6 = vpop.permute.xlu0 %2785  ;;  %16927 = vmatmul.mubr.msk.f32.vlgmr.msra.gmra.mxu0 %vm1254_vm1, %v2160_v61  ;;  %v19944_v44 = vpop.permute.xlu1 %2863  ;;  %16932 = vmatmul.mubr.msk.f32.vlgmr.msra.gmra.mxu1 %vm1254_vm1, %v2238_v5  ;;  %v6216_v5 = vsel %vm6215_vm2, %v19792_v62, -inf }
 0x39b   : > { %16936 = vmatprep.mubr.msk.f32.mxu0 %vm18725_vm0, %v22808_v58  ;;  %16941 = vmatprep.mubr.msk.f32.mxu1 %vm18725_vm0, %v22808_v58 }
 0x39e   : > { %v19951_v59 = vpop.permute.xlu0 %3409  ;;  %v19953_v54 = vpop.permute.xlu1 %3487 }
 0x3a2   : > { %v19955_v9 = vpop.permute.xlu0 %4033  ;;  %v19957_v36 = vpop.permute.xlu1 %4111 }
 0x3a6   : > { %v19959_v61 = vpop.permute.xlu0 %4657  ;;  %v19961_v10 = vpop.permute.xlu1 %4735 }
 0x3a7   : > { %6217 = vmax.xlane.f32.xlu0 %v6216_v5  ;;  %v6225_v5 = vsel %vm6215_vm2, %v19812_v23, -inf }
 0x3aa   : > { %v19965_v28 = vpop.permute.xlu0 %5281  ;;  %v19967_v40 = vpop.permute.xlu1 %5359 }
 0x3ab   : > { %22809 = vst [vmem:[#allocation84_spill] sm:$0xff] %v19965_v28  ;;  %22810 = vst [vmem:[#allocation85_spill] sm:$0xff] %v19967_v40  ;;  %6223 = vmax.xlane.f32.xlu0 %v6222_v24  ;;  %v6234_v24 = vsel %vm6215_vm2, %v19842_v3, -inf }
 0x3ac   : > { %6220 = vmax.xlane.f32.xlu1 %v6219_v19 }
 0x3ae   : > { %v19975_v33 = vpop.permute.xlu0 %5905  ;;  %v19977_v2 = vpop.permute.xlu1 %5983 }
 0x3af   : > { %22811 = vst [vmem:[#allocation86_spill] sm:$0xff] %v19975_v33  ;;  %22812 = vst [vmem:[#allocation87_spill] sm:$0xff] %v19977_v2  ;;  %6226 = vmax.xlane.f32.xlu0 %v6225_v5 }
 0x3b0   : > { %6229 = vmax.xlane.f32.xlu1 %v6228_v42 }
 0x3b2   : > { %v2316_v4 = vpop.permute.xlu0 %2315  ;;  %v2394_v19 = vpop.permute.xlu1 %2393 }
 0x3b3   : > { %6232 = vmax.xlane.f32.xlu0 %v6231_v8 }
 0x3b4   : > { %6235 = vmax.xlane.f32.xlu1 %v6234_v24 }
 0x3b6   : > { %v2940_v62 = vpop.permute.xlu0 %2939  ;;  %v3018_v2 = vpop.permute.xlu1 %3017 }
 0x3b7   : > { %6238 = vmax.xlane.f32.xlu0 %v6237_v12 }
 0x3ba   : > { %v19987_v33 = vpop.permute.xlu0 %3563  ;;  %v19989_v5 = vpop.permute.xlu1 %3641 }
 0x3be   : > { %v19991_v42 = vpop.permute.xlu0 %4187  ;;  %v19993_v14 = vpop.permute.xlu1 %4265 }
 0x3c2   : > { %v19995_v23 = vpop.permute.xlu0 %4811  ;;  %v19997_v3 = vpop.permute.xlu1 %4889 }
 0x3c6   : > { %v19999_v8 = vpop.permute.xlu0 %5435  ;;  %v20001_v24 = vpop.permute.xlu1 %5513 }
 0x3ca   : > { %v20003_v38 = vpop.permute.xlu0 %6059  ;;  %v20005_v40 = vpop.permute.xlu1 %6137 }
 0x3ce   : > { %v2318_v12 = vpop.permute.xlu0 %2317  ;;  %v2396_v28 = vpop.permute.xlu1 %2395 }
 0x3cf   : > { %16935 = vmatpush3.xpose.msk.msra.mxu0 %vm1254_vm1, %v2318_v12  ;;  %16940 = vmatpush3.xpose.msk.msra.mxu1 %vm1254_vm1, %v2396_v28 }
 0x3d0   : > { %16944 = vmatprep.subr.mxu0 %v22808_v58  ;;  %16949 = vmatprep.subr.mxu1 %v22808_v58 }
 0x3d2   : > { %16937 = vmatmul.mubr.msk.f32.vlgmr.msra.gmra.mxu0 %vm1254_vm1, %v2316_v4  ;;  %16942 = vmatmul.mubr.msk.f32.vlgmr.msra.gmra.mxu1 %vm1254_vm1, %v2394_v19  ;;  %v22830_v4 = vld [vmem:[#allocation73_spill] sm:$0xff] }
 0x3d3   : > { %16945 = vmatpush3.xpose.msk.msra.mxu0 %vm1254_vm1, %v19676_v25  ;;  %16950 = vmatpush3.xpose.msk.msra.mxu1 %vm1254_vm1, %v19697_v30  ;;  %v22819_v30 = vld [vmem:[#allocation72_spill] sm:$0xff] }
 0x3d4   : > { %16946 = vmatprep.mubr.msk.f32.mxu0 %vm18725_vm0, %v22808_v58  ;;  %16951 = vmatprep.mubr.msk.f32.mxu1 %vm18725_vm0, %v22808_v58 }
 0x3d5   : > { %16954 = vmatprep.subr.mxu0 %v22808_v58  ;;  %16959 = vmatprep.subr.mxu1 %v22808_v58 }
 0x3d6   : > { %16947 = vmatmul.mubr.msk.f32.vlgmr.msra.gmra.mxu0 %vm1254_vm1, %v19624_v11  ;;  %16952 = vmatmul.mubr.msk.f32.vlgmr.msra.gmra.mxu1 %vm1254_vm1, %v19638_v16  ;;  %v2942_v11 = vpop.permute.xlu0 %2941  ;;  %v3020_v16 = vpop.permute.xlu1 %3019 }
 0x3d7   : > { %16955 = vmatpush3.xpose.msk.msra.mxu0 %vm1254_vm1, %v19816_v41  ;;  %16960 = vmatpush3.xpose.msk.msra.mxu1 %vm1254_vm1, %v19819_v1  ;;  %v22832_v41 = vld [vmem:[#allocation58_spill] sm:$0xff] }
 0x3d8   : > { %16956 = vmatprep.mubr.msk.f32.mxu0 %vm18725_vm0, %v22808_v58  ;;  %16961 = vmatprep.mubr.msk.f32.mxu1 %vm18725_vm0, %v22808_v58  ;;  %v22833_v1 = vld [vmem:[#allocation62_spill] sm:$0xff] }
 0x3d9   : > { %16964 = vmatprep.subr.mxu0 %v22808_v58  ;;  %16969 = vmatprep.subr.mxu1 %v22808_v58 }
 0x3da   : > { %16957 = vmatmul.mubr.msk.f32.vlgmr.msra.gmra.mxu0 %vm1254_vm1, %v19744_v45  ;;  %16962 = vmatmul.mubr.msk.f32.vlgmr.msra.gmra.mxu1 %vm1254_vm1, %v19752_v48  ;;  %v22825_v45 = vld [vmem:[#allocation81_spill] sm:$0xff] }
 0x3db   : > { %16965 = vmatpush3.xpose.msk.msra.mxu0 %vm1254_vm1, %v19941_v6  ;;  %16970 = vmatpush3.xpose.msk.msra.mxu1 %vm1254_vm1, %v19944_v44  ;;  %v22824_v44 = vld [vmem:[#allocation80_spill] sm:$0xff]  ;;  %v22836_v6 = vld [vmem:[#allocation82_spill] sm:$0xff] }
 0x3dc   : > { %16966 = vmatprep.mubr.msk.f32.mxu0 %vm18725_vm0, %v22808_v58  ;;  %16971 = vmatprep.mubr.msk.f32.mxu1 %vm18725_vm0, %v22808_v58 }
 0x3dd   : > { %16974 = vmatprep.subr.mxu0 %v22808_v58  ;;  %16979 = vmatprep.subr.mxu1 %v22808_v58 }
 0x3de   : > { %16967 = vmatmul.mubr.msk.f32.vlgmr.msra.gmra.mxu0 %vm1254_vm1, %v19897_v0  ;;  %16972 = vmatmul.mubr.msk.f32.vlgmr.msra.gmra.mxu1 %vm1254_vm1, %v19899_v26  ;;  %v22829_v0 = vld [vmem:[#allocation51_spill] sm:$0xff] }
 0x3df   : > { %16975 = vmatpush3.xpose.msk.msra.mxu0 %vm1254_vm1, %v2942_v11  ;;  %16980 = vmatpush3.xpose.msk.msra.mxu1 %vm1254_vm1, %v3020_v16 }
 0x3e0   : > { %16976 = vmatprep.mubr.msk.f32.mxu0 %vm18725_vm0, %v22808_v58  ;;  %16981 = vmatprep.mubr.msk.f32.mxu1 %vm18725_vm0, %v22808_v58 }
 0x3e1   : > { %16984 = vmatprep.subr.mxu0 %v22808_v58  ;;  %16989 = vmatprep.subr.mxu1 %v22808_v58 }
 0x3e2   : > { %v20063_v25 = vpop.f32.mrf.mxu0  ;;  %16977 = vmatmul.mubr.msk.f32.vlgmr.msra.gmra.mxu0 %vm1254_vm1, %v2940_v62  ;;  %16982 = vmatmul.mubr.msk.f32.vlgmr.msra.gmra.mxu1 %vm1254_vm1, %v3018_v2  ;;  %v22838_v2 = vld [vmem:[#allocation46_spill] sm:$0xff] }
 0x3e3   : > { %16985 = vmatpush3.xpose.msk.msra.mxu0 %vm1254_vm1, %v19687_v27  ;;  %16990 = vmatpush3.xpose.msk.msra.mxu1 %vm1254_vm1, %v19705_v32  ;;  %v6240_v26 = vsel %vm6215_vm2, %v20063_v25, -inf  ;;  %v22817_v27 = vld [vmem:[#allocation50_spill] sm:$0xff]  ;;  %v22821_v32 = vld [vmem:[#allocation59_spill] sm:$0xff] }
 0x3e4   : > { %v16908_v28 = vpop.f32.mrf.mxu0  ;;  %6241 = vmax.xlane.f32.xlu1 %v6240_v26  ;;  %16986 = vmatprep.mubr.msk.f32.mxu0 %vm18725_vm0, %v22808_v58 }
 0x3e5   : > { %16991 = vmatprep.mubr.msk.f32.mxu1 %vm18725_vm0, %v22808_v58  ;;  %16994 = vmatprep.subr.mxu0 %v22808_v58 }
 0x3e6   : > { %16987 = vmatmul.mubr.msk.f32.vlgmr.msra.gmra.mxu0 %vm1254_vm1, %v19630_v13  ;;  %16992 = vmatmul.mubr.msk.f32.vlgmr.msra.gmra.mxu1 %vm1254_vm1, %v19646_v18  ;;  %v3566_v13 = vpop.permute.xlu0 %3565  ;;  %v3644_v18 = vpop.permute.xlu1 %3643 }
 0x3e7   : > { %16999 = vmatprep.subr.mxu1 %v22808_v58  ;;  %16995 = vmatpush3.xpose.msk.msra.mxu0 %vm1254_vm1, %v19832_v43  ;;  %v22834_v43 = vld [vmem:[#allocation86_spill] sm:$0xff] }
 0x3e8   : > { %17000 = vmatpush3.xpose.msk.msra.mxu1 %vm1254_vm1, %v19834_v7  ;;  %16996 = vmatprep.mubr.msk.f32.mxu0 %vm18725_vm0, %v22808_v58  ;;  %v22835_v7 = vld [vmem:[#allocation87_spill] sm:$0xff] }
 0x3e9   : > { %17001 = vmatprep.mubr.msk.f32.mxu1 %vm18725_vm0, %v22808_v58  ;;  %17004 = vmatprep.subr.mxu0 %v22808_v58 }
 0x3ea   : > { %16997 = vmatmul.mubr.msk.f32.vlgmr.msra.gmra.mxu0 %vm1254_vm1, %v19750_v47  ;;  %17009 = vmatprep.subr.mxu1 %v22808_v58 }
 0x3eb   : > { %17002 = vmatmul.mubr.msk.f32.vlgmr.msra.gmra.mxu1 %vm1254_vm1, %v19760_v51  ;;  %17005 = vmatpush3.xpose.msk.msra.mxu0 %vm1254_vm1, %v19951_v59 }
 0x3ec   : > { %17010 = vmatpush3.xpose.msk.msra.mxu1 %vm1254_vm1, %v19953_v54  ;;  %17006 = vmatprep.mubr.msk.f32.mxu0 %vm18725_vm0, %v22808_v58 }
 0x3ed   : > { %17011 = vmatprep.mubr.msk.f32.mxu1 %vm18725_vm0, %v22808_v58  ;;  %17014 = vmatprep.subr.mxu0 %v22808_v58 }
 0x3ee   : > { %17007 = vmatmul.mubr.msk.f32.vlgmr.msra.gmra.mxu0 %vm1254_vm1, %v19909_v57  ;;  %17019 = vmatprep.subr.mxu1 %v22808_v58 }
 0x3ef   : > { %17012 = vmatmul.mubr.msk.f32.vlgmr.msra.gmra.mxu1 %vm1254_vm1, %v19911_v46  ;;  %17015 = vmatpush3.xpose.msk.msra.mxu0 %vm1254_vm1, %v3566_v13  ;;  %v22837_v46 = vld [vmem:[#allocation83_spill] sm:$0xff] }
 0x3f0   : > { %17020 = vmatpush3.xpose.msk.msra.mxu1 %vm1254_vm1, %v3644_v18  ;;  %17016 = vmatprep.mubr.msk.f32.mxu0 %vm18725_vm0, %v22808_v58 }
 0x3f1   : > { %17021 = vmatprep.mubr.msk.f32.mxu1 %vm18725_vm0, %v22808_v58  ;;  %17024 = vmatprep.subr.mxu0 %v22808_v58 }
 0x3f2   : > { %17017 = vmatmul.mubr.msk.f32.vlgmr.msra.gmra.mxu0 %vm1254_vm1, %v19987_v33  ;;  %17029 = vmatprep.subr.mxu1 %v22808_v58  ;;  %v22822_v33 = vld [vmem:[#allocation84_spill] sm:$0xff] }
 0x3f3   : > { %17022 = vmatmul.mubr.msk.f32.vlgmr.msra.gmra.mxu1 %vm1254_vm1, %v19989_v5  ;;  %17025 = vmatpush3.xpose.msk.msra.mxu0 %vm1254_vm1, %v19695_v29  ;;  %v22818_v29 = vld [vmem:[#allocation71_spill] sm:$0xff] }
 0x3f4   : > { %17030 = vmatpush3.xpose.msk.msra.mxu1 %vm1254_vm1, %v19713_v34  ;;  %17026 = vmatprep.mubr.msk.f32.mxu0 %vm18725_vm0, %v22808_v58  ;;  %v22823_v34 = vld [vmem:[#allocation85_spill] sm:$0xff] }
 0x3f5   : > { %17031 = vmatprep.mubr.msk.f32.mxu1 %vm18725_vm0, %v22808_v58  ;;  %17034 = vmatprep.subr.mxu0 %v22808_v58 }
 0x3f6   : > { %17027 = vmatmul.mubr.msk.f32.vlgmr.msra.gmra.mxu0 %vm1254_vm1, %v19636_v15  ;;  %17039 = vmatprep.subr.mxu1 %v22808_v58 }
 0x3f7   : > { %17032 = vmatmul.mubr.msk.f32.vlgmr.msra.gmra.mxu1 %vm1254_vm1, %v19654_v20  ;;  %17035 = vmatpush3.xpose.msk.msra.mxu0 %vm1254_vm1, %v19844_v35  ;;  %v4190_v35 = vpop.permute.xlu0 %4189 }
 0x3f8   : > { %17040 = vmatpush3.xpose.msk.msra.mxu1 %vm1254_vm1, %v19846_v50  ;;  %17036 = vmatprep.mubr.msk.f32.mxu0 %vm18725_vm0, %v22808_v58 }
 0x3f9   : > { %17041 = vmatprep.mubr.msk.f32.mxu1 %vm18725_vm0, %v22808_v58  ;;  %17044 = vmatprep.subr.mxu0 %v22808_v58 }
 0x3fa   : > { %17037 = vmatmul.mubr.msk.f32.vlgmr.msra.gmra.mxu0 %vm1254_vm1, %v19758_v49  ;;  %17049 = vmatprep.subr.mxu1 %v22808_v58 }
 0x3fb   : > { %17042 = vmatmul.mubr.msk.f32.vlgmr.msra.gmra.mxu1 %vm1254_vm1, %v19768_v53  ;;  %17045 = vmatpush3.xpose.msk.msra.mxu0 %vm1254_vm1, %v19955_v9  ;;  %v4268_v9 = vpop.permute.xlu1 %4267  ;;  %v22827_v53 = vld [vmem:[#allocation56_spill] sm:$0xff] }
 0x3fc   : > { %17050 = vmatpush3.xpose.msk.msra.mxu1 %vm1254_vm1, %v19957_v36  ;;  %17046 = vmatprep.mubr.msk.f32.mxu0 %vm18725_vm0, %v22808_v58 }
 0x3fd   : > { %17051 = vmatprep.mubr.msk.f32.mxu1 %vm18725_vm0, %v22808_v58  ;;  %17054 = vmatprep.subr.mxu0 %v22808_v58 }
 0x3fe   : > { %v20160_v50 = vpop.f32.mrf.mxu1  ;;  %17047 = vmatmul.mubr.msk.f32.vlgmr.msra.gmra.mxu0 %vm1254_vm1, %v19917_v60  ;;  %17059 = vmatprep.subr.mxu1 %v22808_v58 }
 0x3ff   : > { %17052 = vmatmul.mubr.msk.f32.vlgmr.msra.gmra.mxu1 %vm1254_vm1, %v19919_v21  ;;  %17055 = vmatpush3.xpose.msk.msra.mxu0 %vm1254_vm1, %v4190_v35  ;;  %v6243_v15 = vsel %vm6215_vm2, %v20160_v50, -inf  ;;  %v4892_v60 = vpop.permute.xlu1 %4891  ;;  %v22815_v21 = vld [vmem:[#allocation55_spill] sm:$0xff] }
 0x400   : > { %17060 = vmatpush3.xpose.msk.msra.mxu1 %vm1254_vm1, %v4268_v9  ;;  %6244 = vmax.xlane.f32.xlu0 %v6243_v15  ;;  %v16913_v20 = vpop.f32.mrf.mxu1 }
 0x401   : > { %17056 = vmatprep.mubr.msk.f32.mxu0 %vm18725_vm0, %v22808_v58  ;;  %17061 = vmatprep.mubr.msk.f32.mxu1 %vm18725_vm0, %v22808_v58 }
 0x402   : > { %17057 = vmatmul.mubr.msk.f32.vlgmr.msra.gmra.mxu0 %vm1254_vm1, %v19991_v42  ;;  %17064 = vmatprep.subr.mxu0 %v22808_v58 }
 0x403   : > { %17062 = vmatmul.mubr.msk.f32.vlgmr.msra.gmra.mxu1 %vm1254_vm1, %v19993_v14  ;;  %17069 = vmatprep.subr.mxu1 %v22808_v58 }
 0x404   : > { %17065 = vmatpush3.xpose.msk.msra.mxu0 %vm1254_vm1, %v19703_v31  ;;  %17070 = vmatpush3.xpose.msk.msra.mxu1 %vm1254_vm1, %v19721_v39  ;;  %v22820_v31 = vld [vmem:[#allocation57_spill] sm:$0xff]  ;;  %v5516_v39 = vpop.permute.xlu1 %5515 }
 0x405   : > { %17066 = vmatprep.mubr.msk.f32.mxu0 %vm18725_vm0, %v22808_v58  ;;  %17071 = vmatprep.mubr.msk.f32.mxu1 %vm18725_vm0, %v22808_v58 }
 0x406   : > { %17074 = vmatprep.subr.mxu0 %v22808_v58  ;;  %17079 = vmatprep.subr.mxu1 %v22808_v58 }
 0x407   : > { %17067 = vmatmul.mubr.msk.f32.vlgmr.msra.gmra.mxu0 %vm1254_vm1, %v19644_v17  ;;  %17072 = vmatmul.mubr.msk.f32.vlgmr.msra.gmra.mxu1 %vm1254_vm1, %v19662_v22  ;;  %v22813_v17 = vld [vmem:[#allocation79_spill] sm:$0xff]  ;;  %v22816_v22 = vld [vmem:[#allocation48_spill] sm:$0xff] }
 0x408   : > { %17075 = vmatpush3.xpose.msk.msra.mxu0 %vm1254_vm1, %v19854_v37  ;;  %17080 = vmatpush3.xpose.msk.msra.mxu1 %vm1254_vm1, %v19856_v63  ;;  %v4814_v37 = vpop.permute.xlu0 %4813  ;;  %v22828_v63 = vld [vmem:[#allocation49_spill] sm:$0xff] }
 0x409   : > { %17076 = vmatprep.mubr.msk.f32.mxu0 %vm18725_vm0, %v22808_v58  ;;  %17081 = vmatprep.mubr.msk.f32.mxu1 %vm18725_vm0, %v22808_v58 }
 0x40a   : > { %17084 = vmatprep.subr.mxu0 %v22808_v58  ;;  %17089 = vmatprep.subr.mxu1 %v22808_v58 }
 0x40b   : > { %17077 = vmatmul.mubr.msk.f32.vlgmr.msra.gmra.mxu0 %vm1254_vm1, %v19766_v52  ;;  %17082 = vmatmul.mubr.msk.f32.vlgmr.msra.gmra.mxu1 %vm1254_vm1, %v19776_v56  ;;  %v22826_v52 = vld [vmem:[#allocation54_spill] sm:$0xff] }
 0x40c   : > { %17085 = vmatpush3.xpose.msk.msra.mxu0 %vm1254_vm1, %v19959_v61  ;;  %17090 = vmatpush3.xpose.msk.msra.mxu1 %vm1254_vm1, %v19961_v10  ;;  %v22814_v10 = vld [vmem:[#allocation53_spill] sm:$0xff]  ;;  %v5438_v36 = vpop.permute.xlu0 %5437 }
 0x40d   : > { %17086 = vmatprep.mubr.msk.f32.mxu0 %vm18725_vm0, %v22808_v58  ;;  %17091 = vmatprep.mubr.msk.f32.mxu1 %vm18725_vm0, %v22808_v58 }
 0x40e   : > { %17094 = vmatprep.subr.mxu0 %v22808_v58  ;;  %17099 = vmatprep.subr.mxu1 %v22808_v58 }
 0x40f   : > { %17087 = vmatmul.mubr.msk.f32.vlgmr.msra.gmra.mxu0 %vm1254_vm1, %v19925_v55  ;;  %17092 = vmatmul.mubr.msk.f32.vlgmr.msra.gmra.mxu1 %vm1254_vm1, %v22813_v17  ;;  %v22839_v55 = vld [vmem:[#allocation47_spill] sm:$0xff] }
 0x410   : > { %17095 = vmatpush3.xpose.msk.msra.mxu0 %vm1254_vm1, %v4814_v37  ;;  %17100 = vmatpush3.xpose.msk.msra.mxu1 %vm1254_vm1, %v4892_v60  ;;  %v6062_v14 = vpop.permute.xlu0 %6061 }
 0x411   : > { %17096 = vmatprep.mubr.msk.f32.mxu0 %vm18725_vm0, %v22808_v58  ;;  %17101 = vmatprep.mubr.msk.f32.mxu1 %vm18725_vm0, %v22808_v58 }
 0x412   : > { %17104 = vmatprep.subr.mxu0 %v22808_v58  ;;  %17109 = vmatprep.subr.mxu1 %v22808_v58 }
 0x413   : > { %17097 = vmatmul.mubr.msk.f32.vlgmr.msra.gmra.mxu0 %vm1254_vm1, %v19995_v23  ;;  %17102 = vmatmul.mubr.msk.f32.vlgmr.msra.gmra.mxu1 %vm1254_vm1, %v19997_v3  ;;  %v22831_v23 = vld [vmem:[#allocation74_spill] sm:$0xff]  ;;  %v6140_v3 = vpop.permute.xlu1 %6139 }
 0x414   : > { %17105 = vmatpush3.xpose.msk.msra.mxu0 %vm1254_vm1, %v22814_v10  ;;  %17110 = vmatpush3.xpose.msk.msra.mxu1 %vm1254_vm1, %v22815_v21  ;;  %v20369_v19 = vpop.permute.xlu0 %7753 }
 0x415   : > { %17106 = vmatprep.mubr.msk.f32.mxu0 %vm18725_vm0, %v22808_v58  ;;  %17111 = vmatprep.mubr.msk.f32.mxu1 %vm18725_vm0, %v22808_v58 }
 0x416   : > { %17114 = vmatprep.subr.mxu0 %v22808_v58  ;;  %17119 = vmatprep.subr.mxu1 %v22808_v58 }
 0x417   : > { %17107 = vmatmul.mubr.msk.f32.vlgmr.msra.gmra.mxu0 %vm1254_vm1, %v22816_v22  ;;  %17112 = vmatmul.mubr.msk.f32.vlgmr.msra.gmra.mxu1 %vm1254_vm1, %v22817_v27  ;;  %v20371_v5 = vpop.permute.xlu1 %7676 }
 0x418   : > { %17115 = vmatpush3.xpose.msk.msra.mxu0 %vm1254_vm1, %v22818_v29  ;;  %17120 = vmatpush3.xpose.msk.msra.mxu1 %vm1254_vm1, %v22819_v30  ;;  %v20373_v42 = vpop.permute.xlu0 %7907 }
 0x419   : > { %17116 = vmatprep.mubr.msk.f32.mxu0 %vm18725_vm0, %v22808_v58  ;;  %17121 = vmatprep.mubr.msk.f32.mxu1 %vm18725_vm0, %v22808_v58  ;;  %22840 = vst [vmem:[#allocation79_spill] sm:$0xff] %v20373_v42 }
 0x41a   : > { %17124 = vmatprep.subr.mxu0 %v22808_v58  ;;  %17129 = vmatprep.subr.mxu1 %v22808_v58 }
 0x41b   : > { %17117 = vmatmul.mubr.msk.f32.vlgmr.msra.gmra.mxu0 %vm1254_vm1, %v22820_v31  ;;  %17122 = vmatmul.mubr.msk.f32.vlgmr.msra.gmra.mxu1 %vm1254_vm1, %v22821_v32 }
 0x41c   : > { %17125 = vmatpush3.xpose.msk.msra.mxu0 %vm1254_vm1, %v22822_v33  ;;  %17130 = vmatpush3.xpose.msk.msra.mxu1 %vm1254_vm1, %v22823_v34  ;;  %v22847_v33 = vld [vmem:[#allocation60_spill] sm:$0xff] }
 0x41d   : > { %17126 = vmatprep.mubr.msk.f32.mxu0 %vm18725_vm0, %v22808_v58  ;;  %17131 = vmatprep.mubr.msk.f32.mxu1 %vm18725_vm0, %v22808_v58 }
 0x41e   : > { %17134 = vmatprep.subr.mxu0 %v22808_v58  ;;  %17139 = vmatprep.subr.mxu1 %v22808_v58 }
 0x41f   : > { %17127 = vmatmul.mubr.msk.f32.vlgmr.msra.gmra.mxu0 %vm1254_vm1, %v22824_v44  ;;  %17132 = vmatmul.mubr.msk.f32.vlgmr.msra.gmra.mxu1 %vm1254_vm1, %v22825_v45 }
 0x420   : > { %17135 = vmatpush3.xpose.msk.msra.mxu0 %vm1254_vm1, %v5438_v36  ;;  %17140 = vmatpush3.xpose.msk.msra.mxu1 %vm1254_vm1, %v5516_v39 }
 0x421   : > { %17136 = vmatprep.mubr.msk.f32.mxu0 %vm18725_vm0, %v22808_v58  ;;  %17141 = vmatprep.mubr.msk.f32.mxu1 %vm18725_vm0, %v22808_v58 }
 0x422   : > { %v20283_v47 = vpop.f32.mrf.mxu0  ;;  %v20285_v48 = vpop.f32.mrf.mxu1  ;;  %17144 = vmatprep.subr.mxu0 %v22808_v58  ;;  %17149 = vmatprep.subr.mxu1 %v22808_v58 }
 0x423   : > { %17137 = vmatmul.mubr.msk.f32.vlgmr.msra.gmra.mxu0 %vm1254_vm1, %v19999_v8  ;;  %17142 = vmatmul.mubr.msk.f32.vlgmr.msra.gmra.mxu1 %vm1254_vm1, %v20001_v24  ;;  %v6246_v49 = vsel %vm6215_vm2, %v20283_v47, -inf  ;;  %v6249_v51 = vsel %vm6215_vm2, %v20285_v48, -inf  ;;  %v20375_v8 = vpop.permute.xlu1 %7830  ;;  %v20377_v24 = vpop.permute.xlu0 %8061 }
 0x424   : > { %17145 = vmatpush3.xpose.msk.msra.mxu0 %vm1254_vm1, %v22826_v52  ;;  %17150 = vmatpush3.xpose.msk.msra.mxu1 %vm1254_vm1, %v22827_v53  ;;  %v16918_v56 = vpop.f32.mrf.mxu0  ;;  %v16923_v62 = vpop.f32.mrf.mxu1  ;;  %22841 = vst [vmem:[#allocation53_spill] sm:$0xff] %v20377_v24 }
 0x425   : > { %6247 = vmax.xlane.f32.xlu1 %v6246_v49  ;;  %6250 = vmax.xlane.f32.xlu0 %v6249_v51  ;;  %v22848_v62 = vld [vmem:[#allocation63_spill] sm:$0xff] }
 0x426   : > { %17146 = vmatprep.mubr.msk.f32.mxu0 %vm18725_vm0, %v22808_v58  ;;  %17151 = vmatprep.mubr.msk.f32.mxu1 %vm18725_vm0, %v22808_v58 }
 0x427   : > { %17147 = vmatmul.mubr.msk.f32.vlgmr.msra.gmra.mxu0 %vm1254_vm1, %v22828_v63  ;;  %17152 = vmatmul.mubr.msk.f32.vlgmr.msra.gmra.mxu1 %vm1254_vm1, %v22829_v0  ;;  %v20379_v12 = vpop.permute.xlu1 %7984  ;;  %v20381_v11 = vpop.permute.xlu0 %8215 }
 0x428   : > { %17154 = vmatprep.subr.mxu0 %v22808_v58  ;;  %17159 = vmatprep.subr.mxu1 %v22808_v58  ;;  %22842 = vst [vmem:[#allocation55_spill] sm:$0xff] %v20379_v12  ;;  %22843 = vst [vmem:[#allocation48_spill] sm:$0xff] %v20381_v11 }
 0x429   : > { %17155 = vmatpush3.xpose.msk.msra.mxu0 %vm1254_vm1, %v22830_v4  ;;  %17160 = vmatpush3.xpose.msk.msra.mxu1 %vm1254_vm1, %v22831_v23 }
 0x42a   : > { %17156 = vmatprep.mubr.msk.f32.mxu0 %vm18725_vm0, %v22808_v58  ;;  %17161 = vmatprep.mubr.msk.f32.mxu1 %vm18725_vm0, %v22808_v58 }
 0x42b   : > { %17164 = vmatprep.subr.mxu0 %v22808_v58  ;;  %17169 = vmatprep.subr.mxu1 %v22808_v58  ;;  %v20387_v28 = vpop.permute.xlu1 %8138  ;;  %v20393_v15 = vpop.permute.xlu0 %8369 }
 0x42c   : > { %17157 = vmatmul.mubr.msk.f32.vlgmr.msra.gmra.mxu0 %vm1254_vm1, %v22832_v41  ;;  %17162 = vmatmul.mubr.msk.f32.vlgmr.msra.gmra.mxu1 %vm1254_vm1, %v22833_v1  ;;  %22844 = vst [vmem:[#allocation50_spill] sm:$0xff] %v20387_v28  ;;  %22845 = vst [vmem:[#allocation71_spill] sm:$0xff] %v20393_v15 }
 0x42d   : > { %17165 = vmatpush3.xpose.msk.msra.mxu0 %vm1254_vm1, %v22834_v43  ;;  %17170 = vmatpush3.xpose.msk.msra.mxu1 %vm1254_vm1, %v22835_v7  ;;  %v22849_v7 = vld [vmem:[#allocation64_spill] sm:$0xff] }
 0x42e   : > { %17166 = vmatprep.mubr.msk.f32.mxu0 %vm18725_vm0, %v22808_v58  ;;  %17171 = vmatprep.mubr.msk.f32.mxu1 %vm18725_vm0, %v22808_v58 }
 0x42f   : > { %17174 = vmatprep.subr.mxu0 %v22808_v58  ;;  %17179 = vmatprep.subr.mxu1 %v22808_v58  ;;  %v20403_v22 = vpop.permute.xlu1 %8292 }
 0x430   : > { %17167 = vmatmul.mubr.msk.f32.vlgmr.msra.gmra.mxu0 %vm1254_vm1, %v22836_v6  ;;  %17172 = vmatmul.mubr.msk.f32.vlgmr.msra.gmra.mxu1 %vm1254_vm1, %v22837_v46  ;;  %22846 = vst [vmem:[#allocation72_spill] sm:$0xff] %v20403_v22  ;;  %v6218_v27 = vpop.xlane.xlu0 %6217 }
 0x431   : > { %17175 = vmatpush3.xpose.msk.msra.mxu0 %vm1254_vm1, %v6062_v14  ;;  %17180 = vmatpush3.xpose.msk.msra.mxu1 %vm1254_vm1, %v6140_v3  ;;  %v6408_v34 = vsub.f32 %v22847_v33, %v6218_v27  ;;  %v22851_v27 = vld [vmem:[#allocation66_spill] sm:$0xff] }
 0x432   : > { %17176 = vmatprep.mubr.msk.f32.mxu0 %vm18725_vm0, %v22808_v58  ;;  %17181 = vmatprep.mubr.msk.f32.mxu1 %vm18725_vm0, %v22808_v58 }
 0x433   : > { %17184 = vmatprep.subr.mxu0 %v22808_v58  ;;  %17189 = vmatprep.subr.mxu1 %v22808_v58  ;;  %v6472_v56 = vmul.f32 1.442695, %v6408_v34 }
 0x434   : > { %17177 = vmatmul.mubr.msk.f32.vlgmr.msra.gmra.mxu0 %vm1254_vm1, %v20003_v38  ;;  %17182 = vmatmul.mubr.msk.f32.vlgmr.msra.gmra.mxu1 %vm1254_vm1, %v20005_v40  ;;  %v6224_v51 = vpop.xlane.xlu0 %6223 }
 0x435   : > { %17185 = vmatpush3.msk.msra.mxu0 %vm6924_vm3, %v22838_v2  ;;  %17190 = vmatpush3.msk.msra.mxu1 %vm6924_vm3, %v22839_v55  ;;  %v6221_v44 = vpop.xlane.xlu1 %6220  ;;  %17920 = vpow2.f32 %v6472_v56  ;;  %v6410_v14 = vsub.f32 %v22849_v7, %v6224_v51 }
 0x436   : > { %17186 = vmatprep.mubr.msk.f32.mxu0 %vm18725_vm0, %v22808_v58  ;;  %17194 = vmatprep.subr.mxu0 %v22808_v58  ;;  %v6409_v63 = vsub.f32 %v22848_v62, %v6221_v44  ;;  %v22852_v62 = vld [vmem:[#allocation67_spill] sm:$0xff] }
 0x437   : > { %17191 = vmatprep.mubr.msk.f32.mxu1 %vm18725_vm0, %v22808_v58  ;;  %17199 = vmatprep.subr.mxu1 %v22808_v58 }
 0x438   : > { %v6474_v3 = vmul.f32 1.442695, %v6409_v63 }
 0x43a   : > { %17922 = vpow2.f32 %v6474_v3  ;;  %v22853_v3 = vld [vmem:[#allocation68_spill] sm:$0xff] }
 0x45a   : > { %v20361_v38 = vpop.f32.mrf.mxu0  ;;  %v20363_v57 = vpop.f32.mrf.mxu1 }
 0x45b   : > { %v6252_v40 = vsel %vm6215_vm2, %v20361_v38, -inf  ;;  %v6255_v59 = vsel %vm6215_vm2, %v20363_v57, -inf }
 0x45c   : > { %v16928_v54 = vpop.f32.mrf.mxu0  ;;  %6253 = vmax.xlane.f32.xlu1 %v6252_v40  ;;  %6256 = vmax.xlane.f32.xlu0 %v6255_v59  ;;  %v16933_v61 = vpop.f32.mrf.mxu1 }
 0x45d   : > { %v6227_v40 = vpop.xlane.xlu0 %6226  ;;  %v6230_v61 = vpop.xlane.xlu1 %6229 }
 0x461   : > { %v6233_v44 = vpop.xlane.xlu0 %6232 }
 0x462   : > { %v6413_v63 = vsub.f32 %v22852_v62, %v6233_v44 }
 0x492   : > { %v20383_v16 = vpop.f32.mrf.mxu0  ;;  %v20385_v26 = vpop.f32.mrf.mxu1 }
 0x493   : > { %v6258_v13 = vsel %vm6215_vm2, %v20383_v16, -inf  ;;  %v6261_v18 = vsel %vm6215_vm2, %v20385_v26, -inf }
 0x494   : > { %v16938_v35 = vpop.f32.mrf.mxu0  ;;  %6259 = vmax.xlane.f32.xlu1 %v6258_v13  ;;  %6262 = vmax.xlane.f32.xlu0 %v6261_v18  ;;  %v16943_v9 = vpop.f32.mrf.mxu1 }
 0x495   : > { %v6476_v35 = vmul.f32 1.442695, %v6410_v14  ;;  %v22850_v9 = vld [vmem:[#allocation65_spill] sm:$0xff] }
 0x496   : > { %v20395_v20 = vpop.f32.mrf.mxu0  ;;  %v20397_v37 = vpop.f32.mrf.mxu1 }
 0x497   : > { %v6264_v60 = vsel %vm6215_vm2, %v20395_v20, -inf  ;;  %v6267_v17 = vsel %vm6215_vm2, %v20397_v37, -inf  ;;  %17924 = vpow2.f32 %v6476_v35 }
 0x498   : > { %v16948_v10 = vpop.f32.mrf.mxu0  ;;  %6265 = vmax.xlane.f32.xlu1 %v6264_v60  ;;  %6268 = vmax.xlane.f32.xlu0 %v6267_v17  ;;  %v16953_v21 = vpop.f32.mrf.mxu1  ;;  %v6411_v60 = vsub.f32 %v22850_v9, %v6227_v40 }
 0x49a   : > { %v20405_v29 = vpop.f32.mrf.mxu0  ;;  %v20407_v30 = vpop.f32.mrf.mxu1  ;;  %v6478_v34 = vmul.f32 1.442695, %v6411_v60 }
 0x49b   : > { %v6270_v31 = vsel %vm6215_vm2, %v20405_v29, -inf  ;;  %v6273_v32 = vsel %vm6215_vm2, %v20407_v30, -inf }
 0x49c   : > { %v16958_v36 = vpop.f32.mrf.mxu0  ;;  %6271 = vmax.xlane.f32.xlu1 %v6270_v31  ;;  %6274 = vmax.xlane.f32.xlu0 %v6273_v32  ;;  %v16963_v39 = vpop.f32.mrf.mxu1  ;;  %v6412_v31 = vsub.f32 %v22851_v27, %v6230_v61  ;;  %17926 = vpow2.f32 %v6478_v34  ;;  %v6482_v61 = vmul.f32 1.442695, %v6413_v63 }
 0x49e   : > { %v20414_v45 = vpop.f32.mrf.mxu0  ;;  %v20416_v49 = vpop.f32.mrf.mxu1 }
 0x49f   : > { %v6276_v52 = vsel %vm6215_vm2, %v20414_v45, -inf  ;;  %v6279_v53 = vsel %vm6215_vm2, %v20416_v49, -inf }
 0x4a0   : > { %v16968_v0 = vpop.f32.mrf.mxu0  ;;  %6277 = vmax.xlane.f32.xlu1 %v6276_v52  ;;  %6280 = vmax.xlane.f32.xlu0 %v6279_v53  ;;  %v16973_v4 = vpop.f32.mrf.mxu1  ;;  %v6480_v52 = vmul.f32 1.442695, %v6412_v31 }
 0x4a1   : > { %v6236_v0 = vpop.xlane.xlu1 %6235 }
 0x4a2   : > { %v20423_v23 = vpop.f32.mrf.mxu0  ;;  %v20425_v41 = vpop.f32.mrf.mxu1  ;;  %17928 = vpow2.f32 %v6480_v52 }
 0x4a3   : > { %v6282_v1 = vsel %vm6215_vm2, %v20423_v23, -inf  ;;  %v6285_v43 = vsel %vm6215_vm2, %v20425_v41, -inf  ;;  %17930 = vpow2.f32 %v6482_v61 }
 0x4a4   : > { %v16978_v6 = vpop.f32.mrf.mxu0  ;;  %6283 = vmax.xlane.f32.xlu1 %v6282_v1  ;;  %6286 = vmax.xlane.f32.xlu0 %v6285_v43  ;;  %v16983_v46 = vpop.f32.mrf.mxu1 }
 0x4a5   : > { %v20459_v43 = vpop.eup %17920  ;;  %v6414_v6 = vsub.f32 %v22853_v3, %v6236_v0 }
 0x4a6   : > { %v20432_v59 = vpop.f32.mrf.mxu0  ;;  %v20434_v54 = vpop.f32.mrf.mxu1 }
 0x4a7   : > { %v6288_v13 = vsel %vm6215_vm2, %v20432_v59, -inf  ;;  %v6291_v18 = vsel %vm6215_vm2, %v20434_v54, -inf  ;;  %v20470_v9 = vpop.eup %17922 }
 0x4a8   : > { %v16988_v17 = vpop.f32.mrf.mxu0  ;;  %6289 = vmax.xlane.f32.xlu1 %v6288_v13  ;;  %6292 = vmax.xlane.f32.xlu0 %v6291_v18  ;;  %v16993_v10 = vpop.f32.mrf.mxu1  ;;  %v6600_v18 = vsel %vm6215_vm2, %v20459_v43, 0.0 }
 0x4a9   : > { %v6239_v13 = vpop.xlane.xlu0 %6238  ;;  %v6484_v10 = vmul.f32 1.442695, %v6414_v6  ;;  %v20481_v44 = vpop.eup %17924 }
 0x4aa   : > { %v20441_v21 = vpop.f32.mrf.mxu0 }
 0x4ab   : > { %v20444_v32 = vpop.f32.mrf.mxu1  ;;  %v6294_v33 = vsel %vm6215_vm2, %v20441_v21, -inf  ;;  %17932 = vpow2.f32 %v6484_v10 }
 0x4ac   : > { %v16998_v36 = vpop.f32.mrf.mxu0  ;;  %6295 = vmax.xlane.f32.xlu1 %v6294_v33  ;;  %v6297_v39 = vsel %vm6215_vm2, %v20444_v32, -inf  ;;  %v22854_v33 = vld [vmem:[#allocation69_spill] sm:$0xff] }
 0x4ad   : > { %6298 = vmax.xlane.f32.xlu0 %v6297_v39  ;;  %v17003_v51 = vpop.f32.mrf.mxu1  ;;  %v6415_v34 = vsub.f32 %v22854_v33, %v6239_v13  ;;  %v6603_v39 = vsel %vm6215_vm2, %v20470_v9, 0.0 }
 0x4ae   : > { %v20450_v53 = vpop.f32.mrf.mxu0 }
 0x4af   : > { %v20452_v56 = vpop.f32.mrf.mxu1  ;;  %v6300_v4 = vsel %vm6215_vm2, %v20450_v53, -inf  ;;  %v6486_v0 = vmul.f32 1.442695, %v6415_v34 }
 0x4b0   : > { %v6303_v1 = vsel %vm6215_vm2, %v20452_v56, -inf  ;;  %v17008_v7 = vpop.f32.mrf.mxu0  ;;  %6301 = vmax.xlane.f32.xlu1 %v6300_v4  ;;  %v6606_v4 = vsel %vm6215_vm2, %v20481_v44, 0.0 }
 0x4b1   : > { %6304 = vmax.xlane.f32.xlu0 %v6303_v1  ;;  %v17013_v14 = vpop.f32.mrf.mxu1  ;;  %v20491_v7 = vpop.eup %17926  ;;  %17934 = vpow2.f32 %v6486_v0 }
 0x4b2   : > { %v20462_v46 = vpop.f32.mrf.mxu0 }
 0x4b3   : > { %v20464_v40 = vpop.f32.mrf.mxu1  ;;  %v6306_v36 = vsel %vm6215_vm2, %v20462_v46, -inf }
 0x4b4   : > { %v6309_v35 = vsel %vm6215_vm2, %v20464_v40, -inf  ;;  %v17018_v60 = vpop.f32.mrf.mxu0  ;;  %6601 = vadd.xlane.f32.xlu1 %v6600_v18  ;;  %v6609_v18 = vsel %vm6215_vm2, %v20491_v7, 0.0 }
 0x4b5   : > { %6310 = vmax.xlane.f32.xlu0 %v6309_v35  ;;  %v17023_v17 = vpop.f32.mrf.mxu1  ;;  %v20501_v35 = vpop.eup %17928 }
 0x4b6   : > { %v20472_v27 = vpop.f32.mrf.mxu0  ;;  %v6612_v34 = vsel %vm6215_vm2, %v20501_v35, 0.0 }
 0x4b7   : > { %v20474_v31 = vpop.f32.mrf.mxu1  ;;  %v6312_v13 = vsel %vm6215_vm2, %v20472_v27, -inf }
 0x4b8   : > { %v17028_v51 = vpop.f32.mrf.mxu0  ;;  %6307 = vmax.xlane.f32.xlu1 %v6306_v36  ;;  %v6315_v1 = vsel %vm6215_vm2, %v20474_v31, -inf }
 0x4b9   : > { %6604 = vadd.xlane.f32.xlu0 %v6603_v39  ;;  %v17033_v52 = vpop.f32.mrf.mxu1  ;;  %v20511_v39 = vpop.eup %17930 }
 0x4ba   : > { %v20483_v62 = vpop.f32.mrf.mxu0 }
 0x4bb   : > { %v20485_v63 = vpop.f32.mrf.mxu1 }
 0x4bc   : > { %v17038_v14 = vpop.f32.mrf.mxu0  ;;  %6607 = vadd.xlane.f32.xlu1 %v6606_v4  ;;  %v6321_v36 = vsel %vm6215_vm2, %v20485_v63, -inf }
 0x4bd   : > { %6316 = vmax.xlane.f32.xlu0 %v6315_v1  ;;  %v17043_v3 = vpop.f32.mrf.mxu1  ;;  %v6318_v1 = vsel %vm6215_vm2, %v20483_v62, -inf  ;;  %v6615_v14 = vsel %vm6215_vm2, %v20511_v39, 0.0 }
 0x4be   : > { %v20493_v6 = vpop.f32.mrf.mxu0  ;;  %v20521_v3 = vpop.eup %17932 }
 0x4bf   : > { %22855 = vst [vmem:[#allocation57_spill] sm:$0xff] %v20493_v6  ;;  %v20495_v61 = vpop.f32.mrf.mxu1 }
 0x4c0   : > { %v17048_v60 = vpop.f32.mrf.mxu0  ;;  %6313 = vmax.xlane.f32.xlu1 %v6312_v13 }
 0x4c1   : > { %6610 = vadd.xlane.f32.xlu0 %v6609_v18  ;;  %v17053_v17 = vpop.f32.mrf.mxu1 }
 0x4c2   : > { %v20503_v10 = vpop.f32.mrf.mxu0 }
 0x4c3   : > { %22856 = vst [vmem:[#allocation59_spill] sm:$0xff] %v20503_v10  ;;  %v20505_v33 = vpop.f32.mrf.mxu1 }
 0x4c4   : > { %22857 = vst [vmem:[#allocation84_spill] sm:$0xff] %v20505_v33  ;;  %v17058_v51 = vpop.f32.mrf.mxu0  ;;  %6613 = vadd.xlane.f32.xlu1 %v6612_v34  ;;  %v6618_v34 = vsel %vm6215_vm2, %v20521_v3, 0.0 }
 0x4c5   : > { %6322 = vmax.xlane.f32.xlu0 %v6321_v36  ;;  %v17063_v52 = vpop.f32.mrf.mxu1  ;;  %v6327_v36 = vsel %vm6215_vm2, %v20495_v61, -inf  ;;  %v20531_v51 = vpop.eup %17934 }
 0x4c7   : > { %v20513_v0 = vpop.f32.mrf.mxu0  ;;  %v20515_v4 = vpop.f32.mrf.mxu1 }
 0x4c8   : > { %22858 = vst [vmem:[#allocation85_spill] sm:$0xff] %v20513_v0  ;;  %22859 = vst [vmem:[#allocation80_spill] sm:$0xff] %v20515_v4  ;;  %6319 = vmax.xlane.f32.xlu1 %v6318_v1 }
 0x4c9   : > { %v17068_v13 = vpop.f32.mrf.mxu0  ;;  %6616 = vadd.xlane.f32.xlu0 %v6615_v14  ;;  %v17073_v18 = vpop.f32.mrf.mxu1  ;;  %v6324_v14 = vsel %vm6215_vm2, %v20493_v6, -inf }
 0x4ca   : > { %v6621_v18 = vsel %vm6215_vm2, %v20531_v51, 0.0 }
 0x4cb   : > { %v20523_v60 = vpop.f32.mrf.mxu0  ;;  %v20525_v17 = vpop.f32.mrf.mxu1 }
 0x4cc   : > { %22860 = vst [vmem:[#allocation81_spill] sm:$0xff] %v20523_v60  ;;  %22861 = vst [vmem:[#allocation54_spill] sm:$0xff] %v20525_v17  ;;  %6619 = vadd.xlane.f32.xlu1 %v6618_v34  ;;  %v6333_v34 = vsel %vm6215_vm2, %v20505_v33, -inf }
 0x4cd   : > { %v17078_v52 = vpop.f32.mrf.mxu0  ;;  %6328 = vmax.xlane.f32.xlu0 %v6327_v36  ;;  %v17083_v55 = vpop.f32.mrf.mxu1 }
 0x4ce   : > { %v6330_v55 = vsel %vm6215_vm2, %v20503_v10, -inf }
 0x4cf   : > { %v20533_v13 = vpop.f32.mrf.mxu0  ;;  %v20535_v1 = vpop.f32.mrf.mxu1 }
 0x4d0   : > { %22862 = vst [vmem:[#allocation56_spill] sm:$0xff] %v20533_v13  ;;  %22863 = vst [vmem:[#allocation49_spill] sm:$0xff] %v20535_v1  ;;  %6325 = vmax.xlane.f32.xlu1 %v6324_v14  ;;  %v6339_v14 = vsel %vm6215_vm2, %v20515_v4, -inf }
 0x4d1   : > { %v17088_v2 = vpop.f32.mrf.mxu0  ;;  %6622 = vadd.xlane.f32.xlu0 %v6621_v18  ;;  %v17093_v15 = vpop.f32.mrf.mxu1 }
 0x4d2   : > { %v6336_v15 = vsel %vm6215_vm2, %v20513_v0, -inf }
 0x4d3   : > { %v20541_v22 = vpop.f32.mrf.mxu0  ;;  %v20543_v52 = vpop.f32.mrf.mxu1 }
 0x4d4   : > { %22864 = vst [vmem:[#allocation51_spill] sm:$0xff] %v20541_v22  ;;  %22865 = vst [vmem:[#allocation73_spill] sm:$0xff] %v20543_v52  ;;  %6331 = vmax.xlane.f32.xlu1 %v6330_v55  ;;  %v6345_v55 = vsel %vm6215_vm2, %v20525_v17, -inf }
 0x4d5   : > { %v17098_v36 = vpop.f32.mrf.mxu0  ;;  %6334 = vmax.xlane.f32.xlu0 %v6333_v34  ;;  %v17103_v11 = vpop.f32.mrf.mxu1 }
 0x4d6   : > { %v6342_v11 = vsel %vm6215_vm2, %v20523_v60, -inf }
 0x4d7   : > { %v20549_v28 = vpop.f32.mrf.mxu0  ;;  %v20551_v2 = vpop.f32.mrf.mxu1 }
 0x4d8   : > { %22866 = vst [vmem:[#allocation74_spill] sm:$0xff] %v20549_v28  ;;  %22867 = vst [vmem:[#allocation58_spill] sm:$0xff] %v20551_v2  ;;  %6337 = vmax.xlane.f32.xlu1 %v6336_v15  ;;  %v6351_v15 = vsel %vm6215_vm2, %v20535_v1, -inf  ;;  %v6242_v1 = vpop.xlane.xlu1 %6241 }
 0x4d9   : > { %v17108_v18 = vpop.f32.mrf.mxu0  ;;  %6340 = vmax.xlane.f32.xlu0 %v6339_v14  ;;  %v17113_v10 = vpop.f32.mrf.mxu1 }
 0x4da   : > { %v6348_v10 = vsel %vm6215_vm2, %v20533_v13, -inf }
 0x4db   : > { %v20557_v24 = vpop.f32.mrf.mxu0  ;;  %v20559_v36 = vpop.f32.mrf.mxu1 }
 0x4dc   : > { %22868 = vst [vmem:[#allocation62_spill] sm:$0xff] %v20557_v24  ;;  %22869 = vst [vmem:[#allocation86_spill] sm:$0xff] %v20559_v36  ;;  %6343 = vmax.xlane.f32.xlu1 %v6342_v11  ;;  %v6357_v11 = vsel %vm6215_vm2, %v20543_v52, -inf  ;;  %v6245_v52 = vpop.xlane.xlu0 %6244 }
 0x4dd   : > { %v17118_v34 = vpop.f32.mrf.mxu0  ;;  %6346 = vmax.xlane.f32.xlu0 %v6345_v55  ;;  %v17123_v0 = vpop.f32.mrf.mxu1 }
 0x4de   : > { %v6354_v0 = vsel %vm6215_vm2, %v20541_v22, -inf }
 0x4df   : > { %v20565_v33 = vpop.f32.mrf.mxu0  ;;  %v20567_v18 = vpop.f32.mrf.mxu1 }
 0x4e0   : > { %22870 = vst [vmem:[#allocation87_spill] sm:$0xff] %v20565_v33  ;;  %22871 = vst [vmem:[#allocation82_spill] sm:$0xff] %v20567_v18  ;;  %6349 = vmax.xlane.f32.xlu1 %v6348_v10  ;;  %v6363_v10 = vsel %vm6215_vm2, %v20551_v2, -inf  ;;  %v6372_v12 = vsel %vm6215_vm2, %v20565_v33, -inf }
 0x4e1   : > { %v17128_v14 = vpop.f32.mrf.mxu0  ;;  %6352 = vmax.xlane.f32.xlu0 %v6351_v15  ;;  %v17133_v60 = vpop.f32.mrf.mxu1 }
 0x4e2   : > { %v6360_v60 = vsel %vm6215_vm2, %v20549_v28, -inf  ;;  %v6416_v28 = vsub.f32 %v20063_v25, %v6242_v1 }
 0x4e3   : > { %v20573_v4 = vpop.f32.mrf.mxu0  ;;  %v20575_v34 = vpop.f32.mrf.mxu1 }
 0x4e4   : > { %22872 = vst [vmem:[#allocation83_spill] sm:$0xff] %v20573_v4  ;;  %22873 = vst [vmem:[#allocation60_spill] sm:$0xff] %v20575_v34  ;;  %6355 = vmax.xlane.f32.xlu1 %v6354_v0  ;;  %v6378_v33 = vsel %vm6215_vm2, %v20573_v4, -inf }
 0x4e5   : > { %v17138_v55 = vpop.f32.mrf.mxu0  ;;  %6358 = vmax.xlane.f32.xlu0 %v6357_v11  ;;  %v17143_v13 = vpop.f32.mrf.mxu1  ;;  %v6369_v11 = vsel %vm6215_vm2, %v20559_v36, -inf }
 0x4e6   : > { %v6366_v13 = vsel %vm6215_vm2, %v20557_v24, -inf  ;;  %v6375_v24 = vsel %vm6215_vm2, %v20567_v18, -inf  ;;  %v6251_v36 = vpop.xlane.xlu0 %6250 }
 0x4e7   : > { %v20581_v17 = vpop.f32.mrf.mxu0  ;;  %v20583_v14 = vpop.f32.mrf.mxu1 }
 0x4e8   : > { %22874 = vst [vmem:[#allocation63_spill] sm:$0xff] %v20581_v17  ;;  %22875 = vst [vmem:[#allocation64_spill] sm:$0xff] %v20583_v14  ;;  %6361 = vmax.xlane.f32.xlu1 %v6360_v60 }
 0x4e9   : > { %v17148_v15 = vpop.f32.mrf.mxu0  ;;  %6364 = vmax.xlane.f32.xlu0 %v6363_v10  ;;  %v17153_v22 = vpop.f32.mrf.mxu1 }
 0x4ea   : > { %v6417_v22 = vsub.f32 %v20160_v50, %v6245_v52  ;;  %v6248_v10 = vpop.xlane.xlu1 %6247 }
 0x4eb   : > { %v6418_v50 = vsub.f32 %v20283_v47, %v6248_v10 }
 0x4ec   : > { %v20589_v55 = vpop.f32.mrf.mxu0  ;;  %v20591_v0 = vpop.f32.mrf.mxu1  ;;  %6367 = vmax.xlane.f32.xlu1 %v6366_v13  ;;  %v6488_v13 = vmul.f32 1.442695, %v6416_v28 }
 0x4ed   : > { %22876 = vst [vmem:[#allocation65_spill] sm:$0xff] %v20589_v55  ;;  %22877 = vst [vmem:[#allocation66_spill] sm:$0xff] %v20591_v0  ;;  %6370 = vmax.xlane.f32.xlu0 %v6369_v11  ;;  %v6490_v11 = vmul.f32 1.442695, %v6417_v22  ;;  %v6492_v47 = vmul.f32 1.442695, %v6418_v50 }
 0x4ee   : > { %v17158_v15 = vpop.f32.mrf.mxu0  ;;  %v17163_v60 = vpop.f32.mrf.mxu1  ;;  %17936 = vpow2.f32 %v6488_v13 }
 0x4ef   : > { %v6254_v52 = vpop.xlane.xlu1 %6253  ;;  %v6419_v15 = vsub.f32 %v20285_v48, %v6251_v36  ;;  %17938 = vpow2.f32 %v6490_v11  ;;  %v6390_v11 = vsel %vm6215_vm2, %v20589_v55, -inf }
 0x4f0   : > { %v20599_v2 = vpop.f32.mrf.mxu0  ;;  %v20601_v6 = vpop.f32.mrf.mxu1  ;;  %6373 = vmax.xlane.f32.xlu1 %v6372_v12  ;;  %v6381_v12 = vsel %vm6215_vm2, %v20575_v34, -inf  ;;  %v6420_v48 = vsub.f32 %v20361_v38, %v6254_v52  ;;  %17940 = vpow2.f32 %v6492_v47  ;;  %v6393_v38 = vsel %vm6215_vm2, %v20591_v0, -inf }
 0x4f1   : > { %22878 = vst [vmem:[#allocation67_spill] sm:$0xff] %v20599_v2  ;;  %22879 = vst [vmem:[#allocation68_spill] sm:$0xff] %v20601_v6  ;;  %6376 = vmax.xlane.f32.xlu0 %v6375_v24  ;;  %v6257_v24 = vpop.xlane.xlu0 %6256  ;;  %v6494_v36 = vmul.f32 1.442695, %v6419_v15  ;;  %v6399_v50 = vsel %vm6215_vm2, %v20601_v6, -inf }
 0x4f2   : > { %v17168_v25 = vpop.f32.mrf.mxu0  ;;  %v17173_v1 = vpop.f32.mrf.mxu1  ;;  %v6421_v10 = vsub.f32 %v20363_v57, %v6257_v24  ;;  %v6396_v57 = vsel %vm6215_vm2, %v20599_v2, -inf }
 0x4f3   : > { %v6384_v25 = vsel %vm6215_vm2, %v20581_v17, -inf  ;;  %v6387_v1 = vsel %vm6215_vm2, %v20583_v14, -inf  ;;  %17942 = vpow2.f32 %v6494_v36 }
 0x4f4   : > { %v20609_v60 = vpop.f32.mrf.mxu0  ;;  %v20611_v42 = vpop.f32.mrf.mxu1  ;;  %6379 = vmax.xlane.f32.xlu1 %v6378_v33  ;;  %v6496_v33 = vmul.f32 1.442695, %v6420_v48  ;;  %v6498_v13 = vmul.f32 1.442695, %v6421_v10 }
 0x4f5   : > { %22880 = vst [vmem:[#allocation69_spill] sm:$0xff] %v20609_v60  ;;  %22881 = vst [vmem:[#allocation88_spill] sm:$0xff] %v20611_v42  ;;  %6382 = vmax.xlane.f32.xlu0 %v6381_v12  ;;  %v6402_v12 = vsel %vm6215_vm2, %v20609_v60, -inf  ;;  %v6405_v24 = vsel %vm6215_vm2, %v20611_v42, -inf }
 0x4f6   : > { %v17178_v28 = vpop.f32.mrf.mxu0  ;;  %v17183_v22 = vpop.f32.mrf.mxu1  ;;  %17944 = vpow2.f32 %v6496_v33 }
 0x4f7   : > { %17946 = vpow2.f32 %v6498_v13 }
 0x4f8   : > { %6385 = vmax.xlane.f32.xlu1 %v6384_v25 }
 0x4f9   : > { %6388 = vmax.xlane.f32.xlu0 %v6387_v1 }
 0x4fb   : > { %v20631_v52 = vpop.eup %17936 }
 0x4fc   : > { %6391 = vmax.xlane.f32.xlu1 %v6390_v11  ;;  %v20633_v15 = vpop.eup %17938  ;;  %v6624_v22 = vsel %vm6215_vm2, %v20631_v52, 0.0 }
 0x4fd   : > { %6394 = vmax.xlane.f32.xlu0 %v6393_v38  ;;  %v20639_v28 = vpop.eup %17940  ;;  %v6627_v47 = vsel %vm6215_vm2, %v20633_v15, 0.0 }
 0x4fe   : > { %v6630_v10 = vsel %vm6215_vm2, %v20639_v28, 0.0 }
 0x500   : > { %6397 = vmax.xlane.f32.xlu1 %v6396_v57  ;;  %v20645_v48 = vpop.eup %17942 }
 0x501   : > { %6400 = vmax.xlane.f32.xlu0 %v6399_v50  ;;  %v6633_v25 = vsel %vm6215_vm2, %v20645_v48, 0.0 }
 0x503   : > { %v20647_v36 = vpop.eup %17944 }
 0x504   : > { %6403 = vmax.xlane.f32.xlu1 %v6402_v12  ;;  %v20653_v1 = vpop.eup %17946  ;;  %v6636_v33 = vsel %vm6215_vm2, %v20647_v36, 0.0 }
 0x505   : > { %6406 = vmax.xlane.f32.xlu0 %v6405_v24  ;;  %v6639_v13 = vsel %vm6215_vm2, %v20653_v1, 0.0 }
 0x508   : > { %6625 = vadd.xlane.f32.xlu1 %v6624_v22 }
 0x509   : > { %6628 = vadd.xlane.f32.xlu0 %v6627_v47 }
 0x50c   : > { %6631 = vadd.xlane.f32.xlu1 %v6630_v10 }
 0x50d   : > { %6634 = vadd.xlane.f32.xlu0 %v6633_v25 }
 0x510   : > { %6637 = vadd.xlane.f32.xlu1 %v6636_v33 }
 0x511   : > { %6640 = vadd.xlane.f32.xlu0 %v6639_v13 }
 0x51d   : > { %v6260_v11 = vpop.xlane.xlu1 %6259  ;;  %v6263_v38 = vpop.xlane.xlu0 %6262 }
 0x51e   : > { %v6422_v57 = vsub.f32 %v20383_v16, %v6260_v11  ;;  %v6423_v50 = vsub.f32 %v20385_v26, %v6263_v38 }
 0x520   : > { %v6500_v12 = vmul.f32 1.442695, %v6422_v57  ;;  %v6502_v24 = vmul.f32 1.442695, %v6423_v50 }
 0x521   : > { %v6266_v22 = vpop.xlane.xlu1 %6265  ;;  %v6269_v47 = vpop.xlane.xlu0 %6268 }
 0x522   : > { %17948 = vpow2.f32 %v6500_v12  ;;  %v6424_v10 = vsub.f32 %v20395_v20, %v6266_v22  ;;  %v6425_v25 = vsub.f32 %v20397_v37, %v6269_v47 }
 0x523   : > { %17950 = vpow2.f32 %v6502_v24 }
 0x524   : > { %v6504_v60 = vmul.f32 1.442695, %v6424_v10  ;;  %v6506_v42 = vmul.f32 1.442695, %v6425_v25 }
 0x525   : > { %v6272_v33 = vpop.xlane.xlu1 %6271  ;;  %v6275_v13 = vpop.xlane.xlu0 %6274 }
 0x526   : > { %17952 = vpow2.f32 %v6504_v60  ;;  %v6426_v2 = vsub.f32 %v20405_v29, %v6272_v33  ;;  %v6427_v16 = vsub.f32 %v20407_v30, %v6275_v13 }
 0x527   : > { %17954 = vpow2.f32 %v6506_v42 }
 0x528   : > { %v6508_v26 = vmul.f32 1.442695, %v6426_v2  ;;  %v6510_v11 = vmul.f32 1.442695, %v6427_v16 }
 0x529   : > { %v6278_v38 = vpop.xlane.xlu1 %6277  ;;  %v6281_v57 = vpop.xlane.xlu0 %6280 }
 0x52a   : > { %17956 = vpow2.f32 %v6508_v26  ;;  %v6428_v20 = vsub.f32 %v20414_v45, %v6278_v38  ;;  %v6429_v37 = vsub.f32 %v20416_v49, %v6281_v57 }
 0x52b   : > { %17958 = vpow2.f32 %v6510_v11 }
 0x52c   : > { %v6512_v50 = vmul.f32 1.442695, %v6428_v20  ;;  %v6514_v12 = vmul.f32 1.442695, %v6429_v37 }
 0x52d   : > { %v6284_v24 = vpop.xlane.xlu1 %6283  ;;  %v6287_v22 = vpop.xlane.xlu0 %6286 }
 0x52e   : > { %17960 = vpow2.f32 %v6512_v50  ;;  %v6430_v29 = vsub.f32 %v20423_v23, %v6284_v24  ;;  %v6431_v30 = vsub.f32 %v20425_v41, %v6287_v22 }
 0x52f   : > { %v20669_v42 = vpop.eup %17948  ;;  %17962 = vpow2.f32 %v6514_v12 }
 0x530   : > { %v20671_v2 = vpop.eup %17950  ;;  %v6516_v60 = vmul.f32 1.442695, %v6430_v29  ;;  %v6518_v47 = vmul.f32 1.442695, %v6431_v30  ;;  %v6642_v45 = vsel %vm6215_vm2, %v20669_v42, 0.0 }
 0x531   : > { %6643 = vadd.xlane.f32.xlu1 %v6642_v45  ;;  %v6290_v49 = vpop.xlane.xlu1 %6289  ;;  %v6293_v10 = vpop.xlane.xlu0 %6292  ;;  %v6645_v25 = vsel %vm6215_vm2, %v20671_v2, 0.0 }
 0x532   : > { %17964 = vpow2.f32 %v6516_v60  ;;  %v6432_v23 = vsub.f32 %v20432_v59, %v6290_v49  ;;  %v6433_v41 = vsub.f32 %v20434_v54, %v6293_v10  ;;  %6646 = vadd.xlane.f32.xlu0 %v6645_v25 }
 0x533   : > { %v20679_v33 = vpop.eup %17952  ;;  %17966 = vpow2.f32 %v6518_v47 }
 0x534   : > { %v20681_v13 = vpop.eup %17954  ;;  %v6520_v16 = vmul.f32 1.442695, %v6432_v23  ;;  %v6522_v26 = vmul.f32 1.442695, %v6433_v41  ;;  %v6648_v11 = vsel %vm6215_vm2, %v20679_v33, 0.0 }
 0x535   : > { %6649 = vadd.xlane.f32.xlu1 %v6648_v11  ;;  %v6296_v38 = vpop.xlane.xlu1 %6295  ;;  %v6651_v57 = vsel %vm6215_vm2, %v20681_v13, 0.0 }
 0x536   : > { %17968 = vpow2.f32 %v6520_v16  ;;  %v6434_v59 = vsub.f32 %v20441_v21, %v6296_v38  ;;  %v6299_v54 = vpop.xlane.xlu0 %6298  ;;  %6652 = vadd.xlane.f32.xlu0 %v6651_v57 }
 0x537   : > { %v20688_v20 = vpop.eup %17956  ;;  %17970 = vpow2.f32 %v6522_v26  ;;  %v6435_v37 = vsub.f32 %v20444_v32, %v6299_v54 }
 0x538   : > { %v20691_v50 = vpop.eup %17958  ;;  %v6524_v12 = vmul.f32 1.442695, %v6434_v59  ;;  %v6654_v24 = vsel %vm6215_vm2, %v20688_v20, 0.0 }
 0x539   : > { %v6526_v22 = vmul.f32 1.442695, %v6435_v37  ;;  %6655 = vadd.xlane.f32.xlu1 %v6654_v24  ;;  %v6657_v29 = vsel %vm6215_vm2, %v20691_v50, 0.0  ;;  %v6302_v21 = vpop.xlane.xlu1 %6301 }
 0x53a   : > { %17972 = vpow2.f32 %v6524_v12  ;;  %v6305_v30 = vpop.xlane.xlu0 %6304  ;;  %6658 = vadd.xlane.f32.xlu0 %v6657_v29  ;;  %v6436_v32 = vsub.f32 %v20450_v53, %v6302_v21 }
 0x53b   : > { %v20697_v60 = vpop.eup %17960  ;;  %17974 = vpow2.f32 %v6526_v22  ;;  %v6437_v47 = vsub.f32 %v20452_v56, %v6305_v30 }
 0x53c   : > { %v20701_v45 = vpop.eup %17962  ;;  %v6660_v49 = vsel %vm6215_vm2, %v20697_v60, 0.0  ;;  %v6528_v10 = vmul.f32 1.442695, %v6436_v32 }
 0x53d   : > { %v6530_v25 = vmul.f32 1.442695, %v6437_v47  ;;  %6661 = vadd.xlane.f32.xlu1 %v6660_v49  ;;  %v6663_v23 = vsel %vm6215_vm2, %v20701_v45, 0.0  ;;  %v6602_v41 = vpop.xlane.xlu1 %6601 }
 0x53e   : > { %v6311_v16 = vpop.xlane.xlu0 %6310  ;;  %6664 = vadd.xlane.f32.xlu0 %v6663_v23  ;;  %17976 = vpow2.f32 %v6528_v10 }
 0x53f   : > { %v20707_v26 = vpop.eup %17964  ;;  %v6439_v53 = vsub.f32 %v20464_v40, %v6311_v16  ;;  %17978 = vpow2.f32 %v6530_v25 }
 0x540   : > { %v20710_v56 = vpop.eup %17966  ;;  %v6666_v11 = vsel %vm6215_vm2, %v20707_v26, 0.0  ;;  %17980 = vrcp.f32 %v6602_v41 }
 0x541   : > { %v6534_v38 = vmul.f32 1.442695, %v6439_v53  ;;  %6667 = vadd.xlane.f32.xlu1 %v6666_v11  ;;  %v6669_v57 = vsel %vm6215_vm2, %v20710_v56, 0.0  ;;  %v6308_v59 = vpop.xlane.xlu1 %6307 }
 0x542   : > { %v6605_v54 = vpop.xlane.xlu0 %6604  ;;  %6670 = vadd.xlane.f32.xlu0 %v6669_v57  ;;  %v6438_v40 = vsub.f32 %v20462_v46, %v6308_v59 }
 0x543   : > { %v20716_v37 = vpop.eup %17968  ;;  %17982 = vpow2.f32 %v6534_v38 }
 0x544   : > { %v20719_v12 = vpop.eup %17970  ;;  %17984 = vrcp.f32 %v6605_v54  ;;  %v6672_v24 = vsel %vm6215_vm2, %v20716_v37, 0.0  ;;  %v6532_v22 = vmul.f32 1.442695, %v6438_v40 }
 0x545   : > { %6673 = vadd.xlane.f32.xlu1 %v6672_v24  ;;  %v6675_v29 = vsel %vm6215_vm2, %v20719_v12, 0.0  ;;  %v6608_v21 = vpop.xlane.xlu1 %6607 }
 0x546   : > { %v6317_v30 = vpop.xlane.xlu0 %6316  ;;  %6676 = vadd.xlane.f32.xlu0 %v6675_v29  ;;  %17986 = vpow2.f32 %v6532_v22 }
 0x547   : > { %v20725_v32 = vpop.eup %17972  ;;  %v6441_v47 = vsub.f32 %v20474_v31, %v6317_v30  ;;  %17988 = vrcp.f32 %v6608_v21  ;;  %v22882_v21 = vld [vmem:[#allocation70_spill] sm:$0xff] }
 0x548   : > { %v20728_v46 = vpop.eup %17974  ;;  %v6678_v49 = vsel %vm6215_vm2, %v20725_v32, 0.0 }
 0x549   : > { %v6538_v10 = vmul.f32 1.442695, %v6441_v47  ;;  %6679 = vadd.xlane.f32.xlu1 %v6678_v49  ;;  %v6681_v25 = vsel %vm6215_vm2, %v20728_v46, 0.0  ;;  %v6314_v23 = vpop.xlane.xlu1 %6313 }
 0x54a   : > { %v6611_v41 = vpop.xlane.xlu0 %6610  ;;  %6682 = vadd.xlane.f32.xlu0 %v6681_v25  ;;  %v6440_v16 = vsub.f32 %v20472_v27, %v6314_v23  ;;  %v22883_v25 = vld [vmem:[#allocation75_spill] sm:$0xff] }
 0x54b   : > { %17990 = vpow2.f32 %v6538_v10  ;;  %v20735_v53 = vpop.eup %17976 }
 0x54c   : > { %17992 = vrcp.f32 %v6611_v41  ;;  %v20737_v31 = vpop.eup %17978  ;;  %v6536_v11 = vmul.f32 1.442695, %v6440_v16  ;;  %v6684_v38 = vsel %vm6215_vm2, %v20735_v53, 0.0 }
 0x54d   : > { %v17981_v57 = vpop.eup %17980  ;;  %6685 = vadd.xlane.f32.xlu1 %v6684_v38  ;;  %v6614_v59 = vpop.xlane.xlu1 %6613  ;;  %v6687_v40 = vsel %vm6215_vm2, %v20737_v31, 0.0 }
 0x54e   : > { %v20741_v54 = vpop.xlane.xlu0 %6322  ;;  %17994 = vpow2.f32 %v6536_v11  ;;  %6688 = vadd.xlane.f32.xlu0 %v6687_v40  ;;  %v6856_v27 = vmul.f32 %v17981_v57, %v20459_v43  ;;  %v22885_v57 = vld [vmem:[#allocation45_spill] sm:$0xff] }
 0x54f   : > { %17996 = vrcp.f32 %v6614_v59 }
 0x550   : > { %v20746_v24 = vpop.eup %17982  ;;  %17187 = vmatmul.mubr.msk.f32.vlgmr.msra.gmra.mxu0 %vm6920_vm4, %v6856_v27 }
 0x551   : > { %v17985_v22 = vpop.eup %17984  ;;  %v6693_v29 = vsel %vm6215_vm2, %v20746_v24, 0.0  ;;  %17195 = vmatpush3.msk.msra.mxu0 %vm6924_vm3, %v22882_v21  ;;  %v20753_v30 = vpop.xlane.xlu1 %6319  ;;  %17196 = vmatprep.mubr.msk.f32.mxu0 %vm18725_vm0, %v22808_v58 }
 0x552   : > { %v6617_v47 = vpop.xlane.xlu0 %6616  ;;  %v6857_v49 = vmul.f32 %v17985_v22, %v20470_v9  ;;  %6694 = vadd.xlane.f32.xlu0 %v6693_v29  ;;  %17204 = vmatprep.subr.mxu0 %v22808_v58  ;;  %v6442_v17 = vsub.f32 %v20483_v62, %v20753_v30 }
 0x553   : > { %v20759_v43 = vpop.eup %17986  ;;  %17998 = vrcp.f32 %v6617_v47  ;;  %v22887_v47 = vld [vmem:[#allocation77_spill] sm:$0xff] }
 0x554   : > { %17192 = vmatmul.mubr.msk.f32.vlgmr.msra.gmra.mxu1 %vm6920_vm4, %v6857_v49  ;;  %v17989_v10 = vpop.eup %17988  ;;  %v6690_v23 = vsel %vm6215_vm2, %v20759_v43, 0.0  ;;  %v6540_v34 = vmul.f32 1.442695, %v6442_v17 }
 0x555   : > { %17200 = vmatpush3.msk.msra.mxu1 %vm6924_vm3, %v22883_v25  ;;  %17201 = vmatprep.mubr.msk.f32.mxu1 %vm18725_vm0, %v22808_v58  ;;  %v6620_v9 = vpop.xlane.xlu1 %6619  ;;  %v6858_v16 = vmul.f32 %v17989_v10, %v20481_v44 }
 0x556   : > { %6691 = vadd.xlane.f32.xlu1 %v6690_v23  ;;  %v20768_v41 = vpop.xlane.xlu0 %6328  ;;  %17209 = vmatprep.subr.mxu1 %v22808_v58  ;;  %18000 = vrcp.f32 %v6620_v9 }
 0x557   : > { %17197 = vmatmul.mubr.msk.f32.vlgmr.msra.gmra.mxu0 %vm6920_vm4, %v6858_v16  ;;  %v22888_v16 = vld [vmem:[#allocation76_spill] sm:$0xff] }
 0x558   : > { %v20772_v11 = vpop.eup %17990  ;;  %17205 = vmatpush3.msk.msra.mxu0 %vm6924_vm3, %v22885_v57  ;;  %17206 = vmatprep.mubr.msk.f32.mxu0 %vm18725_vm0, %v22808_v58 }
 0x559   : > { %22884 = vst [vmem:[#allocation70_spill] sm:$0xff] %v20772_v11  ;;  %v17993_v38 = vpop.eup %17992  ;;  %v6699_v59 = vsel %vm6215_vm2, %v20772_v11, 0.0  ;;  %v20781_v40 = vpop.xlane.xlu1 %6325  ;;  %17214 = vmatprep.subr.mxu0 %v22808_v58 }
 0x55a   : > { %v6623_v44 = vpop.xlane.xlu0 %6622  ;;  %6700 = vadd.xlane.f32.xlu0 %v6699_v59  ;;  %v6859_v27 = vmul.f32 %v17993_v38, %v20491_v7 }
 0x55b   : > { %v20785_v22 = vpop.eup %17994  ;;  %18002 = vrcp.f32 %v6623_v44 }
 0x55c   : > { %22886 = vst [vmem:[#allocation75_spill] sm:$0xff] %v20785_v22  ;;  %17202 = vmatmul.mubr.msk.f32.vlgmr.msra.gmra.mxu1 %vm6920_vm4, %v6859_v27  ;;  %v17997_v29 = vpop.eup %17996  ;;  %v6696_v49 = vsel %vm6215_vm2, %v20785_v22, 0.0  ;;  %v22889_v27 = vld [vmem:[#allocation78_spill] sm:$0xff] }
 0x55d   : > { %17210 = vmatpush3.msk.msra.mxu1 %vm6924_vm3, %v22887_v47  ;;  %17211 = vmatprep.mubr.msk.f32.mxu1 %vm18725_vm0, %v22808_v58  ;;  %v20794_v10 = vpop.xlane.xlu1 %6331  ;;  %v6860_v23 = vmul.f32 %v17997_v29, %v20501_v35 }
 0x55e   : > { %6697 = vadd.xlane.f32.xlu1 %v6696_v49  ;;  %v20796_v7 = vpop.xlane.xlu0 %6334  ;;  %17219 = vmatprep.subr.mxu1 %v22808_v58 }
 0x55f   : > { %17207 = vmatmul.mubr.msk.f32.vlgmr.msra.gmra.mxu0 %vm6920_vm4, %v6860_v23 }
 0x560   : > { %v17999_v9 = vpop.eup %17998  ;;  %17215 = vmatpush3.msk.msra.mxu0 %vm6924_vm3, %v22888_v16  ;;  %17216 = vmatprep.mubr.msk.f32.mxu0 %vm18725_vm0, %v22808_v58 }
 0x561   : > { %v20805_v38 = vpop.xlane.xlu1 %6337  ;;  %v6861_v44 = vmul.f32 %v17999_v9, %v20511_v39  ;;  %17224 = vmatprep.subr.mxu0 %v22808_v58  ;;  %v22890_v9 = vld [vmem:[#allocation52_spill] sm:$0xff] }
 0x562   : > { %v20807_v59 = vpop.xlane.xlu0 %6340 }
 0x563   : > { %17212 = vmatmul.mubr.msk.f32.vlgmr.msra.gmra.mxu1 %vm6920_vm4, %v6861_v44  ;;  %v18001_v35 = vpop.eup %18000 }
 0x564   : > { %17220 = vmatpush3.msk.msra.mxu1 %vm6924_vm3, %v22889_v27  ;;  %17221 = vmatprep.mubr.msk.f32.mxu1 %vm18725_vm0, %v22808_v58  ;;  %v6862_v23 = vmul.f32 %v18001_v35, %v20521_v3  ;;  %v22891_v3 = vld [vmem:[#allocation61_spill] sm:$0xff] }
 0x565   : > { %v20816_v29 = vpop.xlane.xlu1 %6343  ;;  %17229 = vmatprep.subr.mxu1 %v22808_v58 }
 0x566   : > { %v20818_v49 = vpop.xlane.xlu0 %6346  ;;  %17217 = vmatmul.mubr.msk.f32.vlgmr.msra.gmra.mxu0 %vm6920_vm4, %v6862_v23 }
 0x567   : > { %17225 = vmatpush3.msk.msra.mxu0 %vm6924_vm3, %v22890_v9  ;;  %17226 = vmatprep.mubr.msk.f32.mxu0 %vm18725_vm0, %v22808_v58 }
 0x568   : > { %v18003_v39 = vpop.eup %18002  ;;  %17234 = vmatprep.subr.mxu0 %v22808_v58 }
 0x569   : > { %v20827_v44 = vpop.xlane.xlu1 %6349  ;;  %v6863_v55 = vmul.f32 %v18003_v39, %v20531_v51  ;;  %v6443_v39 = vsub.f32 %v20485_v63, %v20741_v54 }
 0x56a   : > { %v20829_v6 = vpop.xlane.xlu0 %6352 }
 0x56b   : > { %17222 = vmatmul.mubr.msk.f32.vlgmr.msra.gmra.mxu1 %vm6920_vm4, %v6863_v55  ;;  %v6542_v0 = vmul.f32 1.442695, %v6443_v39 }
 0x56c   : > { %17230 = vmatpush3.msk.msra.mxu1 %vm6924_vm3, %v22891_v3  ;;  %17231 = vmatprep.mubr.msk.f32.mxu1 %vm18725_vm0, %v22808_v58 }
 0x56d   : > { %v20838_v35 = vpop.xlane.xlu1 %6355  ;;  %17239 = vmatprep.subr.mxu1 %v22808_v58  ;;  %18004 = vpow2.f32 %v6542_v0 }
 0x56e   : > { %v20840_v23 = vpop.xlane.xlu0 %6358  ;;  %18006 = vpow2.f32 %v6540_v34 }
 0x56f   : > { %8446 = vrot.lane.b32.xlu1 %v22885_v57, %s18726_s29 }
 0x570   : > { %8523 = vrot.lane.b32.xlu0 %v22887_v47, %s18726_s29 }
 0x571   : > { %v20847_v51 = vpop.xlane.xlu1 %6361 }
 0x572   : > { %v20849_v55 = vpop.xlane.xlu0 %6364 }
 0x575   : > { %v20853_v9 = vpop.xlane.xlu1 %6367 }
 0x576   : > { %v20855_v3 = vpop.xlane.xlu0 %6370 }
 0x579   : > { %v20859_v14 = vpop.xlane.xlu1 %6373 }
 0x57a   : > { %22892 = vst [vmem:[#allocation45_spill] sm:$0xff] %v20859_v14  ;;  %v20861_v4 = vpop.xlane.xlu0 %6376  ;;  %v20879_v14 = vpop.eup %18004 }
 0x57b   : > { %22893 = vst [vmem:[#allocation77_spill] sm:$0xff] %v20861_v4  ;;  %22902 = vst [vmem:[#allocation93_spill] sm:$0xff] %v20879_v14  ;;  %v6705_v34 = vsel %vm6215_vm2, %v20879_v14, 0.0 }
 0x57d   : > { %v20863_v18 = vpop.xlane.xlu1 %6379 }
 0x57e   : > { %22894 = vst [vmem:[#allocation76_spill] sm:$0xff] %v20863_v18  ;;  %v20865_v22 = vpop.xlane.xlu0 %6382 }
 0x57f   : > { %22895 = vst [vmem:[#allocation78_spill] sm:$0xff] %v20865_v22 }
 0x581   : > { %v20867_v63 = vpop.xlane.xlu1 %6385 }
 0x582   : > { %22896 = vst [vmem:[#allocation52_spill] sm:$0xff] %v20867_v63  ;;  %v20869_v54 = vpop.xlane.xlu0 %6388  ;;  %v20887_v63 = vpop.eup %18006 }
 0x583   : > { %22897 = vst [vmem:[#allocation61_spill] sm:$0xff] %v20869_v54 }
 0x585   : > { %v20871_v11 = vpop.xlane.xlu1 %6391 }
 0x586   : > { %22898 = vst [vmem:[#allocation89_spill] sm:$0xff] %v20871_v11  ;;  %v20873_v39 = vpop.xlane.xlu0 %6394 }
 0x587   : > { %22899 = vst [vmem:[#allocation90_spill] sm:$0xff] %v20873_v39  ;;  %v6702_v39 = vsel %vm6215_vm2, %v20887_v63, 0.0 }
 0x589   : > { %v20875_v62 = vpop.xlane.xlu1 %6397 }
 0x58a   : > { %22900 = vst [vmem:[#allocation91_spill] sm:$0xff] %v20875_v62  ;;  %v20877_v30 = vpop.xlane.xlu0 %6400 }
 0x58b   : > { %22901 = vst [vmem:[#allocation92_spill] sm:$0xff] %v20877_v30 }
 0x58d   : > { %v20881_v17 = vpop.xlane.xlu1 %6403 }
 0x58e   : > { %22903 = vst [vmem:[#allocation94_spill] sm:$0xff] %v20881_v17  ;;  %v20883_v0 = vpop.xlane.xlu0 %6406 }
 0x58f   : > { %22904 = vst [vmem:[#allocation95_spill] sm:$0xff] %v20883_v0  ;;  %6706 = vadd.xlane.f32.xlu0 %v6705_v34 }
 0x591   : > { %v6626_v54 = vpop.xlane.xlu1 %6625 }
 0x592   : > { %v6629_v11 = vpop.xlane.xlu0 %6628  ;;  %18008 = vrcp.f32 %v6626_v54 }
 0x593   : > { %6703 = vadd.xlane.f32.xlu1 %v6702_v39  ;;  %18010 = vrcp.f32 %v6629_v11 }
 0x595   : > { %v6632_v62 = vpop.xlane.xlu1 %6631 }
 0x596   : > { %v6635_v30 = vpop.xlane.xlu0 %6634  ;;  %18012 = vrcp.f32 %v6632_v62 }
 0x597   : > { %18014 = vrcp.f32 %v6635_v30 }
 0x599   : > { %v6638_v17 = vpop.xlane.xlu1 %6637 }
 0x59a   : > { %v6641_v0 = vpop.xlane.xlu0 %6640  ;;  %18016 = vrcp.f32 %v6638_v17 }
 0x59b   : > { %18018 = vrcp.f32 %v6641_v0 }
 0x59f   : > { %v18009_v18 = vpop.eup %18008 }
 0x5a0   : > { %v18011_v22 = vpop.eup %18010  ;;  %v6864_v34 = vmul.f32 %v18009_v18, %v20631_v52 }
 0x5a1   : > { %v6865_v4 = vmul.f32 %v18011_v22, %v20633_v15  ;;  %v22905_v15 = vld [vmem:[#allocation79_spill] sm:$0xff] }
 0x5a2   : > { %17227 = vmatmul.mubr.msk.f32.vlgmr.msra.gmra.mxu0 %vm6920_vm4, %v6864_v34 }
 0x5a3   : > { %v18013_v14 = vpop.eup %18012  ;;  %17232 = vmatmul.mubr.msk.f32.vlgmr.msra.gmra.mxu1 %vm6920_vm4, %v6865_v4  ;;  %17235 = vmatpush3.msk.msra.mxu0 %vm6924_vm3, %v20371_v5  ;;  %v6445_v4 = vsub.f32 %v20495_v61, %v20768_v41 }
 0x5a4   : > { %8600 = vrot.lane.b32.xlu1 %v22888_v16, %s18726_s29  ;;  %v18015_v54 = vpop.eup %18014  ;;  %v6866_v11 = vmul.f32 %v18013_v14, %v20639_v28  ;;  %17240 = vmatpush3.msk.msra.mxu1 %vm6924_vm3, %v20369_v19  ;;  %v22907_v28 = vld [vmem:[#allocation57_spill] sm:$0xff] }
 0x5a5   : > { %8677 = vrot.lane.b32.xlu0 %v22889_v27, %s18726_s29  ;;  %v6867_v18 = vmul.f32 %v18015_v54, %v20645_v48  ;;  %17236 = vmatprep.mubr.msk.f32.mxu0 %vm18725_vm0, %v22808_v58  ;;  %v6546_v61 = vmul.f32 1.442695, %v6445_v4  ;;  %v6444_v48 = vsub.f32 %v22907_v28, %v20781_v40 }
 0x5a6   : > { %17241 = vmatprep.mubr.msk.f32.mxu1 %vm18725_vm0, %v22808_v58  ;;  %17244 = vmatprep.subr.mxu0 %v22808_v58 }
 0x5a7   : > { %v18017_v52 = vpop.eup %18016  ;;  %17249 = vmatprep.subr.mxu1 %v22808_v58  ;;  %17237 = vmatmul.mubr.msk.f32.vlgmr.msra.gmra.mxu0 %vm6920_vm4, %v6866_v11  ;;  %18020 = vpow2.f32 %v6546_v61 }
 0x5a8   : > { %v18019_v14 = vpop.eup %18018  ;;  %v6868_v5 = vmul.f32 %v18017_v52, %v20647_v36  ;;  %17242 = vmatmul.mubr.msk.f32.vlgmr.msra.gmra.mxu1 %vm6920_vm4, %v6867_v18  ;;  %17245 = vmatpush3.msk.msra.mxu0 %vm6924_vm3, %v20375_v8  ;;  %v22906_v8 = vld [vmem:[#allocation55_spill] sm:$0xff]  ;;  %v22908_v36 = vld [vmem:[#allocation53_spill] sm:$0xff] }
 0x5a9   : > { %v6869_v19 = vmul.f32 %v18019_v14, %v20653_v1  ;;  %17250 = vmatpush3.msk.msra.mxu1 %vm6924_vm3, %v22905_v15  ;;  %17246 = vmatprep.mubr.msk.f32.mxu0 %vm18725_vm0, %v22808_v58  ;;  %v6544_v1 = vmul.f32 1.442695, %v6444_v48  ;;  %v22910_v48 = vld [vmem:[#allocation48_spill] sm:$0xff] }
 0x5aa   : > { %17251 = vmatprep.mubr.msk.f32.mxu1 %vm18725_vm0, %v22808_v58  ;;  %17254 = vmatprep.subr.mxu0 %v22808_v58 }
 0x5ab   : > { %17259 = vmatprep.subr.mxu1 %v22808_v58  ;;  %17247 = vmatmul.mubr.msk.f32.vlgmr.msra.gmra.mxu0 %vm6920_vm4, %v6868_v5  ;;  %18022 = vpow2.f32 %v6544_v1 }
 0x5ac   : > { %17252 = vmatmul.mubr.msk.f32.vlgmr.msra.gmra.mxu1 %vm6920_vm4, %v6869_v19  ;;  %17255 = vmatpush3.msk.msra.mxu0 %vm6924_vm3, %v22906_v8  ;;  %v22909_v8 = vld [vmem:[#allocation50_spill] sm:$0xff] }
 0x5ad   : > { %17260 = vmatpush3.msk.msra.mxu1 %vm6924_vm3, %v22908_v36  ;;  %17256 = vmatprep.mubr.msk.f32.mxu0 %vm18725_vm0, %v22808_v58 }
 0x5ae   : > { %17264 = vmatprep.subr.mxu0 %v22808_v58  ;;  %17261 = vmatprep.mubr.msk.f32.mxu1 %vm18725_vm0, %v22808_v58 }
 0x5af   : > { %17269 = vmatprep.subr.mxu1 %v22808_v58 }
 0x5b4   : > { %v20941_v62 = vpop.eup %18020 }
 0x5b5   : > { %v6711_v0 = vsel %vm6215_vm2, %v20941_v62, 0.0 }
 0x5b8   : > { %v20945_v34 = vpop.eup %18022 }
 0x5b9   : > { %v6708_v18 = vsel %vm6215_vm2, %v20945_v34, 0.0 }
 0x5ba   : > { %v6644_v41 = vpop.xlane.xlu1 %6643 }
 0x5bb   : > { %18024 = vrcp.f32 %v6644_v41  ;;  %v6647_v22 = vpop.xlane.xlu0 %6646  ;;  %v22911_v41 = vld [vmem:[#allocation72_spill] sm:$0xff] }
 0x5bc   : > { %18026 = vrcp.f32 %v6647_v22  ;;  %v22912_v22 = vld [vmem:[#allocation71_spill] sm:$0xff] }
 0x5be   : > { %v6650_v40 = vpop.xlane.xlu1 %6649 }
 0x5bf   : > { %18028 = vrcp.f32 %v6650_v40  ;;  %v6653_v39 = vpop.xlane.xlu0 %6652 }
 0x5c0   : > { %18030 = vrcp.f32 %v6653_v39 }
 0x5c2   : > { %v6656_v30 = vpop.xlane.xlu1 %6655 }
 0x5c3   : > { %18032 = vrcp.f32 %v6656_v30  ;;  %v6659_v17 = vpop.xlane.xlu0 %6658 }
 0x5c4   : > { %18034 = vrcp.f32 %v6659_v17  ;;  %6712 = vadd.xlane.f32.xlu0 %v6711_v0  ;;  %v22913_v17 = vld [vmem:[#allocation46_spill] sm:$0xff]  ;;  %v22914_v0 = vld [vmem:[#allocation47_spill] sm:$0xff] }
 0x5c6   : > { %v6662_v54 = vpop.xlane.xlu1 %6661 }
 0x5c7   : > { %v6665_v11 = vpop.xlane.xlu0 %6664 }
 0x5c8   : > { %v18025_v52 = vpop.eup %18024  ;;  %6709 = vadd.xlane.f32.xlu1 %v6708_v18  ;;  %18036 = vrcp.f32 %v6665_v11 }
 0x5c9   : > { %v18027_v14 = vpop.eup %18026  ;;  %v6870_v5 = vmul.f32 %v18025_v52, %v20669_v42  ;;  %18038 = vrcp.f32 %v6662_v54 }
 0x5ca   : > { %v6871_v19 = vmul.f32 %v18027_v14, %v20671_v2  ;;  %v20957_v28 = vpop.xlane.xlu1 %6667  ;;  %v22915_v14 = vld [vmem:[#allocation84_spill] sm:$0xff] }
 0x5cb   : > { %v20951_v4 = vpop.xlane.xlu0 %6670  ;;  %17257 = vmatmul.mubr.msk.f32.vlgmr.msra.gmra.mxu0 %vm6920_vm4, %v6870_v5  ;;  %v6447_v5 = vsub.f32 %v22915_v14, %v20796_v7 }
 0x5cc   : > { %v18029_v15 = vpop.eup %18028  ;;  %17262 = vmatmul.mubr.msk.f32.vlgmr.msra.gmra.mxu1 %vm6920_vm4, %v6871_v19  ;;  %17265 = vmatpush3.msk.msra.mxu0 %vm6924_vm3, %v22909_v8  ;;  %v22916_v8 = vld [vmem:[#allocation59_spill] sm:$0xff] }
 0x5cd   : > { %v18031_v61 = vpop.eup %18030  ;;  %17270 = vmatpush3.msk.msra.mxu1 %vm6924_vm3, %v22910_v48  ;;  %17266 = vmatprep.mubr.msk.f32.mxu0 %vm18725_vm0, %v22808_v58  ;;  %v6872_v42 = vmul.f32 %v18029_v15, %v20679_v33  ;;  %v6550_v48 = vmul.f32 1.442695, %v6447_v5  ;;  %v22919_v5 = vld [vmem:[#allocation80_spill] sm:$0xff] }
 0x5ce   : > { %17274 = vmatprep.subr.mxu0 %v22808_v58  ;;  %17271 = vmatprep.mubr.msk.f32.mxu1 %vm18725_vm0, %v22808_v58  ;;  %v6873_v2 = vmul.f32 %v18031_v61, %v20681_v13  ;;  %v20984_v39 = vpop.xlane.xlu1 %6673  ;;  %v6446_v61 = vsub.f32 %v22916_v8, %v20794_v10 }
 0x5cf   : > { %17279 = vmatprep.subr.mxu1 %v22808_v58  ;;  %v20969_v36 = vpop.xlane.xlu0 %6676  ;;  %17267 = vmatmul.mubr.msk.f32.vlgmr.msra.gmra.mxu0 %vm6920_vm4, %v6872_v42  ;;  %18040 = vpow2.f32 %v6550_v48  ;;  %v22921_v48 = vld [vmem:[#allocation85_spill] sm:$0xff] }
 0x5d0   : > { %v18033_v1 = vpop.eup %18032  ;;  %17272 = vmatmul.mubr.msk.f32.vlgmr.msra.gmra.mxu1 %vm6920_vm4, %v6873_v2  ;;  %17275 = vmatpush3.msk.msra.mxu0 %vm6924_vm3, %v22911_v41  ;;  %v6548_v41 = vmul.f32 1.442695, %v6446_v61 }
 0x5d1   : > { %v18035_v33 = vpop.eup %18034  ;;  %17280 = vmatpush3.msk.msra.mxu1 %vm6924_vm3, %v22912_v22  ;;  %17276 = vmatprep.mubr.msk.f32.mxu0 %vm18725_vm0, %v22808_v58  ;;  %v6874_v13 = vmul.f32 %v18033_v1, %v20688_v20 }
 0x5d2   : > { %17281 = vmatprep.mubr.msk.f32.mxu1 %vm18725_vm0, %v22808_v58  ;;  %v6875_v40 = vmul.f32 %v18035_v33, %v20691_v50  ;;  %17289 = vmatprep.subr.mxu1 %v22808_v58  ;;  %v20995_v20 = vpop.xlane.xlu1 %6679  ;;  %18042 = vpow2.f32 %v6548_v41 }
 0x5d3   : > { %v20986_v30 = vpop.xlane.xlu0 %6682  ;;  %17277 = vmatmul.mubr.msk.f32.vlgmr.msra.gmra.mxu0 %vm6920_vm4, %v6874_v13  ;;  %17284 = vmatprep.subr.mxu0 %v22808_v58  ;;  %18044 = vrcp.f32 %v20951_v4 }
 0x5d4   : > { %17282 = vmatmul.mubr.msk.f32.vlgmr.msra.gmra.mxu1 %vm6920_vm4, %v6875_v40  ;;  %17286 = vmatprep.mubr.msk.f32.mxu0 %vm18725_vm0, %v22808_v58  ;;  %18046 = vrcp.f32 %v20957_v28 }
 0x5d5   : > { %17291 = vmatprep.mubr.msk.f32.mxu1 %vm18725_vm0, %v22808_v58  ;;  %v18037_v15 = vpop.eup %18036 }
 0x5d6   : > { %v21003_v18 = vpop.xlane.xlu1 %6685  ;;  %v6877_v54 = vmul.f32 %v18037_v15, %v20701_v45  ;;  %v18039_v1 = vpop.eup %18038  ;;  %v6449_v15 = vsub.f32 %v22919_v5, %v20807_v59 }
 0x5d7   : > { %v20997_v50 = vpop.xlane.xlu0 %6688  ;;  %v6876_v10 = vmul.f32 %v18039_v1, %v20697_v60 }
 0x5d9   : > { %8754 = vrot.lane.b32.xlu1 %v22913_v17, %s18728_s19 }
 0x5da   : > { %8831 = vrot.lane.b32.xlu0 %v22914_v0, %s18728_s19 }
 0x5db   : > { %v21005_v52 = vpop.xlane.xlu0 %6694 }
 0x5dc   : > { %v21029_v45 = vpop.eup %18040 }
 0x5dd   : > { %v6717_v33 = vsel %vm6215_vm2, %v21029_v45, 0.0 }
 0x5df   : > { %v21009_v19 = vpop.xlane.xlu1 %6691  ;;  %v21033_v22 = vpop.eup %18042 }
 0x5e0   : > { %v6714_v60 = vsel %vm6215_vm2, %v21033_v22, 0.0  ;;  %v18045_v1 = vpop.eup %18044 }
 0x5e1   : > { %v6879_v59 = vmul.f32 %v18045_v1, %v20710_v56 }
 0x5e3   : > { %v21011_v11 = vpop.xlane.xlu0 %6700 }
 0x5e7   : > { %v21015_v42 = vpop.xlane.xlu1 %6697  ;;  %v8524_v2 = vpop.permute.xlu0 %8523 }
 0x5e8   : > { %17290 = vmatpush3.msk.msra.mxu1 %vm6924_vm3, %v8524_v2  ;;  %v6448_v2 = vsub.f32 %v22921_v48, %v20805_v38 }
 0x5e9   : > { %17292 = vmatmul.mubr.msk.f32.vlgmr.msra.gmra.mxu1 %vm6920_vm4, %v6877_v54  ;;  %17299 = vmatprep.subr.mxu1 %v22808_v58  ;;  %v6554_v54 = vmul.f32 1.442695, %v6449_v15 }
 0x5ea   : > { %17301 = vmatprep.mubr.msk.f32.mxu1 %vm18725_vm0, %v22808_v58 }
 0x5eb   : > { %v8447_v7 = vpop.permute.xlu1 %8446  ;;  %18048 = vpow2.f32 %v6554_v54 }
 0x5ec   : > { %17285 = vmatpush3.msk.msra.mxu0 %vm6924_vm3, %v8447_v7 }
 0x5ed   : > { %17287 = vmatmul.mubr.msk.f32.vlgmr.msra.gmra.mxu0 %vm6920_vm4, %v6876_v10  ;;  %17294 = vmatprep.subr.mxu0 %v22808_v58  ;;  %v18047_v10 = vpop.eup %18046 }
 0x5ee   : > { %17296 = vmatprep.mubr.msk.f32.mxu0 %vm18725_vm0, %v22808_v58  ;;  %v6878_v15 = vmul.f32 %v18047_v10, %v20707_v26 }
 0x5f8   : > { %v21077_v26 = vpop.eup %18048 }
 0x5f9   : > { %6718 = vadd.xlane.f32.xlu0 %v6717_v33  ;;  %v6552_v33 = vmul.f32 1.442695, %v6448_v2 }
 0x5fb   : > { %18050 = vpow2.f32 %v6552_v33 }
 0x5fc   : > { %18052 = vrcp.f32 %v20969_v36 }
 0x5fd   : > { %6715 = vadd.xlane.f32.xlu1 %v6714_v60  ;;  %18054 = vrcp.f32 %v20984_v39 }
 0x608   : > { %v21083_v10 = vpop.eup %18050 }
 0x60e   : > { %8908 = vrot.lane.b32.xlu1 %v22882_v21, %s18728_s19 }
 0x60f   : > { %8985 = vrot.lane.b32.xlu0 %v22883_v25, %s18728_s19 }
 0x610   : > { %v21043_v13 = vpop.f32.mrf.mxu0 }
 0x611   : > { %22917 = vst [vmem:[#allocation79_spill] sm:$0xff] %v21043_v13 }
 0x612   : > { %v17188_v40 = vpop.f32.mrf.mxu0 }
 0x614   : > { %v21045_v14 = vpop.f32.mrf.mxu1 }
 0x615   : > { %22918 = vst [vmem:[#allocation55_spill] sm:$0xff] %v21045_v14 }
 0x616   : > { %v17193_v8 = vpop.f32.mrf.mxu1 }
 0x617   : > { %v21049_v61 = vpop.f32.mrf.mxu0 }
 0x618   : > { %22920 = vst [vmem:[#allocation57_spill] sm:$0xff] %v21049_v61  ;;  %v21051_v4 = vpop.xlane.xlu0 %6706 }
 0x619   : > { %v17198_v41 = vpop.f32.mrf.mxu0 }
 0x61a   : > { %v6723_v41 = vsel %vm6215_vm2, %v21077_v26, 0.0 }
 0x61c   : > { %v21055_v28 = vpop.f32.mrf.mxu1  ;;  %v21057_v7 = vpop.xlane.xlu1 %6703 }
 0x61d   : > { %22922 = vst [vmem:[#allocation53_spill] sm:$0xff] %v21055_v28  ;;  %v8678_v60 = vpop.permute.xlu0 %8677 }
 0x61e   : > { %v17203_v40 = vpop.f32.mrf.mxu1  ;;  %17300 = vmatpush3.msk.msra.mxu1 %vm6924_vm3, %v8678_v60  ;;  %v6720_v60 = vsel %vm6215_vm2, %v21083_v10, 0.0 }
 0x61f   : > { %17302 = vmatmul.mubr.msk.f32.vlgmr.msra.gmra.mxu1 %vm6920_vm4, %v6879_v59  ;;  %17309 = vmatprep.subr.mxu1 %v22808_v58  ;;  %v21063_v38 = vpop.f32.mrf.mxu0  ;;  %v22927_v59 = vld [vmem:[#allocation54_spill] sm:$0xff] }
 0x620   : > { %22923 = vst [vmem:[#allocation50_spill] sm:$0xff] %v21063_v38  ;;  %v8601_v5 = vpop.permute.xlu1 %8600  ;;  %17311 = vmatprep.mubr.msk.f32.mxu1 %vm18725_vm0, %v22808_v58  ;;  %v6451_v40 = vsub.f32 %v22927_v59, %v20818_v49 }
 0x621   : > { %17295 = vmatpush3.msk.msra.mxu0 %vm6924_vm3, %v8601_v5  ;;  %v17208_v8 = vpop.f32.mrf.mxu0 }
 0x622   : > { %17297 = vmatmul.mubr.msk.f32.vlgmr.msra.gmra.mxu0 %vm6920_vm4, %v6878_v15  ;;  %17304 = vmatprep.subr.mxu0 %v22808_v58  ;;  %v18053_v15 = vpop.eup %18052  ;;  %v22928_v8 = vld [vmem:[#allocation81_spill] sm:$0xff] }
 0x623   : > { %17306 = vmatprep.mubr.msk.f32.mxu0 %vm18725_vm0, %v22808_v58  ;;  %v21073_v56 = vpop.f32.mrf.mxu1 }
 0x624   : > { %22924 = vst [vmem:[#allocation48_spill] sm:$0xff] %v21073_v56 }
 0x625   : > { %v17213_v48 = vpop.f32.mrf.mxu1 }
 0x626   : > { %v21075_v2 = vpop.f32.mrf.mxu0  ;;  %v6450_v48 = vsub.f32 %v22928_v8, %v20816_v29 }
 0x627   : > { %22925 = vst [vmem:[#allocation72_spill] sm:$0xff] %v21075_v2 }
 0x628   : > { %v17218_v54 = vpop.f32.mrf.mxu0 }
 0x629   : > { %v6558_v54 = vmul.f32 1.442695, %v6451_v40 }
 0x62b   : > { %v21079_v1 = vpop.f32.mrf.mxu1  ;;  %18056 = vpow2.f32 %v6558_v54 }
 0x62c   : > { %22926 = vst [vmem:[#allocation71_spill] sm:$0xff] %v21079_v1  ;;  %v6556_v1 = vmul.f32 1.442695, %v6450_v48 }
 0x62d   : > { %v17223_v33 = vpop.f32.mrf.mxu1 }
 0x62e   : > { %6724 = vadd.xlane.f32.xlu0 %v6723_v41  ;;  %v6881_v33 = vmul.f32 %v18053_v15, %v20719_v12  ;;  %18058 = vpow2.f32 %v6556_v1 }
 0x62f   : > { %18060 = vrcp.f32 %v20986_v30 }
 0x630   : > { %18062 = vrcp.f32 %v20995_v20 }
 0x632   : > { %6721 = vadd.xlane.f32.xlu1 %v6720_v60  ;;  %v18055_v60 = vpop.eup %18054 }
 0x633   : > { %v6880_v29 = vmul.f32 %v18055_v60, %v20716_v37 }
 0x638   : > { %v21113_v12 = vpop.eup %18056 }
 0x639   : > { %v6729_v39 = vsel %vm6215_vm2, %v21113_v12, 0.0 }
 0x63b   : > { %v21117_v59 = vpop.eup %18058 }
 0x63c   : > { %v6726_v1 = vsel %vm6215_vm2, %v21117_v59, 0.0 }
 0x643   : > { %9062 = vrot.lane.b32.xlu1 %v22885_v57, %s18728_s19 }
 0x644   : > { %9139 = vrot.lane.b32.xlu0 %v22887_v47, %s18728_s19 }
 0x64d   : > { %v21095_v5 = vpop.xlane.xlu0 %6712 }
 0x651   : > { %v21099_v41 = vpop.xlane.xlu1 %6709  ;;  %v8832_v36 = vpop.permute.xlu0 %8831 }
 0x652   : > { %17310 = vmatpush3.msk.msra.mxu1 %vm6924_vm3, %v8832_v36 }
 0x653   : > { %17312 = vmatmul.mubr.msk.f32.vlgmr.msra.gmra.mxu1 %vm6920_vm4, %v6881_v33  ;;  %17319 = vmatprep.subr.mxu1 %v22808_v58 }
 0x654   : > { %17321 = vmatprep.mubr.msk.f32.mxu1 %vm18725_vm0, %v22808_v58 }
 0x655   : > { %v8755_v49 = vpop.permute.xlu1 %8754 }
 0x656   : > { %17305 = vmatpush3.msk.msra.mxu0 %vm6924_vm3, %v8755_v49 }
 0x657   : > { %17307 = vmatmul.mubr.msk.f32.vlgmr.msra.gmra.mxu0 %vm6920_vm4, %v6880_v29  ;;  %17314 = vmatprep.subr.mxu0 %v22808_v58 }
 0x658   : > { %17316 = vmatprep.mubr.msk.f32.mxu0 %vm18725_vm0, %v22808_v58 }
 0x662   : > { %v21119_v40 = vpop.f32.mrf.mxu0 }
 0x663   : > { %6730 = vadd.xlane.f32.xlu0 %v6729_v39  ;;  %v21121_v37 = vpop.f32.mrf.mxu1 }
 0x664   : > { %v17228_v15 = vpop.f32.mrf.mxu0 }
 0x665   : > { %v17233_v8 = vpop.f32.mrf.mxu1 }
 0x667   : > { %6727 = vadd.xlane.f32.xlu1 %v6726_v1  ;;  %v21125_v48 = vpop.f32.mrf.mxu0  ;;  %v22929_v1 = vld [vmem:[#allocation49_spill] sm:$0xff] }
 0x668   : > { %v21127_v54 = vpop.f32.mrf.mxu1  ;;  %v6453_v15 = vsub.f32 %v22929_v1, %v20829_v6 }
 0x669   : > { %v17238_v36 = vpop.f32.mrf.mxu0 }
 0x66a   : > { %v17243_v33 = vpop.f32.mrf.mxu1  ;;  %v18061_v36 = vpop.eup %18060 }
 0x66b   : > { %v21129_v60 = vpop.f32.mrf.mxu0  ;;  %v22930_v33 = vld [vmem:[#allocation56_spill] sm:$0xff]  ;;  %v6883_v28 = vmul.f32 %v18061_v36, %v20728_v46  ;;  %v18063_v14 = vpop.eup %18062 }
 0x66c   : > { %v21131_v49 = vpop.f32.mrf.mxu1 }
 0x66d   : > { %v17248_v29 = vpop.f32.mrf.mxu0 }
 0x66e   : > { %v17253_v39 = vpop.f32.mrf.mxu1  ;;  %v6452_v29 = vsub.f32 %v22930_v33, %v20827_v44  ;;  %v6882_v44 = vmul.f32 %v18063_v14, %v20725_v32 }
 0x66f   : > { %v6562_v39 = vmul.f32 1.442695, %v6453_v15 }
 0x670   : > { %v6560_v2 = vmul.f32 1.442695, %v6452_v29 }
 0x671   : > { %18064 = vpow2.f32 %v6562_v39 }
 0x672   : > { %18066 = vpow2.f32 %v6560_v2 }
 0x673   : > { %18068 = vrcp.f32 %v20997_v50  ;;  %v22936_v50 = vld [vmem:[#allocation51_spill] sm:$0xff] }
 0x674   : > { %18070 = vrcp.f32 %v21003_v18 }
 0x678   : > { %9216 = vrot.lane.b32.xlu1 %v22888_v16, %s18728_s19 }
 0x679   : > { %9293 = vrot.lane.b32.xlu0 %v22889_v27, %s18728_s19 }
 0x67e   : > { %v21169_v33 = vpop.eup %18064 }
 0x682   : > { %v21141_v8 = vpop.xlane.xlu0 %6718 }
 0x686   : > { %v21145_v56 = vpop.xlane.xlu1 %6715  ;;  %v8986_v30 = vpop.permute.xlu0 %8985 }
 0x687   : > { %17320 = vmatpush3.msk.msra.mxu1 %vm6924_vm3, %v8986_v30 }
 0x688   : > { %17322 = vmatmul.mubr.msk.f32.vlgmr.msra.gmra.mxu1 %vm6920_vm4, %v6883_v28  ;;  %17329 = vmatprep.subr.mxu1 %v22808_v58 }
 0x689   : > { %17331 = vmatprep.mubr.msk.f32.mxu1 %vm18725_vm0, %v22808_v58 }
 0x68a   : > { %v8909_v6 = vpop.permute.xlu1 %8908 }
 0x68b   : > { %17315 = vmatpush3.msk.msra.mxu0 %vm6924_vm3, %v8909_v6  ;;  %v21155_v20 = vpop.f32.mrf.mxu0  ;;  %v6735_v6 = vsel %vm6215_vm2, %v21169_v33, 0.0 }
 0x68c   : > { %v21157_v46 = vpop.f32.mrf.mxu1  ;;  %17317 = vmatmul.mubr.msk.f32.vlgmr.msra.gmra.mxu0 %vm6920_vm4, %v6882_v44  ;;  %17324 = vmatprep.subr.mxu0 %v22808_v58  ;;  %v21175_v44 = vpop.eup %18066 }
 0x68d   : > { %v17258_v28 = vpop.f32.mrf.mxu0  ;;  %17326 = vmatprep.mubr.msk.f32.mxu0 %vm18725_vm0, %v22808_v58  ;;  %v18069_v38 = vpop.eup %18068 }
 0x68e   : > { %v17263_v1 = vpop.f32.mrf.mxu1  ;;  %v6732_v28 = vsel %vm6215_vm2, %v21175_v44, 0.0 }
 0x68f   : > { %v21163_v15 = vpop.f32.mrf.mxu0 }
 0x690   : > { %v21165_v36 = vpop.f32.mrf.mxu1 }
 0x691   : > { %22931 = vst [vmem:[#allocation46_spill] sm:$0xff] %v21165_v36  ;;  %v17268_v32 = vpop.f32.mrf.mxu0 }
 0x692   : > { %v17273_v14 = vpop.f32.mrf.mxu1 }
 0x693   : > { %v21167_v2 = vpop.f32.mrf.mxu0 }
 0x694   : > { %v21171_v29 = vpop.f32.mrf.mxu1 }
 0x695   : > { %22932 = vst [vmem:[#allocation47_spill] sm:$0xff] %v21171_v29  ;;  %v17278_v39 = vpop.f32.mrf.mxu0  ;;  %v6885_v29 = vmul.f32 %v18069_v38, %v20737_v31 }
 0x696   : > { %v17283_v30 = vpop.f32.mrf.mxu1 }
 0x697   : > { %v22935_v30 = vld [vmem:[#allocation73_spill] sm:$0xff] }
 0x698   : > { %6736 = vadd.xlane.f32.xlu0 %v6735_v6  ;;  %v6455_v6 = vsub.f32 %v22935_v30, %v20840_v23 }
 0x69a   : > { %v6566_v61 = vmul.f32 1.442695, %v6455_v6 }
 0x69c   : > { %6733 = vadd.xlane.f32.xlu1 %v6732_v28  ;;  %18072 = vpow2.f32 %v6566_v61 }
 0x6a9   : > { %v21179_v1 = vpop.f32.mrf.mxu1 }
 0x6aa   : > { %22933 = vst [vmem:[#allocation84_spill] sm:$0xff] %v21179_v1 }
 0x6ab   : > { %v17293_v32 = vpop.f32.mrf.mxu1 }
 0x6ac   : > { %v6454_v32 = vsub.f32 %v22936_v50, %v20838_v35 }
 0x6ad   : > { %9370 = vrot.lane.b32.xlu1 %v22913_v17, %s18729_s15  ;;  %v21184_v14 = vpop.f32.mrf.mxu0 }
 0x6ae   : > { %22934 = vst [vmem:[#allocation59_spill] sm:$0xff] %v21184_v14  ;;  %9447 = vrot.lane.b32.xlu0 %v22914_v0, %s18729_s15  ;;  %v18071_v14 = vpop.eup %18070  ;;  %v6564_v36 = vmul.f32 1.442695, %v6454_v32 }
 0x6af   : > { %v17288_v39 = vpop.f32.mrf.mxu0  ;;  %v6884_v35 = vmul.f32 %v18071_v14, %v20735_v53  ;;  %v21209_v31 = vpop.eup %18072  ;;  %v22937_v14 = vld [vmem:[#allocation58_spill] sm:$0xff] }
 0x6b0   : > { %18074 = vpow2.f32 %v6564_v36  ;;  %v6741_v18 = vsel %vm6215_vm2, %v21209_v31, 0.0  ;;  %v6457_v39 = vsub.f32 %v22937_v14, %v20849_v55 }
 0x6b1   : > { %18076 = vrcp.f32 %v21005_v52  ;;  %v22938_v52 = vld [vmem:[#allocation74_spill] sm:$0xff] }
 0x6b2   : > { %18078 = vrcp.f32 %v21009_v19  ;;  %v6456_v50 = vsub.f32 %v22938_v52, %v20847_v51  ;;  %v6570_v32 = vmul.f32 1.442695, %v6457_v39 }
 0x6b4   : > { %18080 = vpow2.f32 %v6570_v32 }
 0x6b7   : > { %v21191_v28 = vpop.xlane.xlu0 %6724 }
 0x6bb   : > { %v21195_v13 = vpop.xlane.xlu1 %6721  ;;  %v9140_v1 = vpop.permute.xlu0 %9139 }
 0x6bc   : > { %17330 = vmatpush3.msk.msra.mxu1 %vm6924_vm3, %v9140_v1 }
 0x6bd   : > { %17332 = vmatmul.mubr.msk.f32.vlgmr.msra.gmra.mxu1 %vm6920_vm4, %v6885_v29  ;;  %17339 = vmatprep.subr.mxu1 %v22808_v58  ;;  %v21213_v61 = vpop.eup %18074 }
 0x6be   : > { %17341 = vmatprep.mubr.msk.f32.mxu1 %vm18725_vm0, %v22808_v58  ;;  %v6738_v53 = vsel %vm6215_vm2, %v21213_v61, 0.0  ;;  %v18077_v6 = vpop.eup %18076 }
 0x6bf   : > { %v9063_v23 = vpop.permute.xlu1 %9062 }
 0x6c0   : > { %17325 = vmatpush3.msk.msra.mxu0 %vm6924_vm3, %v9063_v23 }
 0x6c1   : > { %17327 = vmatmul.mubr.msk.f32.vlgmr.msra.gmra.mxu0 %vm6920_vm4, %v6884_v35  ;;  %17334 = vmatprep.subr.mxu0 %v22808_v58 }
 0x6c2   : > { %17336 = vmatprep.mubr.msk.f32.mxu0 %vm18725_vm0, %v22808_v58 }
 0x6cd   : > { %6742 = vadd.xlane.f32.xlu0 %v6741_v18  ;;  %v6887_v18 = vmul.f32 %v18077_v6, %v20746_v24 }
 0x6d1   : > { %6739 = vadd.xlane.f32.xlu1 %v6738_v53  ;;  %v18079_v53 = vpop.eup %18078 }
 0x6d2   : > { %v6886_v51 = vmul.f32 %v18079_v53, %v20759_v43  ;;  %v21247_v24 = vpop.eup %18080 }
 0x6d3   : > { %22939 = vst [vmem:[#allocation80_spill] sm:$0xff] %v21247_v24  ;;  %v6747_v19 = vsel %vm6215_vm2, %v21247_v24, 0.0 }
 0x6df   : > { %v21217_v38 = vpop.f32.mrf.mxu1 }
 0x6e1   : > { %v17303_v36 = vpop.f32.mrf.mxu1 }
 0x6e2   : > { %9524 = vrot.lane.b32.xlu1 %v22882_v21, %s18729_s15  ;;  %v21222_v29 = vpop.f32.mrf.mxu0  ;;  %v6568_v36 = vmul.f32 1.442695, %v6456_v50  ;;  %v22941_v50 = vld [vmem:[#allocation86_spill] sm:$0xff] }
 0x6e3   : > { %9601 = vrot.lane.b32.xlu0 %v22883_v25, %s18729_s15  ;;  %v6459_v32 = vsub.f32 %v22941_v50, %v20855_v3 }
 0x6e4   : > { %v17298_v1 = vpop.f32.mrf.mxu0  ;;  %18082 = vpow2.f32 %v6568_v36 }
 0x6e5   : > { %18084 = vrcp.f32 %v21011_v11  ;;  %v22942_v11 = vld [vmem:[#allocation62_spill] sm:$0xff]  ;;  %v6574_v36 = vmul.f32 1.442695, %v6459_v32 }
 0x6e6   : > { %18086 = vrcp.f32 %v21015_v42  ;;  %v6458_v53 = vsub.f32 %v22942_v11, %v20853_v9  ;;  %v22944_v9 = vld [vmem:[#allocation75_spill] sm:$0xff] }
 0x6e7   : > { %18088 = vpow2.f32 %v6574_v36 }
 0x6ec   : > { %v21229_v30 = vpop.xlane.xlu0 %6730 }
 0x6f0   : > { %v21233_v23 = vpop.xlane.xlu1 %6727  ;;  %v9294_v35 = vpop.permute.xlu0 %9293 }
 0x6f1   : > { %17340 = vmatpush3.msk.msra.mxu1 %vm6924_vm3, %v9294_v35  ;;  %v21251_v1 = vpop.eup %18082 }
 0x6f2   : > { %17342 = vmatmul.mubr.msk.f32.vlgmr.msra.gmra.mxu1 %vm6920_vm4, %v6887_v18  ;;  %17349 = vmatprep.subr.mxu1 %v22808_v58  ;;  %22940 = vst [vmem:[#allocation85_spill] sm:$0xff] %v21251_v1  ;;  %v6744_v43 = vsel %vm6215_vm2, %v21251_v1, 0.0  ;;  %v18085_v18 = vpop.eup %18084  ;;  %v6572_v1 = vmul.f32 1.442695, %v6458_v53 }
 0x6f3   : > { %17351 = vmatprep.mubr.msk.f32.mxu1 %vm18725_vm0, %v22808_v58 }
 0x6f4   : > { %v9217_v55 = vpop.permute.xlu1 %9216  ;;  %18090 = vpow2.f32 %v6572_v1 }
 0x6f5   : > { %17335 = vmatpush3.msk.msra.mxu0 %vm6924_vm3, %v9217_v55  ;;  %18092 = vrcp.f32 %v21051_v4  ;;  %v22951_v4 = vld [vmem:[#allocation87_spill] sm:$0xff] }
 0x6f6   : > { %17337 = vmatmul.mubr.msk.f32.vlgmr.msra.gmra.mxu0 %vm6920_vm4, %v6886_v51  ;;  %17344 = vmatprep.subr.mxu0 %v22808_v58  ;;  %18094 = vrcp.f32 %v21057_v7 }
 0x6f7   : > { %17346 = vmatprep.mubr.msk.f32.mxu0 %vm18725_vm0, %v22808_v58 }
 0x702   : > { %6748 = vadd.xlane.f32.xlu0 %v6747_v19  ;;  %v22943_v19 = vld [vmem:[#allocation70_spill] sm:$0xff] }
 0x706   : > { %6745 = vadd.xlane.f32.xlu1 %v6744_v43  ;;  %v6889_v43 = vmul.f32 %v18085_v18, %v22943_v19  ;;  %v22949_v19 = vld [vmem:[#allocation82_spill] sm:$0xff] }
 0x713   : > { %v21255_v14 = vpop.f32.mrf.mxu1 }
 0x715   : > { %v17313_v39 = vpop.f32.mrf.mxu1 }
 0x716   : > { %v18087_v39 = vpop.eup %18086 }
 0x717   : > { %9678 = vrot.lane.b32.xlu1 %v22885_v57, %s18729_s15  ;;  %v21260_v6 = vpop.f32.mrf.mxu0  ;;  %v6888_v42 = vmul.f32 %v18087_v39, %v22944_v9  ;;  %v22950_v9 = vld [vmem:[#allocation45_spill] sm:$0xff] }
 0x718   : > { %9755 = vrot.lane.b32.xlu0 %v22887_v47, %s18729_s15 }
 0x719   : > { %v17308_v52 = vpop.f32.mrf.mxu0 }
 0x71a   : > { %v21285_v52 = vpop.eup %18088 }
 0x71b   : > { %22945 = vst [vmem:[#allocation54_spill] sm:$0xff] %v21285_v52  ;;  %v6753_v50 = vsel %vm6215_vm2, %v21285_v52, 0.0  ;;  %v21289_v32 = vpop.eup %18090 }
 0x71c   : > { %22946 = vst [vmem:[#allocation81_spill] sm:$0xff] %v21289_v32  ;;  %v6750_v1 = vsel %vm6215_vm2, %v21289_v32, 0.0  ;;  %v22952_v32 = vld [vmem:[#allocation93_spill] sm:$0xff] }
 0x721   : > { %v21267_v35 = vpop.xlane.xlu0 %6736 }
 0x725   : > { %v21271_v55 = vpop.xlane.xlu1 %6733  ;;  %v9448_v51 = vpop.permute.xlu0 %9447 }
 0x726   : > { %17350 = vmatpush3.msk.msra.mxu1 %vm6924_vm3, %v9448_v51  ;;  %v22948_v51 = vld [vmem:[#allocation77_spill] sm:$0xff] }
 0x727   : > { %17352 = vmatmul.mubr.msk.f32.vlgmr.msra.gmra.mxu1 %vm6920_vm4, %v6889_v43  ;;  %17359 = vmatprep.subr.mxu1 %v22808_v58  ;;  %v6461_v43 = vsub.f32 %v22949_v19, %v22948_v51 }
 0x728   : > { %17361 = vmatprep.mubr.msk.f32.mxu1 %vm18725_vm0, %v22808_v58 }
 0x729   : > { %v9371_v3 = vpop.permute.xlu1 %9370 }
 0x72a   : > { %17345 = vmatpush3.msk.msra.mxu0 %vm6924_vm3, %v9371_v3  ;;  %v18093_v3 = vpop.eup %18092 }
 0x72b   : > { %17347 = vmatmul.mubr.msk.f32.vlgmr.msra.gmra.mxu0 %vm6920_vm4, %v6888_v42  ;;  %17354 = vmatprep.subr.mxu0 %v22808_v58  ;;  %v6460_v42 = vsub.f32 %v22951_v4, %v22950_v9  ;;  %v6891_v52 = vmul.f32 %v18093_v3, %v22952_v32  ;;  %v22955_v3 = vld [vmem:[#allocation78_spill] sm:$0xff]  ;;  %v22956_v9 = vld [vmem:[#allocation60_spill] sm:$0xff] }
 0x72c   : > { %17356 = vmatprep.mubr.msk.f32.mxu0 %vm18725_vm0, %v22808_v58  ;;  %v6463_v4 = vsub.f32 %v22956_v9, %v22955_v3 }
 0x72d   : > { %v6576_v24 = vmul.f32 1.442695, %v6460_v42 }
 0x737   : > { %6754 = vadd.xlane.f32.xlu0 %v6753_v50  ;;  %v6578_v50 = vmul.f32 1.442695, %v6461_v43 }
 0x739   : > { %18096 = vpow2.f32 %v6578_v50 }
 0x73a   : > { %18098 = vpow2.f32 %v6576_v24 }
 0x73b   : > { %6751 = vadd.xlane.f32.xlu1 %v6750_v1  ;;  %18100 = vrcp.f32 %v21095_v5  ;;  %v22958_v5 = vld [vmem:[#allocation83_spill] sm:$0xff] }
 0x73c   : > { %18102 = vrcp.f32 %v21099_v41 }
 0x748   : > { %v21293_v18 = vpop.f32.mrf.mxu1 }
 0x749   : > { %22947 = vst [vmem:[#allocation49_spill] sm:$0xff] %v21293_v18  ;;  %v18095_v18 = vpop.eup %18094 }
 0x74a   : > { %v17323_v11 = vpop.f32.mrf.mxu1  ;;  %v21323_v32 = vpop.eup %18096 }
 0x74b   : > { %22953 = vst [vmem:[#allocation56_spill] sm:$0xff] %v21323_v32  ;;  %v21327_v51 = vpop.eup %18098 }
 0x74c   : > { %9832 = vrot.lane.b32.xlu1 %v22888_v16, %s18729_s15  ;;  %v21298_v53 = vpop.f32.mrf.mxu0  ;;  %22954 = vst [vmem:[#allocation73_spill] sm:$0xff] %v21327_v51  ;;  %v18101_v50 = vpop.eup %18100 }
 0x74d   : > { %9909 = vrot.lane.b32.xlu0 %v22889_v27, %s18729_s15 }
 0x74e   : > { %v17318_v36 = vpop.f32.mrf.mxu0 }
 0x74f   : > { %v6890_v36 = vmul.f32 %v18095_v18, %v20887_v63  ;;  %v6756_v63 = vsel %vm6215_vm2, %v21327_v51, 0.0 }
 0x756   : > { %v21305_v39 = vpop.xlane.xlu0 %6742 }
 0x75a   : > { %v21309_v1 = vpop.xlane.xlu1 %6739  ;;  %v9602_v11 = vpop.permute.xlu0 %9601 }
 0x75b   : > { %17360 = vmatpush3.msk.msra.mxu1 %vm6924_vm3, %v9602_v11  ;;  %v22957_v11 = vld [vmem:[#allocation76_spill] sm:$0xff] }
 0x75c   : > { %17362 = vmatmul.mubr.msk.f32.vlgmr.msra.gmra.mxu1 %vm6920_vm4, %v6891_v52  ;;  %17369 = vmatprep.subr.mxu1 %v22808_v58  ;;  %v6759_v52 = vsel %vm6215_vm2, %v21323_v32, 0.0  ;;  %v18103_v32 = vpop.eup %18102 }
 0x75d   : > { %17371 = vmatprep.mubr.msk.f32.mxu1 %vm18725_vm0, %v22808_v58 }
 0x75e   : > { %v9525_v7 = vpop.permute.xlu1 %9524 }
 0x75f   : > { %17355 = vmatpush3.msk.msra.mxu0 %vm6924_vm3, %v9525_v7  ;;  %v6462_v7 = vsub.f32 %v22958_v5, %v22957_v11  ;;  %v22961_v11 = vld [vmem:[#allocation61_spill] sm:$0xff]  ;;  %v22962_v5 = vld [vmem:[#allocation64_spill] sm:$0xff] }
 0x760   : > { %17357 = vmatmul.mubr.msk.f32.vlgmr.msra.gmra.mxu0 %vm6920_vm4, %v6890_v36  ;;  %17364 = vmatprep.subr.mxu0 %v22808_v58  ;;  %v6582_v36 = vmul.f32 1.442695, %v6463_v4 }
 0x761   : > { %17366 = vmatprep.mubr.msk.f32.mxu0 %vm18725_vm0, %v22808_v58  ;;  %v6580_v51 = vmul.f32 1.442695, %v6462_v7  ;;  %v6465_v7 = vsub.f32 %v22962_v5, %v22961_v11 }
 0x762   : > { %18104 = vpow2.f32 %v6582_v36 }
 0x763   : > { %18106 = vpow2.f32 %v6580_v51 }
 0x764   : > { %18108 = vrcp.f32 %v21141_v8  ;;  %v22964_v8 = vld [vmem:[#allocation63_spill] sm:$0xff] }
 0x765   : > { %18110 = vrcp.f32 %v21145_v56 }
 0x76c   : > { %6760 = vadd.xlane.f32.xlu0 %v6759_v52 }
 0x770   : > { %6757 = vadd.xlane.f32.xlu1 %v6756_v63 }
 0x77d   : > { %v21331_v24 = vpop.f32.mrf.mxu1 }
 0x77f   : > { %v17333_v18 = vpop.f32.mrf.mxu1 }
 0x780   : > { %v6893_v18 = vmul.f32 %v18101_v50, %v20941_v62  ;;  %v21361_v62 = vpop.eup %18104 }
 0x781   : > { %9986 = vrot.lane.b32.xlu1 %v22913_v17, %s18730_s1  ;;  %v21336_v19 = vpop.f32.mrf.mxu0  ;;  %22959 = vst [vmem:[#allocation51_spill] sm:$0xff] %v21361_v62  ;;  %v6765_v3 = vsel %vm6215_vm2, %v21361_v62, 0.0  ;;  %v21365_v9 = vpop.eup %18106 }
 0x782   : > { %10063 = vrot.lane.b32.xlu0 %v22914_v0, %s18730_s1  ;;  %22960 = vst [vmem:[#allocation58_spill] sm:$0xff] %v21365_v9 }
 0x783   : > { %v17328_v43 = vpop.f32.mrf.mxu0 }
 0x784   : > { %v6892_v43 = vmul.f32 %v18103_v32, %v20945_v34  ;;  %v6762_v34 = vsel %vm6215_vm2, %v21365_v9, 0.0 }
 0x78b   : > { %v21343_v42 = vpop.xlane.xlu0 %6748 }
 0x78f   : > { %v21347_v52 = vpop.xlane.xlu1 %6745  ;;  %v9756_v63 = vpop.permute.xlu0 %9755 }
 0x790   : > { %17370 = vmatpush3.msk.msra.mxu1 %vm6924_vm3, %v9756_v63  ;;  %v18109_v63 = vpop.eup %18108 }
 0x791   : > { %17372 = vmatmul.mubr.msk.f32.vlgmr.msra.gmra.mxu1 %vm6920_vm4, %v6893_v18  ;;  %17379 = vmatprep.subr.mxu1 %v22808_v58  ;;  %v22963_v18 = vld [vmem:[#allocation52_spill] sm:$0xff]  ;;  %v18111_v62 = vpop.eup %18110 }
 0x792   : > { %17381 = vmatprep.mubr.msk.f32.mxu1 %vm18725_vm0, %v22808_v58 }
 0x793   : > { %v9679_v41 = vpop.permute.xlu1 %9678 }
 0x794   : > { %17365 = vmatpush3.msk.msra.mxu0 %vm6924_vm3, %v9679_v41  ;;  %v6464_v41 = vsub.f32 %v22964_v8, %v22963_v18  ;;  %v22967_v18 = vld [vmem:[#allocation90_spill] sm:$0xff] }
 0x795   : > { %17367 = vmatmul.mubr.msk.f32.vlgmr.msra.gmra.mxu0 %vm6920_vm4, %v6892_v43  ;;  %17374 = vmatprep.subr.mxu0 %v22808_v58  ;;  %v6586_v43 = vmul.f32 1.442695, %v6465_v7  ;;  %v22968_v8 = vld [vmem:[#allocation66_spill] sm:$0xff] }
 0x796   : > { %17376 = vmatprep.mubr.msk.f32.mxu0 %vm18725_vm0, %v22808_v58  ;;  %v6584_v9 = vmul.f32 1.442695, %v6464_v41  ;;  %v6467_v41 = vsub.f32 %v22968_v8, %v22967_v18 }
 0x797   : > { %18112 = vpow2.f32 %v6586_v43 }
 0x798   : > { %18114 = vpow2.f32 %v6584_v9 }
 0x799   : > { %18116 = vrcp.f32 %v21191_v28  ;;  %v22970_v28 = vld [vmem:[#allocation65_spill] sm:$0xff] }
 0x79a   : > { %18118 = vrcp.f32 %v21195_v13 }
 0x7a1   : > { %6766 = vadd.xlane.f32.xlu0 %v6765_v3 }
 0x7a5   : > { %6763 = vadd.xlane.f32.xlu1 %v6762_v34 }
 0x7b2   : > { %v21369_v32 = vpop.f32.mrf.mxu1 }
 0x7b4   : > { %v17343_v51 = vpop.f32.mrf.mxu1 }
 0x7b5   : > { %v6895_v51 = vmul.f32 %v18109_v63, %v21029_v45  ;;  %v21399_v45 = vpop.eup %18112 }
 0x7b6   : > { %10140 = vrot.lane.b32.xlu1 %v22882_v21, %s18730_s1  ;;  %v21374_v4 = vpop.f32.mrf.mxu0  ;;  %22965 = vst [vmem:[#allocation74_spill] sm:$0xff] %v21399_v45  ;;  %v6771_v11 = vsel %vm6215_vm2, %v21399_v45, 0.0  ;;  %v21403_v5 = vpop.eup %18114 }
 0x7b7   : > { %10217 = vrot.lane.b32.xlu0 %v22883_v25, %s18730_s1  ;;  %22966 = vst [vmem:[#allocation86_spill] sm:$0xff] %v21403_v5 }
 0x7b8   : > { %v17338_v50 = vpop.f32.mrf.mxu0 }
 0x7b9   : > { %v6894_v50 = vmul.f32 %v18111_v62, %v21033_v22  ;;  %v6768_v22 = vsel %vm6215_vm2, %v21403_v5, 0.0 }
 0x7c0   : > { %v21381_v36 = vpop.xlane.xlu0 %6754 }
 0x7c4   : > { %v21385_v3 = vpop.xlane.xlu1 %6751  ;;  %v9910_v34 = vpop.permute.xlu0 %9909 }
 0x7c5   : > { %17380 = vmatpush3.msk.msra.mxu1 %vm6924_vm3, %v9910_v34  ;;  %v18117_v34 = vpop.eup %18116 }
 0x7c6   : > { %17382 = vmatmul.mubr.msk.f32.vlgmr.msra.gmra.mxu1 %vm6920_vm4, %v6895_v51  ;;  %17389 = vmatprep.subr.mxu1 %v22808_v58  ;;  %v22969_v51 = vld [vmem:[#allocation89_spill] sm:$0xff]  ;;  %v18119_v45 = vpop.eup %18118 }
 0x7c7   : > { %17391 = vmatprep.mubr.msk.f32.mxu1 %vm18725_vm0, %v22808_v58 }
 0x7c8   : > { %v9833_v56 = vpop.permute.xlu1 %9832 }
 0x7c9   : > { %17375 = vmatpush3.msk.msra.mxu0 %vm6924_vm3, %v9833_v56  ;;  %v6466_v56 = vsub.f32 %v22970_v28, %v22969_v51  ;;  %v22973_v51 = vld [vmem:[#allocation92_spill] sm:$0xff] }
 0x7ca   : > { %17377 = vmatmul.mubr.msk.f32.vlgmr.msra.gmra.mxu0 %vm6920_vm4, %v6894_v50  ;;  %17384 = vmatprep.subr.mxu0 %v22808_v58  ;;  %v6590_v50 = vmul.f32 1.442695, %v6467_v41  ;;  %v22974_v28 = vld [vmem:[#allocation68_spill] sm:$0xff] }
 0x7cb   : > { %17386 = vmatprep.mubr.msk.f32.mxu0 %vm18725_vm0, %v22808_v58  ;;  %v6588_v5 = vmul.f32 1.442695, %v6466_v56  ;;  %v6469_v56 = vsub.f32 %v22974_v28, %v22973_v51 }
 0x7cc   : > { %18120 = vpow2.f32 %v6590_v50 }
 0x7cd   : > { %18122 = vpow2.f32 %v6588_v5 }
 0x7ce   : > { %18124 = vrcp.f32 %v21229_v30  ;;  %v22976_v30 = vld [vmem:[#allocation67_spill] sm:$0xff] }
 0x7cf   : > { %18126 = vrcp.f32 %v21233_v23 }
 0x7d6   : > { %6772 = vadd.xlane.f32.xlu0 %v6771_v11 }
 0x7da   : > { %6769 = vadd.xlane.f32.xlu1 %v6768_v22 }
 0x7e7   : > { %v21407_v62 = vpop.f32.mrf.mxu1 }
 0x7e9   : > { %v17353_v9 = vpop.f32.mrf.mxu1 }
 0x7ea   : > { %v6897_v9 = vmul.f32 %v18117_v34, %v21077_v26  ;;  %v21437_v26 = vpop.eup %18120 }
 0x7eb   : > { %10294 = vrot.lane.b32.xlu1 %v22885_v57, %s18730_s1  ;;  %v21412_v7 = vpop.f32.mrf.mxu0  ;;  %22971 = vst [vmem:[#allocation62_spill] sm:$0xff] %v21437_v26  ;;  %v6777_v18 = vsel %vm6215_vm2, %v21437_v26, 0.0  ;;  %v21441_v8 = vpop.eup %18122 }
 0x7ec   : > { %10371 = vrot.lane.b32.xlu0 %v22887_v47, %s18730_s1  ;;  %22972 = vst [vmem:[#allocation70_spill] sm:$0xff] %v21441_v8 }
 0x7ed   : > { %v17348_v63 = vpop.f32.mrf.mxu0 }
 0x7ee   : > { %v6896_v63 = vmul.f32 %v18119_v45, %v21083_v10  ;;  %v6774_v10 = vsel %vm6215_vm2, %v21441_v8, 0.0 }
 0x7f5   : > { %v21419_v43 = vpop.xlane.xlu0 %6760 }
 0x7f9   : > { %v21423_v11 = vpop.xlane.xlu1 %6757  ;;  %v10064_v22 = vpop.permute.xlu0 %10063 }
 0x7fa   : > { %17390 = vmatpush3.msk.msra.mxu1 %vm6924_vm3, %v10064_v22  ;;  %v18125_v22 = vpop.eup %18124 }
 0x7fb   : > { %17392 = vmatmul.mubr.msk.f32.vlgmr.msra.gmra.mxu1 %vm6920_vm4, %v6897_v9  ;;  %17399 = vmatprep.subr.mxu1 %v22808_v58  ;;  %v22975_v9 = vld [vmem:[#allocation91_spill] sm:$0xff]  ;;  %v18127_v26 = vpop.eup %18126 }
 0x7fc   : > { %17401 = vmatprep.mubr.msk.f32.mxu1 %vm18725_vm0, %v22808_v58  ;;  %v6898_v23 = vmul.f32 %v18127_v26, %v21117_v59 }
 0x7fd   : > { %v9987_v13 = vpop.permute.xlu1 %9986 }
 0x7fe   : > { %17385 = vmatpush3.msk.msra.mxu0 %vm6924_vm3, %v9987_v13  ;;  %v6468_v13 = vsub.f32 %v22976_v30, %v22975_v9  ;;  %v22979_v9 = vld [vmem:[#allocation95_spill] sm:$0xff]  ;;  %v22980_v30 = vld [vmem:[#allocation88_spill] sm:$0xff] }
 0x7ff   : > { %17387 = vmatmul.mubr.msk.f32.vlgmr.msra.gmra.mxu0 %vm6920_vm4, %v6896_v63  ;;  %17394 = vmatprep.subr.mxu0 %v22808_v58  ;;  %v6594_v63 = vmul.f32 1.442695, %v6469_v56 }
 0x800   : > { %17396 = vmatprep.mubr.msk.f32.mxu0 %vm18725_vm0, %v22808_v58  ;;  %v6592_v8 = vmul.f32 1.442695, %v6468_v13  ;;  %v6471_v13 = vsub.f32 %v22980_v30, %v22979_v9 }
 0x801   : > { %18128 = vpow2.f32 %v6594_v63 }
 0x802   : > { %18130 = vpow2.f32 %v6592_v8 }
 0x803   : > { %18132 = vrcp.f32 %v21267_v35  ;;  %v22982_v35 = vld [vmem:[#allocation69_spill] sm:$0xff] }
 0x804   : > { %18134 = vrcp.f32 %v21271_v55 }
 0x80b   : > { %6778 = vadd.xlane.f32.xlu0 %v6777_v18  ;;  %v6899_v18 = vmul.f32 %v18125_v22, %v21113_v12 }
 0x80e   : > { %v21475_v12 = vpop.eup %18128 }
 0x80f   : > { %6775 = vadd.xlane.f32.xlu1 %v6774_v10  ;;  %22977 = vst [vmem:[#allocation75_spill] sm:$0xff] %v21475_v12  ;;  %v6783_v51 = vsel %vm6215_vm2, %v21475_v12, 0.0  ;;  %v21479_v28 = vpop.eup %18130 }
 0x810   : > { %22978 = vst [vmem:[#allocation77_spill] sm:$0xff] %v21479_v28  ;;  %v6780_v59 = vsel %vm6215_vm2, %v21479_v28, 0.0 }
 0x81c   : > { %v21445_v45 = vpop.f32.mrf.mxu1 }
 0x81e   : > { %v17363_v5 = vpop.f32.mrf.mxu1 }
 0x820   : > { %10448 = vrot.lane.b32.xlu1 %v22888_v16, %s18730_s1  ;;  %v21450_v41 = vpop.f32.mrf.mxu0 }
 0x821   : > { %10525 = vrot.lane.b32.xlu0 %v22889_v27, %s18730_s1 }
 0x822   : > { %v17358_v34 = vpop.f32.mrf.mxu0 }
 0x82a   : > { %v21457_v50 = vpop.xlane.xlu0 %6766 }
 0x82e   : > { %v21462_v10 = vpop.xlane.xlu1 %6763  ;;  %v10218_v5 = vpop.permute.xlu0 %10217 }
 0x82f   : > { %17400 = vmatpush3.msk.msra.mxu1 %vm6924_vm3, %v10218_v5  ;;  %v22981_v5 = vld [vmem:[#allocation94_spill] sm:$0xff] }
 0x830   : > { %17402 = vmatmul.mubr.msk.f32.vlgmr.msra.gmra.mxu1 %vm6920_vm4, %v6899_v18  ;;  %17409 = vmatprep.subr.mxu1 %v22808_v58  ;;  %v18133_v18 = vpop.eup %18132 }
 0x831   : > { %17411 = vmatprep.mubr.msk.f32.mxu1 %vm18725_vm0, %v22808_v58  ;;  %v18135_v12 = vpop.eup %18134 }
 0x832   : > { %v10141_v34 = vpop.permute.xlu1 %10140  ;;  %v6900_v55 = vmul.f32 %v18135_v12, %v21175_v44 }
 0x833   : > { %17395 = vmatpush3.msk.msra.mxu0 %vm6924_vm3, %v10141_v34  ;;  %v6598_v34 = vmul.f32 1.442695, %v6471_v13 }
 0x834   : > { %17397 = vmatmul.mubr.msk.f32.vlgmr.msra.gmra.mxu0 %vm6920_vm4, %v6898_v23  ;;  %17404 = vmatprep.subr.mxu0 %v22808_v58  ;;  %v6470_v23 = vsub.f32 %v22982_v35, %v22981_v5 }
 0x835   : > { %17406 = vmatprep.mubr.msk.f32.mxu0 %vm18725_vm0, %v22808_v58  ;;  %18136 = vpow2.f32 %v6598_v34 }
 0x836   : > { %v6596_v28 = vmul.f32 1.442695, %v6470_v23 }
 0x838   : > { %18138 = vpow2.f32 %v6596_v28 }
 0x839   : > { %18140 = vrcp.f32 %v21305_v39 }
 0x83a   : > { %18142 = vrcp.f32 %v21309_v1 }
 0x83b   : > { %18144 = vrcp.f32 %v21343_v42  ;;  %v22990_v42 = vld [vmem:[#allocation54_spill] sm:$0xff] }
 0x83c   : > { %18146 = vrcp.f32 %v21347_v52 }
 0x83d   : > { %18148 = vrcp.f32 %v21381_v36 }
 0x83e   : > { %18150 = vrcp.f32 %v21385_v3  ;;  %v22991_v3 = vld [vmem:[#allocation81_spill] sm:$0xff] }
 0x83f   : > { %18152 = vrcp.f32 %v21423_v11 }
 0x840   : > { %6784 = vadd.xlane.f32.xlu0 %v6783_v51  ;;  %v6901_v51 = vmul.f32 %v18133_v18, %v21169_v33  ;;  %18154 = vrcp.f32 %v21419_v43 }
 0x841   : > { %18156 = vrcp.f32 %v21462_v10 }
 0x842   : > { %v21513_v33 = vpop.eup %18136  ;;  %18158 = vrcp.f32 %v21457_v50 }
 0x843   : > { %v6789_v9 = vsel %vm6215_vm2, %v21513_v33, 0.0 }
 0x844   : > { %6781 = vadd.xlane.f32.xlu1 %v6780_v59 }
 0x845   : > { %v21517_v30 = vpop.eup %18138 }
 0x846   : > { %v6786_v44 = vsel %vm6215_vm2, %v21517_v30, 0.0  ;;  %v18141_v5 = vpop.eup %18140 }
 0x847   : > { %v6903_v1 = vmul.f32 %v18141_v5, %v21209_v31  ;;  %v18143_v34 = vpop.eup %18142  ;;  %v22989_v31 = vld [vmem:[#allocation85_spill] sm:$0xff] }
 0x851   : > { %v21483_v26 = vpop.f32.mrf.mxu1 }
 0x853   : > { %v17373_v8 = vpop.f32.mrf.mxu1 }
 0x855   : > { %10602 = vrot.lane.b32.xlu1 %v22913_v17, %s18731_s4  ;;  %v21488_v56 = vpop.f32.mrf.mxu0 }
 0x856   : > { %10679 = vrot.lane.b32.xlu0 %v22914_v0, %s18731_s4 }
 0x857   : > { %v17368_v22 = vpop.f32.mrf.mxu0 }
 0x85f   : > { %v21495_v63 = vpop.xlane.xlu0 %6772 }
 0x863   : > { %v21500_v59 = vpop.xlane.xlu1 %6769  ;;  %v10372_v8 = vpop.permute.xlu0 %10371 }
 0x864   : > { %17410 = vmatpush3.msk.msra.mxu1 %vm6924_vm3, %v10372_v8  ;;  %18160 = vrcp.f32 %v21500_v59  ;;  %v22994_v8 = vld [vmem:[#allocation58_spill] sm:$0xff] }
 0x865   : > { %17412 = vmatmul.mubr.msk.f32.vlgmr.msra.gmra.mxu1 %vm6920_vm4, %v6901_v51  ;;  %17419 = vmatprep.subr.mxu1 %v22808_v58  ;;  %18162 = vrcp.f32 %v21495_v63  ;;  %v22993_v51 = vld [vmem:[#allocation56_spill] sm:$0xff] }
 0x866   : > { %17421 = vmatprep.mubr.msk.f32.mxu1 %vm18725_vm0, %v22808_v58 }
 0x867   : > { %v10295_v22 = vpop.permute.xlu1 %10294 }
 0x868   : > { %17405 = vmatpush3.msk.msra.mxu0 %vm6924_vm3, %v10295_v22 }
 0x869   : > { %17407 = vmatmul.mubr.msk.f32.vlgmr.msra.gmra.mxu0 %vm6920_vm4, %v6900_v55  ;;  %17414 = vmatprep.subr.mxu0 %v22808_v58 }
 0x86a   : > { %17416 = vmatprep.mubr.msk.f32.mxu0 %vm18725_vm0, %v22808_v58 }
 0x875   : > { %6790 = vadd.xlane.f32.xlu0 %v6789_v9 }
 0x879   : > { %6787 = vadd.xlane.f32.xlu1 %v6786_v44 }
 0x886   : > { %v21521_v12 = vpop.f32.mrf.mxu1 }
 0x888   : > { %v17383_v28 = vpop.f32.mrf.mxu1 }
 0x889   : > { %v22995_v28 = vld [vmem:[#allocation51_spill] sm:$0xff] }
 0x88a   : > { %10756 = vrot.lane.b32.xlu1 %v22882_v21, %s18731_s4  ;;  %v21526_v13 = vpop.f32.mrf.mxu0 }
 0x88b   : > { %10833 = vrot.lane.b32.xlu0 %v22883_v25, %s18731_s4 }
 0x88c   : > { %v17378_v18 = vpop.f32.mrf.mxu0 }
 0x88d   : > { %v22996_v18 = vld [vmem:[#allocation86_spill] sm:$0xff] }
 0x88e   : > { %10910 = vrot.lane.b32.xlu1 %v22885_v57, %s18731_s4 }
 0x88f   : > { %11064 = vrot.lane.b32.xlu0 %v22888_v16, %s18731_s4 }
 0x892   : > { %10987 = vrot.lane.b32.xlu1 %v22887_v47, %s18731_s4 }
 0x893   : > { %11218 = vrot.lane.b32.xlu0 %v22913_v17, %s18732_s22 }
 0x894   : > { %v21539_v39 = vpop.xlane.xlu0 %6778 }
 0x896   : > { %11141 = vrot.lane.b32.xlu1 %v22889_v27, %s18731_s4 }
 0x897   : > { %11372 = vrot.lane.b32.xlu0 %v22882_v21, %s18732_s22  ;;  %v6902_v21 = vmul.f32 %v18143_v34, %v21213_v61  ;;  %v22997_v34 = vld [vmem:[#allocation74_spill] sm:$0xff] }
 0x898   : > { %v21546_v35 = vpop.xlane.xlu1 %6775  ;;  %v10526_v23 = vpop.permute.xlu0 %10525 }
 0x899   : > { %17420 = vmatpush3.msk.msra.mxu1 %vm6924_vm3, %v10526_v23  ;;  %18164 = vrcp.f32 %v21546_v35 }
 0x89a   : > { %11295 = vrot.lane.b32.xlu1 %v22914_v0, %s18732_s22  ;;  %17422 = vmatmul.mubr.msk.f32.vlgmr.msra.gmra.mxu1 %vm6920_vm4, %v6903_v1  ;;  %18166 = vrcp.f32 %v21539_v39 }
 0x89b   : > { %11526 = vrot.lane.b32.xlu0 %v22885_v57, %s18732_s22  ;;  %17429 = vmatprep.subr.mxu1 %v22808_v58  ;;  %v22984_v57 = vld [vmem:[#allocation59_spill] sm:$0xff] }
 0x89c   : > { %v10449_v17 = vpop.permute.xlu1 %10448  ;;  %17431 = vmatprep.mubr.msk.f32.mxu1 %vm18725_vm0, %v22808_v58 }
 0x89d   : > { %17415 = vmatpush3.msk.msra.mxu0 %vm6924_vm3, %v10449_v17  ;;  %v22998_v17 = vld [vmem:[#allocation70_spill] sm:$0xff] }
 0x89e   : > { %11449 = vrot.lane.b32.xlu1 %v22883_v25, %s18732_s22  ;;  %17417 = vmatmul.mubr.msk.f32.vlgmr.msra.gmra.mxu0 %vm6920_vm4, %v6902_v21  ;;  %v22983_v25 = vld [vmem:[#allocation46_spill] sm:$0xff] }
 0x89f   : > { %11680 = vrot.lane.b32.xlu0 %v22888_v16, %s18732_s22  ;;  %17424 = vmatprep.subr.mxu0 %v22808_v58 }
 0x8a0   : > { %17426 = vmatprep.mubr.msk.f32.mxu0 %vm18725_vm0, %v22808_v58 }
 0x8a2   : > { %11603 = vrot.lane.b32.xlu1 %v22887_v47, %s18732_s22 }
 0x8a3   : > { %11842 = vrot.lane.b32.xlu0 %v21119_v40, %s18732_s22 }
 0x8a6   : > { %11757 = vrot.lane.b32.xlu1 %v22889_v27, %s18732_s22  ;;  %v22985_v27 = vld [vmem:[#allocation47_spill] sm:$0xff] }
 0x8a7   : > { %11846 = vrot.lane.b32.xlu0 %v21125_v48, %s18732_s22 }
 0x8aa   : > { %11844 = vrot.lane.b32.xlu1 %v21121_v37, %s18732_s22  ;;  %v22986_v37 = vld [vmem:[#allocation84_spill] sm:$0xff] }
 0x8ab   : > { %11850 = vrot.lane.b32.xlu0 %v21129_v60, %s18732_s22  ;;  %v22987_v60 = vld [vmem:[#allocation80_spill] sm:$0xff] }
 0x8ae   : > { %11848 = vrot.lane.b32.xlu1 %v21127_v54, %s18732_s22  ;;  %v18145_v54 = vpop.eup %18144 }
 0x8af   : > { %11854 = vrot.lane.b32.xlu0 %v21155_v20, %s18732_s22 }
 0x8b2   : > { %11852 = vrot.lane.b32.xlu1 %v21131_v49, %s18732_s22  ;;  %v6905_v49 = vmul.f32 %v18145_v54, %v22987_v60 }
 0x8b3   : > { %11874 = vrot.lane.b32.xlu0 %v21163_v15, %s18731_s4  ;;  %v18147_v15 = vpop.eup %18146 }
 0x8b4   : > { %v6904_v61 = vmul.f32 %v18147_v15, %v22989_v31 }
 0x8b6   : > { %11856 = vrot.lane.b32.xlu1 %v21157_v46, %s18732_s22 }
 0x8b7   : > { %11878 = vrot.lane.b32.xlu0 %v21167_v2, %s18731_s4  ;;  %v22988_v2 = vld [vmem:[#allocation49_spill] sm:$0xff] }
 0x8ba   : > { %11876 = vrot.lane.b32.xlu1 %v22983_v25, %s18731_s4 }
 0x8bb   : > { %11882 = vrot.lane.b32.xlu0 %v22984_v57, %s18731_s4  ;;  %v10136_v47 = vpop.f32.mrf.mxu1 }
 0x8bd   : > { %v17393_v16 = vpop.f32.mrf.mxu1 }
 0x8be   : > { %11880 = vrot.lane.b32.xlu1 %v22985_v27, %s18731_s4 }
 0x8bf   : > { %v10059_v0 = vpop.f32.mrf.mxu0  ;;  %11886 = vrot.lane.b32.xlu0 %v21222_v29, %s18731_s4 }
 0x8c1   : > { %v17388_v40 = vpop.f32.mrf.mxu0 }
 0x8c2   : > { %11884 = vrot.lane.b32.xlu1 %v22986_v37, %s18731_s4  ;;  %v23000_v37 = vld [vmem:[#allocation77_spill] sm:$0xff] }
 0x8c3   : > { %11906 = vrot.lane.b32.xlu0 %v21260_v6, %s18730_s1 }
 0x8c6   : > { %11888 = vrot.lane.b32.xlu1 %v21217_v38, %s18731_s4 }
 0x8c7   : > { %11910 = vrot.lane.b32.xlu0 %v21298_v53, %s18730_s1 }
 0x8c9   : > { %v21609_v48 = vpop.xlane.xlu0 %6784 }
 0x8ca   : > { %11908 = vrot.lane.b32.xlu1 %v21255_v14, %s18730_s1 }
 0x8cb   : > { %11914 = vrot.lane.b32.xlu0 %v21336_v19, %s18730_s1  ;;  %v18149_v19 = vpop.eup %18148 }
 0x8cc   : > { %v6907_v52 = vmul.f32 %v18149_v19, %v22990_v42  ;;  %v18151_v36 = vpop.eup %18150 }
 0x8cd   : > { %v21616_v20 = vpop.xlane.xlu1 %6781  ;;  %v10680_v46 = vpop.permute.xlu0 %10679 }
 0x8ce   : > { %17430 = vmatpush3.msk.msra.mxu1 %vm6924_vm3, %v10680_v46  ;;  %11912 = vrot.lane.b32.xlu1 %v22988_v2, %s18730_s1  ;;  %v18153_v11 = vpop.eup %18152  ;;  %18168 = vrcp.f32 %v21616_v20  ;;  %v23001_v20 = vld [vmem:[#allocation75_spill] sm:$0xff] }
 0x8cf   : > { %11918 = vrot.lane.b32.xlu0 %v21374_v4, %s18730_s1  ;;  %17432 = vmatmul.mubr.msk.f32.vlgmr.msra.gmra.mxu1 %vm6920_vm4, %v6905_v49  ;;  %18170 = vrcp.f32 %v21609_v48 }
 0x8d0   : > { %17439 = vmatprep.subr.mxu1 %v22808_v58  ;;  %17441 = vmatprep.mubr.msk.f32.mxu1 %vm18725_vm0, %v22808_v58 }
 0x8d1   : > { %v10603_v38 = vpop.permute.xlu1 %10602 }
 0x8d2   : > { %17425 = vmatpush3.msk.msra.mxu0 %vm6924_vm3, %v10603_v38  ;;  %11916 = vrot.lane.b32.xlu1 %v21331_v24, %s18730_s1 }
 0x8d3   : > { %17427 = vmatmul.mubr.msk.f32.vlgmr.msra.gmra.mxu0 %vm6920_vm4, %v6904_v61  ;;  %11938 = vrot.lane.b32.xlu0 %v21412_v7, %s18729_s15 }
 0x8d4   : > { %17434 = vmatprep.subr.mxu0 %v22808_v58  ;;  %17436 = vmatprep.mubr.msk.f32.mxu0 %vm18725_vm0, %v22808_v58 }
 0x8d6   : > { %11920 = vrot.lane.b32.xlu1 %v21369_v32, %s18730_s1 }
 0x8d7   : > { %11942 = vrot.lane.b32.xlu0 %v21450_v41, %s18729_s15  ;;  %v22992_v41 = vld [vmem:[#allocation73_spill] sm:$0xff] }
 0x8d8   : > { %v6908_v50 = vmul.f32 %v18153_v11, %v22992_v41 }
 0x8da   : > { %11940 = vrot.lane.b32.xlu1 %v21407_v62, %s18729_s15  ;;  %v6906_v62 = vmul.f32 %v18151_v36, %v22991_v3  ;;  %v23004_v3 = vld [vmem:[#allocation57_spill] sm:$0xff] }
 0x8db   : > { %11946 = vrot.lane.b32.xlu0 %v21488_v56, %s18729_s15 }
 0x8de   : > { %11944 = vrot.lane.b32.xlu1 %v21445_v45, %s18729_s15  ;;  %v18155_v45 = vpop.eup %18154 }
 0x8df   : > { %11950 = vrot.lane.b32.xlu0 %v21526_v13, %s18729_s15  ;;  %v18157_v56 = vpop.eup %18156  ;;  %v6909_v59 = vmul.f32 %v18155_v45, %v22993_v51  ;;  %v23005_v45 = vld [vmem:[#allocation50_spill] sm:$0xff]  ;;  %v23007_v51 = vld [vmem:[#allocation55_spill] sm:$0xff] }
 0x8e0   : > { %v18159_v63 = vpop.eup %18158  ;;  %v6910_v55 = vmul.f32 %v18157_v56, %v22994_v8  ;;  %v23006_v56 = vld [vmem:[#allocation72_spill] sm:$0xff] }
 0x8e1   : > { %v18161_v44 = vpop.eup %18160  ;;  %v6911_v13 = vmul.f32 %v18159_v63, %v22995_v28 }
 0x8e2   : > { %11948 = vrot.lane.b32.xlu1 %v21483_v26, %s18729_s15  ;;  %v6912_v39 = vmul.f32 %v18161_v44, %v22996_v18  ;;  %v23008_v44 = vld [vmem:[#allocation53_spill] sm:$0xff] }
 0x8e3   : > { %11970 = vrot.lane.b32.xlu0 %v10059_v0, %s18728_s19  ;;  %v22999_v0 = vld [vmem:[#allocation62_spill] sm:$0xff] }
 0x8e6   : > { %11952 = vrot.lane.b32.xlu1 %v21521_v12, %s18729_s15  ;;  %v18163_v12 = vpop.eup %18162 }
 0x8e7   : > { %v18165_v35 = vpop.eup %18164  ;;  %v6913_v21 = vmul.f32 %v18163_v12, %v22997_v34 }
 0x8e8   : > { %v18167_v23 = vpop.eup %18166  ;;  %v6914_v25 = vmul.f32 %v18165_v35, %v22998_v17 }
 0x8e9   : > { %v18169_v16 = vpop.eup %18168  ;;  %v6915_v40 = vmul.f32 %v18167_v23, %v22999_v0 }
 0x8ea   : > { %11972 = vrot.lane.b32.xlu1 %v10136_v47, %s18728_s19  ;;  %v18171_v27 = vpop.eup %18170  ;;  %v6916_v48 = vmul.f32 %v18169_v16, %v23000_v37 }
 0x8eb   : > { %v6917_v46 = vmul.f32 %v18171_v27, %v23001_v20 }
 0x8f0   : > { %v10290_v29 = vpop.f32.mrf.mxu1 }
 0x8f1   : > { %11976 = vrot.lane.b32.xlu1 %v10290_v29, %s18728_s19 }
 0x8f2   : > { %v17403_v14 = vpop.f32.mrf.mxu1 }
 0x8f4   : > { %v10213_v6 = vpop.f32.mrf.mxu0 }
 0x8f5   : > { %11974 = vrot.lane.b32.xlu0 %v10213_v6, %s18728_s19  ;;  %v23002_v6 = vmov 0  }
 0x8f6   : > { %v17398_v53 = vpop.f32.mrf.mxu0 }
 0x8fe   : > { %v6791_v24 = vpop.xlane.xlu0 %6790 }
 0x902   : > { %v6788_v32 = vpop.xlane.xlu1 %6787  ;;  %v10834_v4 = vpop.permute.xlu0 %10833 }
 0x903   : > { %17440 = vmatpush3.msk.msra.mxu1 %vm6924_vm3, %v10834_v4  ;;  %18172 = vrcp.f32 %v6788_v32 }
 0x904   : > { %17442 = vmatmul.mubr.msk.f32.vlgmr.msra.gmra.mxu1 %vm6920_vm4, %v6907_v52  ;;  %17449 = vmatprep.subr.mxu1 %v22808_v58  ;;  %18174 = vrcp.f32 %v6791_v24  ;;  %v23003_v52 = vld [vmem:[#allocation79_spill] sm:$0xff] }
 0x905   : > { %17451 = vmatprep.mubr.msk.f32.mxu1 %vm18725_vm0, %v22808_v58 }
 0x906   : > { %v10757_v7 = vpop.permute.xlu1 %10756  ;;  %v11065_v43 = vpop.permute.xlu0 %11064 }
 0x907   : > { %17435 = vmatpush3.msk.msra.mxu0 %vm6924_vm3, %v10757_v7 }
 0x908   : > { %17437 = vmatmul.mubr.msk.f32.vlgmr.msra.gmra.mxu0 %vm6920_vm4, %v6906_v62  ;;  %17444 = vmatprep.subr.mxu0 %v22808_v58 }
 0x909   : > { %17446 = vmatprep.mubr.msk.f32.mxu0 %vm18725_vm0, %v22808_v58 }
 0x90a   : > { %v10911_v10 = vpop.permute.xlu1 %10910  ;;  %v11219_v26 = vpop.permute.xlu0 %11218 }
 0x90b   : > { %17445 = vmatpush3.msk.msra.mxu0 %vm6924_vm3, %v10911_v10 }
 0x90c   : > { %17447 = vmatmul.mubr.msk.f32.vlgmr.msra.gmra.mxu0 %vm6920_vm4, %v6908_v50  ;;  %17454 = vmatprep.subr.mxu0 %v22808_v58 }
 0x90d   : > { %17455 = vmatpush3.msk.msra.mxu0 %vm6924_vm3, %v11065_v43  ;;  %17456 = vmatprep.mubr.msk.f32.mxu0 %vm18725_vm0, %v22808_v58 }
 0x90e   : > { %v10988_v22 = vpop.permute.xlu1 %10987  ;;  %v11373_v9 = vpop.permute.xlu0 %11372  ;;  %17464 = vmatprep.subr.mxu0 %v22808_v58 }
 0x90f   : > { %17450 = vmatpush3.msk.msra.mxu1 %vm6924_vm3, %v10988_v22 }
 0x910   : > { %17452 = vmatmul.mubr.msk.f32.vlgmr.msra.gmra.mxu1 %vm6920_vm4, %v6909_v59  ;;  %17457 = vmatmul.mubr.msk.f32.vlgmr.msra.gmra.mxu0 %vm6920_vm4, %v6910_v55  ;;  %v18173_v49 = vpop.eup %18172 }
 0x911   : > { %17465 = vmatpush3.msk.msra.mxu0 %vm6924_vm3, %v11219_v26  ;;  %17459 = vmatprep.subr.mxu1 %v22808_v58  ;;  %v6918_v15 = vmul.f32 %v18173_v49, %v21517_v30  ;;  %v18175_v61 = vpop.eup %18174 }
 0x912   : > { %v11142_v5 = vpop.permute.xlu1 %11141  ;;  %v11527_v1 = vpop.permute.xlu0 %11526  ;;  %17461 = vmatprep.mubr.msk.f32.mxu1 %vm18725_vm0, %v22808_v58  ;;  %17466 = vmatprep.mubr.msk.f32.mxu0 %vm18725_vm0, %v22808_v58  ;;  %v6919_v30 = vmul.f32 %v18175_v61, %v21513_v33  ;;  %v17784_v61 = vld [vmem:[%s19282_s23 + $0x38] sm:$0xff]  }
 0x913   : > { %17460 = vmatpush3.msk.msra.mxu1 %vm6924_vm3, %v11142_v5  ;;  %17474 = vmatprep.subr.mxu0 %v22808_v58  ;;  %v23009_v5 = vld [vmem:[#allocation48_spill] sm:$0xff] }
 0x914   : > { %17462 = vmatmul.mubr.msk.f32.vlgmr.msra.gmra.mxu1 %vm6920_vm4, %v6911_v13  ;;  %17467 = vmatmul.mubr.msk.f32.vlgmr.msra.gmra.mxu0 %vm6920_vm4, %v6912_v39 }
 0x915   : > { %17475 = vmatpush3.msk.msra.mxu0 %vm6924_vm3, %v11373_v9  ;;  %17469 = vmatprep.subr.mxu1 %v22808_v58 }
 0x916   : > { %v11296_v57 = vpop.permute.xlu1 %11295  ;;  %v11681_v47 = vpop.permute.xlu0 %11680  ;;  %17471 = vmatprep.mubr.msk.f32.mxu1 %vm18725_vm0, %v22808_v58  ;;  %17476 = vmatprep.mubr.msk.f32.mxu0 %vm18725_vm0, %v22808_v58 }
 0x917   : > { %17470 = vmatpush3.msk.msra.mxu1 %vm6924_vm3, %v11296_v57  ;;  %17484 = vmatprep.subr.mxu0 %v22808_v58 }
 0x918   : > { %17472 = vmatmul.mubr.msk.f32.vlgmr.msra.gmra.mxu1 %vm6920_vm4, %v6913_v21  ;;  %17477 = vmatmul.mubr.msk.f32.vlgmr.msra.gmra.mxu0 %vm6920_vm4, %v6914_v25  ;;  %v23010_v21 = vld [vmem:[#allocation71_spill] sm:$0xff] }
 0x919   : > { %17485 = vmatpush3.msk.msra.mxu0 %vm6924_vm3, %v11527_v1  ;;  %17479 = vmatprep.subr.mxu1 %v22808_v58 }
 0x91a   : > { %v11450_v54 = vpop.permute.xlu1 %11449  ;;  %v11843_v60 = vpop.permute.xlu0 %11842  ;;  %17481 = vmatprep.mubr.msk.f32.mxu1 %vm18725_vm0, %v22808_v58  ;;  %17486 = vmatprep.mubr.msk.f32.mxu0 %vm18725_vm0, %v22808_v58 }
 0x91b   : > { %17480 = vmatpush3.msk.msra.mxu1 %vm6924_vm3, %v11450_v54  ;;  %17494 = vmatprep.subr.mxu0 %v22808_v58 }
 0x91c   : > { %17482 = vmatmul.mubr.msk.f32.vlgmr.msra.gmra.mxu1 %vm6920_vm4, %v6915_v40  ;;  %17487 = vmatmul.mubr.msk.f32.vlgmr.msra.gmra.mxu0 %vm6920_vm4, %v6916_v48 }
 0x91d   : > { %17495 = vmatpush3.msk.msra.mxu0 %vm6924_vm3, %v11681_v47  ;;  %17489 = vmatprep.subr.mxu1 %v22808_v58 }
 0x91e   : > { %v11604_v2 = vpop.permute.xlu1 %11603  ;;  %v11847_v31 = vpop.permute.xlu0 %11846  ;;  %17491 = vmatprep.mubr.msk.f32.mxu1 %vm18725_vm0, %v22808_v58  ;;  %17496 = vmatprep.mubr.msk.f32.mxu0 %vm18725_vm0, %v22808_v58 }
 0x91f   : > { %17490 = vmatpush3.msk.msra.mxu1 %vm6924_vm3, %v11604_v2  ;;  %v12060_v62 = vsel %vm1254_vm1, %v23004_v3, %v11847_v31  ;;  %17504 = vmatprep.subr.bf16.mxu0 %v17784_v61 }
 0x920   : > { %17492 = vmatmul.mubr.msk.f32.vlgmr.msra.gmra.mxu1 %vm6920_vm4, %v6917_v46  ;;  %17497 = vmatmul.mubr.msk.f32.vlgmr.msra.gmra.mxu0 %vm6920_vm4, %v6918_v15 }
 0x921   : > { %17499 = vmatprep.subr.mxu1 %v22808_v58  ;;  %17501 = vmatprep.mubr.msk.f32.mxu1 %vm18725_vm0, %v22808_v58  ;;  %v12058_v58 = vsel %vm1254_vm1, %v23003_v52, %v11843_v60  ;;  %v17788_v52 = vld [vmem:[%s19282_s23 + $0x18] sm:$0xff]  }
 0x922   : > { %v11758_v38 = vpop.permute.xlu1 %11757  ;;  %v11851_v29 = vpop.permute.xlu0 %11850  ;;  %17505 = vmatpush3.bf16.msra.mxu0 %v17784_v61 }
 0x923   : > { %17500 = vmatpush3.msk.msra.mxu1 %vm6924_vm3, %v11758_v38  ;;  %v12062_v41 = vsel %vm1254_vm1, %v23005_v45, %v11851_v29  ;;  %v17786_v29 = vld [vmem:[%s19282_s23 + $0x28] sm:$0xff]  }
 0x924   : > { %17502 = vmatmul.mubr.msk.f32.vlgmr.msra.gmra.mxu1 %vm6920_vm4, %v6919_v30  ;;  %v17785_v30 = vld [vmem:[%s19282_s23 + $0x30] sm:$0xff]  }
 0x925   : > { %v10444_v14 = vpop.f32.mrf.mxu1  ;;  %13215 = vmatprep.mubr.bf16.mxu1 %v23002_v6  ;;  %17506 = vmatprep.subr.bf16.mxu0 %v17785_v30 }
 0x926   : > { %v11855_v53 = vpop.permute.xlu0 %11854  ;;  %v11845_v24 = vpop.permute.xlu1 %11844  ;;  %11980 = vrot.lane.b32.xlu1 %v10444_v14, %s18728_s19  ;;  %17507 = vmatpush3.bf16.msra.mxu0 %v17785_v30 }
 0x927   : > { %v17413_v19 = vpop.f32.mrf.mxu1  ;;  %v12064_v63 = vsel %vm1254_vm1, %v23006_v56, %v11855_v53  ;;  %v12059_v59 = vsel %vm1254_vm1, %v23007_v51, %v11845_v24  ;;  %17508 = vmatprep.subr.bf16.mxu0 %v17786_v29  ;;  %v17787_v24 = vld [vmem:[%s19282_s23 + $0x20] sm:$0xff]  }
 0x929   : > { %v10367_v42 = vpop.f32.mrf.mxu0 }
 0x92a   : > { %11978 = vrot.lane.b32.xlu0 %v10367_v42, %s18728_s19  ;;  %v11875_v33 = vpop.permute.xlu0 %11874  ;;  %v11849_v32 = vpop.permute.xlu1 %11848  ;;  %17509 = vmatpush3.bf16.msra.mxu0 %v17786_v29 }
 0x92b   : > { %v12067_v4 = vsel %vm12066_vm5, %v12058_v58, %v11875_v33  ;;  %v17408_v36 = vpop.f32.mrf.mxu0  ;;  %v12061_v12 = vsel %vm1254_vm1, %v23008_v44, %v11849_v32  ;;  %17510 = vmatprep.subr.bf16.mxu0 %v17787_v24 }
 0x92e   : > { %v11879_v7 = vpop.permute.xlu0 %11878  ;;  %v11853_v43 = vpop.permute.xlu1 %11852  ;;  %17511 = vmatpush3.bf16.msra.mxu0 %v17787_v24 }
 0x92f   : > { %v21756_v11 = vsel %vm12066_vm5, %v12060_v62, %v11879_v7  ;;  %v12063_v1 = vsel %vm1254_vm1, %v23009_v5, %v11853_v43  ;;  %17512 = vmatprep.subr.bf16.mxu0 %v17788_v52  ;;  %v17790_v43 = vld [vmem:[%s19282_s23 + $0x8] sm:$0xff]  }
 0x932   : > { %v11883_v50 = vpop.permute.xlu0 %11882  ;;  %v11857_v10 = vpop.permute.xlu1 %11856  ;;  %17513 = vmatpush3.bf16.msra.mxu0 %v17788_v52 }
 0x933   : > { %v12071_v26 = vsel %vm12066_vm5, %v12062_v41, %v11883_v50  ;;  %v12065_v17 = vsel %vm1254_vm1, %v23010_v21, %v11857_v10 }
 0x936   : > { %v11887_v8 = vpop.permute.xlu0 %11886  ;;  %v11877_v55 = vpop.permute.xlu1 %11876 }
 0x937   : > { %v21766_v22 = vsel %vm12066_vm5, %v12064_v63, %v11887_v8  ;;  %v12068_v9 = vsel %vm12066_vm5, %v12059_v59, %v11877_v55  ;;  %v17791_v63 = vld [vmem:[%s19282_s23] sm:$0xff]  }
 0x93a   : > { %v11907_v28 = vpop.permute.xlu0 %11906  ;;  %v11881_v13 = vpop.permute.xlu1 %11880 }
 0x93b   : > { %v21772_v18 = vsel %vm12075_vm6, %v12067_v4, %v11907_v28  ;;  %v21775_v39 = vsel %vm12066_vm5, %v12061_v12, %v11881_v13  ;;  %v17789_v4 = vld [vmem:[%s19282_s23 + $0x10] sm:$0xff]   ;;  %s23015_s23 = scalar_lea.vmem [#allocation19], %s19260_s20 }
 0x93c   : > { %17514 = vmatprep.subr.bf16.mxu0 %v17789_v4 }
 0x93d   : > { %17515 = vmatpush3.bf16.msra.mxu0 %v17789_v4 }
 0x93e   : > { %v21779_v35 = vpop.permute.xlu0 %11910  ;;  %v11885_v23 = vpop.permute.xlu1 %11884  ;;  %17516 = vmatprep.subr.bf16.mxu0 %v17790_v43 }
 0x93f   : > { %v12072_v34 = vsel %vm12066_vm5, %v12063_v1, %v11885_v23 }
 0x941   : > { %17517 = vmatpush3.bf16.msra.mxu0 %v17790_v43  ;;  %v12078_v43 = vsel %vm12075_vm6, %v21756_v11, %v21779_v35 }
 0x942   : > { %v11915_v25 = vpop.permute.xlu0 %11914  ;;  %v11889_v57 = vpop.permute.xlu1 %11888  ;;  %17518 = vmatprep.subr.bf16.mxu0 %v17791_v63 }
 0x943   : > { %v21785_v47 = vsel %vm12075_vm6, %v12071_v26, %v11915_v25  ;;  %v21788_v16 = vsel %vm12066_vm5, %v12065_v17, %v11889_v57 }
 0x945   : > { %17519 = vmatpush3.bf16.msra.mxu0 %v17791_v63 }
 0x946   : > { %v11909_v27 = vpop.permute.xlu1 %11908  ;;  %v21824_v1 = vpop.permute.xlu0 %11918 }
 0x947   : > { %v21791_v0 = vsel %vm12075_vm6, %v12068_v9, %v11909_v27 }
 0x94a   : > { %v21793_v40 = vpop.permute.xlu1 %11912 }
 0x94e   : > { %v11917_v37 = vpop.permute.xlu1 %11916 }
 0x94f   : > { %v21796_v48 = vsel %vm12075_vm6, %v12072_v34, %v11917_v37  ;;  %v11939_v34 = vpop.permute.xlu0 %11938 }
 0x952   : > { %v21826_v23 = vpop.permute.xlu1 %11920 }
 0x953   : > { %v11943_v17 = vpop.permute.xlu0 %11942 }
 0x956   : > { %v11941_v21 = vpop.permute.xlu1 %11940 }
 0x957   : > { %v11947_v57 = vpop.permute.xlu0 %11946 }
 0x95a   : > { %v10598_v54 = vpop.f32.mrf.mxu1  ;;  %v11945_v25 = vpop.permute.xlu1 %11944 }
 0x95b   : > { %11984 = vrot.lane.b32.xlu1 %v10598_v54, %s18728_s19  ;;  %v11951_v37 = vpop.permute.xlu0 %11950 }
 0x95c   : > { %v17423_v60 = vpop.f32.mrf.mxu1 }
 0x95e   : > { %v10521_v49 = vpop.f32.mrf.mxu0  ;;  %v11949_v27 = vpop.permute.xlu1 %11948 }
 0x95f   : > { %11982 = vrot.lane.b32.xlu0 %v10521_v49, %s18728_s19  ;;  %v11971_v60 = vpop.permute.xlu0 %11970 }
 0x960   : > { %v17418_v20 = vpop.f32.mrf.mxu0 }
 0x962   : > { %v11953_v54 = vpop.permute.xlu1 %11952 }
 0x966   : > { %v11973_v49 = vpop.permute.xlu1 %11972 }
 0x967   : > { %v11975_v20 = vpop.permute.xlu0 %11974 }
 0x98f   : > { %v10752_v46 = vpop.f32.mrf.mxu1 }
 0x990   : > { %12004 = vrot.lane.b32.xlu1 %v10752_v46, %s18726_s29  ;;  %v11977_v46 = vpop.permute.xlu1 %11976 }
 0x991   : > { %v17433_v15 = vpop.f32.mrf.mxu1 }
 0x993   : > { %v10675_v2 = vpop.f32.mrf.mxu0 }
 0x994   : > { %12002 = vrot.lane.b32.xlu0 %v10675_v2, %s18726_s29 }
 0x995   : > { %v17428_v31 = vpop.f32.mrf.mxu0 }
 0x998   : > { %v11981_v2 = vpop.permute.xlu1 %11980 }
 0x99c   : > { %v11979_v15 = vpop.permute.xlu0 %11978 }
 0x9c4   : > { %v10906_v38 = vpop.f32.mrf.mxu1 }
 0x9c5   : > { %12008 = vrot.lane.b32.xlu1 %v10906_v38, %s18726_s29 }
 0x9c6   : > { %v17443_v14 = vpop.f32.mrf.mxu1 }
 0x9c8   : > { %v10829_v53 = vpop.f32.mrf.mxu0 }
 0x9c9   : > { %12006 = vrot.lane.b32.xlu0 %v10829_v53, %s18726_s29 }
 0x9ca   : > { %v17438_v19 = vpop.f32.mrf.mxu0 }
 0x9cc   : > { %v10983_v42 = vpop.f32.mrf.mxu0 }
 0x9cd   : > { %12010 = vrot.lane.b32.xlu0 %v10983_v42, %s18726_s29  ;;  %v11985_v61 = vpop.permute.xlu1 %11984 }
 0x9ce   : > { %v17448_v58 = vpop.f32.mrf.mxu0 }
 0x9cf   : > { %v12085_v58 = vsel %vm12084_vm7, %v21772_v18, %v11939_v34  ;;  %v12079_v18 = vsel %vm12075_vm6, %v21775_v39, %v21793_v40  ;;  %v12082_v34 = vsel %vm12075_vm6, %v21766_v22, %v21824_v1 }
 0x9d0   : > { %v11060_v33 = vpop.f32.mrf.mxu1  ;;  %v11137_v32 = vpop.f32.mrf.mxu0 }
 0x9d1   : > { %12014 = vrot.lane.b32.xlu0 %v11137_v32, %s18726_s29  ;;  %12012 = vrot.lane.b32.xlu1 %v11060_v33, %s18726_s29  ;;  %v11983_v31 = vpop.permute.xlu0 %11982  ;;  %v12086_v33 = vsel %vm12084_vm7, %v21791_v0, %v11941_v21  ;;  %v12094_v32 = vsel %vm12093_vm8, %v12085_v58, %v11971_v60 }
 0x9d2   : > { %v17453_v36 = vpop.f32.mrf.mxu1  ;;  %v17458_v3 = vpop.f32.mrf.mxu0  ;;  %v12095_v4 = vsel %vm12093_vm8, %v12086_v33, %v11973_v49  ;;  %v18195_v33 = vld [vmem:[#allocation2 + $0x8] sm:$0xff] }
 0x9d4   : > { %v11214_v62 = vpop.f32.mrf.mxu1  ;;  %v11291_v7 = vpop.f32.mrf.mxu0 }
 0x9d5   : > { %12034 = vrot.lane.b32.xlu0 %v11291_v7, %s18727_s25  ;;  %12016 = vrot.lane.b32.xlu1 %v11214_v62, %s18726_s29 }
 0x9d6   : > { %v17463_v45 = vpop.f32.mrf.mxu1  ;;  %v17468_v41 = vpop.f32.mrf.mxu0 }
 0x9d7   : > { %v12087_v41 = vsel %vm12084_vm7, %v12078_v43, %v11943_v17  ;;  %v12091_v17 = vsel %vm12084_vm7, %v12082_v34, %v11951_v37  ;;  %v12452_v43 = vld [vmem:[%s19292_s18 + $0x3c8] sm:$0xff] }
 0x9d8   : > { %v11368_v50 = vpop.f32.mrf.mxu1  ;;  %v11445_v10 = vpop.f32.mrf.mxu0  ;;  %v12100_v22 = vsel %vm12093_vm8, %v12091_v17, %v11983_v31  ;;  %v12419_v17 = vld [vmem:[%s19292_s18 + $0x2c0] sm:$0xff] }
 0x9d9   : > { %12038 = vrot.lane.b32.xlu0 %v11445_v10, %s18727_s25  ;;  %12036 = vrot.lane.b32.xlu1 %v11368_v50, %s18727_s25  ;;  %v12088_v50 = vsel %vm12084_vm7, %v12079_v18, %v11945_v25 }
 0x9da   : > { %v17473_v26 = vpop.f32.mrf.mxu1  ;;  %v17478_v56 = vpop.f32.mrf.mxu0 }
 0x9db   : > { %v12096_v26 = vsel %vm12093_vm8, %v12087_v41, %v11975_v20  ;;  %v12097_v56 = vsel %vm12093_vm8, %v12088_v50, %v11977_v46 }
 0x9dc   : > { %v11522_v51 = vpop.f32.mrf.mxu1  ;;  %v11599_v59 = vpop.f32.mrf.mxu0 }
 0x9dd   : > { %12042 = vrot.lane.b32.xlu0 %v11599_v59, %s18727_s25  ;;  %12040 = vrot.lane.b32.xlu1 %v11522_v51, %s18727_s25  ;;  %v12089_v59 = vsel %vm12084_vm7, %v21785_v47, %v11947_v57  ;;  %v12083_v47 = vsel %vm12075_vm6, %v21788_v16, %v21826_v23 }
 0x9de   : > { %v17483_v8 = vpop.f32.mrf.mxu1  ;;  %v17488_v55 = vpop.f32.mrf.mxu0  ;;  %v12092_v25 = vsel %vm12084_vm7, %v12083_v47, %v11953_v54 }
 0x9df   : > { %v12090_v8 = vsel %vm12084_vm7, %v21796_v48, %v11949_v27  ;;  %v12101_v60 = vsel %vm12093_vm8, %v12092_v25, %v11985_v61  ;;  %v12412_v25 = vld [vmem:[%s19292_s18 + $0x288] sm:$0xff] }
 0x9e0   : > { %v11676_v9 = vpop.f32.mrf.mxu1  ;;  %v11753_v44 = vpop.f32.mrf.mxu0 }
 0x9e1   : > { %12046 = vrot.lane.b32.xlu0 %v11753_v44, %s18727_s25  ;;  %12044 = vrot.lane.b32.xlu1 %v11676_v9, %s18727_s25  ;;  %v12099_v9 = vsel %vm12093_vm8, %v12090_v8, %v11981_v2  ;;  %v12098_v44 = vsel %vm12093_vm8, %v12089_v59, %v11979_v15  ;;  %v16046_v15 = vld [vmem:[%s746_s12] ss:$0 sm:$0xff]  ;;  %s23016_s12 = scalar_lea.vmem [#allocation20], %s19260_s20  ;;  %s23017_s20 = sld [smem:[#allocation36_spill]] }
 0x9e2   : > { %v17493_v12 = vpop.f32.mrf.mxu1  ;;  %v17498_v28 = vpop.f32.mrf.mxu0 }
 0x9e4   : > { %v11830_v13 = vpop.f32.mrf.mxu1 }
 0x9e5   : > { %12048 = vrot.lane.b32.xlu1 %v11830_v13, %s18727_s25 }
 0x9e6   : > { %v17503_v5 = vpop.f32.mrf.mxu1 }
 0x9e7   : > { %p16316_p8 = scmp.ne.s32.totalorder %s23017_s20, 2 }
 0xa02   : > { %v12005_v38 = vpop.permute.xlu1 %12004 }
 0xa03   : > { %v12104_v36 = vsel %vm12102_vm9, %v12095_v4, %v12005_v38  ;;  %v18192_v38 = vld [vmem:[#allocation2 + $0x10] sm:$0xff]  ;;  %v12443_v4 = vld [vmem:[%s19292_s18 + $0x380] sm:$0xff] }
 0xa06   : > { %v12003_v30 = vpop.permute.xlu0 %12002 }
 0xa07   : > { %v12103_v3 = vsel %vm12102_vm9, %v12094_v32, %v12003_v30 }
 0xa37   : > { %v12009_v14 = vpop.permute.xlu1 %12008 }
 0xa38   : > { %v12106_v63 = vsel %vm12102_vm9, %v12097_v56, %v12009_v14 }
 0xa3b   : > { %v12007_v29 = vpop.permute.xlu0 %12006 }
 0xa3c   : > { %v12105_v11 = vsel %vm12102_vm9, %v12096_v26, %v12007_v29 }
 0xa3f   : > { %v12011_v53 = vpop.permute.xlu0 %12010 }
 0xa40   : > { %v12107_v12 = vsel %vm12102_vm9, %v12098_v44, %v12011_v53  ;;  %v12427_v44 = vld [vmem:[%s19292_s18 + $0x300] sm:$0xff] }
 0xa43   : > { %v12015_v24 = vpop.permute.xlu0 %12014  ;;  %v12013_v19 = vpop.permute.xlu1 %12012 }
 0xa44   : > { %v12108_v28 = vsel %vm12102_vm9, %v12099_v9, %v12013_v19  ;;  %v12109_v1 = vsel %vm12102_vm9, %v12100_v22, %v12015_v24  ;;  %v18193_v24 = vld [vmem:[#allocation2 + $0x18] sm:$0xff] }
 0xa47   : > { %v12035_v42 = vpop.permute.xlu0 %12034  ;;  %v12017_v52 = vpop.permute.xlu1 %12016 }
 0xa48   : > { %v12112_v0 = vsel %vm12111_vm10, %v12103_v3, %v12035_v42  ;;  %v12110_v16 = vsel %vm12102_vm9, %v12101_v60, %v12017_v52  ;;  %v18194_v52 = vld [vmem:[#allocation2] sm:$0xff]  ;;  %v12444_v3 = vld [vmem:[%s19292_s18 + $0x388] sm:$0xff] }
 0xa49   : > { %v16171_v18 = vcombine.low %v12444_v3, %v12452_v43 }
 0xa4b   : > { %v12039_v62 = vpop.permute.xlu0 %12038  ;;  %v12037_v7 = vpop.permute.xlu1 %12036 }
 0xa4c   : > { %v12113_v45 = vsel %vm12111_vm10, %v12104_v36, %v12037_v7  ;;  %v12114_v39 = vsel %vm12111_vm10, %v12105_v11, %v12039_v62  ;;  %v12451_v36 = vld [vmem:[%s19292_s18 + $0x3c0] sm:$0xff] }
 0xa4d   : > { %v12128_v10 = vcombine.low %v12112_v0, %v12113_v45  ;;  %v16169_v62 = vcombine.low %v12443_v4, %v12451_v36  ;;  %v16170_v7 = vcombine.high %v12443_v4, %v12451_v36  ;;  %v16172_v0 = vcombine.high %v12444_v3, %v12452_v43  ;;  %v12347_v36 = vld [vmem:[%s19292_s18 + $0x80] sm:$0xff]  ;;  %v12356_v43 = vld [vmem:[%s19292_s18 + $0xc8] sm:$0xff] }
 0xa4e   : > { %v12355_v3 = vld [vmem:[%s19292_s18 + $0xc0] sm:$0xff] }
 0xa4f   : > { %v12043_v35 = vpop.permute.xlu0 %12042  ;;  %v12041_v51 = vpop.permute.xlu1 %12040  ;;  %13183 = vmatprep.subr.bf16.mxu1 %v16170_v7  ;;  %13236 = vmatprep.subr.bf16.mxu0 %v16172_v0  ;;  %v16074_v7 = vcombine.high %v12347_v36, %v12355_v3 }
 0xa50   : > { %v12115_v40 = vsel %vm12111_vm10, %v12106_v63, %v12041_v51  ;;  %v12116_v48 = vsel %vm12111_vm10, %v12107_v12, %v12043_v35  ;;  %13184 = vmatpush1.bf16.msra.mxu1 %v16169_v62  ;;  %v12435_v12 = vld [vmem:[%s19292_s18 + $0x340] sm:$0xff]  ;;  %v12348_v62 = vld [vmem:[%s19292_s18 + $0x88] sm:$0xff] }
 0xa51   : > { %v12129_v55 = vcombine.low %v12114_v39, %v12115_v40  ;;  %v16153_v34 = vcombine.low %v12427_v44, %v12435_v12  ;;  %v16075_v0 = vcombine.low %v12348_v62, %v12356_v43 }
 0xa53   : > { %v12045_v13 = vpop.permute.xlu1 %12044  ;;  %v12136_v5 = vpack.c.bf16 %v12129_v55, %v12128_v10  ;;  %v12047_v57 = vpop.permute.xlu0 %12046 }
 0xa54   : > { %v12117_v21 = vsel %vm12111_vm10, %v12108_v28, %v12045_v13  ;;  %v12118_v49 = vsel %vm12111_vm10, %v12109_v1, %v12047_v57  ;;  %v12428_v28 = vld [vmem:[%s19292_s18 + $0x308] sm:$0xff]  ;;  %v16154_v13 = vcombine.high %v12427_v44, %v12435_v12  ;;  %v12454_v12 = vld [vmem:[%s19292_s18 + $0x3d8] sm:$0xff] }
 0xa55   : > { %v12130_v27 = vcombine.low %v12116_v48, %v12117_v21  ;;  %17520 = vmatprep.mubr.bf16.mxu0 %v12136_v5  ;;  %v12436_v5 = vld [vmem:[%s19292_s18 + $0x348] sm:$0xff]  ;;  %v12411_v21 = vld [vmem:[%s19292_s18 + $0x280] sm:$0xff] }
 0xa56   : > { %v16155_v47 = vcombine.low %v12428_v28, %v12436_v5  ;;  %v16156_v48 = vcombine.high %v12428_v28, %v12436_v5  ;;  %13185 = vmatprep.subr.bf16.mxu1 %v16154_v13  ;;  %v16138_v57 = vcombine.high %v12411_v21, %v12419_v17  ;;  %v16137_v60 = vcombine.low %v12411_v21, %v12419_v17 }
 0xa57   : > { %v12049_v23 = vpop.permute.xlu1 %12048  ;;  %13186 = vmatpush1.bf16.msra.mxu1 %v16153_v34 }
 0xa58   : > { %v12119_v20 = vsel %vm12111_vm10, %v12110_v16, %v12049_v23  ;;  %13187 = vmatprep.subr.bf16.mxu1 %v16138_v57  ;;  %v12395_v16 = vld [vmem:[%s19292_s18 + $0x200] sm:$0xff] }
 0xa59   : > { %v12131_v37 = vcombine.low %v12118_v49, %v12119_v20  ;;  %v12403_v23 = vld [vmem:[%s19292_s18 + $0x240] sm:$0xff]  ;;  %v12396_v49 = vld [vmem:[%s19292_s18 + $0x208] sm:$0xff] }
 0xa5a   : > { %v16122_v20 = vcombine.high %v12395_v16, %v12403_v23 }
 0xa5b   : > { %v12137_v46 = vpack.c.bf16 %v12131_v37, %v12130_v27  ;;  %v12420_v27 = vld [vmem:[%s19292_s18 + $0x2c8] sm:$0xff]  ;;  %13188 = vmatpush1.bf16.msra.mxu1 %v16137_v60 }
 0xa5c   : > { %v16139_v22 = vcombine.low %v12412_v25, %v12420_v27  ;;  %v16140_v1 = vcombine.high %v12412_v25, %v12420_v27  ;;  %v12404_v37 = vld [vmem:[%s19292_s18 + $0x248] sm:$0xff]  ;;  %13189 = vmatprep.subr.bf16.mxu1 %v16122_v20  ;;  %v16055_v20 = vld [vmem:[%s789_s11] ss:$0 sm:$0xff] }
 0xa5d   : > { %17521 = vmatmul.mubr.bf16.vlgmr.msra.gmra.mxu0 %v12137_v46  ;;  %v16121_v46 = vcombine.low %v12395_v16, %v12403_v23 }
 0xa5e   : > { %13268 = vmatprep.mubr.bf16.mxu0 %v23002_v6  ;;  %13237 = vmatpush1.bf16.msra.mxu0 %v16171_v18  ;;  %v16073_v18 = vcombine.low %v12347_v36, %v12355_v3 }
 0xa5f   : > { %13238 = vmatprep.subr.bf16.mxu0 %v16156_v48  ;;  %13190 = vmatpush1.bf16.msra.mxu1 %v16121_v46 }
 0xa62   : > { %13239 = vmatpush1.bf16.msra.mxu0 %v16155_v47 }
 0xa63   : > { %13240 = vmatprep.subr.bf16.mxu0 %v16140_v1 }
 0xa66   : > { %13241 = vmatpush1.bf16.msra.mxu0 %v16139_v22 }
 0xb1d   : > { %v17522_v54 = vpop.f32.mrf.mxu0 }
 0xb1e   : > { %v12252_v30 = vadd.f32 %v17522_v54, %v16046_v15  ;;  %v16123_v54 = vcombine.low %v12396_v49, %v12404_v37 }
 0xb1f   : > { %v12243_v2 = vpop.f32.mrf.mxu0 }
 0xb20   : > { %v12244_v61 = vadd.f32 %v16046_v15, %v12243_v2  ;;  %v12260_v19 = vadd.f32 %v18193_v24, %v12252_v30  ;;  %v12379_v2 = vld [vmem:[%s19292_s18 + $0x180] sm:$0xff] }
 0xb21   : > { %v17523_v31 = vpop.f32.mrf.mxu0  ;;  %v12363_v24 = vld [vmem:[%s19292_s18 + $0x100] sm:$0xff] }
 0xb22   : > { %v12258_v29 = vadd.f32 %v18192_v38, %v12244_v61  ;;  %v12255_v42 = vadd.f32 %v17523_v31, %v16046_v15  ;;  %v12387_v61 = vld [vmem:[%s19292_s18 + $0x1c0] sm:$0xff]  ;;  %v12380_v31 = vld [vmem:[%s19292_s18 + $0x188] sm:$0xff] }
 0xb23   : > { %v12246_v14 = vpop.f32.mrf.mxu0  ;;  %v16106_v30 = vcombine.high %v12379_v2, %v12387_v61  ;;  %v12388_v38 = vld [vmem:[%s19292_s18 + $0x1c8] sm:$0xff] }
 0xb24   : > { %v12247_v53 = vadd.f32 %v16046_v15, %v12246_v14  ;;  %12264 = vadd.xlane.f32.xlu0 %v12258_v29  ;;  %v12261_v32 = vadd.f32 %v18195_v33, %v12255_v42  ;;  %v16124_v15 = vcombine.high %v12396_v49, %v12404_v37  ;;  %v16107_v14 = vcombine.low %v12380_v31, %v12388_v38  ;;  %v12364_v42 = vld [vmem:[%s19292_s18 + $0x108] sm:$0xff] }
 0xb25   : > { %13191 = vmatprep.subr.bf16.mxu1 %v16106_v30  ;;  %v12429_v30 = vld [vmem:[%s19292_s18 + $0x310] sm:$0xff] }
 0xb26   : > { %v12259_v58 = vadd.f32 %v18194_v52, %v12247_v53  ;;  %13242 = vmatprep.subr.bf16.mxu0 %v16124_v15  ;;  %v16108_v53 = vcombine.high %v12380_v31, %v12388_v38 }
 0xb27   : > { %13243 = vmatpush1.bf16.msra.mxu0 %v16123_v54 }
 0xb28   : > { %12266 = vadd.xlane.f32.xlu1 %v12259_v58  ;;  %12268 = vadd.xlane.f32.xlu0 %v12260_v19 }
 0xb29   : > { %13244 = vmatprep.subr.bf16.mxu0 %v16108_v53 }
 0xb2b   : > { %13245 = vmatpush1.bf16.msra.mxu0 %v16107_v14  ;;  %v12438_v14 = vld [vmem:[%s19292_s18 + $0x358] sm:$0xff] }
 0xb2c   : > { %12270 = vadd.xlane.f32.xlu0 %v12261_v32 }
 0xbad   : > { %v12265_v45 = vpop.xlane.xlu0 %12264 }
 0xbae   : > { %v12273_v41 = vmul.f32 0.0078125, %v12265_v45  ;;  %v16076_v45 = vcombine.high %v12348_v62, %v12356_v43 }
 0xbb0   : > { %v21883_v50 = vsub.f32 %v12258_v29, %v12273_v41  ;;  %v16105_v29 = vcombine.low %v12379_v2, %v12387_v61  ;;  %v12331_v41 = vld [vmem:[%s19292_s18] sm:$0xff]  ;;  %v16056_v2 = vld [vmem:[%s797_s26] ss:$0 sm:$0xff] }
 0xbb1   : > { %v12267_v10 = vpop.xlane.xlu1 %12266  ;;  %v12269_v26 = vpop.xlane.xlu0 %12268 }
 0xbb2   : > { %v12274_v56 = vmul.f32 0.0078125, %v12267_v10  ;;  %v12275_v63 = vmul.f32 0.0078125, %v12269_v26  ;;  %v12281_v11 = vmul.f32 %v21883_v50, %v21883_v50  ;;  %13192 = vmatpush1.bf16.msra.mxu1 %v16105_v29  ;;  %v12339_v10 = vld [vmem:[%s19292_s18 + $0x40] sm:$0xff]  ;;  %v12332_v26 = vld [vmem:[%s19292_s18 + $0x8] sm:$0xff]  ;;  %v12437_v29 = vld [vmem:[%s19292_s18 + $0x350] sm:$0xff] }
 0xbb4   : > { %v21887_v35 = vsub.f32 %v12259_v58, %v12274_v56  ;;  %v21889_v51 = vsub.f32 %v12260_v19, %v12275_v63  ;;  %12285 = vadd.xlane.f32.xlu1 %v12281_v11  ;;  %v12371_v19 = vld [vmem:[%s19292_s18 + $0x140] sm:$0xff]  ;;  %v12372_v58 = vld [vmem:[%s19292_s18 + $0x148] sm:$0xff]  ;;  %v16058_v56 = vcombine.high %v12331_v41, %v12339_v10  ;;  %v16057_v11 = vcombine.low %v12331_v41, %v12339_v10  ;;  %v12406_v41 = vld [vmem:[%s19292_s18 + $0x258] sm:$0xff] }
 0xbb5   : > { %v12271_v39 = vpop.xlane.xlu0 %12270  ;;  %v16090_v52 = vcombine.high %v12363_v24, %v12371_v19  ;;  %v16089_v33 = vcombine.low %v12363_v24, %v12371_v19  ;;  %v16092_v4 = vcombine.high %v12364_v42, %v12372_v58  ;;  %v12340_v63 = vld [vmem:[%s19292_s18 + $0x48] sm:$0xff] }
 0xbb6   : > { %v12276_v40 = vmul.f32 0.0078125, %v12271_v39  ;;  %v12282_v59 = vmul.f32 %v21887_v35, %v21887_v35  ;;  %v12283_v8 = vmul.f32 %v21889_v51, %v21889_v51  ;;  %v16059_v39 = vcombine.low %v12332_v26, %v12340_v63 }
 0xbb7   : > { %13193 = vmatprep.subr.bf16.mxu1 %v16090_v52  ;;  %13246 = vmatprep.subr.bf16.mxu0 %v16092_v4  ;;  %v16158_v52 = vcombine.high %v12429_v30, %v12437_v29  ;;  %v12422_v4 = vld [vmem:[%s19292_s18 + $0x2d8] sm:$0xff] }
 0xbb8   : > { %v21895_v55 = vsub.f32 %v12261_v32, %v12276_v40  ;;  %12287 = vadd.xlane.f32.xlu0 %v12282_v59  ;;  %12289 = vadd.xlane.f32.xlu1 %v12283_v8  ;;  %v16091_v32 = vcombine.low %v12364_v42, %v12372_v58  ;;  %v16060_v40 = vcombine.high %v12332_v26, %v12340_v63  ;;  %v12445_v59 = vld [vmem:[%s19292_s18 + $0x390] sm:$0xff] }
 0xbb9   : > { %13194 = vmatpush1.bf16.msra.mxu1 %v16089_v33  ;;  %v12453_v8 = vld [vmem:[%s19292_s18 + $0x3d0] sm:$0xff] }
 0xbba   : > { %v12284_v9 = vmul.f32 %v21895_v55, %v21895_v55  ;;  %13247 = vmatpush1.bf16.msra.mxu0 %v16091_v32  ;;  %13195 = vmatprep.subr.bf16.mxu1 %v16074_v7  ;;  %v16174_v44 = vcombine.high %v12445_v59, %v12453_v8  ;;  %v16173_v28 = vcombine.low %v12445_v59, %v12453_v8  ;;  %v12413_v33 = vld [vmem:[%s19292_s18 + $0x290] sm:$0xff]  ;;  %v12382_v8 = vld [vmem:[%s19292_s18 + $0x198] sm:$0xff] }
 0xbbb   : > { %13248 = vmatprep.subr.bf16.mxu0 %v16076_v45  ;;  %v12421_v32 = vld [vmem:[%s19292_s18 + $0x2d0] sm:$0xff]  ;;  %v12398_v45 = vld [vmem:[%s19292_s18 + $0x218] sm:$0xff] }
 0xbbc   : > { %12291 = vadd.xlane.f32.xlu0 %v12284_v9  ;;  %v12446_v9 = vld [vmem:[%s19292_s18 + $0x398] sm:$0xff]  ;;  %v16142_v7 = vcombine.high %v12413_v33, %v12421_v32  ;;  %v16141_v26 = vcombine.low %v12413_v33, %v12421_v32  ;;  %v12389_v59 = vld [vmem:[%s19292_s18 + $0x1d0] sm:$0xff]  ;;  %v12431_v33 = vld [vmem:[%s19292_s18 + $0x320] sm:$0xff] }
 0xbbd   : > { %13196 = vmatpush1.bf16.msra.mxu1 %v16073_v18  ;;  %v16175_v13 = vcombine.low %v12446_v9, %v12454_v12  ;;  %v16176_v5 = vcombine.high %v12446_v9, %v12454_v12  ;;  %v12397_v18 = vld [vmem:[%s19292_s18 + $0x210] sm:$0xff]  ;;  %v12390_v9 = vld [vmem:[%s19292_s18 + $0x1d8] sm:$0xff]  ;;  %v16127_v12 = vcombine.low %v12398_v45, %v12406_v41  ;;  %v12439_v32 = vld [vmem:[%s19292_s18 + $0x360] sm:$0xff] }
 0xbbe   : > { %13249 = vmatpush1.bf16.msra.mxu0 %v16075_v0  ;;  %13197 = vmatprep.subr.bf16.mxu1 %v16058_v56  ;;  %v12405_v0 = vld [vmem:[%s19292_s18 + $0x250] sm:$0xff] }
 0xbbf   : > { %13250 = vmatprep.subr.bf16.mxu0 %v16060_v40  ;;  %v12381_v40 = vld [vmem:[%s19292_s18 + $0x190] sm:$0xff] }
 0xbc1   : > { %13198 = vmatpush1.bf16.msra.mxu1 %v16057_v11  ;;  %v16126_v11 = vcombine.high %v12397_v18, %v12405_v0 }
 0xbc2   : > { %13251 = vmatpush1.bf16.msra.mxu0 %v16059_v39  ;;  %13289 = vmatprep.subr.bf16.mxu1 %v16174_v44  ;;  %v16128_v39 = vcombine.high %v12398_v45, %v12406_v41  ;;  %v16125_v44 = vcombine.low %v12397_v18, %v12405_v0  ;;  %v12423_v18 = vld [vmem:[%s19292_s18 + $0x2e0] sm:$0xff]  ;;  %v12416_v0 = vld [vmem:[%s19292_s18 + $0x2a8] sm:$0xff]  ;;  %v16161_v41 = vcombine.low %v12431_v33, %v12439_v32 }
 0xbc3   : > { %13342 = vmatprep.subr.bf16.mxu0 %v16176_v5  ;;  %v12365_v5 = vld [vmem:[%s19292_s18 + $0x110] sm:$0xff]  ;;  %v12424_v45 = vld [vmem:[%s19292_s18 + $0x2e8] sm:$0xff] }
 0xc3d   : > { %v12286_v34 = vpop.xlane.xlu1 %12285 }
 0xc3e   : > { %v12293_v47 = vmul.f32 0.0078125, %v12286_v34  ;;  %v12373_v34 = vld [vmem:[%s19292_s18 + $0x150] sm:$0xff] }
 0xc40   : > { %v12297_v48 = vadd.f32 1e-05, %v12293_v47  ;;  %v12366_v47 = vld [vmem:[%s19292_s18 + $0x118] sm:$0xff] }
 0xc41   : > { %v12290_v21 = vpop.xlane.xlu1 %12289  ;;  %v12288_v17 = vpop.xlane.xlu0 %12287 }
 0xc42   : > { %18176 = vrsqrt.f32 %v12297_v48  ;;  %v12295_v25 = vmul.f32 0.0078125, %v12290_v21  ;;  %v12294_v57 = vmul.f32 0.0078125, %v12288_v17  ;;  %v12374_v48 = vld [vmem:[%s19292_s18 + $0x158] sm:$0xff]  ;;  %v16109_v21 = vcombine.low %v12381_v40, %v12389_v59 }
 0xc43   : > { %v16111_v17 = vcombine.low %v12382_v8, %v12390_v9 }
 0xc44   : > { %v12298_v27 = vadd.f32 1e-05, %v12294_v57  ;;  %v12299_v60 = vadd.f32 1e-05, %v12295_v25  ;;  %v16094_v25 = vcombine.high %v12365_v5, %v12373_v34  ;;  %v16096_v57 = vcombine.high %v12366_v47, %v12374_v48 }
 0xc45   : > { %v12292_v22 = vpop.xlane.xlu0 %12291 }
 0xc46   : > { %v12296_v1 = vmul.f32 0.0078125, %v12292_v22  ;;  %18178 = vrsqrt.f32 %v12298_v27  ;;  %v12349_v27 = vld [vmem:[%s19292_s18 + $0x90] sm:$0xff]  ;;  %v12350_v22 = vld [vmem:[%s19292_s18 + $0x98] sm:$0xff] }
 0xc47   : > { %18180 = vrsqrt.f32 %v12299_v60  ;;  %v12357_v60 = vld [vmem:[%s19292_s18 + $0xd0] sm:$0xff] }
 0xc48   : > { %v12300_v16 = vadd.f32 1e-05, %v12296_v1  ;;  %v12358_v1 = vld [vmem:[%s19292_s18 + $0xd8] sm:$0xff] }
 0xc4a   : > { %18182 = vrsqrt.f32 %v12300_v16  ;;  %v16093_v16 = vcombine.low %v12365_v5, %v12373_v34  ;;  %v12391_v5 = vld [vmem:[%s19292_s18 + $0x1e0] sm:$0xff]  ;;  %v12384_v34 = vld [vmem:[%s19292_s18 + $0x1a8] sm:$0xff] }
 0xc4f   : > { %v18177_v23 = vpop.eup %18176 }
 0xc50   : > { %v12305_v49 = vmul.f32 %v18177_v23, %v21883_v50  ;;  %v12430_v50 = vld [vmem:[%s19292_s18 + $0x318] sm:$0xff]  ;;  %v16095_v23 = vcombine.low %v12366_v47, %v12374_v48  ;;  %v12392_v47 = vld [vmem:[%s19292_s18 + $0x1e8] sm:$0xff] }
 0xc51   : > { %v16160_v58 = vcombine.high %v12430_v50, %v12438_v14  ;;  %v16159_v3 = vcombine.low %v12430_v50, %v12438_v14  ;;  %v12448_v50 = vld [vmem:[%s19292_s18 + $0x3a8] sm:$0xff] }
 0xc52   : > { %v12315_v46 = vmul.f32 %v16055_v20, %v12305_v49  ;;  %v16078_v49 = vcombine.high %v12349_v27, %v12357_v60  ;;  %v12456_v14 = vld [vmem:[%s19292_s18 + $0x3e8] sm:$0xff] }
 0xc53   : > { %v18179_v37 = vpop.eup %18178 }
 0xc54   : > { %v12306_v54 = vmul.f32 %v18179_v37, %v21887_v35  ;;  %v18181_v15 = vpop.eup %18180  ;;  %v21942_v53 = vadd.f32 %v16056_v2, %v12315_v46  ;;  %v12333_v37 = vld [vmem:[%s19292_s18 + $0x10] sm:$0xff] }
 0xc55   : > { %v12307_v24 = vmul.f32 %v18181_v15, %v21889_v51  ;;  %v16157_v51 = vcombine.low %v12429_v30, %v12437_v29  ;;  %v12341_v46 = vld [vmem:[%s19292_s18 + $0x50] sm:$0xff]  ;;  %v12342_v15 = vld [vmem:[%s19292_s18 + $0x58] sm:$0xff]  ;;  %v12455_v29 = vld [vmem:[%s19292_s18 + $0x3e0] sm:$0xff] }
 0xc56   : > { %v12316_v31 = vmul.f32 %v16055_v20, %v12306_v54  ;;  %v12334_v54 = vld [vmem:[%s19292_s18 + $0x18] sm:$0xff] }
 0xc57   : > { %v18183_v61 = vpop.eup %18182  ;;  %v12317_v36 = vmul.f32 %v16055_v20, %v12307_v24  ;;  %v16064_v30 = vcombine.high %v12334_v54, %v12342_v15  ;;  %v16061_v24 = vcombine.low %v12333_v37, %v12341_v46 }
 0xc58   : > { %v12308_v38 = vmul.f32 %v18183_v61, %v21895_v55  ;;  %v21945_v35 = vadd.f32 %v16056_v2, %v12316_v31  ;;  %v12414_v55 = vld [vmem:[%s19292_s18 + $0x298] sm:$0xff]  ;;  %v16079_v61 = vcombine.low %v12350_v22, %v12358_v1  ;;  %v16062_v31 = vcombine.high %v12333_v37, %v12341_v46  ;;  %v12359_v37 = vld [vmem:[%s19292_s18 + $0xe0] sm:$0xff]  ;;  %v12352_v46 = vld [vmem:[%s19292_s18 + $0xa8] sm:$0xff] }
 0xc59   : > { %v16144_v43 = vcombine.high %v12414_v55, %v12422_v4  ;;  %v21965_v10 = vadd.f32 %v16056_v2, %v12317_v36  ;;  %v16143_v56 = vcombine.low %v12414_v55, %v12422_v4  ;;  %v12432_v55 = vld [vmem:[%s19292_s18 + $0x328] sm:$0xff] }
 0xc5a   : > { %v21949_v19 = vpack.c.bf16 %v21945_v35, %v21942_v53  ;;  %v12318_v42 = vmul.f32 %v16055_v20, %v12308_v38  ;;  %v16080_v20 = vcombine.high %v12350_v22, %v12358_v1  ;;  %v12447_v38 = vld [vmem:[%s19292_s18 + $0x3a0] sm:$0xff]  ;;  %v12440_v4 = vld [vmem:[%s19292_s18 + $0x368] sm:$0xff] }
 0xc5b   : > { %v16177_v36 = vcombine.low %v12447_v38, %v12455_v29  ;;  %v12376_v22 = vld [vmem:[%s19292_s18 + $0x168] sm:$0xff] }
 0xc5c   : > { %13216 = vmatmul.mubr.bf16.vlgmr.msra.gmra.mxu1 %v21949_v19  ;;  %13269 = vmatmul.mubr.bf16.vlgmr.msra.gmra.mxu0 %v21949_v19  ;;  %v21957_v62 = vadd.f32 %v16056_v2, %v12318_v42  ;;  %v16077_v2 = vcombine.low %v12349_v27, %v12357_v60  ;;  %v16063_v42 = vcombine.low %v12334_v54, %v12342_v15  ;;  %v12375_v27 = vld [vmem:[%s19292_s18 + $0x160] sm:$0xff]  ;;  %v12368_v60 = vld [vmem:[%s19292_s18 + $0x128] sm:$0xff] }
 0xc5d   : > { %13290 = vmatpush1.bf16.msra.mxu1 %v16173_v28  ;;  %13343 = vmatpush1.bf16.msra.mxu0 %v16175_v13  ;;  %v16110_v28 = vcombine.high %v12381_v40, %v12389_v59  ;;  %v16112_v13 = vcombine.high %v12382_v8, %v12390_v9  ;;  %v12407_v40 = vld [vmem:[%s19292_s18 + $0x260] sm:$0xff]  ;;  %v12400_v59 = vld [vmem:[%s19292_s18 + $0x228] sm:$0xff] }
 0xc5e   : > { %13291 = vmatprep.subr.bf16.mxu1 %v16158_v52  ;;  %13344 = vmatprep.subr.bf16.mxu0 %v16160_v58  ;;  %v21969_v63 = vpack.c.bf16 %v21957_v62, %v21965_v10  ;;  %v16178_v52 = vcombine.high %v12447_v38, %v12455_v29  ;;  %v16180_v58 = vcombine.high %v12448_v50, %v12456_v14  ;;  %v12408_v8 = vld [vmem:[%s19292_s18 + $0x268] sm:$0xff]  ;;  %v12343_v38 = vld [vmem:[%s19292_s18 + $0x60] sm:$0xff] }
 0xc5f   : > { %13225 = vmatprep.mubr.bf16.mxu1 %v23002_v6  ;;  %13278 = vmatprep.mubr.bf16.mxu0 %v23002_v6  ;;  %v12360_v54 = vld [vmem:[%s19292_s18 + $0xe8] sm:$0xff] }
 0xc60   : > { %v12336_v29 = vld [vmem:[%s19292_s18 + $0x28] sm:$0xff] }
 0xc61   : > { %13292 = vmatpush1.bf16.msra.mxu1 %v16157_v51  ;;  %13345 = vmatpush1.bf16.msra.mxu0 %v16159_v3  ;;  %v16179_v51 = vcombine.low %v12448_v50, %v12456_v14  ;;  %v16162_v3 = vcombine.high %v12431_v33, %v12439_v32  ;;  %v12344_v50 = vld [vmem:[%s19292_s18 + $0x68] sm:$0xff]  ;;  %v12457_v33 = vld [vmem:[%s19292_s18 + $0x3f0] sm:$0xff]  ;;  %v12450_v32 = vld [vmem:[%s19292_s18 + $0x3b8] sm:$0xff] }
 0xc62   : > { %13293 = vmatprep.subr.bf16.mxu1 %v16142_v7  ;;  %13346 = vmatprep.subr.bf16.mxu0 %v16144_v43  ;;  %v16164_v7 = vcombine.high %v12432_v55, %v12440_v4  ;;  %v12415_v43 = vld [vmem:[%s19292_s18 + $0x2a0] sm:$0xff] }
 0xc63   : > { %v16145_v9 = vcombine.low %v12415_v43, %v12423_v18 }
 0xc64   : > { %13226 = vmatmul.mubr.bf16.gmra.mxu1 %v21969_v63  ;;  %13279 = vmatmul.mubr.bf16.gmra.mxu0 %v21969_v63 }
 0xc65   : > { %13294 = vmatpush1.bf16.msra.mxu1 %v16141_v26  ;;  %13347 = vmatpush1.bf16.msra.mxu0 %v16143_v56  ;;  %v16163_v26 = vcombine.low %v12432_v55, %v12440_v4  ;;  %v16146_v56 = vcombine.high %v12415_v43, %v12423_v18  ;;  %v12458_v55 = vld [vmem:[%s19292_s18 + $0x3f8] sm:$0xff]  ;;  %v12441_v43 = vld [vmem:[%s19292_s18 + $0x370] sm:$0xff] }
 0xc66   : > { %13295 = vmatprep.subr.bf16.mxu1 %v16126_v11  ;;  %13348 = vmatprep.subr.bf16.mxu0 %v16128_v39  ;;  %v16148_v11 = vcombine.high %v12416_v0, %v12424_v45  ;;  %v12399_v39 = vld [vmem:[%s19292_s18 + $0x220] sm:$0xff]  ;;  %v12434_v18 = vld [vmem:[%s19292_s18 + $0x338] sm:$0xff] }
 0xc67   : > { %13321 = vmatprep.mubr.bf16.mxu1 %v23002_v6  ;;  %13374 = vmatprep.mubr.bf16.mxu0 %v23002_v6  ;;  %v16129_v48 = vcombine.low %v12399_v39, %v12407_v40 }
 0xc69   : > { %13296 = vmatpush1.bf16.msra.mxu1 %v16125_v44  ;;  %13349 = vmatpush1.bf16.msra.mxu0 %v16127_v12  ;;  %v16147_v44 = vcombine.low %v12416_v0, %v12424_v45  ;;  %v16130_v12 = vcombine.high %v12399_v39, %v12407_v40  ;;  %v12442_v0 = vld [vmem:[%s19292_s18 + $0x378] sm:$0xff]  ;;  %v12425_v39 = vld [vmem:[%s19292_s18 + $0x2f0] sm:$0xff] }
 0xc6a   : > { %13297 = vmatprep.subr.bf16.mxu1 %v16110_v28  ;;  %13350 = vmatprep.subr.bf16.mxu0 %v16112_v13  ;;  %v16132_v28 = vcombine.high %v12400_v59, %v12408_v8  ;;  %v12383_v13 = vld [vmem:[%s19292_s18 + $0x1a0] sm:$0xff]  ;;  %v12418_v40 = vld [vmem:[%s19292_s18 + $0x2b8] sm:$0xff] }
 0xc6b   : > { %v16113_v1 = vcombine.low %v12383_v13, %v12391_v5 }
 0xc6d   : > { %13298 = vmatpush1.bf16.msra.mxu1 %v16109_v21  ;;  %13351 = vmatpush1.bf16.msra.mxu0 %v16111_v17  ;;  %v16131_v21 = vcombine.low %v12400_v59, %v12408_v8  ;;  %v16114_v17 = vcombine.high %v12383_v13, %v12391_v5  ;;  %v12426_v59 = vld [vmem:[%s19292_s18 + $0x2f8] sm:$0xff]  ;;  %v12409_v13 = vld [vmem:[%s19292_s18 + $0x270] sm:$0xff] }
 0xc6e   : > { %13299 = vmatprep.subr.bf16.mxu1 %v16094_v25  ;;  %13352 = vmatprep.subr.bf16.mxu0 %v16096_v57  ;;  %v16116_v25 = vcombine.high %v12384_v34, %v12392_v47  ;;  %v12367_v57 = vld [vmem:[%s19292_s18 + $0x120] sm:$0xff]  ;;  %v12402_v5 = vld [vmem:[%s19292_s18 + $0x238] sm:$0xff] }
 0xc6f   : > { %v16097_v15 = vcombine.low %v12367_v57, %v12375_v27 }
 0xc71   : > { %13300 = vmatpush1.bf16.msra.mxu1 %v16093_v16  ;;  %13353 = vmatpush1.bf16.msra.mxu0 %v16095_v23  ;;  %v16115_v16 = vcombine.low %v12384_v34, %v12392_v47  ;;  %v16098_v23 = vcombine.high %v12367_v57, %v12375_v27  ;;  %v12410_v34 = vld [vmem:[%s19292_s18 + $0x278] sm:$0xff]  ;;  %v12393_v57 = vld [vmem:[%s19292_s18 + $0x1f0] sm:$0xff] }
 0xc72   : > { %13301 = vmatprep.subr.bf16.mxu1 %v16078_v49  ;;  %13354 = vmatprep.subr.bf16.mxu0 %v16080_v20  ;;  %v16100_v49 = vcombine.high %v12368_v60, %v12376_v22  ;;  %v12351_v20 = vld [vmem:[%s19292_s18 + $0xa0] sm:$0xff]  ;;  %v12386_v27 = vld [vmem:[%s19292_s18 + $0x1b8] sm:$0xff] }
 0xc73   : > { %v16081_v14 = vcombine.low %v12351_v20, %v12359_v37 }
 0xc75   : > { %13302 = vmatpush1.bf16.msra.mxu1 %v16077_v2  ;;  %13355 = vmatpush1.bf16.msra.mxu0 %v16079_v61  ;;  %v16099_v2 = vcombine.low %v12368_v60, %v12376_v22  ;;  %v16082_v61 = vcombine.high %v12351_v20, %v12359_v37  ;;  %v12394_v60 = vld [vmem:[%s19292_s18 + $0x1f8] sm:$0xff]  ;;  %v12377_v20 = vld [vmem:[%s19292_s18 + $0x170] sm:$0xff] }
 0xc76   : > { %13303 = vmatprep.subr.bf16.mxu1 %v16062_v31  ;;  %13356 = vmatprep.subr.bf16.mxu0 %v16064_v30  ;;  %v16084_v31 = vcombine.high %v12352_v46, %v12360_v54  ;;  %v12335_v30 = vld [vmem:[%s19292_s18 + $0x20] sm:$0xff]  ;;  %v12370_v37 = vld [vmem:[%s19292_s18 + $0x138] sm:$0xff] }
 0xc77   : > { %v16065_v4 = vcombine.low %v12335_v30, %v12343_v38 }
 0xc79   : > { %13304 = vmatpush1.bf16.msra.mxu1 %v16061_v24  ;;  %13357 = vmatpush1.bf16.msra.mxu0 %v16063_v42  ;;  %v16083_v24 = vcombine.low %v12352_v46, %v12360_v54  ;;  %v16066_v42 = vcombine.high %v12335_v30, %v12343_v38  ;;  %v12378_v46 = vld [vmem:[%s19292_s18 + $0x178] sm:$0xff]  ;;  %v12361_v30 = vld [vmem:[%s19292_s18 + $0xf0] sm:$0xff] }
 0xc7a   : > { %13395 = vmatprep.subr.bf16.mxu1 %v16178_v52  ;;  %13448 = vmatprep.subr.bf16.mxu0 %v16180_v58  ;;  %v16068_v52 = vcombine.high %v12336_v29, %v12344_v50  ;;  %v12449_v58 = vld [vmem:[%s19292_s18 + $0x3b0] sm:$0xff]  ;;  %v12354_v38 = vld [vmem:[%s19292_s18 + $0xb8] sm:$0xff] }
 0xc7b   : > { %v16181_v45 = vcombine.low %v12449_v58, %v12457_v33 }
 0xc7c   : > { %13322 = vmatmul.mubr.bf16.vlgmr.msra.gmra.mxu1 %v21949_v19  ;;  %13375 = vmatmul.mubr.bf16.vlgmr.msra.gmra.mxu0 %v21949_v19 }
 0xc7d   : > { %13396 = vmatpush1.bf16.msra.mxu1 %v16177_v36  ;;  %13449 = vmatpush1.bf16.msra.mxu0 %v16179_v51  ;;  %v16067_v36 = vcombine.low %v12336_v29, %v12344_v50  ;;  %v16182_v51 = vcombine.high %v12449_v58, %v12457_v33  ;;  %v12362_v29 = vld [vmem:[%s19292_s18 + $0xf8] sm:$0xff]  ;;  %v12345_v58 = vld [vmem:[%s19292_s18 + $0x70] sm:$0xff] }
 0xc7e   : > { %13397 = vmatprep.subr.bf16.mxu1 %v16162_v3  ;;  %13450 = vmatprep.subr.bf16.mxu0 %v16164_v7  ;;  %v16184_v3 = vcombine.high %v12450_v32, %v12458_v55  ;;  %v12433_v7 = vld [vmem:[%s19292_s18 + $0x330] sm:$0xff]  ;;  %v12338_v33 = vld [vmem:[%s19292_s18 + $0x38] sm:$0xff] }
 0xc7f   : > { %13331 = vmatprep.mubr.bf16.mxu1 %v23002_v6  ;;  %13384 = vmatprep.mubr.bf16.mxu0 %v23002_v6  ;;  %v16165_v8 = vcombine.low %v12433_v7, %v12441_v43 }
 0xc81   : > { %13398 = vmatpush1.bf16.msra.mxu1 %v16161_v41  ;;  %13451 = vmatpush1.bf16.msra.mxu0 %v16163_v26  ;;  %v16183_v41 = vcombine.low %v12450_v32, %v12458_v55  ;;  %v16166_v26 = vcombine.high %v12433_v7, %v12441_v43  ;;  %v12346_v32 = vld [vmem:[%s19292_s18 + $0x78] sm:$0xff] }
 0xc82   : > { %13399 = vmatprep.subr.bf16.mxu1 %v16146_v56  ;;  %13452 = vmatprep.subr.bf16.mxu0 %v16148_v11  ;;  %v16168_v56 = vcombine.high %v12434_v18, %v12442_v0  ;;  %v12417_v11 = vld [vmem:[%s19292_s18 + $0x2b0] sm:$0xff]  ;;  %v16071_v7 = vcombine.low %v12338_v33, %v12346_v32  ;;  %v17792_v43 = vld [vmem:[%s19301_s16 + $0x78] sm:$0xff]  }
 0xc83   : > { %v16149_v47 = vcombine.low %v12417_v11, %v12425_v39 }
 0xc84   : > { %13332 = vmatmul.mubr.bf16.gmra.mxu1 %v21969_v63  ;;  %13385 = vmatmul.mubr.bf16.gmra.mxu0 %v21969_v63 }
 0xc85   : > { %13400 = vmatpush1.bf16.msra.mxu1 %v16145_v9  ;;  %13453 = vmatpush1.bf16.msra.mxu0 %v16147_v44  ;;  %v16167_v9 = vcombine.low %v12434_v18, %v12442_v0  ;;  %v16150_v44 = vcombine.high %v12417_v11, %v12425_v39  ;;  %v17793_v18 = vld [vmem:[%s19301_s16 + $0xf8] sm:$0xff]   ;;  %v17799_v11 = vld [vmem:[%s19301_s16 + $0xb0] sm:$0xff]   ;;  %v17800_v39 = vld [vmem:[%s19301_s16 + $0x68] sm:$0xff]  }
 0xc86   : > { %13401 = vmatprep.subr.bf16.mxu1 %v16130_v12  ;;  %13454 = vmatprep.subr.bf16.mxu0 %v16132_v28  ;;  %v16152_v12 = vcombine.high %v12418_v40, %v12426_v59  ;;  %v12401_v28 = vld [vmem:[%s19292_s18 + $0x230] sm:$0xff]  ;;  %v17794_v0 = vld [vmem:[%s19301_s16 + $0x38] sm:$0xff]  }
 0xc87   : > { %13427 = vmatprep.mubr.bf16.mxu1 %v23002_v6  ;;  %13480 = vmatprep.mubr.bf16.mxu0 %v23002_v6  ;;  %v16133_v22 = vcombine.low %v12401_v28, %v12409_v13 }
 0xc89   : > { %13402 = vmatpush1.bf16.msra.mxu1 %v16129_v48  ;;  %13455 = vmatpush1.bf16.msra.mxu0 %v16131_v21  ;;  %v16151_v48 = vcombine.low %v12418_v40, %v12426_v59  ;;  %v16134_v21 = vcombine.high %v12401_v28, %v12409_v13  ;;  %v17801_v40 = vld [vmem:[%s19301_s16 + $0xe8] sm:$0xff]   ;;  %v17809_v28 = vld [vmem:[%s19301_s16 + $0xd8] sm:$0xff]  }
 0xc8a   : > { %13403 = vmatprep.subr.bf16.mxu1 %v16114_v17  ;;  %13456 = vmatprep.subr.bf16.mxu0 %v16116_v25  ;;  %v16136_v17 = vcombine.high %v12402_v5, %v12410_v34  ;;  %v12385_v25 = vld [vmem:[%s19292_s18 + $0x1b0] sm:$0xff]  ;;  %v17803_v59 = vld [vmem:[%s19301_s16 + $0xa8] sm:$0xff]   ;;  %v17810_v13 = vld [vmem:[%s19301_s16 + $0x18] sm:$0xff]  }
 0xc8b   : > { %v16117_v54 = vcombine.low %v12385_v25, %v12393_v57 }
 0xc8d   : > { %13404 = vmatpush1.bf16.msra.mxu1 %v16113_v1  ;;  %13457 = vmatpush1.bf16.msra.mxu0 %v16115_v16  ;;  %v16135_v1 = vcombine.low %v12402_v5, %v12410_v34  ;;  %v16118_v16 = vcombine.high %v12385_v25, %v12393_v57  ;;  %v17811_v5 = vld [vmem:[%s19301_s16 + $0x98] sm:$0xff]   ;;  %v17813_v34 = vld [vmem:[%s19301_s16 + $0xd0] sm:$0xff]   ;;  %v17818_v25 = vld [vmem:[%s19301_s16 + $0x8] sm:$0xff]  }
 0xc8e   : > { %13405 = vmatprep.subr.bf16.mxu1 %v16098_v23  ;;  %13458 = vmatprep.subr.bf16.mxu0 %v16100_v49  ;;  %v16120_v23 = vcombine.high %v12386_v27, %v12394_v60  ;;  %v12369_v49 = vld [vmem:[%s19292_s18 + $0x130] sm:$0xff]  ;;  %v17819_v57 = vld [vmem:[%s19301_s16 + $0x88] sm:$0xff]  }
 0xc8f   : > { %v16101_v50 = vcombine.low %v12369_v49, %v12377_v20 }
 0xc91   : > { %13406 = vmatpush1.bf16.msra.mxu1 %v16097_v15  ;;  %13459 = vmatpush1.bf16.msra.mxu0 %v16099_v2  ;;  %v16119_v15 = vcombine.low %v12386_v27, %v12394_v60  ;;  %v16102_v2 = vcombine.high %v12369_v49, %v12377_v20  ;;  %v17820_v27 = vld [vmem:[%s19301_s16 + $0x40] sm:$0xff]   ;;  %v23011_v49 = vld [vmem:[#allocation41_spill] sm:$0xff] }
 0xc92   : > { %13407 = vmatprep.subr.bf16.mxu1 %v16082_v61  ;;  %13460 = vmatprep.subr.bf16.mxu0 %v16084_v31  ;;  %v16104_v61 = vcombine.high %v12370_v37, %v12378_v46  ;;  %v12353_v31 = vld [vmem:[%s19292_s18 + $0xb0] sm:$0xff]  ;;  %v17821_v60 = vld [vmem:[%s19301_s16 + $0xc0] sm:$0xff]   ;;  %v12477_v20 = vsub.s32 3, %v23011_v49 }
 0xc93   : > { %v16085_v55 = vcombine.low %v12353_v31, %v12361_v30 }
 0xc95   : > { %13408 = vmatpush1.bf16.msra.mxu1 %v16081_v14  ;;  %13461 = vmatpush1.bf16.msra.mxu0 %v16083_v24  ;;  %v16103_v14 = vcombine.low %v12370_v37, %v12378_v46  ;;  %v16086_v24 = vcombine.high %v12353_v31, %v12361_v30  ;;  %v22113_v37 = vld [vmem:[%s19295_s21] sm:$0xff] }
 0xc96   : > { %13409 = vmatprep.subr.bf16.mxu1 %v16066_v42  ;;  %13462 = vmatprep.subr.bf16.mxu0 %v16068_v52  ;;  %v16088_v42 = vcombine.high %v12354_v38, %v12362_v29  ;;  %v12337_v52 = vld [vmem:[%s19292_s18 + $0x30] sm:$0xff] }
 0xc97   : > { %v23013_v31 = vld [vmem:[#allocation42_spill] sm:$0xff] }
 0xc98   : > { %v12466_v30 = vrot.slane %v22113_v37, %v23013_v31 }
 0xc99   : > { %13410 = vmatpush1.bf16.msra.mxu1 %v16065_v4  ;;  %13463 = vmatpush1.bf16.msra.mxu0 %v16067_v36  ;;  %v16087_v4 = vcombine.low %v12354_v38, %v12362_v29  ;;  %v16070_v36 = vcombine.high %v12337_v52, %v12345_v58  ;;  %v23014_v38 = vld [vmem:[#allocation44_spill] sm:$0xff] }
 0xc9a   : > { %13501 = vmatprep.subr.bf16.mxu1 %v16182_v51  ;;  %13554 = vmatprep.subr.bf16.mxu0 %v16184_v3  ;;  %v16072_v51 = vcombine.high %v12338_v33, %v12346_v32  ;;  %v16069_v3 = vcombine.low %v12337_v52, %v12345_v58  ;;  %v12474_v29 = vrot.slane %v22113_v37, %v23014_v38 }
 0xc9c   : > { %13428 = vmatmul.mubr.bf16.vlgmr.msra.gmra.mxu1 %v21949_v19  ;;  %13481 = vmatmul.mubr.bf16.vlgmr.msra.gmra.mxu0 %v21949_v19 }
 0xc9d   : > { %13502 = vmatpush1.bf16.msra.mxu1 %v16181_v45  ;;  %13555 = vmatpush1.bf16.msra.mxu0 %v16183_v41  ;;  %v17795_v45 = vld [vmem:[%s19301_s16 + $0xb8] sm:$0xff]   ;;  %v17796_v41 = vld [vmem:[%s19301_s16 + $0x70] sm:$0xff]  }
 0xc9e   : > { %13503 = vmatprep.subr.bf16.mxu1 %v16166_v26  ;;  %13556 = vmatprep.subr.bf16.mxu0 %v16168_v56  ;;  %v17797_v26 = vld [vmem:[%s19301_s16 + $0xf0] sm:$0xff]  }
 0xc9f   : > { %13437 = vmatprep.mubr.bf16.mxu1 %v23002_v6  ;;  %13490 = vmatprep.mubr.bf16.mxu0 %v23002_v6  ;;  %v17798_v56 = vld [vmem:[%s19301_s16 + $0x30] sm:$0xff]  }
 0xca1   : > { %13504 = vmatpush1.bf16.msra.mxu1 %v16165_v8  ;;  %13557 = vmatpush1.bf16.msra.mxu0 %v16167_v9  ;;  %v17805_v8 = vld [vmem:[%s19301_s16 + $0xe0] sm:$0xff]  }
 0xca2   : > { %13505 = vmatprep.subr.bf16.mxu1 %v16150_v44  ;;  %13558 = vmatprep.subr.bf16.mxu0 %v16152_v12  ;;  %v17806_v9 = vld [vmem:[%s19301_s16 + $0x20] sm:$0xff]   ;;  %v17808_v12 = vld [vmem:[%s19301_s16 + $0x58] sm:$0xff]  }
 0xca3   : > { %v17807_v44 = vld [vmem:[%s19301_s16 + $0xa0] sm:$0xff]  }
 0xca4   : > { %13438 = vmatmul.mubr.bf16.gmra.mxu1 %v21969_v63  ;;  %13491 = vmatmul.mubr.bf16.gmra.mxu0 %v21969_v63 }
 0xca5   : > { %13506 = vmatpush1.bf16.msra.mxu1 %v16149_v47  ;;  %13559 = vmatpush1.bf16.msra.mxu0 %v16151_v48  ;;  %v17814_v47 = vld [vmem:[%s19301_s16 + $0x10] sm:$0xff]  }
 0xca6   : > { %13507 = vmatprep.subr.bf16.mxu1 %v16134_v21  ;;  %13560 = vmatprep.subr.bf16.mxu0 %v16136_v17  ;;  %v17815_v48 = vld [vmem:[%s19301_s16 + $0x90] sm:$0xff]   ;;  %v17816_v21 = vld [vmem:[%s19301_s16 + $0x48] sm:$0xff]  }
 0xca7   : > { %13533 = vmatprep.mubr.bf16.mxu1 %v23002_v6  ;;  %13586 = vmatprep.mubr.bf16.mxu0 %v23002_v6  ;;  %v17817_v17 = vld [vmem:[%s19301_s16 + $0xc8] sm:$0xff]  }
 0xca9   : > { %13508 = vmatpush1.bf16.msra.mxu1 %v16133_v22  ;;  %13561 = vmatpush1.bf16.msra.mxu0 %v16135_v1  ;;  %v17822_v22 = vld [vmem:[%s19301_s16] sm:$0xff]  }
 0xcaa   : > { %13509 = vmatprep.subr.bf16.mxu1 %v16118_v16  ;;  %13562 = vmatprep.subr.bf16.mxu0 %v16120_v23  ;;  %v17823_v1 = vld [vmem:[%s19301_s16 + $0x80] sm:$0xff]   ;;  %v17824_v16 = vld [vmem:[%s19301_s16 + $0x178] sm:$0xff]  }
 0xcab   : > { %v17825_v23 = vld [vmem:[%s19301_s16 + $0x1f8] sm:$0xff]  }
 0xcad   : > { %13510 = vmatpush1.bf16.msra.mxu1 %v16117_v54  ;;  %13563 = vmatpush1.bf16.msra.mxu0 %v16119_v15  ;;  %v23012_v15 = vld [vmem:[#allocation43_spill] sm:$0xff] }
 0xcae   : > { %13511 = vmatprep.subr.bf16.mxu1 %v16102_v2  ;;  %13564 = vmatprep.subr.bf16.mxu0 %v16104_v61  ;;  %v12470_v2 = vrot.slane %v22113_v37, %v23012_v15  ;;  %v12478_v61 = vrot.slane %v22113_v37, %v12477_v20 }
 0xcb1   : > { %13512 = vmatpush1.bf16.msra.mxu1 %v16101_v50  ;;  %13565 = vmatpush1.bf16.msra.mxu0 %v16103_v14 }
 0xcb2   : > { %13513 = vmatprep.subr.bf16.mxu1 %v16086_v24  ;;  %13566 = vmatprep.subr.bf16.mxu0 %v16088_v42 }
 0xcb5   : > { %13514 = vmatpush1.bf16.msra.mxu1 %v16085_v55  ;;  %13567 = vmatpush1.bf16.msra.mxu0 %v16087_v4 }
 0xcb6   : > { %13515 = vmatprep.subr.bf16.mxu1 %v16070_v36  ;;  %13568 = vmatprep.subr.bf16.mxu0 %v16072_v51 }
 0xcb9   : > { %13516 = vmatpush1.bf16.msra.mxu1 %v16069_v3  ;;  %13569 = vmatpush1.bf16.msra.mxu0 %v16071_v7 }
 0xcba   : > { %16600 = vmatprep.subr.bf16.mxu1 %v17792_v43  ;;  %16628 = vmatprep.subr.bf16.mxu0 %v17793_v18 }
 0xcbc   : > { %13534 = vmatmul.mubr.bf16.vlgmr.msra.gmra.mxu1 %v21949_v19  ;;  %13587 = vmatmul.mubr.bf16.vlgmr.msra.gmra.mxu0 %v21949_v19  ;;  %v17802_v19 = vld [vmem:[%s19301_s16 + $0x28] sm:$0xff]  }
 0xcbd   : > { %13543 = vmatprep.mubr.bf16.mxu1 %v23002_v6  ;;  %13596 = vmatprep.mubr.bf16.mxu0 %v23002_v6  ;;  %v17804_v6 = vld [vmem:[%s19301_s16 + $0x60] sm:$0xff]  }
 0xcbe   : > { %16601 = vmatpush3.bf16.msra.mxu1 %v17794_v0  ;;  %16629 = vmatpush3.bf16.msra.mxu0 %v17795_v45 }
 0xcbf   : > { %16602 = vmatprep.subr.bf16.mxu1 %v17796_v41  ;;  %16630 = vmatprep.subr.bf16.mxu0 %v17797_v26 }
 0xcc2   : > { %16603 = vmatpush3.bf16.msra.mxu1 %v17798_v56  ;;  %16631 = vmatpush3.bf16.msra.mxu0 %v17799_v11 }
 0xcc3   : > { %16604 = vmatprep.subr.bf16.mxu1 %v17800_v39  ;;  %16632 = vmatprep.subr.bf16.mxu0 %v17801_v40 }
 0xcc4   : > { %13544 = vmatmul.mubr.bf16.gmra.mxu1 %v21969_v63  ;;  %13597 = vmatmul.mubr.bf16.gmra.mxu0 %v21969_v63  ;;  %v17812_v63 = vld [vmem:[%s19301_s16 + $0x50] sm:$0xff]  }
 0xcc6   : > { %16605 = vmatpush3.bf16.msra.mxu1 %v17802_v19  ;;  %16633 = vmatpush3.bf16.msra.mxu0 %v17803_v59 }
 0xcc7   : > { %16606 = vmatprep.subr.bf16.mxu1 %v17804_v6  ;;  %16634 = vmatprep.subr.bf16.mxu0 %v17805_v8 }
 0xcca   : > { %16607 = vmatpush3.bf16.msra.mxu1 %v17806_v9  ;;  %16635 = vmatpush3.bf16.msra.mxu0 %v17807_v44  ;;  %v17826_v9 = vld [vmem:[%s19301_s16 + $0x138] sm:$0xff]  }
 0xccb   : > { %16608 = vmatprep.subr.bf16.mxu1 %v17808_v12  ;;  %16636 = vmatprep.subr.bf16.mxu0 %v17809_v28  ;;  %v17827_v44 = vld [vmem:[%s19301_s16 + $0x1b8] sm:$0xff]  }
 0xcce   : > { %16609 = vmatpush3.bf16.msra.mxu1 %v17810_v13  ;;  %16637 = vmatpush3.bf16.msra.mxu0 %v17811_v5 }
 0xccf   : > { %16610 = vmatprep.subr.bf16.mxu1 %v17812_v63  ;;  %16638 = vmatprep.subr.bf16.mxu0 %v17813_v34  ;;  %v17828_v34 = vld [vmem:[%s19301_s16 + $0x170] sm:$0xff]  }
 0xcd2   : > { %16611 = vmatpush3.bf16.msra.mxu1 %v17814_v47  ;;  %16639 = vmatpush3.bf16.msra.mxu0 %v17815_v48  ;;  %v17829_v47 = vld [vmem:[%s19301_s16 + $0x1f0] sm:$0xff]  }
 0xcd3   : > { %16612 = vmatprep.subr.bf16.mxu1 %v17816_v21  ;;  %16640 = vmatprep.subr.bf16.mxu0 %v17817_v17 }
 0xcd6   : > { %16613 = vmatpush3.bf16.msra.mxu1 %v17818_v25  ;;  %16641 = vmatpush3.bf16.msra.mxu0 %v17819_v57 }
 0xcd7   : > { %16614 = vmatprep.subr.bf16.mxu1 %v17820_v27  ;;  %16642 = vmatprep.subr.bf16.mxu0 %v17821_v60 }
 0xcda   : > { %16615 = vmatpush3.bf16.msra.mxu1 %v17822_v22  ;;  %16643 = vmatpush3.bf16.msra.mxu0 %v17823_v1 }
 0xcdb   : > { %16656 = vmatprep.subr.bf16.mxu1 %v17824_v16  ;;  %16684 = vmatprep.subr.bf16.mxu0 %v17825_v23  ;;  %v17830_v16 = vld [vmem:[%s19301_s16 + $0x130] sm:$0xff]  }
 0xcdc   : > { %v17831_v23 = vld [vmem:[%s19301_s16 + $0x1b0] sm:$0xff]  }
 0xd1c   : > { %v13217_v46 = vpop.f32.mrf.mxu1  ;;  %v13270_v54 = vpop.f32.mrf.mxu0 }
 0xd1d   : > { %v13218_v55 = vadd.f32 %v13217_v46, %v12466_v30  ;;  %v13271_v4 = vadd.f32 %v13270_v54, %v12474_v29 }
 0xd1e   : > { %v13219_v50 = vpop.f32.mrf.mxu1  ;;  %v13272_v14 = vpop.f32.mrf.mxu0 }
 0xd1f   : > { %v13220_v52 = vadd.f32 %v13219_v50, %v12470_v2  ;;  %v13273_v58 = vadd.f32 %v13272_v14, %v12478_v61  ;;  %v13607_v39 = vmax.f32 %v13218_v55, 0.0  ;;  %v13609_v40 = vmax.f32 %v13271_v4, 0.0  ;;  %v17833_v50 = vld [vmem:[%s19301_s16 + $0x1e8] sm:$0xff]  }
 0xd20   : > { %v13221_v24 = vpop.f32.mrf.mxu1  ;;  %v13274_v42 = vpop.f32.mrf.mxu0 }
 0xd21   : > { %v13222_v33 = vadd.f32 %v13221_v24, %v12466_v30  ;;  %v13275_v32 = vadd.f32 %v13274_v42, %v12474_v29  ;;  %v13608_v41 = vmax.f32 %v13220_v52, 0.0  ;;  %v13610_v26 = vmax.f32 %v13273_v58, 0.0 }
 0xd22   : > { %v13223_v36 = vpop.f32.mrf.mxu1  ;;  %v13276_v51 = vpop.f32.mrf.mxu0 }
 0xd23   : > { %v13224_v3 = vadd.f32 %v13223_v36, %v12470_v2  ;;  %v13277_v7 = vadd.f32 %v13276_v51, %v12478_v61  ;;  %v13623_v43 = vmax.f32 %v13222_v33, 0.0  ;;  %v13625_v18 = vmax.f32 %v13275_v32, 0.0  ;;  %v17834_v33 = vld [vmem:[%s19301_s16 + $0x128] sm:$0xff]   ;;  %v17836_v36 = vld [vmem:[%s19301_s16 + $0x160] sm:$0xff]  }
 0xd24   : > { %v13227_v0 = vpop.f32.mrf.mxu1  ;;  %v13280_v45 = vpop.f32.mrf.mxu0  ;;  %v17835_v32 = vld [vmem:[%s19301_s16 + $0x1a8] sm:$0xff]   ;;  %v17837_v51 = vld [vmem:[%s19301_s16 + $0x1e0] sm:$0xff]  }
 0xd25   : > { %v13624_v56 = vmax.f32 %v13224_v3, 0.0  ;;  %v13626_v11 = vmax.f32 %v13277_v7, 0.0  ;;  %v13671_v12 = vpack.c.bf16 %v13623_v43, %v13607_v39  ;;  %v13673_v28 = vpack.c.bf16 %v13625_v18, %v13609_v40  ;;  %v17838_v3 = vld [vmem:[%s19301_s16 + $0x120] sm:$0xff]   ;;  %v17840_v43 = vld [vmem:[%s19301_s16 + $0x158] sm:$0xff]  }
 0xd26   : > { %v13229_v19 = vpop.f32.mrf.mxu1  ;;  %v13282_v59 = vpop.f32.mrf.mxu0  ;;  %v13228_v25 = vadd.f32 %v13227_v0, %v12466_v30  ;;  %v13281_v57 = vadd.f32 %v13280_v45, %v12474_v29  ;;  %v17839_v7 = vld [vmem:[%s19301_s16 + $0x1a0] sm:$0xff]   ;;  %v17841_v18 = vld [vmem:[%s19301_s16 + $0x1d8] sm:$0xff]   ;;  %v12481_v39 = vsub.s32 4, %v23011_v49  ;;  %v12489_v40 = vsub.s32 6, %v23011_v49 }
 0xd27   : > { %v13672_v6 = vpack.c.bf16 %v13624_v56, %v13608_v41  ;;  %v13674_v8 = vpack.c.bf16 %v13626_v11, %v13610_v26  ;;  %v13230_v13 = vadd.f32 %v13229_v19, %v12470_v2  ;;  %v13283_v48 = vadd.f32 %v13282_v59, %v12478_v61  ;;  %v17842_v0 = vld [vmem:[%s19301_s16 + $0x118] sm:$0xff]   ;;  %v17844_v41 = vld [vmem:[%s19301_s16 + $0x150] sm:$0xff]  }
 0xd28   : > { %v13231_v5 = vpop.f32.mrf.mxu1  ;;  %v13284_v63 = vpop.f32.mrf.mxu0  ;;  %v17843_v45 = vld [vmem:[%s19301_s16 + $0x198] sm:$0xff]   ;;  %v17845_v26 = vld [vmem:[%s19301_s16 + $0x1d0] sm:$0xff]   ;;  %v12485_v56 = vsub.s32 5, %v23011_v49  ;;  %v12493_v11 = vsub.s32 7, %v23011_v49 }
 0xd29   : > { %v13232_v21 = vadd.f32 %v13231_v5, %v12466_v30  ;;  %v13285_v17 = vadd.f32 %v13284_v63, %v12474_v29  ;;  %14766 = vmatprep.mubr.bf16.mxu1 %v13672_v6  ;;  %14815 = vmatprep.mubr.bf16.mxu0 %v13674_v8  ;;  %v17832_v30 = vld [vmem:[%s19301_s16 + $0x168] sm:$0xff]   ;;  %v13640_v29 = vmax.f32 %v13230_v13, 0.0  ;;  %v13642_v14 = vmax.f32 %v13283_v48, 0.0  ;;  %v17846_v19 = vld [vmem:[%s19301_s16 + $0x110] sm:$0xff]  }
 0xd2a   : > { %v13233_v27 = vpop.f32.mrf.mxu1  ;;  %v13286_v60 = vpop.f32.mrf.mxu0  ;;  %14767 = vmatmul.mubr.bf16.vlgmr.msra.gmra.mxu1 %v13671_v12  ;;  %14816 = vmatmul.mubr.bf16.vlgmr.msra.gmra.mxu0 %v13673_v28  ;;  %v17847_v59 = vld [vmem:[%s19301_s16 + $0x190] sm:$0xff]   ;;  %v22155_v12 = vrot.slane %v22113_v37, %v12485_v56  ;;  %v22160_v28 = vrot.slane %v22113_v37, %v12493_v11  ;;  %v22165_v13 = vrot.slane %v22113_v37, %v12481_v39  ;;  %v17851_v48 = vld [vmem:[%s19301_s16 + $0x188] sm:$0xff]  }
 0xd2b   : > { %v13234_v22 = vadd.f32 %v13233_v27, %v12470_v2  ;;  %v13287_v1 = vadd.f32 %v13286_v60, %v12478_v61  ;;  %16657 = vmatpush3.bf16.msra.mxu1 %v17826_v9  ;;  %16685 = vmatpush3.bf16.msra.mxu0 %v17827_v44  ;;  %v13655_v46 = vmax.f32 %v13232_v21, 0.0  ;;  %v13657_v54 = vmax.f32 %v13285_v17, 0.0  ;;  %v17848_v9 = vld [vmem:[%s19301_s16 + $0x148] sm:$0xff]  }
 0xd2c   : > { %16658 = vmatprep.subr.bf16.mxu1 %v17828_v34  ;;  %16686 = vmatprep.subr.bf16.mxu0 %v17829_v47  ;;  %v13639_v2 = vmax.f32 %v13228_v25, 0.0  ;;  %v13641_v61 = vmax.f32 %v13281_v57, 0.0  ;;  %v17849_v44 = vld [vmem:[%s19301_s16 + $0x1c8] sm:$0xff]   ;;  %v22170_v5 = vrot.slane %v22113_v37, %v12489_v40  ;;  %v17852_v25 = vld [vmem:[%s19301_s16 + $0x140] sm:$0xff]  }
 0xd2d   : > { %v13656_v24 = vmax.f32 %v13234_v22, 0.0  ;;  %v13658_v42 = vmax.f32 %v13287_v1, 0.0  ;;  %v17850_v47 = vld [vmem:[%s19301_s16 + $0x108] sm:$0xff]   ;;  %v17853_v57 = vld [vmem:[%s19301_s16 + $0x1c0] sm:$0xff]  }
 0xd2e   : > { %v13687_v55 = vpack.c.bf16 %v13655_v46, %v13639_v2  ;;  %v13689_v4 = vpack.c.bf16 %v13657_v54, %v13641_v61  ;;  %v17855_v2 = vld [vmem:[%s19301_s16 + $0x180] sm:$0xff]   ;;  %v17856_v61 = vld [vmem:[%s19301_s16 + $0x278] sm:$0xff]  }
 0xd2f   : > { %v13688_v52 = vpack.c.bf16 %v13656_v24, %v13640_v29  ;;  %v13690_v58 = vpack.c.bf16 %v13658_v42, %v13642_v14  ;;  %16659 = vmatpush3.bf16.msra.mxu1 %v17830_v16  ;;  %16687 = vmatpush3.bf16.msra.mxu0 %v17831_v23 }
 0xd30   : > { %16660 = vmatprep.subr.bf16.mxu1 %v17832_v30  ;;  %16688 = vmatprep.subr.bf16.mxu0 %v17833_v50  ;;  %v17854_v50 = vld [vmem:[%s19301_s16 + $0x100] sm:$0xff]  }
 0xd31   : > { %14774 = vmatprep.mubr.bf16.mxu1 %v13688_v52  ;;  %14823 = vmatprep.mubr.bf16.mxu0 %v13690_v58 }
 0xd32   : > { %14775 = vmatmul.mubr.bf16.gmra.mxu1 %v13687_v55  ;;  %14824 = vmatmul.mubr.bf16.gmra.mxu0 %v13689_v4 }
 0xd33   : > { %16661 = vmatpush3.bf16.msra.mxu1 %v17834_v33  ;;  %16689 = vmatpush3.bf16.msra.mxu0 %v17835_v32 }
 0xd34   : > { %16662 = vmatprep.subr.bf16.mxu1 %v17836_v36  ;;  %16690 = vmatprep.subr.bf16.mxu0 %v17837_v51 }
 0xd37   : > { %16663 = vmatpush3.bf16.msra.mxu1 %v17838_v3  ;;  %16691 = vmatpush3.bf16.msra.mxu0 %v17839_v7  ;;  %v17857_v3 = vld [vmem:[%s19301_s16 + $0x2f8] sm:$0xff]  }
 0xd38   : > { %16664 = vmatprep.subr.bf16.mxu1 %v17840_v43  ;;  %16692 = vmatprep.subr.bf16.mxu0 %v17841_v18  ;;  %v17858_v18 = vld [vmem:[%s19301_s16 + $0x238] sm:$0xff]  }
 0xd3b   : > { %16665 = vmatpush3.bf16.msra.mxu1 %v17842_v0  ;;  %16693 = vmatpush3.bf16.msra.mxu0 %v17843_v45 }
 0xd3c   : > { %v13323_v6 = vpop.f32.mrf.mxu1  ;;  %v13376_v8 = vpop.f32.mrf.mxu0  ;;  %16666 = vmatprep.subr.bf16.mxu1 %v17844_v41  ;;  %16694 = vmatprep.subr.bf16.mxu0 %v17845_v26 }
 0xd3d   : > { %v13324_v1 = vadd.f32 %v13323_v6, %v22165_v13  ;;  %v13377_v16 = vadd.f32 %v13376_v8, %v22170_v5  ;;  %v17860_v6 = vld [vmem:[%s19301_s16 + $0x270] sm:$0xff]  }
 0xd3e   : > { %v13325_v63 = vpop.f32.mrf.mxu1  ;;  %v13378_v34 = vpop.f32.mrf.mxu0 }
 0xd3f   : > { %16667 = vmatpush3.bf16.msra.mxu1 %v17846_v19  ;;  %16695 = vmatpush3.bf16.msra.mxu0 %v17847_v59  ;;  %v13326_v27 = vadd.f32 %v13325_v63, %v22155_v12  ;;  %v13379_v60 = vadd.f32 %v13378_v34, %v22160_v28  ;;  %v13611_v55 = vmax.f32 %v13324_v1, 0.0  ;;  %v13613_v4 = vmax.f32 %v13377_v16, 0.0  ;;  %v17859_v59 = vld [vmem:[%s19301_s16 + $0x2b8] sm:$0xff]   ;;  %v17861_v63 = vld [vmem:[%s19301_s16 + $0x2f0] sm:$0xff]  }
 0xd40   : > { %v13327_v21 = vpop.f32.mrf.mxu1  ;;  %v13380_v17 = vpop.f32.mrf.mxu0  ;;  %16668 = vmatprep.subr.bf16.mxu1 %v17848_v9  ;;  %16696 = vmatprep.subr.bf16.mxu0 %v17849_v44 }
 0xd41   : > { %v13328_v37 = vadd.f32 %v13327_v21, %v22165_v13  ;;  %v13381_v22 = vadd.f32 %v13380_v17, %v22170_v5  ;;  %v13612_v52 = vmax.f32 %v13326_v27, 0.0  ;;  %v13614_v58 = vmax.f32 %v13379_v60, 0.0 }
 0xd42   : > { %v13329_v23 = vpop.f32.mrf.mxu1  ;;  %v13382_v46 = vpop.f32.mrf.mxu0 }
 0xd43   : > { %v13330_v54 = vadd.f32 %v13329_v23, %v22155_v12  ;;  %v13383_v30 = vadd.f32 %v13382_v46, %v22160_v28  ;;  %16669 = vmatpush3.bf16.msra.mxu1 %v17850_v47  ;;  %16697 = vmatpush3.bf16.msra.mxu0 %v17851_v48  ;;  %v13627_v29 = vmax.f32 %v13328_v37, 0.0  ;;  %v13629_v14 = vmax.f32 %v13381_v22, 0.0  ;;  %v17864_v37 = vld [vmem:[%s19301_s16 + $0x268] sm:$0xff]  }
 0xd44   : > { %v13333_v24 = vpop.f32.mrf.mxu1  ;;  %v13386_v42 = vpop.f32.mrf.mxu0  ;;  %16670 = vmatprep.subr.bf16.mxu1 %v17852_v25  ;;  %16698 = vmatprep.subr.bf16.mxu0 %v17853_v57  ;;  %v17862_v57 = vld [vmem:[%s19301_s16 + $0x230] sm:$0xff]  }
 0xd45   : > { %v13628_v33 = vmax.f32 %v13330_v54, 0.0  ;;  %v13630_v32 = vmax.f32 %v13383_v30, 0.0  ;;  %v13675_v0 = vpack.c.bf16 %v13627_v29, %v13611_v55  ;;  %v13677_v45 = vpack.c.bf16 %v13629_v14, %v13613_v4  ;;  %v17866_v30 = vld [vmem:[%s19301_s16 + $0x228] sm:$0xff]   ;;  %v17868_v14 = vld [vmem:[%s19301_s16 + $0x260] sm:$0xff]   ;;  %v17876_v55 = vld [vmem:[%s19301_s16 + $0x250] sm:$0xff]  }
 0xd46   : > { %v13335_v36 = vpop.f32.mrf.mxu1  ;;  %v13388_v51 = vpop.f32.mrf.mxu0  ;;  %v13334_v34 = vadd.f32 %v13333_v24, %v22165_v13  ;;  %v13387_v21 = vadd.f32 %v13386_v42, %v22170_v5  ;;  %v17867_v29 = vld [vmem:[%s19301_s16 + $0x2a8] sm:$0xff]   ;;  %v17869_v42 = vld [vmem:[%s19301_s16 + $0x2e0] sm:$0xff]   ;;  %v17877_v4 = vld [vmem:[%s19301_s16 + $0x2d0] sm:$0xff]  }
 0xd47   : > { %v13676_v7 = vpack.c.bf16 %v13628_v33, %v13612_v52  ;;  %v13678_v43 = vpack.c.bf16 %v13630_v32, %v13614_v58  ;;  %16671 = vmatpush3.bf16.msra.mxu1 %v17854_v50  ;;  %v13336_v41 = vadd.f32 %v13335_v36, %v22155_v12  ;;  %16699 = vmatpush3.bf16.msra.mxu0 %v17855_v2  ;;  %v17870_v2 = vld [vmem:[%s19301_s16 + $0x220] sm:$0xff]   ;;  %v17872_v52 = vld [vmem:[%s19301_s16 + $0x258] sm:$0xff]  }
 0xd48   : > { %v13337_v26 = vpop.f32.mrf.mxu1  ;;  %v13390_v19 = vpop.f32.mrf.mxu0  ;;  %16712 = vmatprep.subr.bf16.mxu1 %v17856_v61  ;;  %v13389_v8 = vadd.f32 %v13388_v51, %v22160_v28  ;;  %16740 = vmatprep.subr.bf16.mxu0 %v17857_v3  ;;  %v13645_v23 = vmax.f32 %v13387_v21, 0.0  ;;  %v17871_v61 = vld [vmem:[%s19301_s16 + $0x2a0] sm:$0xff]   ;;  %v17873_v58 = vld [vmem:[%s19301_s16 + $0x2d8] sm:$0xff]   ;;  %v17878_v51 = vld [vmem:[%s19301_s16 + $0x210] sm:$0xff]  }
 0xd49   : > { %v13338_v9 = vadd.f32 %v13337_v26, %v22165_v13  ;;  %v13391_v44 = vadd.f32 %v13390_v19, %v22170_v5  ;;  %14864 = vmatprep.mubr.bf16.mxu1 %v13676_v7  ;;  %14913 = vmatprep.mubr.bf16.mxu0 %v13678_v43  ;;  %v13644_v27 = vmax.f32 %v13336_v41, 0.0  ;;  %v17863_v13 = vld [vmem:[%s19301_s16 + $0x2b0] sm:$0xff]   ;;  %v17874_v33 = vld [vmem:[%s19301_s16 + $0x218] sm:$0xff]   ;;  %v17881_v41 = vld [vmem:[%s19301_s16 + $0x2c8] sm:$0xff]  }
 0xd4a   : > { %v13339_v47 = vpop.f32.mrf.mxu1  ;;  %v13392_v48 = vpop.f32.mrf.mxu0  ;;  %14865 = vmatmul.mubr.bf16.vlgmr.msra.gmra.mxu1 %v13675_v0  ;;  %14914 = vmatmul.mubr.bf16.vlgmr.msra.gmra.mxu0 %v13677_v45  ;;  %v13646_v22 = vmax.f32 %v13389_v8, 0.0  ;;  %v17875_v32 = vld [vmem:[%s19301_s16 + $0x298] sm:$0xff]   ;;  %v17879_v43 = vld [vmem:[%s19301_s16 + $0x290] sm:$0xff]  }
 0xd4b   : > { %v13340_v17 = vadd.f32 %v13339_v47, %v22155_v12  ;;  %v13393_v25 = vadd.f32 %v13392_v48, %v22160_v28  ;;  %16713 = vmatpush3.bf16.msra.mxu1 %v17858_v18  ;;  %v13659_v60 = vmax.f32 %v13338_v9, 0.0  ;;  %16741 = vmatpush3.bf16.msra.mxu0 %v17859_v59  ;;  %v13661_v1 = vmax.f32 %v13391_v44, 0.0  ;;  %v17865_v28 = vld [vmem:[%s19301_s16 + $0x2e8] sm:$0xff]   ;;  %v17884_v44 = vld [vmem:[%s19301_s16 + $0x240] sm:$0xff]  }
 0xd4c   : > { %16714 = vmatprep.subr.bf16.mxu1 %v17860_v6  ;;  %16742 = vmatprep.subr.bf16.mxu0 %v17861_v63  ;;  %v13643_v12 = vmax.f32 %v13334_v34, 0.0  ;;  %v22217_v36 = vld [vmem:[%s19295_s21 + $0x8] sm:$0xff]  ;;  %v17885_v47 = vld [vmem:[%s19301_s16 + $0x2c0] sm:$0xff]  }
 0xd4d   : > { %v13660_v5 = vmax.f32 %v13340_v17, 0.0  ;;  %v13662_v16 = vmax.f32 %v13393_v25, 0.0  ;;  %v13693_v24 = vpack.c.bf16 %v13661_v1, %v13645_v23  ;;  %v17880_v18 = vld [vmem:[%s19301_s16 + $0x248] sm:$0xff]   ;;  %v22224_v0 = vrot.slane %v22217_v36, %v23012_v15 }
 0xd4e   : > { %v13691_v50 = vpack.c.bf16 %v13659_v60, %v13643_v12  ;;  %v22229_v45 = vrot.slane %v22217_v36, %v12477_v20  ;;  %v22234_v26 = vrot.slane %v22217_v36, %v23013_v31  ;;  %v22238_v19 = vrot.slane %v22217_v36, %v23014_v38  ;;  %v17882_v15 = vld [vmem:[%s19301_s16 + $0x208] sm:$0xff]   ;;  %v17886_v60 = vld [vmem:[%s19301_s16 + $0x200] sm:$0xff]  }
 0xd4f   : > { %v13692_v46 = vpack.c.bf16 %v13660_v5, %v13644_v27  ;;  %v13694_v54 = vpack.c.bf16 %v13662_v16, %v13646_v22  ;;  %16715 = vmatpush3.bf16.msra.mxu1 %v17862_v57  ;;  %16743 = vmatpush3.bf16.msra.mxu0 %v17863_v13  ;;  %v17883_v20 = vld [vmem:[%s19301_s16 + $0x288] sm:$0xff]   ;;  %v17887_v5 = vld [vmem:[%s19301_s16 + $0x280] sm:$0xff]   ;;  %v17888_v16 = vld [vmem:[%s19301_s16 + $0x378] sm:$0xff]  }
 0xd50   : > { %16716 = vmatprep.subr.bf16.mxu1 %v17864_v37  ;;  %16744 = vmatprep.subr.bf16.mxu0 %v17865_v28 }
 0xd51   : > { %14872 = vmatprep.mubr.bf16.mxu1 %v13692_v46  ;;  %14921 = vmatprep.mubr.bf16.mxu0 %v13694_v54 }
 0xd52   : > { %14873 = vmatmul.mubr.bf16.gmra.mxu1 %v13691_v50  ;;  %14922 = vmatmul.mubr.bf16.gmra.mxu0 %v13693_v24 }
 0xd53   : > { %16717 = vmatpush3.bf16.msra.mxu1 %v17866_v30  ;;  %16745 = vmatpush3.bf16.msra.mxu0 %v17867_v29 }
 0xd54   : > { %16718 = vmatprep.subr.bf16.mxu1 %v17868_v14  ;;  %16746 = vmatprep.subr.bf16.mxu0 %v17869_v42  ;;  %v22256_v14 = vld [vmem:[%s19301_s16 + $0x3f8] sm:$0xff]  }
 0xd57   : > { %16719 = vmatpush3.bf16.msra.mxu1 %v17870_v2  ;;  %16747 = vmatpush3.bf16.msra.mxu0 %v17871_v61  ;;  %v17890_v2 = vld [vmem:[%s19301_s16 + $0x338] sm:$0xff]  }
 0xd58   : > { %16720 = vmatprep.subr.bf16.mxu1 %v17872_v52  ;;  %16748 = vmatprep.subr.bf16.mxu0 %v17873_v58 }
 0xd5b   : > { %16721 = vmatpush3.bf16.msra.mxu1 %v17874_v33  ;;  %16749 = vmatpush3.bf16.msra.mxu0 %v17875_v32 }
 0xd5c   : > { %v13429_v3 = vpop.f32.mrf.mxu1  ;;  %v13482_v7 = vpop.f32.mrf.mxu0  ;;  %16722 = vmatprep.subr.bf16.mxu1 %v17876_v55  ;;  %16750 = vmatprep.subr.bf16.mxu0 %v17877_v4  ;;  %v22261_v55 = vld [vmem:[%s19301_s16 + $0x3b8] sm:$0xff]   ;;  %v17892_v4 = vld [vmem:[%s19301_s16 + $0x370] sm:$0xff]  }
 0xd5d   : > { %v13430_v48 = vadd.f32 %v13429_v3, %v22234_v26  ;;  %v13483_v21 = vadd.f32 %v13482_v7, %v22238_v19 }
 0xd5e   : > { %v13431_v59 = vpop.f32.mrf.mxu1  ;;  %v13484_v6 = vpop.f32.mrf.mxu0 }
 0xd5f   : > { %16723 = vmatpush3.bf16.msra.mxu1 %v17878_v51  ;;  %16751 = vmatpush3.bf16.msra.mxu0 %v17879_v43  ;;  %v13432_v63 = vadd.f32 %v13431_v59, %v22224_v0  ;;  %v13485_v31 = vadd.f32 %v13484_v6, %v22229_v45  ;;  %v13615_v54 = vmax.f32 %v13430_v48, 0.0  ;;  %v13617_v30 = vmax.f32 %v13483_v21, 0.0  ;;  %v22268_v43 = vld [vmem:[%s19301_s16 + $0x3f0] sm:$0xff]  }
 0xd60   : > { %v13433_v8 = vpop.f32.mrf.mxu1  ;;  %v13486_v9 = vpop.f32.mrf.mxu0  ;;  %16724 = vmatprep.subr.bf16.mxu1 %v17880_v18  ;;  %16752 = vmatprep.subr.bf16.mxu0 %v17881_v41 }
 0xd61   : > { %v13434_v34 = vadd.f32 %v13433_v8, %v22234_v26  ;;  %v13487_v38 = vadd.f32 %v13486_v9, %v22238_v19  ;;  %v13616_v12 = vmax.f32 %v13432_v63, 0.0  ;;  %v13618_v28 = vmax.f32 %v13485_v31, 0.0  ;;  %v17894_v9 = vld [vmem:[%s19301_s16 + $0x330] sm:$0xff]   ;;  %v17896_v63 = vld [vmem:[%s19301_s16 + $0x368] sm:$0xff]  }
 0xd62   : > { %v13435_v17 = vpop.f32.mrf.mxu1  ;;  %v13488_v25 = vpop.f32.mrf.mxu0 }
 0xd63   : > { %v13436_v57 = vadd.f32 %v13435_v17, %v22224_v0  ;;  %v13489_v27 = vadd.f32 %v13488_v25, %v22229_v45  ;;  %16725 = vmatpush3.bf16.msra.mxu1 %v17882_v15  ;;  %v13631_v13 = vmax.f32 %v13434_v34, 0.0  ;;  %v13633_v37 = vmax.f32 %v13487_v38, 0.0  ;;  %16753 = vmatpush3.bf16.msra.mxu0 %v17883_v20  ;;  %v22283_v38 = vld [vmem:[%s19301_s16 + $0x3e8] sm:$0xff]  }
 0xd64   : > { %v13439_v22 = vpop.f32.mrf.mxu1  ;;  %v13492_v1 = vpop.f32.mrf.mxu0  ;;  %16726 = vmatprep.subr.bf16.mxu1 %v17884_v44  ;;  %16754 = vmatprep.subr.bf16.mxu0 %v17885_v47  ;;  %v17898_v17 = vld [vmem:[%s19301_s16 + $0x328] sm:$0xff]  }
 0xd65   : > { %v13632_v23 = vmax.f32 %v13436_v57, 0.0  ;;  %v13634_v46 = vmax.f32 %v13489_v27, 0.0  ;;  %v13679_v61 = vpack.c.bf16 %v13631_v13, %v13615_v54  ;;  %v13681_v52 = vpack.c.bf16 %v13633_v37, %v13617_v30  ;;  %v22288_v57 = vld [vmem:[%s19301_s16 + $0x3a8] sm:$0xff]   ;;  %v17900_v27 = vld [vmem:[%s19301_s16 + $0x360] sm:$0xff]  }
 0xd66   : > { %v13441_v50 = vpop.f32.mrf.mxu1  ;;  %v13494_v29 = vpop.f32.mrf.mxu0  ;;  %v13440_v18 = vadd.f32 %v13439_v22, %v22234_v26  ;;  %v13493_v6 = vadd.f32 %v13492_v1, %v22238_v19  ;;  %v22292_v13 = vld [vmem:[%s19301_s16 + $0x3e0] sm:$0xff]   ;;  %v17904_v1 = vld [vmem:[%s19301_s16 + $0x358] sm:$0xff]  }
 0xd67   : > { %v13680_v24 = vpack.c.bf16 %v13632_v23, %v13616_v12  ;;  %v13682_v42 = vpack.c.bf16 %v13634_v46, %v13618_v28  ;;  %16727 = vmatpush3.bf16.msra.mxu1 %v17886_v60  ;;  %v13442_v58 = vadd.f32 %v13441_v50, %v22224_v0  ;;  %16755 = vmatpush3.bf16.msra.mxu0 %v17887_v5  ;;  %v17902_v37 = vld [vmem:[%s19301_s16 + $0x320] sm:$0xff]   ;;  %v22303_v5 = vld [vmem:[%s19301_s16 + $0x3d8] sm:$0xff]   ;;  %v17908_v28 = vld [vmem:[%s19301_s16 + $0x350] sm:$0xff]  }
 0xd68   : > { %v13443_v33 = vpop.f32.mrf.mxu1  ;;  %v13496_v32 = vpop.f32.mrf.mxu0  ;;  %16768 = vmatprep.subr.bf16.mxu1 %v17888_v16  ;;  %v13495_v51 = vadd.f32 %v13494_v29, %v22229_v45  ;;  %16796 = vmatprep.subr.bf16.mxu0 %v22256_v14  ;;  %v13649_v47 = vmax.f32 %v13493_v6, 0.0  ;;  %v22298_v22 = vld [vmem:[%s19301_s16 + $0x3a0] sm:$0xff]   ;;  %v17906_v16 = vld [vmem:[%s19301_s16 + $0x318] sm:$0xff]   ;;  %v22313_v23 = vld [vmem:[%s19301_s16 + $0x3d0] sm:$0xff]   ;;  %v22320_v50 = vrot.slane %v22217_v36, %v12485_v56  ;;  %v12514_v56 = vrot.slane %v22217_v36, %v12481_v39 }
 0xd69   : > { %v13444_v3 = vadd.f32 %v13443_v33, %v22234_v26  ;;  %v13497_v7 = vadd.f32 %v13496_v32, %v22238_v19  ;;  %14962 = vmatprep.mubr.bf16.mxu1 %v13680_v24  ;;  %15011 = vmatprep.mubr.bf16.mxu0 %v13682_v42  ;;  %v13648_v20 = vmax.f32 %v13442_v58, 0.0  ;;  %v22278_v26 = vld [vmem:[%s19301_s16 + $0x3b0] sm:$0xff]   ;;  %v22308_v12 = vld [vmem:[%s19301_s16 + $0x398] sm:$0xff]   ;;  %v17912_v24 = vld [vmem:[%s19301_s16 + $0x348] sm:$0xff]   ;;  %v22329_v42 = vrot.slane %v22217_v36, %v12493_v11 }
 0xd6a   : > { %v13445_v41 = vpop.f32.mrf.mxu1  ;;  %v13498_v59 = vpop.f32.mrf.mxu0  ;;  %14963 = vmatmul.mubr.bf16.vlgmr.msra.gmra.mxu1 %v13679_v61  ;;  %15012 = vmatmul.mubr.bf16.vlgmr.msra.gmra.mxu0 %v13681_v52  ;;  %v13650_v31 = vmax.f32 %v13495_v51, 0.0  ;;  %v17910_v46 = vld [vmem:[%s19301_s16 + $0x310] sm:$0xff]   ;;  %v22341_v58 = vrot.slane %v22217_v36, %v12489_v40  ;;  %v17914_v33 = vld [vmem:[%s19301_s16 + $0x308] sm:$0xff]   ;;  %v17916_v39 = vld [vmem:[%s19301_s16 + $0x340] sm:$0xff]  }
 0xd6b   : > { %v13446_v15 = vadd.f32 %v13445_v41, %v22224_v0  ;;  %v13499_v8 = vadd.f32 %v13498_v59, %v22229_v45  ;;  %16769 = vmatpush3.bf16.msra.mxu1 %v17890_v2  ;;  %v13663_v44 = vmax.f32 %v13444_v3, 0.0  ;;  %16797 = vmatpush3.bf16.msra.mxu0 %v22261_v55  ;;  %v13665_v19 = vmax.f32 %v13497_v7, 0.0  ;;  %v22323_v29 = vld [vmem:[%s19301_s16 + $0x390] sm:$0xff]   ;;  %v22333_v2 = vld [vmem:[%s19301_s16 + $0x3c8] sm:$0xff]   ;;  %v22354_v40 = vld [vmem:[%s19301_s16 + $0x3c0] sm:$0xff]  }
 0xd6c   : > { %16770 = vmatprep.subr.bf16.mxu1 %v17892_v4  ;;  %16798 = vmatprep.subr.bf16.mxu0 %v22268_v43  ;;  %v13647_v45 = vmax.f32 %v13440_v18, 0.0  ;;  %v22347_v51 = vld [vmem:[%s19301_s16 + $0x388] sm:$0xff]  }
 0xd6d   : > { %v13664_v0 = vmax.f32 %v13446_v15, 0.0  ;;  %v13666_v34 = vmax.f32 %v13499_v8, 0.0  ;;  %v13697_v60 = vpack.c.bf16 %v13665_v19, %v13649_v47  ;;  %v17918_v8 = vld [vmem:[%s19301_s16 + $0x300] sm:$0xff]  }
 0xd6e   : > { %v13695_v25 = vpack.c.bf16 %v13663_v44, %v13647_v45 }
 0xd6f   : > { %v13696_v48 = vpack.c.bf16 %v13664_v0, %v13648_v20  ;;  %v13698_v21 = vpack.c.bf16 %v13666_v34, %v13650_v31  ;;  %16771 = vmatpush3.bf16.msra.mxu1 %v17894_v9  ;;  %16799 = vmatpush3.bf16.msra.mxu0 %v22278_v26  ;;  %v17919_v31 = vld [vmem:[%s19301_s16 + $0x380] sm:$0xff]   ;;  %s23018_s16 = sld [smem:[#allocation104_spill]] (!%p16316_p8) }
 0xd70   : > { %16772 = vmatprep.subr.bf16.mxu1 %v17896_v63  ;;  %16800 = vmatprep.subr.bf16.mxu0 %v22283_v38 }
 0xd71   : > { %14970 = vmatprep.mubr.bf16.mxu1 %v13696_v48  ;;  %15019 = vmatprep.mubr.bf16.mxu0 %v13698_v21 }
 0xd72   : > { %14971 = vmatmul.mubr.bf16.gmra.mxu1 %v13695_v25  ;;  %15020 = vmatmul.mubr.bf16.gmra.mxu0 %v13697_v60 }
 0xd73   : > { %16773 = vmatpush3.bf16.msra.mxu1 %v17898_v17  ;;  %16801 = vmatpush3.bf16.msra.mxu0 %v22288_v57 }
 0xd74   : > { %16774 = vmatprep.subr.bf16.mxu1 %v17900_v27  ;;  %16802 = vmatprep.subr.bf16.mxu0 %v22292_v13 }
 0xd77   : > { %16775 = vmatpush3.bf16.msra.mxu1 %v17902_v37  ;;  %16803 = vmatpush3.bf16.msra.mxu0 %v22298_v22 }
 0xd78   : > { %16776 = vmatprep.subr.bf16.mxu1 %v17904_v1  ;;  %16804 = vmatprep.subr.bf16.mxu0 %v22303_v5 }
 0xd7b   : > { %16777 = vmatpush3.bf16.msra.mxu1 %v17906_v16  ;;  %16805 = vmatpush3.bf16.msra.mxu0 %v22308_v12 }
 0xd7c   : > { %v13535_v54 = vpop.f32.mrf.mxu1  ;;  %v13588_v30 = vpop.f32.mrf.mxu0  ;;  %16778 = vmatprep.subr.bf16.mxu1 %v17908_v28  ;;  %16806 = vmatprep.subr.bf16.mxu0 %v22313_v23 }
 0xd7d   : > { %v13536_v36 = vadd.f32 %v13535_v54, %v12514_v56  ;;  %v13589_v59 = vadd.f32 %v13588_v30, %v22341_v58 }
 0xd7e   : > { %v13537_v61 = vpop.f32.mrf.mxu1  ;;  %v13590_v52 = vpop.f32.mrf.mxu0 }
 0xd7f   : > { %16779 = vmatpush3.bf16.msra.mxu1 %v17910_v46  ;;  %v13538_v11 = vadd.f32 %v13537_v61, %v22320_v50  ;;  %16807 = vmatpush3.bf16.msra.mxu0 %v22323_v29  ;;  %v13591_v3 = vadd.f32 %v13590_v52, %v22329_v42  ;;  %v13619_v47 = vmax.f32 %v13536_v36, 0.0  ;;  %v13621_v17 = vmax.f32 %v13589_v59, 0.0 }
 0xd80   : > { %v13539_v32 = vpop.f32.mrf.mxu1  ;;  %v13592_v4 = vpop.f32.mrf.mxu0  ;;  %16780 = vmatprep.subr.bf16.mxu1 %v17912_v24  ;;  %16808 = vmatprep.subr.bf16.mxu0 %v22333_v2 }
 0xd81   : > { %v13540_v7 = vadd.f32 %v13539_v32, %v12514_v56  ;;  %v13593_v49 = vadd.f32 %v13592_v4, %v22341_v58  ;;  %v13620_v9 = vmax.f32 %v13538_v11, 0.0  ;;  %v13622_v19 = vmax.f32 %v13591_v3, 0.0 }
 0xd82   : > { %v13541_v18 = vpop.f32.mrf.mxu1  ;;  %v13594_v41 = vpop.f32.mrf.mxu0 }
 0xd83   : > { %v13542_v6 = vadd.f32 %v13541_v18, %v22320_v50  ;;  %v13595_v15 = vadd.f32 %v13594_v41, %v22329_v42  ;;  %16781 = vmatpush3.bf16.msra.mxu1 %v17914_v33  ;;  %v13635_v20 = vmax.f32 %v13540_v7, 0.0  ;;  %16809 = vmatpush3.bf16.msra.mxu0 %v22347_v51  ;;  %v13637_v0 = vmax.f32 %v13593_v49, 0.0 }
 0xd84   : > { %v13545_v44 = vpop.f32.mrf.mxu1  ;;  %v13598_v63 = vpop.f32.mrf.mxu0  ;;  %16782 = vmatprep.subr.bf16.mxu1 %v17916_v39  ;;  %16810 = vmatprep.subr.bf16.mxu0 %v22354_v40 }
 0xd85   : > { %v13636_v34 = vmax.f32 %v13542_v6, 0.0  ;;  %v13638_v45 = vmax.f32 %v13595_v15, 0.0  ;;  %v13683_v60 = vpack.c.bf16 %v13635_v20, %v13619_v47  ;;  %v13685_v16 = vpack.c.bf16 %v13637_v0, %v13621_v17 }
 0xd86   : > { %v13547_v48 = vpop.f32.mrf.mxu1  ;;  %v13600_v21 = vpop.f32.mrf.mxu0  ;;  %v13546_v54 = vadd.f32 %v13545_v44, %v12514_v56 }
 0xd87   : > { %v13684_v25 = vpack.c.bf16 %v13636_v34, %v13620_v9  ;;  %v13686_v27 = vpack.c.bf16 %v13638_v45, %v13622_v19  ;;  %16783 = vmatpush3.bf16.msra.mxu1 %v17918_v8  ;;  %16811 = vmatpush3.bf16.msra.mxu0 %v17919_v31  ;;  %v13548_v28 = vadd.f32 %v13547_v48, %v22320_v50 }
 0xd88   : > { %v13549_v37 = vpop.f32.mrf.mxu1  ;;  %v13602_v1 = vpop.f32.mrf.mxu0  ;;  %17562 = vmatprep.subr.bf16.mxu1 %v22256_v14  ;;  %v13601_v61 = vadd.f32 %v13600_v21, %v22329_v42  ;;  %v13651_v39 = vmax.f32 %v13546_v54, 0.0 }
 0xd89   : > { %v13550_v46 = vadd.f32 %v13549_v37, %v12514_v56  ;;  %15060 = vmatprep.mubr.bf16.mxu1 %v13684_v25  ;;  %15109 = vmatprep.mubr.bf16.mxu0 %v13686_v27  ;;  %v13652_v11 = vmax.f32 %v13548_v28, 0.0 }
 0xd8a   : > { %v13551_v30 = vpop.f32.mrf.mxu1  ;;  %v13604_v24 = vpop.f32.mrf.mxu0  ;;  %15061 = vmatmul.mubr.bf16.vlgmr.msra.gmra.mxu1 %v13683_v60  ;;  %15110 = vmatmul.mubr.bf16.vlgmr.msra.gmra.mxu0 %v13685_v16  ;;  %v13654_v56 = vmax.f32 %v13601_v61, 0.0 }
 0xd8b   : > { %v13552_v52 = vadd.f32 %v13551_v30, %v22320_v50  ;;  %v13605_v33 = vadd.f32 %v13604_v24, %v22329_v42  ;;  %17570 = vmatpush3.bf16.msra.mxu1 %v22261_v55  ;;  %v13667_v14 = vmax.f32 %v13550_v46, 0.0  ;;  %v13603_v55 = vadd.f32 %v13602_v1, %v22341_v58  ;;  %v16185_v30 = vld [vmem:[%s781_s17] ss:$0 sm:$0xff] }
 0xd8c   : > { %17563 = vmatprep.subr.bf16.mxu1 %v22268_v43  ;;  %v13599_v43 = vadd.f32 %v13598_v63, %v22341_v58 }
 0xd8d   : > { %v13668_v32 = vmax.f32 %v13552_v52, 0.0  ;;  %v13670_v4 = vmax.f32 %v13605_v33, 0.0  ;;  %v13699_v7 = vpack.c.bf16 %v13667_v14, %v13651_v39 }
 0xd8f   : > { %v13700_v3 = vpack.c.bf16 %v13668_v32, %v13652_v11  ;;  %17571 = vmatpush3.bf16.msra.mxu1 %v22278_v26  ;;  %v13702_v50 = vpack.c.bf16 %v13670_v4, %v13654_v56  ;;  %v13669_v26 = vmax.f32 %v13603_v55, 0.0 }
 0xd90   : > { %17564 = vmatprep.subr.bf16.mxu1 %v22283_v38  ;;  %v13653_v38 = vmax.f32 %v13599_v43, 0.0 }
 0xd91   : > { %15068 = vmatprep.mubr.bf16.mxu1 %v13700_v3 }
 0xd92   : > { %15069 = vmatmul.mubr.bf16.gmra.mxu1 %v13699_v7 }
 0xd93   : > { %17572 = vmatpush3.bf16.msra.mxu1 %v22288_v57  ;;  %15117 = vmatprep.mubr.bf16.mxu1 %v13702_v50  ;;  %v13701_v57 = vpack.c.bf16 %v13669_v26, %v13653_v38 }
 0xd94   : > { %17565 = vmatprep.subr.bf16.mxu1 %v22292_v13 }
 0xd97   : > { %17573 = vmatpush3.bf16.msra.mxu1 %v22298_v22 }
 0xd98   : > { %17566 = vmatprep.subr.bf16.mxu1 %v22303_v5 }
 0xd9b   : > { %17574 = vmatpush3.bf16.msra.mxu1 %v22308_v12 }
 0xd9c   : > { %17567 = vmatprep.subr.bf16.mxu1 %v22313_v23 }
 0xd9f   : > { %17575 = vmatpush3.bf16.msra.mxu1 %v22323_v29 }
 0xda0   : > { %17568 = vmatprep.subr.bf16.mxu1 %v22333_v2 }
 0xda3   : > { %17576 = vmatpush3.bf16.msra.mxu1 %v22347_v51 }
 0xda4   : > { %17569 = vmatprep.subr.bf16.mxu1 %v22354_v40 }
 0xda7   : > { %17577 = vmatpush3.bf16.msra.mxu1 %v17919_v31 }
 0xdaa   : > { %15118 = vmatmul.mubr.bf16.vlgmr.msra.gmra.mxu1 %v13701_v57 }
 0xdea   : > { %v16616_v13 = vpop.f32.mrf.mxu1  ;;  %v16644_v22 = vpop.f32.mrf.mxu0 }
 0xdec   : > { %v16617_v5 = vpop.f32.mrf.mxu1  ;;  %v16645_v12 = vpop.f32.mrf.mxu0 }
 0xded   : > { %v16618_v46 = vadd.f32 %v16617_v5, %v16616_v13  ;;  %v16646_v14 = vadd.f32 %v16645_v12, %v16644_v22 }
 0xdee   : > { %v16619_v23 = vpop.f32.mrf.mxu1  ;;  %v16647_v29 = vpop.f32.mrf.mxu0 }
 0xdef   : > { %v14769_v61 = vadd.f32 %v16618_v46, %v16185_v30 }
 0xdf0   : > { %v16620_v42 = vpop.f32.mrf.mxu1  ;;  %v16648_v49 = vpop.f32.mrf.mxu0 }
 0xdf1   : > { %v16621_v52 = vadd.f32 %v16620_v42, %v16619_v23  ;;  %v14818_v4 = vadd.f32 %v16646_v14, %v14769_v61  ;;  %v16649_v3 = vadd.f32 %v16648_v49, %v16647_v29 }
 0xdf2   : > { %v22384_v2 = vpop.f32.mrf.mxu1  ;;  %v22386_v58 = vpop.f32.mrf.mxu0 }
 0xdf3   : > { %v14772_v39 = vadd.f32 %v16621_v52, %v16185_v30 }
 0xdf4   : > { %v22388_v51 = vpop.f32.mrf.mxu1  ;;  %v22390_v36 = vpop.f32.mrf.mxu0 }
 0xdf5   : > { %v14821_v43 = vadd.f32 %v16649_v3, %v14772_v39 }
 0xdf6   : > { %v22392_v40 = vpop.f32.mrf.mxu1  ;;  %v22394_v18 = vpop.f32.mrf.mxu0 }
 0xdf8   : > { %v22396_v41 = vpop.f32.mrf.mxu1  ;;  %v22398_v59 = vpop.f32.mrf.mxu0 }
 0xe0a   : > { %v16672_v6 = vpop.f32.mrf.mxu1  ;;  %v16700_v15 = vpop.f32.mrf.mxu0 }
 0xe0c   : > { %v16673_v8 = vpop.f32.mrf.mxu1  ;;  %v16701_v9 = vpop.f32.mrf.mxu0 }
 0xe0d   : > { %v16674_v11 = vadd.f32 %v16673_v8, %v16672_v6  ;;  %v16702_v26 = vadd.f32 %v16701_v9, %v16700_v15 }
 0xe0e   : > { %v16675_v20 = vpop.f32.mrf.mxu1  ;;  %v16703_v44 = vpop.f32.mrf.mxu0 }
 0xe0f   : > { %v14867_v7 = vadd.f32 %v16674_v11, %v14818_v4 }
 0xe10   : > { %v16676_v63 = vpop.f32.mrf.mxu1  ;;  %v16704_v31 = vpop.f32.mrf.mxu0 }
 0xe11   : > { %v16677_v50 = vadd.f32 %v16676_v63, %v16675_v20  ;;  %v14916_v13 = vadd.f32 %v16702_v26, %v14867_v7  ;;  %v16705_v42 = vadd.f32 %v16704_v31, %v16703_v44  ;;  %v16624_v7 = vadd.f32 %v22388_v51, %v22384_v2 }
 0xe12   : > { %v22400_v19 = vpop.f32.mrf.mxu1  ;;  %v22402_v0 = vpop.f32.mrf.mxu0  ;;  %v16652_v26 = vadd.f32 %v22390_v36, %v22386_v58  ;;  %v16655_v2 = vadd.f32 %v22398_v59, %v22394_v18 }
 0xe13   : > { %v14870_v5 = vadd.f32 %v16677_v50, %v14821_v43 }
 0xe14   : > { %v22404_v34 = vpop.f32.mrf.mxu1  ;;  %v22406_v45 = vpop.f32.mrf.mxu0 }
 0xe15   : > { %v14919_v46 = vadd.f32 %v16705_v42, %v14870_v5 }
 0xe16   : > { %v22408_v47 = vpop.f32.mrf.mxu1  ;;  %v22410_v48 = vpop.f32.mrf.mxu0 }
 0xe18   : > { %v22412_v21 = vpop.f32.mrf.mxu1  ;;  %v22414_v17 = vpop.f32.mrf.mxu0 }
 0xe2a   : > { %v16728_v25 = vpop.f32.mrf.mxu1  ;;  %v16756_v27 = vpop.f32.mrf.mxu0 }
 0xe2c   : > { %v16729_v60 = vpop.f32.mrf.mxu1  ;;  %v16757_v37 = vpop.f32.mrf.mxu0 }
 0xe2d   : > { %v16730_v38 = vadd.f32 %v16729_v60, %v16728_v25  ;;  %v16758_v61 = vadd.f32 %v16757_v37, %v16756_v27 }
 0xe2e   : > { %v16731_v1 = vpop.f32.mrf.mxu1  ;;  %v16759_v16 = vpop.f32.mrf.mxu0 }
 0xe2f   : > { %v14965_v22 = vadd.f32 %v16730_v38, %v14916_v13  ;;  %v16680_v38 = vadd.f32 %v22404_v34, %v22400_v19  ;;  %v16711_v19 = vadd.f32 %v22414_v17, %v22410_v48 }
 0xe30   : > { %v16732_v28 = vpop.f32.mrf.mxu1  ;;  %v16760_v54 = vpop.f32.mrf.mxu0 }
 0xe31   : > { %v16733_v12 = vadd.f32 %v16732_v28, %v16731_v1  ;;  %v15014_v49 = vadd.f32 %v16758_v61, %v14965_v22  ;;  %v16761_v9 = vadd.f32 %v16760_v54, %v16759_v16  ;;  %v14777_v16 = vadd.f32 %v16624_v7, %v16185_v30 }
 0xe32   : > { %v22418_v24 = vpop.f32.mrf.mxu1  ;;  %v22420_v33 = vpop.f32.mrf.mxu0  ;;  %v16627_v54 = vadd.f32 %v22396_v41, %v22392_v40  ;;  %v16708_v40 = vadd.f32 %v22406_v45, %v22402_v0 }
 0xe33   : > { %v14968_v20 = vadd.f32 %v16733_v12, %v14919_v46 }
 0xe34   : > { %v16735_v32 = vpop.f32.mrf.mxu1  ;;  %v22422_v56 = vpop.f32.mrf.mxu0  ;;  %v14780_v13 = vadd.f32 %v16627_v54, %v16185_v30 }
 0xe35   : > { %v15017_v39 = vadd.f32 %v16761_v9, %v14968_v20  ;;  %v16736_v41 = vadd.f32 %v16735_v32, %v22418_v24  ;;  %v16764_v59 = vadd.f32 %v22422_v56, %v22420_v33 }
 0xe36   : > { %v16737_v55 = vpop.f32.mrf.mxu1  ;;  %v22424_v57 = vpop.f32.mrf.mxu0  ;;  %v14829_v42 = vadd.f32 %v16655_v2, %v14780_v13 }
 0xe38   : > { %v16738_v23 = vpop.f32.mrf.mxu1  ;;  %v16766_v6 = vpop.f32.mrf.mxu0 }
 0xe39   : > { %v16739_v30 = vadd.f32 %v16738_v23, %v16737_v55  ;;  %v16767_v45 = vadd.f32 %v16766_v6, %v22424_v57 }
 0xe4a   : > { %v16784_v8 = vpop.f32.mrf.mxu1  ;;  %v16812_v52 = vpop.f32.mrf.mxu0 }
 0xe4c   : > { %v16785_v29 = vpop.f32.mrf.mxu1  ;;  %v16813_v14 = vpop.f32.mrf.mxu0 }
 0xe4d   : > { %v16786_v63 = vadd.f32 %v16785_v29, %v16784_v8  ;;  %v16814_v60 = vadd.f32 %v16813_v14, %v16812_v52 }
 0xe4e   : > { %v16787_v15 = vpop.f32.mrf.mxu1  ;;  %v16815_v11 = vpop.f32.mrf.mxu0 }
 0xe4f   : > { %v15063_v25 = vadd.f32 %v16786_v63, %v15014_v49 }
 0xe50   : > { %v16788_v4 = vpop.f32.mrf.mxu1  ;;  %v16816_v1 = vpop.f32.mrf.mxu0 }
 0xe51   : > { %v15112_v44 = vadd.f32 %v16814_v60, %v15063_v25  ;;  %v16789_v31 = vadd.f32 %v16788_v4, %v16787_v15  ;;  %v16817_v3 = vadd.f32 %v16816_v1, %v16815_v11 }
 0xe52   : > { %v16790_v43 = vpop.f32.mrf.mxu1 }
 0xe53   : > { %v15066_v28 = vadd.f32 %v16789_v31, %v15017_v39  ;;  %v15126_v27 = vadd.f32 %v15112_v44, %v21942_v53  ;;  %v14826_v53 = vadd.f32 %v16652_v26, %v14777_v16  ;;  %v16314_v16 = vld [vmem:[%s23015_s23] ss:$0 sm:$0xff] }
 0xe54   : > { %v16791_v5 = vpop.f32.mrf.mxu1 }
 0xe55   : > { %v15115_v37 = vadd.f32 %v16817_v3, %v15066_v28  ;;  %15132 = vadd.xlane.f32.xlu1 %v15126_v27  ;;  %v14875_v51 = vadd.f32 %v16680_v38, %v14826_v53 }
 0xe56   : > { %v16793_v58 = vpop.f32.mrf.mxu1 }
 0xe57   : > { %v15127_v50 = vadd.f32 %v15115_v37, %v21945_v35  ;;  %v16683_v35 = vadd.f32 %v22412_v21, %v22408_v47  ;;  %v14924_v36 = vadd.f32 %v16708_v40, %v14875_v51  ;;  %v16792_v47 = vadd.f32 %v16791_v5, %v16790_v43  ;;  %v16315_v43 = vld [vmem:[%s23016_s12] ss:$0 sm:$0xff] }
 0xe58   : > { %v16794_v12 = vpop.f32.mrf.mxu1 }
 0xe59   : > { %15134 = vadd.xlane.f32.xlu0 %v15127_v50  ;;  %v14878_v22 = vadd.f32 %v16683_v35, %v14829_v42  ;;  %v14973_v34 = vadd.f32 %v16736_v41, %v14924_v36  ;;  %v16795_v32 = vadd.f32 %v16794_v12, %v16793_v58 }
 0xe5b   : > { %v14927_v18 = vadd.f32 %v16711_v19, %v14878_v22  ;;  %v15022_v8 = vadd.f32 %v16764_v59, %v14973_v34 }
 0xe5d   : > { %v14976_v46 = vadd.f32 %v16739_v30, %v14927_v18  ;;  %v15071_v24 = vadd.f32 %v16792_v47, %v15022_v8 }
 0xe5f   : > { %v15025_v29 = vadd.f32 %v16767_v45, %v14976_v46 }
 0xe61   : > { %v15074_v55 = vadd.f32 %v16795_v32, %v15025_v29 }
 0xe6a   : > { %v16818_v21 = vpop.f32.mrf.mxu1 }
 0xe6c   : > { %v16819_v0 = vpop.f32.mrf.mxu1 }
 0xe6d   : > { %v16820_v61 = vadd.f32 %v16819_v0, %v16818_v21 }
 0xe6e   : > { %v16821_v52 = vpop.f32.mrf.mxu1 }
 0xe6f   : > { %v15120_v48 = vadd.f32 %v16820_v61, %v15071_v24 }
 0xe70   : > { %v16822_v17 = vpop.f32.mrf.mxu1 }
 0xe71   : > { %v16823_v23 = vadd.f32 %v16822_v17, %v16821_v52  ;;  %v15128_v49 = vadd.f32 %v15120_v48, %v21965_v10 }
 0xe73   : > { %v15123_v20 = vadd.f32 %v16823_v23, %v15074_v55  ;;  %15136 = vadd.xlane.f32.xlu1 %v15128_v49 }
 0xe75   : > { %v15129_v33 = vadd.f32 %v15123_v20, %v21957_v62 }
 0xe77   : > { %15138 = vadd.xlane.f32.xlu0 %v15129_v33 }
 0xede   : > { %v15133_v56 = vpop.xlane.xlu1 %15132 }
 0xedf   : > { %v15140_v63 = vmul.f32 0.0078125, %v15133_v56 }
 0xee1   : > { %v15144_v14 = vsub.f32 %v15126_v27, %v15140_v63 }
 0xee2   : > { %v15135_v57 = vpop.xlane.xlu0 %15134 }
 0xee3   : > { %v15141_v6 = vmul.f32 0.0078125, %v15135_v57  ;;  %v15148_v15 = vmul.f32 %v15144_v14, %v15144_v14 }
 0xee5   : > { %v15145_v9 = vsub.f32 %v15127_v50, %v15141_v6  ;;  %15152 = vadd.xlane.f32.xlu1 %v15148_v15 }
 0xee7   : > { %v15149_v25 = vmul.f32 %v15145_v9, %v15145_v9 }
 0xee9   : > { %15154 = vadd.xlane.f32.xlu0 %v15149_v25 }
 0xefc   : > { %v15137_v60 = vpop.xlane.xlu1 %15136 }
 0xefd   : > { %v15142_v11 = vmul.f32 0.0078125, %v15137_v60 }
 0xeff   : > { %v15146_v4 = vsub.f32 %v15128_v49, %v15142_v11 }
 0xf00   : > { %v15139_v39 = vpop.xlane.xlu0 %15138 }
 0xf01   : > { %v15143_v10 = vmul.f32 0.0078125, %v15139_v39  ;;  %v15150_v44 = vmul.f32 %v15146_v4, %v15146_v4 }
 0xf03   : > { %v15147_v62 = vsub.f32 %v15129_v33, %v15143_v10  ;;  %15156 = vadd.xlane.f32.xlu1 %v15150_v44 }
 0xf05   : > { %v15151_v31 = vmul.f32 %v15147_v62, %v15147_v62 }
 0xf07   : > { %15158 = vadd.xlane.f32.xlu0 %v15151_v31 }
 0xf6e   : > { %v15153_v1 = vpop.xlane.xlu1 %15152 }
 0xf6f   : > { %v15160_v28 = vmul.f32 0.0078125, %v15153_v1 }
 0xf71   : > { %v15164_v3 = vadd.f32 1e-05, %v15160_v28 }
 0xf72   : > { %v15155_v27 = vpop.xlane.xlu0 %15154 }
 0xf73   : > { %18184 = vrsqrt.f32 %v15164_v3  ;;  %v15161_v37 = vmul.f32 0.0078125, %v15155_v27 }
 0xf75   : > { %v15165_v7 = vadd.f32 1e-05, %v15161_v37 }
 0xf77   : > { %18186 = vrsqrt.f32 %v15165_v7 }
 0xf80   : > { %v18185_v50 = vpop.eup %18184 }
 0xf81   : > { %v15172_v54 = vmul.f32 %v18185_v50, %v15144_v14 }
 0xf83   : > { %v15182_v26 = vmul.f32 %v16314_v16, %v15172_v54 }
 0xf84   : > { %v18187_v38 = vpop.eup %18186 }
 0xf85   : > { %v15192_v53 = vadd.f32 %v16315_v43, %v15182_v26  ;;  %v15173_v13 = vmul.f32 %v18187_v38, %v15145_v9 }
 0xf87   : > { %15196 = vst [vmem:[#allocation2 + $0x10] sm:$0xff] %v15192_v53  ;;  %v15183_v5 = vmul.f32 %v16314_v16, %v15173_v13 }
 0xf89   : > { %v22454_v2 = vadd.f32 %v16315_v43, %v15183_v5 }
 0xf8b   : > { %15197 = vst [vmem:[#allocation2] sm:$0xff] %v22454_v2 }
 0xf8c   : > { %v15157_v51 = vpop.xlane.xlu1 %15156 }
 0xf8d   : > { %v15162_v35 = vmul.f32 0.0078125, %v15157_v51 }
 0xf8f   : > { %v15166_v42 = vadd.f32 1e-05, %v15162_v35 }
 0xf90   : > { %v15159_v40 = vpop.xlane.xlu0 %15158 }
 0xf91   : > { %18188 = vrsqrt.f32 %v15166_v42  ;;  %v15163_v41 = vmul.f32 0.0078125, %v15159_v40 }
 0xf93   : > { %v15167_v58 = vadd.f32 1e-05, %v15163_v41 }
 0xf95   : > { %18190 = vrsqrt.f32 %v15167_v58 }
 0xf9e   : > { %v18189_v36 = vpop.eup %18188 }
 0xf9f   : > { %v15174_v22 = vmul.f32 %v18189_v36, %v15146_v4 }
 0xfa1   : > { %v15184_v19 = vmul.f32 %v16314_v16, %v15174_v22 }
 0xfa2   : > { %v18191_v34 = vpop.eup %18190 }
 0xfa3   : > { %v15194_v30 = vadd.f32 %v16315_v43, %v15184_v19  ;;  %v15175_v12 = vmul.f32 %v18191_v34, %v15147_v62 }
 0xfa5   : > { %15198 = vst [vmem:[#allocation2 + $0x18] sm:$0xff] %v15194_v30  ;;  %v15185_v18 = vmul.f32 %v16314_v16, %v15175_v12  ;;  %15203 = sbr.rel (%p16316_p8) target bundleno = 4311 (0x10d7), region = 144 }
 0xfa7   : > { %v22457_v59 = vadd.f32 %v16315_v43, %v15185_v18 }
 0xfa9   : > { %15199 = vst [vmem:[#allocation2 + $0x8] sm:$0xff] %v22457_v59 }
 0xfaa   : > { %v15219_v47 = vld [vmem:[#allocation22 + $0x78] sm:$0xff]  ;;  %v15218_v21 = vld [vmem:[#allocation22 + $0x70] sm:$0xff]  ;;  %17556 = vmatprep.mubr.f32.mxu0 %v15192_v53  ;;  %17559 = vmatprep.mubr.f32.mxu1 %v15194_v30  ;;  %v15217_v8 = vld [vmem:[#allocation22 + $0x68] sm:$0xff]  ;;  %vm15364_vm11 = vcmask 19472   ;;  %vm15428_vm12 = vcmask 7168   ;;  %vm15437_vm13 = vcmask 15360  }
 0xfab   : > { %17524 = vmatprep.subr.mxu0 %v15219_v47  ;;  %17578 = vmatprep.subr.mxu1 %v15219_v47  ;;  %v15216_v46 = vld [vmem:[#allocation22 + $0x60] sm:$0xff]  ;;  %v15215_v0 = vld [vmem:[#allocation22 + $0x58] sm:$0xff]  ;;  %v15214_v45 = vld [vmem:[#allocation22 + $0x50] sm:$0xff]  ;;  %vm15446_vm14 = vcmask 19456  }
 0xfac   : > { %17525 = vmatpush3.msra.mxu0 %v15219_v47  ;;  %17594 = vmatpush3.msra.mxu1 %v15219_v47  ;;  %v15213_v24 = vld [vmem:[#allocation22 + $0x48] sm:$0xff]  ;;  %v15212_v32 = vld [vmem:[#allocation22 + $0x40] sm:$0xff]  ;;  %v15211_v61 = vld [vmem:[#allocation22 + $0x38] sm:$0xff] }
 0xfad   : > { %17526 = vmatprep.subr.mxu0 %v15218_v21  ;;  %17579 = vmatprep.subr.mxu1 %v15218_v21  ;;  %v15210_v52 = vld [vmem:[#allocation22 + $0x30] sm:$0xff]  ;;  %v15209_v29 = vld [vmem:[#allocation22 + $0x28] sm:$0xff]  ;;  %v15208_v48 = vld [vmem:[#allocation22 + $0x20] sm:$0xff] }
 0xfae   : > { %17527 = vmatpush3.msra.mxu0 %v15218_v21  ;;  %17595 = vmatpush3.msra.mxu1 %v15218_v21  ;;  %v15207_v17 = vld [vmem:[#allocation22 + $0x18] sm:$0xff]  ;;  %v15206_v55 = vld [vmem:[#allocation22 + $0x10] sm:$0xff]  ;;  %v15205_v23 = vld [vmem:[#allocation22 + $0x8] sm:$0xff] }
 0xfaf   : > { %17528 = vmatprep.subr.mxu0 %v15217_v8  ;;  %17580 = vmatprep.subr.mxu1 %v15217_v8  ;;  %v15204_v49 = vld [vmem:[#allocation22] sm:$0xff] }
 0xfb0   : > { %17529 = vmatpush3.msra.mxu0 %v15217_v8  ;;  %17596 = vmatpush3.msra.mxu1 %v15217_v8  ;;  %v16317_v20 = vld [vmem:[#allocation23] ss:$0 sm:$0xff] }
 0xfb1   : > { %17530 = vmatprep.subr.mxu0 %v15216_v46  ;;  %17581 = vmatprep.subr.mxu1 %v15216_v46 }
 0xfb2   : > { %17531 = vmatpush3.msra.mxu0 %v15216_v46  ;;  %17597 = vmatpush3.msra.mxu1 %v15216_v46 }
 0xfb3   : > { %17532 = vmatprep.subr.mxu0 %v15215_v0  ;;  %17582 = vmatprep.subr.mxu1 %v15215_v0 }
 0xfb4   : > { %17533 = vmatpush3.msra.mxu0 %v15215_v0  ;;  %17598 = vmatpush3.msra.mxu1 %v15215_v0 }
 0xfb5   : > { %17534 = vmatprep.subr.mxu0 %v15214_v45  ;;  %17583 = vmatprep.subr.mxu1 %v15214_v45 }
 0xfb6   : > { %17535 = vmatpush3.msra.mxu0 %v15214_v45  ;;  %17599 = vmatpush3.msra.mxu1 %v15214_v45 }
 0xfb7   : > { %17536 = vmatprep.subr.mxu0 %v15213_v24  ;;  %17584 = vmatprep.subr.mxu1 %v15213_v24 }
 0xfb8   : > { %17537 = vmatpush3.msra.mxu0 %v15213_v24  ;;  %17600 = vmatpush3.msra.mxu1 %v15213_v24 }
 0xfb9   : > { %17538 = vmatprep.subr.mxu0 %v15212_v32  ;;  %17585 = vmatprep.subr.mxu1 %v15212_v32 }
 0xfba   : > { %17539 = vmatpush3.msra.mxu0 %v15212_v32  ;;  %17601 = vmatpush3.msra.mxu1 %v15212_v32 }
 0xfbb   : > { %17540 = vmatprep.subr.mxu0 %v15211_v61  ;;  %17586 = vmatprep.subr.mxu1 %v15211_v61 }
 0xfbc   : > { %17541 = vmatpush3.msra.mxu0 %v15211_v61  ;;  %17602 = vmatpush3.msra.mxu1 %v15211_v61 }
 0xfbd   : > { %17542 = vmatprep.subr.mxu0 %v15210_v52  ;;  %17587 = vmatprep.subr.mxu1 %v15210_v52 }
 0xfbe   : > { %17543 = vmatpush3.msra.mxu0 %v15210_v52  ;;  %17603 = vmatpush3.msra.mxu1 %v15210_v52 }
 0xfbf   : > { %17544 = vmatprep.subr.mxu0 %v15209_v29  ;;  %17588 = vmatprep.subr.mxu1 %v15209_v29 }
 0xfc0   : > { %17545 = vmatpush3.msra.mxu0 %v15209_v29  ;;  %17604 = vmatpush3.msra.mxu1 %v15209_v29 }
 0xfc1   : > { %17546 = vmatprep.subr.mxu0 %v15208_v48  ;;  %17589 = vmatprep.subr.mxu1 %v15208_v48 }
 0xfc2   : > { %17547 = vmatpush3.msra.mxu0 %v15208_v48  ;;  %17605 = vmatpush3.msra.mxu1 %v15208_v48 }
 0xfc3   : > { %17548 = vmatprep.subr.mxu0 %v15207_v17  ;;  %17590 = vmatprep.subr.mxu1 %v15207_v17 }
 0xfc4   : > { %17549 = vmatpush3.msra.mxu0 %v15207_v17  ;;  %17606 = vmatpush3.msra.mxu1 %v15207_v17 }
 0xfc5   : > { %17550 = vmatprep.subr.mxu0 %v15206_v55  ;;  %17591 = vmatprep.subr.mxu1 %v15206_v55 }
 0xfc6   : > { %17551 = vmatpush3.msra.mxu0 %v15206_v55  ;;  %17607 = vmatpush3.msra.mxu1 %v15206_v55 }
 0xfc7   : > { %17552 = vmatprep.subr.mxu0 %v15205_v23  ;;  %17592 = vmatprep.subr.mxu1 %v15205_v23 }
 0xfc8   : > { %17553 = vmatpush3.msra.mxu0 %v15205_v23  ;;  %17608 = vmatpush3.msra.mxu1 %v15205_v23 }
 0xfc9   : > { %17554 = vmatprep.subr.mxu0 %v15204_v49  ;;  %17593 = vmatprep.subr.mxu1 %v15204_v49 }
 0xfca   : > { %17555 = vmatpush3.msra.mxu0 %v15204_v49  ;;  %17609 = vmatpush3.msra.mxu1 %v15204_v49 }
 0xfcb   : > { %17557 = vmatmul.mubr.f32.vlgmr.msra.gmra.mxu0 %v22454_v2  ;;  %17560 = vmatmul.mubr.f32.vlgmr.msra.gmra.mxu1 %v22457_v59 }
0x108b   : > { %v17558_v33 = vpop.f32.mrf.mxu0  ;;  %v17561_v56 = vpop.f32.mrf.mxu1 }
0x108c   : > { %v22463_v63 = vadd.f32 %v17558_v33, %v16317_v20  ;;  %v22465_v14 = vadd.f32 %v17561_v56, %v16317_v20 }
0x108d   : > { %v15293_v57 = vpop.f32.mrf.mxu0  ;;  %v15303_v6 = vpop.f32.mrf.mxu1 }
0x108e   : > { %v22469_v15 = vcombine.high %v22463_v63, %v22463_v63  ;;  %v22473_v9 = vcombine.high %v22465_v14, %v22465_v14  ;;  %v22475_v25 = vadd.f32 %v16317_v20, %v15293_v57  ;;  %v22477_v60 = vadd.f32 %v16317_v20, %v15303_v6 }
0x108f   : > { %v15367_v10 = vsel %vm15364_vm11, %v22463_v63, -inf  ;;  %v15373_v44 = vsel %vm15364_vm11, %v22465_v14, -inf  ;;  %v15326_v43 = vsub.f32 0.0, %v22463_v63  ;;  %v15330_v38 = vsub.f32 0.0, %v22465_v14 }
0x1090   : > { %v22481_v11 = vcombine.high %v22475_v25, %v22475_v25  ;;  %v15368_v4 = vsel %vm15364_vm11, %v22469_v15, -inf  ;;  %v15375_v39 = vsel %vm15364_vm11, %v22473_v9, -inf  ;;  %v15365_v62 = vsel %vm15364_vm11, %v22475_v25, -inf }
0x1091   : > { %v22495_v31 = vcombine.high %v22477_v60, %v22477_v60  ;;  %v15376_v1 = vmax.f32 %v15368_v4, %v15375_v39  ;;  %v15369_v3 = vsel %vm15364_vm11, %v22477_v60, -inf  ;;  %v15374_v37 = vmax.f32 %v15367_v10, %v15373_v44 }
0x1092   : > { %v15366_v28 = vsel %vm15364_vm11, %v22481_v11, -inf  ;;  %v15370_v7 = vmax.f32 %v15365_v62, %v15369_v3  ;;  %v15327_v53 = vsub.f32 0.0, %v22469_v15  ;;  %v15336_v5 = vmul.f32 1.442695, %v15326_v43 }
0x1093   : > { %v15371_v27 = vsel %vm15364_vm11, %v22495_v31, -inf  ;;  %v15378_v16 = vmax.f32 %v15374_v37, %v15376_v1  ;;  %v15331_v51 = vsub.f32 0.0, %v22473_v9  ;;  %v15344_v42 = vmul.f32 1.442695, %v15330_v38 }
0x1094   : > { %v15372_v50 = vmax.f32 %v15366_v28, %v15371_v27  ;;  %v15324_v40 = vsub.f32 0.0, %v22475_v25  ;;  %v15338_v41 = vmul.f32 1.442695, %v15327_v53  ;;  %v15325_v58 = vsub.f32 0.0, %v22481_v11 }
0x1095   : > { %18196 = vpow2.f32 %v15336_v5  ;;  %v15328_v36 = vsub.f32 0.0, %v22477_v60  ;;  %v15346_v19 = vmul.f32 1.442695, %v15331_v51  ;;  %v15329_v47 = vsub.f32 0.0, %v22495_v31 }
0x1096   : > { %v15377_v54 = vmax.f32 %v15370_v7, %v15372_v50  ;;  %v15332_v30 = vmul.f32 1.442695, %v15324_v40  ;;  %v15334_v18 = vmul.f32 1.442695, %v15325_v58 }
0x1097   : > { %v15340_v21 = vmul.f32 1.442695, %v15328_v36  ;;  %v15342_v32 = vmul.f32 1.442695, %v15329_v47 }
0x1098   : > { %v15379_v26 = vmax.f32 %v15377_v54, %v15378_v16 }
0x109a   : > { %v15380_v13 = vsub.f32 %v22475_v25, %v15379_v26  ;;  %v15381_v2 = vsub.f32 %v22481_v11, %v15379_v26  ;;  %v15382_v34 = vsub.f32 %v22463_v63, %v15379_v26  ;;  %v15383_v12 = vsub.f32 %v22469_v15, %v15379_v26 }
0x109b   : > { %v15384_v59 = vsub.f32 %v22477_v60, %v15379_v26  ;;  %v15385_v8 = vsub.f32 %v22495_v31, %v15379_v26  ;;  %v15386_v45 = vsub.f32 %v22465_v14, %v15379_v26  ;;  %v15387_v61 = vsub.f32 %v22473_v9, %v15379_v26 }
0x109c   : > { %v15388_v35 = vmul.f32 1.442695, %v15380_v13  ;;  %v15390_v22 = vmul.f32 1.442695, %v15381_v2  ;;  %v15392_v46 = vmul.f32 1.442695, %v15382_v34 }
0x109d   : > { %v15394_v0 = vmul.f32 1.442695, %v15383_v12  ;;  %v15396_v24 = vmul.f32 1.442695, %v15384_v59  ;;  %v15398_v52 = vmul.f32 1.442695, %v15385_v8 }
0x109e   : > { %18198 = vpow2.f32 %v15388_v35  ;;  %v15400_v29 = vmul.f32 1.442695, %v15386_v45  ;;  %v15402_v17 = vmul.f32 1.442695, %v15387_v61 }
0x109f   : > { %18200 = vpow2.f32 %v15344_v42 }
0x10a0   : > { %18202 = vpow2.f32 %v15338_v41 }
0x10a1   : > { %18204 = vpow2.f32 %v15390_v22 }
0x10a2   : > { %18206 = vpow2.f32 %v15346_v19  ;;  %v18197_v48 = vpop.eup %18196 }
0x10a3   : > { %18208 = vpow2.f32 %v15332_v30  ;;  %v15350_v62 = vadd.f32 1.0, %v18197_v48 }
0x10a4   : > { %18210 = vpow2.f32 %v15334_v18 }
0x10a5   : > { %18212 = vpow2.f32 %v15340_v21 }
0x10a6   : > { %18214 = vpow2.f32 %v15392_v46 }
0x10a7   : > { %18216 = vpow2.f32 %v15394_v0 }
0x10a8   : > { %18218 = vpow2.f32 %v15396_v24 }
0x10a9   : > { %18220 = vpow2.f32 %v15342_v32 }
0x10aa   : > { %18222 = vpow2.f32 %v15398_v52 }
0x10ab   : > { %v22519_v55 = vpop.eup %18198  ;;  %18224 = vpow2.f32 %v15400_v29 }
0x10ac   : > { %v18201_v23 = vpop.eup %18200  ;;  %18226 = vpow2.f32 %v15402_v17  ;;  %v15404_v33 = vsel %vm15364_vm11, %v22519_v55, 0.0 }
0x10ad   : > { %v18203_v49 = vpop.eup %18202  ;;  %v15354_v28 = vadd.f32 1.0, %v18201_v23  ;;  %18228 = vrcp.f32 %v15350_v62 }
0x10ae   : > { %v22521_v20 = vpop.eup %18204  ;;  %v15351_v37 = vadd.f32 1.0, %v18203_v49 }
0x10af   : > { %v18207_v56 = vpop.eup %18206  ;;  %v15405_v57 = vsel %vm15364_vm11, %v22521_v20, 0.0  ;;  %18230 = vrcp.f32 %v15354_v28 }
0x10b0   : > { %v18209_v6 = vpop.eup %18208  ;;  %v15406_v39 = vadd.f32 %v15405_v57, %v15404_v33  ;;  %v15355_v16 = vadd.f32 1.0, %v18207_v56  ;;  %18232 = vrcp.f32 %v15351_v37 }
0x10b1   : > { %v18211_v4 = vpop.eup %18210  ;;  %v15348_v26 = vadd.f32 1.0, %v18209_v6 }
0x10b2   : > { %v18213_v10 = vpop.eup %18212  ;;  %v15349_v53 = vadd.f32 1.0, %v18211_v4  ;;  %18234 = vrcp.f32 %v15355_v16 }
0x10b3   : > { %v18215_v44 = vpop.eup %18214  ;;  %v15352_v2 = vadd.f32 1.0, %v18213_v10  ;;  %18236 = vrcp.f32 %v15348_v26 }
0x10b4   : > { %v18217_v1 = vpop.eup %18216  ;;  %v15407_v3 = vsel %vm15364_vm11, %v18215_v44, 0.0  ;;  %18238 = vrcp.f32 %v15349_v53 }
0x10b5   : > { %v18219_v27 = vpop.eup %18218  ;;  %v15408_v7 = vadd.f32 %v15407_v3, %v15406_v39  ;;  %v15409_v54 = vsel %vm15364_vm11, %v18217_v1, 0.0  ;;  %18240 = vrcp.f32 %v15352_v2 }
0x10b6   : > { %v18221_v50 = vpop.eup %18220  ;;  %v15411_v13 = vsel %vm15364_vm11, %v18219_v27, 0.0 }
0x10b7   : > { %v18223_v43 = vpop.eup %18222  ;;  %v15410_v38 = vadd.f32 %v15409_v54, %v15408_v7  ;;  %v15353_v35 = vadd.f32 1.0, %v18221_v50 }
0x10b8   : > { %v18225_v5 = vpop.eup %18224  ;;  %v15413_v42 = vsel %vm15364_vm11, %v18223_v43, 0.0 }
0x10b9   : > { %v15412_v51 = vadd.f32 %v15411_v13, %v15410_v38  ;;  %v18227_v40 = vpop.eup %18226  ;;  %v15415_v58 = vsel %vm15364_vm11, %v18225_v5, 0.0  ;;  %18242 = vrcp.f32 %v15353_v35 }
0x10ba   : > { %v15417_v22 = vsel %vm15364_vm11, %v18227_v40, 0.0  ;;  %v18229_v34 = vpop.eup %18228 }
0x10bb   : > { %v15414_v41 = vadd.f32 %v15413_v42, %v15412_v51  ;;  %v15431_v46 = vsel %vm15428_vm12, %v18229_v34, %v22463_v63 }
0x10bc   : > { %v18231_v30 = vpop.eup %18230 }
0x10bd   : > { %v15416_v36 = vadd.f32 %v15415_v58, %v15414_v41  ;;  %v18233_v12 = vpop.eup %18232  ;;  %v15435_v45 = vsel %vm15428_vm12, %v18231_v30, %v22465_v14 }
0x10be   : > { %v15432_v0 = vsel %vm15428_vm12, %v18233_v12, %v22469_v15 }
0x10bf   : > { %v15418_v19 = vadd.f32 %v15417_v22, %v15416_v36  ;;  %v18235_v18 = vpop.eup %18234 }
0x10c0   : > { %v18237_v59 = vpop.eup %18236  ;;  %v15436_v24 = vsel %vm15428_vm12, %v18235_v18, %v22473_v9 }
0x10c1   : > { %18244 = vrcp.f32 %v15418_v19  ;;  %v18239_v47 = vpop.eup %18238  ;;  %v15429_v61 = vsel %vm15428_vm12, %v18237_v59, %v22475_v25 }
0x10c2   : > { %v18241_v21 = vpop.eup %18240  ;;  %v15430_v52 = vsel %vm15428_vm12, %v18239_v47, %v22481_v11 }
0x10c3   : > { %v15433_v29 = vsel %vm15428_vm12, %v18241_v21, %v22477_v60 }
0x10c6   : > { %v18243_v8 = vpop.eup %18242 }
0x10c7   : > { %v15434_v48 = vsel %vm15428_vm12, %v18243_v8, %v22495_v31 }
0x10ce   : > { %v18245_v32 = vpop.eup %18244 }
0x10cf   : > { %v15420_v17 = vmul.f32 %v18245_v32, %v22519_v55  ;;  %v15421_v23 = vmul.f32 %v18245_v32, %v22521_v20  ;;  %v15422_v63 = vmul.f32 %v18245_v32, %v18215_v44  ;;  %v15423_v49 = vmul.f32 %v18245_v32, %v18217_v1 }
0x10d0   : > { %v15424_v15 = vmul.f32 %v18245_v32, %v18219_v27  ;;  %v15425_v33 = vmul.f32 %v18245_v32, %v18223_v43  ;;  %v15426_v14 = vmul.f32 %v18245_v32, %v18225_v5  ;;  %v15427_v56 = vmul.f32 %v18245_v32, %v18227_v40 }
0x10d1   : > { %v15438_v9 = vsel %vm15437_vm13, %v15429_v61, %v15420_v17  ;;  %v15439_v25 = vsel %vm15437_vm13, %v15430_v52, %v15421_v23  ;;  %v15440_v11 = vsel %vm15437_vm13, %v15431_v46, %v15422_v63  ;;  %v15441_v60 = vsel %vm15437_vm13, %v15432_v0, %v15423_v49 }
0x10d2   : > { %v15442_v31 = vsel %vm15437_vm13, %v15433_v29, %v15424_v15  ;;  %v15443_v55 = vsel %vm15437_vm13, %v15434_v48, %v15425_v33  ;;  %v15444_v20 = vsel %vm15437_vm13, %v15435_v45, %v15426_v14  ;;  %v15445_v57 = vsel %vm15437_vm13, %v15436_v24, %v15427_v56  ;;  %15447 = vst.msk [vmem:[%s23018_s16] sm:$0xf] %vm15446_vm14, %v15438_v9 }
0x10d3   : > { %15448 = vst.msk [vmem:[%s23018_s16 + $0x4] sm:$0xf] %vm15446_vm14, %v15439_v25  ;;  %15449 = vst.msk [vmem:[%s23018_s16 + $0x8] sm:$0xf] %vm15446_vm14, %v15440_v11 }
0x10d4   : > { %15450 = vst.msk [vmem:[%s23018_s16 + $0xc] sm:$0xf] %vm15446_vm14, %v15441_v60  ;;  %15451 = vst.msk [vmem:[%s23018_s16 + $0x10] sm:$0xf] %vm15446_vm14, %v15442_v31 }
0x10d5   : > { %15452 = vst.msk [vmem:[%s23018_s16 + $0x14] sm:$0xf] %vm15446_vm14, %v15443_v55  ;;  %15453 = vst.msk [vmem:[%s23018_s16 + $0x18] sm:$0xf] %vm15446_vm14, %v15444_v20 }
0x10d6   : > { %15454 = vst.msk [vmem:[%s23018_s16 + $0x1c] sm:$0xf] %vm15446_vm14, %v15445_v57 }
0x10d7 PF: > { %s23019_s21 = sld [smem:[#allocation37_spill]] }
0x10d8   : > { %s23020_s18 = sld [smem:[#allocation34_spill]] }
0x10d9   : > { %s23021_s19 = sld [smem:[#allocation35_spill]] }
0x10da   : > { %s23022_s20 = sld [smem:[#allocation38_spill]] }
0x10dd   : > { %p44_p10 = scmp.ge.s32.totalorder %s23019_s21, 5  }
0x10df   :  { %46 = sbr.rel (!%p44_p10) target bundleno = 26 (0x1a), region = 265 }
0x10e4   :  { %15466 = vsyncpa [#allocation4], 1 }
0x10e5   :  { %15468 = vsyncpa [#allocation4 + $0x1], 1 }
0x10e6   :  { %15469 = vsyncpa [#allocation6], 1 }
0x10e7   :  { %15471 = vsyncpa [#allocation6 + $0x1], 1 }
0x10e8   :  { %15472 = vsyncpa [#allocation9], 1 }
0x10e9   :  { %15474 = vsyncpa [#allocation9 + $0x1], 1 }
0x10ea   :  { %15475 = vsyncpa [#allocation12], 1 }
0x10eb   :  { %15477 = vsyncpa [#allocation12 + $0x1], 1 }
0x10ec   :  { %15478 = vsyncpa [#allocation15], 1 }
0x10ed   :  { %15480 = vsyncpa [#allocation15 + $0x1], 1 }
0x10ee   :  { %15481 = vsyncpa [#allocation18], 1 }
0x10ef   :  { %15483 = vsyncpa [#allocation18 + $0x1], 1 }
0x10f0   :  { %15484 = vsyncpa [#allocation21], 1 }
0x10f1   :  { %15486 = vsyncpa [#allocation21 + $0x1], 1 }
0x10f2   :  { %15487 = vsyncpa [#allocation24], 1 }

</bundles_post_ra>
